<compile_context>
chip_gen: v5e
topology: v5e:2x2
jax: 0.10.0
libtpu: 0.0.40
codegen_flags: <defaults>
</compile_context>

<pallas_src>
import jax
import jax.numpy as jnp
import numpy as np
from jax import lax
from jax.experimental import pallas as pl
from jax.experimental.pallas import tpu as pltpu


# ------------------------------- Pallas kernel ------------------------------

def _lenet_kernel(x_ref, m1_ref, b1_ref, s1c_ref, m2_ref, b2_ref, s2c_ref,
                  fw1_ref, fb1_ref, fw2_ref, fb2_ref, fw3_ref, fb3_ref,
                  osel_ref, out_ref,
                  xin_ref, r1_ref, h_ref, r2_ref, p_ref):
    f32 = jnp.float32
    n = x_ref.shape[0]                 # B_BLK * 32 stacked rows
    wlanes = x_ref.shape[1]            # 28

    # Stage the input block into a scratch with a zero tail so every shifted
    # window read below stays in bounds and finite.
    xin_ref[pl.ds(0, n), :] = x_ref[...]
    xin_ref[pl.ds(n, 8), :] = jnp.zeros((8, wlanes), f32)

    # ---------------- conv1 (1->6, 5x5, pad=2) + ReLU --------------------
    # 5 shifted banded matmuls, batched along M = n.
    acc1 = jnp.zeros((n, 256), f32)
    for i in range(5):
        acc1 += jnp.dot(xin_ref[pl.ds(i, n), :], m1_ref[i],
                        preferred_element_type=f32)
    r1_ref[pl.ds(0, n), :] = jnp.maximum(acc1 + b1_ref[...], 0.0)
    r1_ref[pl.ds(n, 8), :] = jnp.zeros((8, 256), f32)

    # ---------------- pool1 (2x2 max) -------------------------------------
    # Row pairs: VPU max of two contiguous windows (pooled values land on even
    # rows).  Column pairs + lane compaction (co*28+x -> co*14+ox): 0/1
    # selector matmuls shared by every image in the block.
    rmax1 = jnp.maximum(r1_ref[pl.ds(0, n), :], r1_ref[pl.ds(1, n), :])
    h_ref[pl.ds(0, n), :] = jnp.maximum(
        jnp.dot(rmax1, s1c_ref[0], preferred_element_type=f32),
        jnp.dot(rmax1, s1c_ref[1], preferred_element_type=f32))
    h_ref[pl.ds(n, 16), :] = jnp.zeros((16, 128), f32)

    # ---------------- conv2 (6->16, 5x5, valid) + ReLU --------------------
    # Pooled rows sit on even rows, so the 5 kernel-row taps are contiguous
    # windows at even offsets; outputs land on even rows again.
    acc2 = jnp.zeros((n, 256), f32)
    for i in range(5):
        acc2 += jnp.dot(h_ref[pl.ds(2 * i, n), :], m2_ref[i],
                        preferred_element_type=f32)
    r2_ref[pl.ds(0, n), :] = jnp.maximum(acc2 + b2_ref[...], 0.0)
    r2_ref[pl.ds(n, 8), :] = jnp.zeros((8, 256), f32)

    # ---------------- pool2 (2x2 max) -------------------------------------
    # conv2 rows live on even rows => the row pairs are window offsets (0, 2);
    # pooled rows land on rows 0,4,8,12,16 of each image's 32-row block.
    rmax2 = jnp.maximum(r2_ref[pl.ds(0, n), :], r2_ref[pl.ds(2, n), :])
    p_ref[pl.ds(0, n), :] = jnp.maximum(
        jnp.dot(rmax2, s2c_ref[0], preferred_element_type=f32),
        jnp.dot(rmax2, s2c_ref[1], preferred_element_type=f32))
    p_ref[pl.ds(n, 16), :] = jnp.zeros((16, 128), f32)

    # ---------------- fc1 + ReLU ------------------------------------------
    # The 16*5*5 flatten is folded into 5 shifted matmuls over the pooled rows
    # (per-image offsets 0,4,8,12,16); valid result sits at row b*32.
    z = jnp.zeros((n, 128), f32)
    for oy in range(5):
        z += jnp.dot(p_ref[pl.ds(4 * oy, n), :], fw1_ref[oy],
                     preferred_element_type=f32)
    z = jnp.maximum(z + fb1_ref[...], 0.0)

    # ---------------- fc2 + ReLU, fc3 (output lane-padded to 128) ----------
    z = jnp.maximum(jnp.dot(z, fw2_ref[...], preferred_element_type=f32)
                    + fb2_ref[...], 0.0)
    logits = jnp.dot(z, fw3_ref[...], preferred_element_type=f32) + fb3_ref[...]

    # Compact the one valid row per image (row b*32) into a lane-dense
    # (B_BLK, 128) tile with a single 0/1 selector matmul + one unmasked store.
    out_ref[...] = jnp.dot(osel_ref[...], logits, preferred_element_type=f32)


# --------------------------------- wrapper ----------------------------------

def lenet_forward(prep, x, b_blk=8):
    batch = x.shape[0]
    nblk = (batch + b_blk - 1) // b_blk
    bp = nblk * b_blk
    rows_blk = b_blk * 32

    # Host-side layout plumbing: stack images along the sublane axis with the
    # conv1 row padding (2 zero rows top/bottom) baked in -> (bp*32, 28).
    xs = x.reshape(batch, 28, 28)
    xs = jnp.pad(xs, ((0, bp - batch), (2, 2), (0, 0)))
    xs = xs.reshape(bp * 32, 28)

    # Per-block row selector that picks each image's single valid FC row.
    osel_np = np.zeros((b_blk, rows_blk), np.float32)
    osel_np[np.arange(b_blk), np.arange(b_blk) * 32] = 1.0
    osel = jnp.asarray(osel_np)

    w_names = ("m1", "b1r", "s1c", "m2", "b2r", "s2c",
               "fw1", "fb1", "fw2", "fb2", "fw3", "fb3")
    w_args = tuple(prep[k] for k in w_names)

    def resident(a):
        nd = a.ndim
        def idx(i):
            return (0,) * nd
        return pl.BlockSpec(a.shape, idx)

    out = pl.pallas_call(
        _lenet_kernel,
        out_shape=jax.ShapeDtypeStruct((bp, 128), jnp.float32),
        grid=(nblk,),
        in_specs=([pl.BlockSpec((rows_blk, 28), lambda i: (i, 0))]
                  + [resident(a) for a in w_args]
                  + [resident(osel)]),
        out_specs=pl.BlockSpec((b_blk, 128), lambda i: (i, 0)),
        scratch_shapes=[
            pltpu.VMEM((rows_blk + 8, 28), jnp.float32),    # staged input
            pltpu.VMEM((rows_blk + 8, 256), jnp.float32),   # conv1 relu out
            pltpu.VMEM((rows_blk + 16, 128), jnp.float32),  # pool1 out
            pltpu.VMEM((rows_blk + 8, 256), jnp.float32),   # conv2 relu out
            pltpu.VMEM((rows_blk + 16, 128), jnp.float32),  # pool2 out
        ],
        compiler_params=pltpu.CompilerParams(
            dimension_semantics=("parallel",)),
    )(xs, *w_args, osel)
    return out[:batch, :10]


# ------------------------- init-time parameter prep -------------------------

def init_params(key):
    """Deterministic synthetic parameters, PyTorch-style uniform(+-1/sqrt(fan_in))."""
    ks = jax.random.split(key, 10)

    def u(k, shape, fan_in):
        bound = 1.0 / float(fan_in) ** 0.5
        return jax.random.uniform(k, shape, jnp.float32, -bound, bound)

    return {
        "conv1_w": u(ks[0], (6, 1, 5, 5), 25), "conv1_b": u(ks[1], (6,), 25),
        "conv2_w": u(ks[2], (16, 6, 5, 5), 150), "conv2_b": u(ks[3], (16,), 150),
        "fc1_w": u(ks[4], (120, 400), 400), "fc1_b": u(ks[5], (120,), 400),
        "fc2_w": u(ks[6], (84, 120), 120), "fc2_b": u(ks[7], (84,), 120),
        "fc3_w": u(ks[8], (10, 84), 84), "fc3_b": u(ks[9], (10,), 84),
    }


def prepare_params(params):
    """One-time construction of the kernel constants: banded conv matrices,
    pooling column-selectors and transposed/permuted FC weights, all padded to
    lane-dense widths (128 / 256)."""
    w1 = np.asarray(params["conv1_w"], np.float32)
    b1 = np.asarray(params["conv1_b"], np.float32)
    w2 = np.asarray(params["conv2_w"], np.float32)
    b2 = np.asarray(params["conv2_b"], np.float32)

    # conv1 shifted-matmul weights: m1[i][u, co*28+x] = w1[co,0,i,j], u = x+j-2.
    m1 = np.zeros((5, 28, 256), np.float32)
    for i in range(5):
        for co in range(6):
            for x in range(28):
                for j in range(5):
                    u = x + j - 2
                    if 0 <= u < 28:
                        m1[i, u, co * 28 + x] = w1[co, 0, i, j]
    b1r = np.zeros((1, 256), np.float32)
    b1r[0, :168] = np.repeat(b1, 28)

    # pool1 column selectors: lane (co*28 + 2*ox + q) -> (co*14 + ox).
    s1c = np.zeros((2, 256, 128), np.float32)
    for q in range(2):
        for c in range(6):
            for ox in range(14):
                s1c[q, c * 28 + 2 * ox + q, c * 14 + ox] = 1.0

    # conv2 shifted-matmul weights on the pooled (ci*14 + u) lane layout:
    # m2[i][ci*14 + x + j, co*10 + x] = w2[co, ci, i, j].
    m2 = np.zeros((5, 128, 256), np.float32)
    for i in range(5):
        for co in range(16):
            for ci in range(6):
                for x in range(10):
                    for j in range(5):
                        m2[i, ci * 14 + x + j, co * 10 + x] = w2[co, ci, i, j]
    b2r = np.zeros((1, 256), np.float32)
    b2r[0, :160] = np.repeat(b2, 10)

    # pool2 column selectors: lane (co*10 + 2*ox + q) -> (co*5 + ox).
    s2c = np.zeros((2, 256, 128), np.float32)
    for q in range(2):
        for c in range(16):
            for ox in range(5):
                s2c[q, c * 10 + 2 * ox + q, c * 5 + ox] = 1.0

    # FC weights in (K, N) layout; fc1 columns permuted from PyTorch's NCHW
    # flatten order (co, oy, ox) to the kernel order (oy, co, ox); everything
    # padded to 128 lanes / 128 K.
    fw1 = np.asarray(params["fc1_w"], np.float32).T            # (400, 120)
    fw1 = fw1.reshape(16, 5, 5, 120).transpose(1, 0, 2, 3)     # (oy, co, ox, n)
    fw1 = np.pad(fw1.reshape(5, 80, 120), ((0, 0), (0, 48), (0, 8)))          # (5,128,128)
    fb1 = np.pad(np.asarray(params["fc1_b"], np.float32), (0, 8))[None, :]    # (1,128)
    fw2 = np.pad(np.asarray(params["fc2_w"], np.float32).T, ((0, 8), (0, 44)))    # (128,128)
    fb2 = np.pad(np.asarray(params["fc2_b"], np.float32), (0, 44))[None, :]       # (1,128)
    fw3 = np.pad(np.asarray(params["fc3_w"], np.float32).T, ((0, 44), (0, 118)))  # (128,128)
    fb3 = np.pad(np.asarray(params["fc3_b"], np.float32), (0, 118))[None, :]      # (1,128)

    host = dict(m1=m1, b1r=b1r, s1c=s1c, m2=m2, b2r=b2r, s2c=s2c,
                fw1=fw1, fb1=fb1, fw2=fw2, fb2=fb2, fw3=fw3, fb3=fb3)
    return {k: jnp.asarray(v, jnp.float32) for k, v in host.items()}


# --------------------------- pure-JAX/XLA reference --------------------------

def lenet_reference(params, x):
    hi = lax.Precision.HIGHEST
    y = lax.conv(x, params["conv1_w"], (1, 1), "SAME", precision=hi)
    y = jax.nn.relu(y + params["conv1_b"][None, :, None, None])
    y = lax.reduce_window(y, -jnp.inf, lax.max, (1, 1, 2, 2), (1, 1, 2, 2), "VALID")
    y = lax.conv(y, params["conv2_w"], (1, 1), "VALID", precision=hi)
    y = jax.nn.relu(y + params["conv2_b"][None, :, None, None])
    y = lax.reduce_window(y, -jnp.inf, lax.max, (1, 1, 2, 2), (1, 1, 2, 2), "VALID")
    y = y.reshape(y.shape[0], 16 * 5 * 5)
    y = jax.nn.relu(jnp.dot(y, params["fc1_w"].T, precision=hi) + params["fc1_b"])
    y = jax.nn.relu(jnp.dot(y, params["fc2_w"].T, precision=hi) + params["fc2_b"])
    return jnp.dot(y, params["fc3_w"].T, precision=hi) + params["fc3_b"]


# ------------------------------------ main -----------------------------------

if __name__ == "__main__":
    key = jax.random.PRNGKey(0)
    pkey, xkey = jax.random.split(key)
    params = init_params(pkey)
    prep = prepare_params(params)

    # LeNet's `view(-1, 16*5*5)` forces 28x28 MNIST-style inputs.
    x = jax.random.normal(xkey, (2, 1, 28, 28), dtype=jnp.float32)

    fwd = jax.jit(lenet_forward)
    out = jax.block_until_ready(fwd(prep, x))
    assert out.shape == (2, 10), out.shape

    ref = jax.block_until_ready(lenet_reference(params, x))
    np.testing.assert_allclose(np.asarray(out), np.asarray(ref), rtol=2e-2, atol=2e-2)
    print("KERNEL_OK")
</pallas_src>

<mosaic_0001>
module attributes {stable_mosaic.version = 11 : i64} {
  func.func @_lenet_kernel(%arg0: i32, %arg1: memref<256x28xf32, #tpu.memory_space<vmem>>, %arg2: memref<5x28x256xf32, #tpu.memory_space<vmem>>, %arg3: memref<1x256xf32, #tpu.memory_space<vmem>>, %arg4: memref<2x256x128xf32, #tpu.memory_space<vmem>>, %arg5: memref<5x128x256xf32, #tpu.memory_space<vmem>>, %arg6: memref<1x256xf32, #tpu.memory_space<vmem>>, %arg7: memref<2x256x128xf32, #tpu.memory_space<vmem>>, %arg8: memref<5x128x128xf32, #tpu.memory_space<vmem>>, %arg9: memref<1x128xf32, #tpu.memory_space<vmem>>, %arg10: memref<128x128xf32, #tpu.memory_space<vmem>>, %arg11: memref<1x128xf32, #tpu.memory_space<vmem>>, %arg12: memref<128x128xf32, #tpu.memory_space<vmem>>, %arg13: memref<1x128xf32, #tpu.memory_space<vmem>>, %arg14: memref<8x256xf32, #tpu.memory_space<vmem>>, %arg15: memref<8x128xf32, #tpu.memory_space<vmem>>, %arg16: memref<264x28xf32, #tpu.memory_space<vmem>>, %arg17: memref<264x256xf32, #tpu.memory_space<vmem>>, %arg18: memref<272x128xf32, #tpu.memory_space<vmem>>, %arg19: memref<264x256xf32, #tpu.memory_space<vmem>>, %arg20: memref<272x128xf32, #tpu.memory_space<vmem>>) attributes {dimension_semantics = [#tpu.dimension_semantics<parallel>], iteration_bounds = array<i64: 1>, scalar_prefetch = 0 : i64, scratch_operands = 5 : i64, tpu.core_type = #tpu.core_type<tc>, window_params = [{transform_indices = @transform_0, window_bounds = array<i64: 256, 28>}, {pipeline_mode = #tpu.pipeline_mode<synchronous>, transform_indices = @transform_1, window_bounds = array<i64: 5, 28, 256>}, {pipeline_mode = #tpu.pipeline_mode<synchronous>, transform_indices = @transform_2, window_bounds = array<i64: 1, 256>}, {pipeline_mode = #tpu.pipeline_mode<synchronous>, transform_indices = @transform_3, window_bounds = array<i64: 2, 256, 128>}, {pipeline_mode = #tpu.pipeline_mode<synchronous>, transform_indices = @transform_4, window_bounds = array<i64: 5, 128, 256>}, {pipeline_mode = #tpu.pipeline_mode<synchronous>, transform_indices = @transform_5, window_bounds = array<i64: 1, 256>}, {pipeline_mode = #tpu.pipeline_mode<synchronous>, transform_indices = @transform_6, window_bounds = array<i64: 2, 256, 128>}, {pipeline_mode = #tpu.pipeline_mode<synchronous>, transform_indices = @transform_7, window_bounds = array<i64: 5, 128, 128>}, {pipeline_mode = #tpu.pipeline_mode<synchronous>, transform_indices = @transform_8, window_bounds = array<i64: 1, 128>}, {pipeline_mode = #tpu.pipeline_mode<synchronous>, transform_indices = @transform_9, window_bounds = array<i64: 128, 128>}, {pipeline_mode = #tpu.pipeline_mode<synchronous>, transform_indices = @transform_10, window_bounds = array<i64: 1, 128>}, {pipeline_mode = #tpu.pipeline_mode<synchronous>, transform_indices = @transform_11, window_bounds = array<i64: 128, 128>}, {pipeline_mode = #tpu.pipeline_mode<synchronous>, transform_indices = @transform_12, window_bounds = array<i64: 1, 128>}, {pipeline_mode = #tpu.pipeline_mode<synchronous>, transform_indices = @transform_13, window_bounds = array<i64: 8, 256>}, {transform_indices = @transform_14, window_bounds = array<i64: 8, 128>}]} {
    %c0 = arith.constant 0 : index
    %c0_0 = arith.constant 0 : index
    %0 = vector.load %arg1[%c0, %c0_0] : memref<256x28xf32, #tpu.memory_space<vmem>>, vector<256x28xf32>
    %c0_1 = arith.constant 0 : index
    %c0_2 = arith.constant 0 : index
    %1 = vector.load %arg16[%c0_1, %c0_2] : memref<264x28xf32, #tpu.memory_space<vmem>>, vector<256x28xf32>
    tpu.vector_store %arg16[%c0_1, %c0_2], %0 {strides = array<i32>} : memref<264x28xf32, #tpu.memory_space<vmem>>, vector<256x28xf32>,
    %cst = arith.constant 0.000000e+00 : f32
    %2 = vector.broadcast %cst : f32 to vector<8x28xf32>
    %c256 = arith.constant 256 : index
    %c0_3 = arith.constant 0 : index
    %3 = vector.load %arg16[%c256, %c0_3] : memref<264x28xf32, #tpu.memory_space<vmem>>, vector<8x28xf32>
    tpu.vector_store %arg16[%c256, %c0_3], %2 {strides = array<i32>} : memref<264x28xf32, #tpu.memory_space<vmem>>, vector<8x28xf32>,
    %cst_4 = arith.constant 0.000000e+00 : f32
    %4 = vector.broadcast %cst_4 : f32 to vector<256x256xf32>
    %c0_5 = arith.constant 0 : index
    %c0_6 = arith.constant 0 : index
    %5 = vector.load %arg16[%c0_5, %c0_6] : memref<264x28xf32, #tpu.memory_space<vmem>>, vector<256x28xf32>
    %c0_7 = arith.constant 0 : index
    %c0_8 = arith.constant 0 : index
    %c0_9 = arith.constant 0 : index
    %6 = vector.load %arg2[%c0_7, %c0_8, %c0_9] : memref<5x28x256xf32, #tpu.memory_space<vmem>>, vector<1x28x256xf32>
    %7 = vector.shape_cast %6 : vector<1x28x256xf32> to vector<28x256xf32>
    %cst_10 = arith.constant dense<0.000000e+00> : vector<256x256xf32>
    %8 = tpu.matmul %5, %7, %cst_10 {dimension_numbers = #tpu.dot_dimension_numbers<[1], [0], [0], [1], [0, 0, 1, 1], [], []>} : vector<256x28xf32>, vector<28x256xf32>, vector<256x256xf32> -> vector<256x256xf32>
    %9 = arith.addf %4, %8 : vector<256x256xf32>
    %c1 = arith.constant 1 : index
    %c0_11 = arith.constant 0 : index
    %10 = vector.load %arg16[%c1, %c0_11] : memref<264x28xf32, #tpu.memory_space<vmem>>, vector<256x28xf32>
    %c1_12 = arith.constant 1 : index
    %c0_13 = arith.constant 0 : index
    %c0_14 = arith.constant 0 : index
    %11 = vector.load %arg2[%c1_12, %c0_13, %c0_14] : memref<5x28x256xf32, #tpu.memory_space<vmem>>, vector<1x28x256xf32>
    %12 = vector.shape_cast %11 : vector<1x28x256xf32> to vector<28x256xf32>
    %cst_15 = arith.constant dense<0.000000e+00> : vector<256x256xf32>
    %13 = tpu.matmul %10, %12, %cst_15 {dimension_numbers = #tpu.dot_dimension_numbers<[1], [0], [0], [1], [0, 0, 1, 1], [], []>} : vector<256x28xf32>, vector<28x256xf32>, vector<256x256xf32> -> vector<256x256xf32>
    %14 = arith.addf %9, %13 : vector<256x256xf32>
    %c2 = arith.constant 2 : index
    %c0_16 = arith.constant 0 : index
    %15 = vector.load %arg16[%c2, %c0_16] : memref<264x28xf32, #tpu.memory_space<vmem>>, vector<256x28xf32>
    %c2_17 = arith.constant 2 : index
    %c0_18 = arith.constant 0 : index
    %c0_19 = arith.constant 0 : index
    %16 = vector.load %arg2[%c2_17, %c0_18, %c0_19] : memref<5x28x256xf32, #tpu.memory_space<vmem>>, vector<1x28x256xf32>
    %17 = vector.shape_cast %16 : vector<1x28x256xf32> to vector<28x256xf32>
    %cst_20 = arith.constant dense<0.000000e+00> : vector<256x256xf32>
    %18 = tpu.matmul %15, %17, %cst_20 {dimension_numbers = #tpu.dot_dimension_numbers<[1], [0], [0], [1], [0, 0, 1, 1], [], []>} : vector<256x28xf32>, vector<28x256xf32>, vector<256x256xf32> -> vector<256x256xf32>
    %19 = arith.addf %14, %18 : vector<256x256xf32>
    %c3 = arith.constant 3 : index
    %c0_21 = arith.constant 0 : index
    %20 = vector.load %arg16[%c3, %c0_21] : memref<264x28xf32, #tpu.memory_space<vmem>>, vector<256x28xf32>
    %c3_22 = arith.constant 3 : index
    %c0_23 = arith.constant 0 : index
    %c0_24 = arith.constant 0 : index
    %21 = vector.load %arg2[%c3_22, %c0_23, %c0_24] : memref<5x28x256xf32, #tpu.memory_space<vmem>>, vector<1x28x256xf32>
    %22 = vector.shape_cast %21 : vector<1x28x256xf32> to vector<28x256xf32>
    %cst_25 = arith.constant dense<0.000000e+00> : vector<256x256xf32>
    %23 = tpu.matmul %20, %22, %cst_25 {dimension_numbers = #tpu.dot_dimension_numbers<[1], [0], [0], [1], [0, 0, 1, 1], [], []>} : vector<256x28xf32>, vector<28x256xf32>, vector<256x256xf32> -> vector<256x256xf32>
    %24 = arith.addf %19, %23 : vector<256x256xf32>
    %c4 = arith.constant 4 : index
    %c0_26 = arith.constant 0 : index
    %25 = vector.load %arg16[%c4, %c0_26] : memref<264x28xf32, #tpu.memory_space<vmem>>, vector<256x28xf32>
    %c4_27 = arith.constant 4 : index
    %c0_28 = arith.constant 0 : index
    %c0_29 = arith.constant 0 : index
    %26 = vector.load %arg2[%c4_27, %c0_28, %c0_29] : memref<5x28x256xf32, #tpu.memory_space<vmem>>, vector<1x28x256xf32>
    %27 = vector.shape_cast %26 : vector<1x28x256xf32> to vector<28x256xf32>
    %cst_30 = arith.constant dense<0.000000e+00> : vector<256x256xf32>
    %28 = tpu.matmul %25, %27, %cst_30 {dimension_numbers = #tpu.dot_dimension_numbers<[1], [0], [0], [1], [0, 0, 1, 1], [], []>} : vector<256x28xf32>, vector<28x256xf32>, vector<256x256xf32> -> vector<256x256xf32>
    %29 = arith.addf %24, %28 : vector<256x256xf32>
    %c0_31 = arith.constant 0 : index
    %c0_32 = arith.constant 0 : index
    %30 = vector.load %arg3[%c0_31, %c0_32] : memref<1x256xf32, #tpu.memory_space<vmem>>, vector<1x256xf32>
    %31 = vector.broadcast %30 : vector<1x256xf32> to vector<256x256xf32>
    %32 = arith.addf %29, %31 : vector<256x256xf32>
    %cst_33 = arith.constant 0.000000e+00 : f32
    %33 = vector.broadcast %cst_33 : f32 to vector<256x256xf32>
    %34 = arith.maximumf %32, %33 : vector<256x256xf32>
    %c0_34 = arith.constant 0 : index
    %c0_35 = arith.constant 0 : index
    %35 = vector.load %arg17[%c0_34, %c0_35] : memref<264x256xf32, #tpu.memory_space<vmem>>, vector<256x256xf32>
    tpu.vector_store %arg17[%c0_34, %c0_35], %34 {strides = array<i32>} : memref<264x256xf32, #tpu.memory_space<vmem>>, vector<256x256xf32>,
    %cst_36 = arith.constant 0.000000e+00 : f32
    %36 = vector.broadcast %cst_36 : f32 to vector<8x256xf32>
    %c256_37 = arith.constant 256 : index
    %c0_38 = arith.constant 0 : index
    %37 = vector.load %arg17[%c256_37, %c0_38] : memref<264x256xf32, #tpu.memory_space<vmem>>, vector<8x256xf32>
    tpu.vector_store %arg17[%c256_37, %c0_38], %36 {strides = array<i32>} : memref<264x256xf32, #tpu.memory_space<vmem>>, vector<8x256xf32>,
    %c0_39 = arith.constant 0 : index
    %c0_40 = arith.constant 0 : index
    %38 = vector.load %arg17[%c0_39, %c0_40] : memref<264x256xf32, #tpu.memory_space<vmem>>, vector<256x256xf32>
    %c1_41 = arith.constant 1 : index
    %c0_42 = arith.constant 0 : index
    %39 = vector.load %arg17[%c1_41, %c0_42] : memref<264x256xf32, #tpu.memory_space<vmem>>, vector<256x256xf32>
    %40 = arith.maximumf %38, %39 : vector<256x256xf32>
    %c0_43 = arith.constant 0 : index
    %c0_44 = arith.constant 0 : index
    %c0_45 = arith.constant 0 : index
    %41 = vector.load %arg4[%c0_43, %c0_44, %c0_45] : memref<2x256x128xf32, #tpu.memory_space<vmem>>, vector<1x256x128xf32>
    %42 = vector.shape_cast %41 : vector<1x256x128xf32> to vector<256x128xf32>
    %cst_46 = arith.constant dense<0.000000e+00> : vector<256x128xf32>
    %43 = tpu.matmul %40, %42, %cst_46 {dimension_numbers = #tpu.dot_dimension_numbers<[1], [0], [0], [1], [0, 0, 1, 1], [], []>} : vector<256x256xf32>, vector<256x128xf32>, vector<256x128xf32> -> vector<256x128xf32>
    %c1_47 = arith.constant 1 : index
    %c0_48 = arith.constant 0 : index
    %c0_49 = arith.constant 0 : index
    %44 = vector.load %arg4[%c1_47, %c0_48, %c0_49] : memref<2x256x128xf32, #tpu.memory_space<vmem>>, vector<1x256x128xf32>
    %45 = vector.shape_cast %44 : vector<1x256x128xf32> to vector<256x128xf32>
    %cst_50 = arith.constant dense<0.000000e+00> : vector<256x128xf32>
    %46 = tpu.matmul %40, %45, %cst_50 {dimension_numbers = #tpu.dot_dimension_numbers<[1], [0], [0], [1], [0, 0, 1, 1], [], []>} : vector<256x256xf32>, vector<256x128xf32>, vector<256x128xf32> -> vector<256x128xf32>
    %47 = arith.maximumf %43, %46 : vector<256x128xf32>
    %c0_51 = arith.constant 0 : index
    %c0_52 = arith.constant 0 : index
    %48 = vector.load %arg18[%c0_51, %c0_52] : memref<272x128xf32, #tpu.memory_space<vmem>>, vector<256x128xf32>
    tpu.vector_store %arg18[%c0_51, %c0_52], %47 {strides = array<i32>} : memref<272x128xf32, #tpu.memory_space<vmem>>, vector<256x128xf32>,
    %cst_53 = arith.constant 0.000000e+00 : f32
    %49 = vector.broadcast %cst_53 : f32 to vector<16x128xf32>
    %c256_54 = arith.constant 256 : index
    %c0_55 = arith.constant 0 : index
    %50 = vector.load %arg18[%c256_54, %c0_55] : memref<272x128xf32, #tpu.memory_space<vmem>>, vector<16x128xf32>
    tpu.vector_store %arg18[%c256_54, %c0_55], %49 {strides = array<i32>} : memref<272x128xf32, #tpu.memory_space<vmem>>, vector<16x128xf32>,
    %cst_56 = arith.constant 0.000000e+00 : f32
    %51 = vector.broadcast %cst_56 : f32 to vector<256x256xf32>
    %c0_57 = arith.constant 0 : index
    %c0_58 = arith.constant 0 : index
    %52 = vector.load %arg18[%c0_57, %c0_58] : memref<272x128xf32, #tpu.memory_space<vmem>>, vector<256x128xf32>
    %c0_59 = arith.constant 0 : index
    %c0_60 = arith.constant 0 : index
    %c0_61 = arith.constant 0 : index
    %53 = vector.load %arg5[%c0_59, %c0_60, %c0_61] : memref<5x128x256xf32, #tpu.memory_space<vmem>>, vector<1x128x256xf32>
    %54 = vector.shape_cast %53 : vector<1x128x256xf32> to vector<128x256xf32>
    %cst_62 = arith.constant dense<0.000000e+00> : vector<256x256xf32>
    %55 = tpu.matmul %52, %54, %cst_62 {dimension_numbers = #tpu.dot_dimension_numbers<[1], [0], [0], [1], [0, 0, 1, 1], [], []>} : vector<256x128xf32>, vector<128x256xf32>, vector<256x256xf32> -> vector<256x256xf32>
    %56 = arith.addf %51, %55 : vector<256x256xf32>
    %c2_63 = arith.constant 2 : index
    %c0_64 = arith.constant 0 : index
    %57 = vector.load %arg18[%c2_63, %c0_64] : memref<272x128xf32, #tpu.memory_space<vmem>>, vector<256x128xf32>
    %c1_65 = arith.constant 1 : index
    %c0_66 = arith.constant 0 : index
    %c0_67 = arith.constant 0 : index
    %58 = vector.load %arg5[%c1_65, %c0_66, %c0_67] : memref<5x128x256xf32, #tpu.memory_space<vmem>>, vector<1x128x256xf32>
    %59 = vector.shape_cast %58 : vector<1x128x256xf32> to vector<128x256xf32>
    %cst_68 = arith.constant dense<0.000000e+00> : vector<256x256xf32>
    %60 = tpu.matmul %57, %59, %cst_68 {dimension_numbers = #tpu.dot_dimension_numbers<[1], [0], [0], [1], [0, 0, 1, 1], [], []>} : vector<256x128xf32>, vector<128x256xf32>, vector<256x256xf32> -> vector<256x256xf32>
    %61 = arith.addf %56, %60 : vector<256x256xf32>
    %c4_69 = arith.constant 4 : index
    %c0_70 = arith.constant 0 : index
    %62 = vector.load %arg18[%c4_69, %c0_70] : memref<272x128xf32, #tpu.memory_space<vmem>>, vector<256x128xf32>
    %c2_71 = arith.constant 2 : index
    %c0_72 = arith.constant 0 : index
    %c0_73 = arith.constant 0 : index
    %63 = vector.load %arg5[%c2_71, %c0_72, %c0_73] : memref<5x128x256xf32, #tpu.memory_space<vmem>>, vector<1x128x256xf32>
    %64 = vector.shape_cast %63 : vector<1x128x256xf32> to vector<128x256xf32>
    %cst_74 = arith.constant dense<0.000000e+00> : vector<256x256xf32>
    %65 = tpu.matmul %62, %64, %cst_74 {dimension_numbers = #tpu.dot_dimension_numbers<[1], [0], [0], [1], [0, 0, 1, 1], [], []>} : vector<256x128xf32>, vector<128x256xf32>, vector<256x256xf32> -> vector<256x256xf32>
    %66 = arith.addf %61, %65 : vector<256x256xf32>
    %c6 = arith.constant 6 : index
    %c0_75 = arith.constant 0 : index
    %67 = vector.load %arg18[%c6, %c0_75] : memref<272x128xf32, #tpu.memory_space<vmem>>, vector<256x128xf32>
    %c3_76 = arith.constant 3 : index
    %c0_77 = arith.constant 0 : index
    %c0_78 = arith.constant 0 : index
    %68 = vector.load %arg5[%c3_76, %c0_77, %c0_78] : memref<5x128x256xf32, #tpu.memory_space<vmem>>, vector<1x128x256xf32>
    %69 = vector.shape_cast %68 : vector<1x128x256xf32> to vector<128x256xf32>
    %cst_79 = arith.constant dense<0.000000e+00> : vector<256x256xf32>
    %70 = tpu.matmul %67, %69, %cst_79 {dimension_numbers = #tpu.dot_dimension_numbers<[1], [0], [0], [1], [0, 0, 1, 1], [], []>} : vector<256x128xf32>, vector<128x256xf32>, vector<256x256xf32> -> vector<256x256xf32>
    %71 = arith.addf %66, %70 : vector<256x256xf32>
    %c8 = arith.constant 8 : index
    %c0_80 = arith.constant 0 : index
    %72 = vector.load %arg18[%c8, %c0_80] : memref<272x128xf32, #tpu.memory_space<vmem>>, vector<256x128xf32>
    %c4_81 = arith.constant 4 : index
    %c0_82 = arith.constant 0 : index
    %c0_83 = arith.constant 0 : index
    %73 = vector.load %arg5[%c4_81, %c0_82, %c0_83] : memref<5x128x256xf32, #tpu.memory_space<vmem>>, vector<1x128x256xf32>
    %74 = vector.shape_cast %73 : vector<1x128x256xf32> to vector<128x256xf32>
    %cst_84 = arith.constant dense<0.000000e+00> : vector<256x256xf32>
    %75 = tpu.matmul %72, %74, %cst_84 {dimension_numbers = #tpu.dot_dimension_numbers<[1], [0], [0], [1], [0, 0, 1, 1], [], []>} : vector<256x128xf32>, vector<128x256xf32>, vector<256x256xf32> -> vector<256x256xf32>
    %76 = arith.addf %71, %75 : vector<256x256xf32>
    %c0_85 = arith.constant 0 : index
    %c0_86 = arith.constant 0 : index
    %77 = vector.load %arg6[%c0_85, %c0_86] : memref<1x256xf32, #tpu.memory_space<vmem>>, vector<1x256xf32>
    %78 = vector.broadcast %77 : vector<1x256xf32> to vector<256x256xf32>
    %79 = arith.addf %76, %78 : vector<256x256xf32>
    %cst_87 = arith.constant 0.000000e+00 : f32
    %80 = vector.broadcast %cst_87 : f32 to vector<256x256xf32>
    %81 = arith.maximumf %79, %80 : vector<256x256xf32>
    %c0_88 = arith.constant 0 : index
    %c0_89 = arith.constant 0 : index
    %82 = vector.load %arg19[%c0_88, %c0_89] : memref<264x256xf32, #tpu.memory_space<vmem>>, vector<256x256xf32>
    tpu.vector_store %arg19[%c0_88, %c0_89], %81 {strides = array<i32>} : memref<264x256xf32, #tpu.memory_space<vmem>>, vector<256x256xf32>,
    %cst_90 = arith.constant 0.000000e+00 : f32
    %83 = vector.broadcast %cst_90 : f32 to vector<8x256xf32>
    %c256_91 = arith.constant 256 : index
    %c0_92 = arith.constant 0 : index
    %84 = vector.load %arg19[%c256_91, %c0_92] : memref<264x256xf32, #tpu.memory_space<vmem>>, vector<8x256xf32>
    tpu.vector_store %arg19[%c256_91, %c0_92], %83 {strides = array<i32>} : memref<264x256xf32, #tpu.memory_space<vmem>>, vector<8x256xf32>,
    %c0_93 = arith.constant 0 : index
    %c0_94 = arith.constant 0 : index
    %85 = vector.load %arg19[%c0_93, %c0_94] : memref<264x256xf32, #tpu.memory_space<vmem>>, vector<256x256xf32>
    %c2_95 = arith.constant 2 : index
    %c0_96 = arith.constant 0 : index
    %86 = vector.load %arg19[%c2_95, %c0_96] : memref<264x256xf32, #tpu.memory_space<vmem>>, vector<256x256xf32>
    %87 = arith.maximumf %85, %86 : vector<256x256xf32>
    %c0_97 = arith.constant 0 : index
    %c0_98 = arith.constant 0 : index
    %c0_99 = arith.constant 0 : index
    %88 = vector.load %arg7[%c0_97, %c0_98, %c0_99] : memref<2x256x128xf32, #tpu.memory_space<vmem>>, vector<1x256x128xf32>
    %89 = vector.shape_cast %88 : vector<1x256x128xf32> to vector<256x128xf32>
    %cst_100 = arith.constant dense<0.000000e+00> : vector<256x128xf32>
    %90 = tpu.matmul %87, %89, %cst_100 {dimension_numbers = #tpu.dot_dimension_numbers<[1], [0], [0], [1], [0, 0, 1, 1], [], []>} : vector<256x256xf32>, vector<256x128xf32>, vector<256x128xf32> -> vector<256x128xf32>
    %c1_101 = arith.constant 1 : index
    %c0_102 = arith.constant 0 : index
    %c0_103 = arith.constant 0 : index
    %91 = vector.load %arg7[%c1_101, %c0_102, %c0_103] : memref<2x256x128xf32, #tpu.memory_space<vmem>>, vector<1x256x128xf32>
    %92 = vector.shape_cast %91 : vector<1x256x128xf32> to vector<256x128xf32>
    %cst_104 = arith.constant dense<0.000000e+00> : vector<256x128xf32>
    %93 = tpu.matmul %87, %92, %cst_104 {dimension_numbers = #tpu.dot_dimension_numbers<[1], [0], [0], [1], [0, 0, 1, 1], [], []>} : vector<256x256xf32>, vector<256x128xf32>, vector<256x128xf32> -> vector<256x128xf32>
    %94 = arith.maximumf %90, %93 : vector<256x128xf32>
    %c0_105 = arith.constant 0 : index
    %c0_106 = arith.constant 0 : index
    %95 = vector.load %arg20[%c0_105, %c0_106] : memref<272x128xf32, #tpu.memory_space<vmem>>, vector<256x128xf32>
    tpu.vector_store %arg20[%c0_105, %c0_106], %94 {strides = array<i32>} : memref<272x128xf32, #tpu.memory_space<vmem>>, vector<256x128xf32>,
    %cst_107 = arith.constant 0.000000e+00 : f32
    %96 = vector.broadcast %cst_107 : f32 to vector<16x128xf32>
    %c256_108 = arith.constant 256 : index
    %c0_109 = arith.constant 0 : index
    %97 = vector.load %arg20[%c256_108, %c0_109] : memref<272x128xf32, #tpu.memory_space<vmem>>, vector<16x128xf32>
    tpu.vector_store %arg20[%c256_108, %c0_109], %96 {strides = array<i32>} : memref<272x128xf32, #tpu.memory_space<vmem>>, vector<16x128xf32>,
    %cst_110 = arith.constant 0.000000e+00 : f32
    %98 = vector.broadcast %cst_110 : f32 to vector<256x128xf32>
    %c0_111 = arith.constant 0 : index
    %c0_112 = arith.constant 0 : index
    %99 = vector.load %arg20[%c0_111, %c0_112] : memref<272x128xf32, #tpu.memory_space<vmem>>, vector<256x128xf32>
    %c0_113 = arith.constant 0 : index
    %c0_114 = arith.constant 0 : index
    %c0_115 = arith.constant 0 : index
    %100 = vector.load %arg8[%c0_113, %c0_114, %c0_115] : memref<5x128x128xf32, #tpu.memory_space<vmem>>, vector<1x128x128xf32>
    %101 = vector.shape_cast %100 : vector<1x128x128xf32> to vector<128x128xf32>
    %cst_116 = arith.constant dense<0.000000e+00> : vector<256x128xf32>
    %102 = tpu.matmul %99, %101, %cst_116 {dimension_numbers = #tpu.dot_dimension_numbers<[1], [0], [0], [1], [0, 0, 1, 1], [], []>} : vector<256x128xf32>, vector<128x128xf32>, vector<256x128xf32> -> vector<256x128xf32>
    %103 = arith.addf %98, %102 : vector<256x128xf32>
    %c4_117 = arith.constant 4 : index
    %c0_118 = arith.constant 0 : index
    %104 = vector.load %arg20[%c4_117, %c0_118] : memref<272x128xf32, #tpu.memory_space<vmem>>, vector<256x128xf32>
    %c1_119 = arith.constant 1 : index
    %c0_120 = arith.constant 0 : index
    %c0_121 = arith.constant 0 : index
    %105 = vector.load %arg8[%c1_119, %c0_120, %c0_121] : memref<5x128x128xf32, #tpu.memory_space<vmem>>, vector<1x128x128xf32>
    %106 = vector.shape_cast %105 : vector<1x128x128xf32> to vector<128x128xf32>
    %cst_122 = arith.constant dense<0.000000e+00> : vector<256x128xf32>
    %107 = tpu.matmul %104, %106, %cst_122 {dimension_numbers = #tpu.dot_dimension_numbers<[1], [0], [0], [1], [0, 0, 1, 1], [], []>} : vector<256x128xf32>, vector<128x128xf32>, vector<256x128xf32> -> vector<256x128xf32>
    %108 = arith.addf %103, %107 : vector<256x128xf32>
    %c8_123 = arith.constant 8 : index
    %c0_124 = arith.constant 0 : index
    %109 = vector.load %arg20[%c8_123, %c0_124] : memref<272x128xf32, #tpu.memory_space<vmem>>, vector<256x128xf32>
    %c2_125 = arith.constant 2 : index
    %c0_126 = arith.constant 0 : index
    %c0_127 = arith.constant 0 : index
    %110 = vector.load %arg8[%c2_125, %c0_126, %c0_127] : memref<5x128x128xf32, #tpu.memory_space<vmem>>, vector<1x128x128xf32>
    %111 = vector.shape_cast %110 : vector<1x128x128xf32> to vector<128x128xf32>
    %cst_128 = arith.constant dense<0.000000e+00> : vector<256x128xf32>
    %112 = tpu.matmul %109, %111, %cst_128 {dimension_numbers = #tpu.dot_dimension_numbers<[1], [0], [0], [1], [0, 0, 1, 1], [], []>} : vector<256x128xf32>, vector<128x128xf32>, vector<256x128xf32> -> vector<256x128xf32>
    %113 = arith.addf %108, %112 : vector<256x128xf32>
    %c12 = arith.constant 12 : index
    %c0_129 = arith.constant 0 : index
    %114 = vector.load %arg20[%c12, %c0_129] : memref<272x128xf32, #tpu.memory_space<vmem>>, vector<256x128xf32>
    %c3_130 = arith.constant 3 : index
    %c0_131 = arith.constant 0 : index
    %c0_132 = arith.constant 0 : index
    %115 = vector.load %arg8[%c3_130, %c0_131, %c0_132] : memref<5x128x128xf32, #tpu.memory_space<vmem>>, vector<1x128x128xf32>
    %116 = vector.shape_cast %115 : vector<1x128x128xf32> to vector<128x128xf32>
    %cst_133 = arith.constant dense<0.000000e+00> : vector<256x128xf32>
    %117 = tpu.matmul %114, %116, %cst_133 {dimension_numbers = #tpu.dot_dimension_numbers<[1], [0], [0], [1], [0, 0, 1, 1], [], []>} : vector<256x128xf32>, vector<128x128xf32>, vector<256x128xf32> -> vector<256x128xf32>
    %118 = arith.addf %113, %117 : vector<256x128xf32>
    %c16 = arith.constant 16 : index
    %c0_134 = arith.constant 0 : index
    %119 = vector.load %arg20[%c16, %c0_134] : memref<272x128xf32, #tpu.memory_space<vmem>>, vector<256x128xf32>
    %c4_135 = arith.constant 4 : index
    %c0_136 = arith.constant 0 : index
    %c0_137 = arith.constant 0 : index
    %120 = vector.load %arg8[%c4_135, %c0_136, %c0_137] : memref<5x128x128xf32, #tpu.memory_space<vmem>>, vector<1x128x128xf32>
    %121 = vector.shape_cast %120 : vector<1x128x128xf32> to vector<128x128xf32>
    %cst_138 = arith.constant dense<0.000000e+00> : vector<256x128xf32>
    %122 = tpu.matmul %119, %121, %cst_138 {dimension_numbers = #tpu.dot_dimension_numbers<[1], [0], [0], [1], [0, 0, 1, 1], [], []>} : vector<256x128xf32>, vector<128x128xf32>, vector<256x128xf32> -> vector<256x128xf32>
    %123 = arith.addf %118, %122 : vector<256x128xf32>
    %c0_139 = arith.constant 0 : index
    %c0_140 = arith.constant 0 : index
    %124 = vector.load %arg9[%c0_139, %c0_140] : memref<1x128xf32, #tpu.memory_space<vmem>>, vector<1x128xf32>
    %125 = vector.broadcast %124 : vector<1x128xf32> to vector<256x128xf32>
    %126 = arith.addf %123, %125 : vector<256x128xf32>
    %cst_141 = arith.constant 0.000000e+00 : f32
    %127 = vector.broadcast %cst_141 : f32 to vector<256x128xf32>
    %128 = arith.maximumf %126, %127 : vector<256x128xf32>
    %c0_142 = arith.constant 0 : index
    %c0_143 = arith.constant 0 : index
    %129 = vector.load %arg10[%c0_142, %c0_143] : memref<128x128xf32, #tpu.memory_space<vmem>>, vector<128x128xf32>
    %cst_144 = arith.constant dense<0.000000e+00> : vector<256x128xf32>
    %130 = tpu.matmul %128, %129, %cst_144 {dimension_numbers = #tpu.dot_dimension_numbers<[1], [0], [0], [1], [0, 0, 1, 1], [], []>} : vector<256x128xf32>, vector<128x128xf32>, vector<256x128xf32> -> vector<256x128xf32>
    %c0_145 = arith.constant 0 : index
    %c0_146 = arith.constant 0 : index
    %131 = vector.load %arg11[%c0_145, %c0_146] : memref<1x128xf32, #tpu.memory_space<vmem>>, vector<1x128xf32>
    %132 = vector.broadcast %131 : vector<1x128xf32> to vector<256x128xf32>
    %133 = arith.addf %130, %132 : vector<256x128xf32>
    %cst_147 = arith.constant 0.000000e+00 : f32
    %134 = vector.broadcast %cst_147 : f32 to vector<256x128xf32>
    %135 = arith.maximumf %133, %134 : vector<256x128xf32>
    %c0_148 = arith.constant 0 : index
    %c0_149 = arith.constant 0 : index
    %136 = vector.load %arg12[%c0_148, %c0_149] : memref<128x128xf32, #tpu.memory_space<vmem>>, vector<128x128xf32>
    %cst_150 = arith.constant dense<0.000000e+00> : vector<256x128xf32>
    %137 = tpu.matmul %135, %136, %cst_150 {dimension_numbers = #tpu.dot_dimension_numbers<[1], [0], [0], [1], [0, 0, 1, 1], [], []>} : vector<256x128xf32>, vector<128x128xf32>, vector<256x128xf32> -> vector<256x128xf32>
    %c0_151 = arith.constant 0 : index
    %c0_152 = arith.constant 0 : index
    %138 = vector.load %arg13[%c0_151, %c0_152] : memref<1x128xf32, #tpu.memory_space<vmem>>, vector<1x128xf32>
    %139 = vector.broadcast %138 : vector<1x128xf32> to vector<256x128xf32>
    %140 = arith.addf %137, %139 : vector<256x128xf32>
    %c0_153 = arith.constant 0 : index
    %c0_154 = arith.constant 0 : index
    %141 = vector.load %arg14[%c0_153, %c0_154] : memref<8x256xf32, #tpu.memory_space<vmem>>, vector<8x256xf32>
    %cst_155 = arith.constant dense<0.000000e+00> : vector<8x128xf32>
    %142 = tpu.matmul %141, %140, %cst_155 {dimension_numbers = #tpu.dot_dimension_numbers<[1], [0], [0], [1], [0, 0, 1, 1], [], []>} : vector<8x256xf32>, vector<256x128xf32>, vector<8x128xf32> -> vector<8x128xf32>
    %c0_156 = arith.constant 0 : index
    %c0_157 = arith.constant 0 : index
    %143 = vector.load %arg15[%c0_156, %c0_157] : memref<8x128xf32, #tpu.memory_space<vmem>>, vector<8x128xf32>
    tpu.vector_store %arg15[%c0_156, %c0_157], %142 {strides = array<i32>} : memref<8x128xf32, #tpu.memory_space<vmem>>, vector<8x128xf32>,
    return
  }
  func.func @transform_0(%arg0: i32) -> (i32, i32) {
    %c0_i32 = arith.constant 0 : i32
    %c0_i32_0 = arith.constant 0 : i32
    return %arg0, %c0_i32 : i32, i32
  }
  func.func @transform_1(%arg0: i32) -> (i32, i32, i32) {
    %c0_i32 = arith.constant 0 : i32
    %c0_i32_0 = arith.constant 0 : i32
    %c0_i32_1 = arith.constant 0 : i32
    %c0_i32_2 = arith.constant 0 : i32
    return %c0_i32, %c0_i32_0, %c0_i32_1 : i32, i32, i32
  }
  func.func @transform_2(%arg0: i32) -> (i32, i32) {
    %c0_i32 = arith.constant 0 : i32
    %c0_i32_0 = arith.constant 0 : i32
    %c0_i32_1 = arith.constant 0 : i32
    return %c0_i32, %c0_i32_0 : i32, i32
  }
  func.func @transform_3(%arg0: i32) -> (i32, i32, i32) {
    %c0_i32 = arith.constant 0 : i32
    %c0_i32_0 = arith.constant 0 : i32
    %c0_i32_1 = arith.constant 0 : i32
    %c0_i32_2 = arith.constant 0 : i32
    return %c0_i32, %c0_i32_0, %c0_i32_1 : i32, i32, i32
  }
  func.func @transform_4(%arg0: i32) -> (i32, i32, i32) {
    %c0_i32 = arith.constant 0 : i32
    %c0_i32_0 = arith.constant 0 : i32
    %c0_i32_1 = arith.constant 0 : i32
    %c0_i32_2 = arith.constant 0 : i32
    return %c0_i32, %c0_i32_0, %c0_i32_1 : i32, i32, i32
  }
  func.func @transform_5(%arg0: i32) -> (i32, i32) {
    %c0_i32 = arith.constant 0 : i32
    %c0_i32_0 = arith.constant 0 : i32
    %c0_i32_1 = arith.constant 0 : i32
    return %c0_i32, %c0_i32_0 : i32, i32
  }
  func.func @transform_6(%arg0: i32) -> (i32, i32, i32) {
    %c0_i32 = arith.constant 0 : i32
    %c0_i32_0 = arith.constant 0 : i32
    %c0_i32_1 = arith.constant 0 : i32
    %c0_i32_2 = arith.constant 0 : i32
    return %c0_i32, %c0_i32_0, %c0_i32_1 : i32, i32, i32
  }
  func.func @transform_7(%arg0: i32) -> (i32, i32, i32) {
    %c0_i32 = arith.constant 0 : i32
    %c0_i32_0 = arith.constant 0 : i32
    %c0_i32_1 = arith.constant 0 : i32
    %c0_i32_2 = arith.constant 0 : i32
    return %c0_i32, %c0_i32_0, %c0_i32_1 : i32, i32, i32
  }
  func.func @transform_8(%arg0: i32) -> (i32, i32) {
    %c0_i32 = arith.constant 0 : i32
    %c0_i32_0 = arith.constant 0 : i32
    %c0_i32_1 = arith.constant 0 : i32
    return %c0_i32, %c0_i32_0 : i32, i32
  }
  func.func @transform_9(%arg0: i32) -> (i32, i32) {
    %c0_i32 = arith.constant 0 : i32
    %c0_i32_0 = arith.constant 0 : i32
    %c0_i32_1 = arith.constant 0 : i32
    return %c0_i32, %c0_i32_0 : i32, i32
  }
  func.func @transform_10(%arg0: i32) -> (i32, i32) {
    %c0_i32 = arith.constant 0 : i32
    %c0_i32_0 = arith.constant 0 : i32
    %c0_i32_1 = arith.constant 0 : i32
    return %c0_i32, %c0_i32_0 : i32, i32
  }
  func.func @transform_11(%arg0: i32) -> (i32, i32) {
    %c0_i32 = arith.constant 0 : i32
    %c0_i32_0 = arith.constant 0 : i32
    %c0_i32_1 = arith.constant 0 : i32
    return %c0_i32, %c0_i32_0 : i32, i32
  }
  func.func @transform_12(%arg0: i32) -> (i32, i32) {
    %c0_i32 = arith.constant 0 : i32
    %c0_i32_0 = arith.constant 0 : i32
    %c0_i32_1 = arith.constant 0 : i32
    return %c0_i32, %c0_i32_0 : i32, i32
  }
  func.func @transform_13(%arg0: i32) -> (i32, i32) {
    %c0_i32 = arith.constant 0 : i32
    %c0_i32_0 = arith.constant 0 : i32
    %c0_i32_1 = arith.constant 0 : i32
    return %c0_i32, %c0_i32_0 : i32, i32
  }
  func.func @transform_14(%arg0: i32) -> (i32, i32) {
    %c0_i32 = arith.constant 0 : i32
    %c0_i32_0 = arith.constant 0 : i32
    return %arg0, %c0_i32 : i32, i32
  }
}

</mosaic_0001>

<bundles_post_ra>
// kernel: lenet_forward.1
= control target key start
LH: loop header
LB: loop body
LE: loop exit
PB: predicated region body
PF: predicated region fallthrough
CT: control target
= control target key end

     0   :  { %19 = vsyncpa [#allocation8], 0  ;;  %s13216_s0 = inlined_call_operand.vmem [shape: f32[256,28], index: 0, kind: input, shape index: {}]   ;;  %s13217_s1 = inlined_call_operand.hbm [shape: f32[5,28,256], index: 1, kind: input, shape index: {}]   ;;  %s13218_s2 = inlined_call_operand.vmem [shape: f32[1,256], index: 2, kind: input, shape index: {}]   ;;  %s13219_s3 = inlined_call_operand.vmem [shape: f32[2,256,128], index: 3, kind: input, shape index: {}]   ;;  %s13220_s4 = inlined_call_operand.hbm [shape: f32[5,128,256], index: 4, kind: input, shape index: {}]   ;;  %s13221_s5 = inlined_call_operand.vmem [shape: f32[1,256], index: 5, kind: input, shape index: {}]   ;;  %s13222_s6 = inlined_call_operand.hbm [shape: f32[2,256,128], index: 6, kind: input, shape index: {}]   ;;  %s13223_s7 = inlined_call_operand.hbm [shape: f32[5,128,128], index: 7, kind: input, shape index: {}]   ;;  %s13224_s8 = inlined_call_operand.vmem [shape: f32[1,128], index: 8, kind: input, shape index: {}]   ;;  %s13225_s9 = inlined_call_operand.hbm [shape: f32[128,128], index: 9, kind: input, shape index: {}]   ;;  %s13226_s10 = inlined_call_operand.vmem [shape: f32[1,128], index: 10, kind: input, shape index: {}]   ;;  %s13227_s11 = inlined_call_operand.hbm [shape: f32[128,128], index: 11, kind: input, shape index: {}]   ;;  %s13228_s12 = inlined_call_operand.vmem [shape: f32[1,128], index: 12, kind: input, shape index: {}]   ;;  %s13229_s13 = inlined_call_operand.vmem [shape: f32[8,256], index: 13, kind: input, shape index: {}]   ;;  %s13230_s14 = inlined_call_operand.vmem [shape: f32[8,128], index: 14, kind: output, shape index: {}]  }
   0x1   :  { %20 = vsyncpa [#allocation10], 0 }
   0x2   :  { %21 = vsyncpa [#allocation13], 0 }
   0x3   :  { %22 = vsyncpa [#allocation16], 0  ;;  %s46_s15 = sshll.u32 %s13220_s4, 4  ;;  %s8230_s16 = smov [#allocation9]   ;;  %s47_s15 = int_to_ptr.hbm [resolvable:$true] %s46_s15 }
   0x4   :  { %s48_s17 = sshll.u32 %s8230_s16, 4  ;;  %s8231_s18 = smov 256   ;;  %s49_s17 = int_to_ptr.vmem [resolvable:$true] %s48_s17 }
   0x5   :  { %s8232_s19 = smov 16   ;;  %s74_s22 = sshll.u32 %s13223_s7, 4  ;;  %s75_s22 = int_to_ptr.hbm [resolvable:$true] %s74_s22 }
   0x6   :  { %54 = dma.hbm_to_vmem [thread:$0]  %s47_s15, 20480, %s49_s17, [#allocation10], %s8231_s18, %s8231_s18, %s8232_s19  }
   0x7   :  { %s8233_s23 = smov [#allocation12]   ;;  %s29_s27 = sshll.u32 %s13217_s1, 4  ;;  %s30_s27 = int_to_ptr.hbm [resolvable:$true] %s29_s27 }
   0x8   :  { %s76_s24 = sshll.u32 %s8233_s23, 4  ;;  %s8234_s4 = smov 128   ;;  %s77_s24 = int_to_ptr.vmem [resolvable:$true] %s76_s24 }
   0x9   :  { %s8235_s28 = smov 8   ;;  %s61_s15 = sshll.u32 %s13222_s6, 4  ;;  %s62_s15 = int_to_ptr.hbm [resolvable:$true] %s61_s15 }
   0xa   :  { %82 = dma.hbm_to_vmem [thread:$0]  %s75_s22, 10240, %s77_s24, [#allocation13], %s8234_s4, %s8234_s4, %s8235_s28  }
   0xb   :  { %s8236_s16 = smov [#allocation7]   ;;  %s8237_s7 = smov [#allocation11]  }
   0xc   :  { %s31_s17 = sshll.u32 %s8236_s16, 4  ;;  %s63_s20 = sshll.u32 %s8237_s7, 4  ;;  %s32_s17 = int_to_ptr.vmem [resolvable:$true] %s31_s17  ;;  %s64_s20 = int_to_ptr.vmem [resolvable:$true] %s63_s20 }
   0xd   :  { %37 = dma.hbm_to_vmem [thread:$0]  %s30_s27, 5120, %s32_s17, [#allocation8], %s8231_s18, %s8231_s18, %s8232_s19  }
   0xe   :  { %s89_s1 = sshll.u32 %s13225_s9, 4  ;;  %s104_s24 = sshll.u32 %s13227_s11, 4  ;;  %s90_s1 = int_to_ptr.hbm [resolvable:$true] %s89_s1  ;;  %s105_s24 = int_to_ptr.hbm [resolvable:$true] %s104_s24 }
   0xf   :  { %69 = dma.hbm_to_vmem [thread:$0]  %s62_s15, 8192, %s64_s20, [#allocation10], %s8234_s4, %s8234_s4, %s8235_s28  }
  0x10   :  { %s8238_s26 = smov [#allocation14]   ;;  %s8239_s29 = smov [#allocation15]  }
  0x11   :  { %s91_s6 = sshll.u32 %s8238_s26, 4  ;;  %s106_s18 = sshll.u32 %s8239_s29, 4  ;;  %s92_s6 = int_to_ptr.vmem [resolvable:$true] %s91_s6  ;;  %s107_s18 = int_to_ptr.vmem [resolvable:$true] %s106_s18 }
  0x12   :  { %97 = dma.hbm_to_vmem [thread:$0]  %s90_s1, 2048, %s92_s6, [#allocation13], %s8234_s4, %s8234_s4, %s8235_s28  }
  0x13   :  { %112 = dma.hbm_to_vmem [thread:$0]  %s105_s24, 2048, %s107_s18, [#allocation16], %s8234_s4, %s8234_s4, %s8235_s28  }
  0x14   :  { %8222 = dma.done.wait [#allocation8], 5120  }
  0x15   :  { %8223 = vsyncadd [#allocation8], 4294962176 }
  0x16   :  { %8224 = dma.done.wait [#allocation10], 28672  }
  0x17   :  { %8225 = vsyncadd [#allocation10], 4294938624 }
  0x18   :  { %8226 = dma.done.wait [#allocation13], 12288  }
  0x19   :  { %8227 = vsyncadd [#allocation13], 4294955008 }
  0x1a   :  { %8228 = dma.done.wait [#allocation16], 2048  }
  0x1b   :  { %8229 = vsyncadd [#allocation16], 4294965248  ;;  %vm384_vm0 = vcmask 1043456   ;;  %v286_v0 = vld [vmem:[#allocation7 + $0x70] sm:$0xf]  ;;  %v284_v3 = vld [vmem:[#allocation7 + $0x60] sm:$0xff] }
  0x1c   :  { %v287_v1 = vld [vmem:[#allocation7 + $0x78] sm:$0xf]  ;;  %v8334_v2 = vld [vmem:[#allocation7 + $0x30] sm:$0xf]  ;;  %7688 = vmatpush.msk.msra.mxu0 %vm384_vm0, %v286_v0  ;;  %8050 = vmatpush.msk.msra.mxu3 %vm384_vm0, %v286_v0  ;;  %v285_v4 = vld [vmem:[#allocation7 + $0x68] sm:$0xff]  ;;  %vm173_vm1 = vcmask 228352  }
  0x1d   :  { %v8338_v5 = vld [vmem:[#allocation7 + $0x20] sm:$0xff]  ;;  %7721 = vmatpush.msk.msra.mxu1 %vm384_vm0, %v287_v1  ;;  %7754 = vmatpush.msk.msra.mxu2 %vm384_vm0, %v8334_v2  ;;  %v282_v6 = vld [vmem:[#allocation7 + $0x50] sm:$0xff]  ;;  %v283_v7 = vld [vmem:[#allocation7 + $0x58] sm:$0xff]  ;;  %v8240_v29 = vmov 0.0   ;;  %vm2640_vm2 = vcmask 1046528   ;;  %vm5524_vm3 = vcmask 1045504  }
  0x1e   :  { %404 = vmatpush.msra.mxu0 %v284_v3  ;;  %8051 = vmatpush.msra.mxu3 %v284_v3  ;;  %v241_v8 = vld [vmem:[#allocation7 + $0x10] sm:$0xff]  ;;  %v280_v9 = vld [vmem:[#allocation7 + $0x40] sm:$0xff]  ;;  %v141_v10 = vld [vmem:[%s13216_s0] sm:$0xff]  ;;  %206 = vst.msk [vmem:[#allocation2 + $0x100] sm:$0xff] %vm173_vm1, %v8240_v29 }
  0x1f   :  { %517 = vmatpush.msra.mxu1 %v285_v4  ;;  %732 = vmatpush.msra.mxu2 %v8338_v5  ;;  %v142_v11 = vld [vmem:[%s13216_s0 + $0x8] sm:$0xff]  ;;  %v167_v12 = vld [vmem:[%s13216_s0 + $0xd0] sm:$0xff]  ;;  %174 = vst.msk [vmem:[#allocation2] sm:$0xff] %vm173_vm1, %v141_v10  ;;  %v168_v15 = vld [vmem:[%s13216_s0 + $0xd8] sm:$0xff] }
  0x20   :  { %405 = vmatpush.msra.mxu0 %v282_v6  ;;  %8052 = vmatpush.msra.mxu3 %v282_v6  ;;  %v281_v13 = vld [vmem:[#allocation7 + $0x48] sm:$0xff]  ;;  %v239_v14 = vld [vmem:[#allocation7] sm:$0xff]  ;;  %175 = vst.msk [vmem:[#allocation2 + $0x8] sm:$0xff] %vm173_vm1, %v142_v11  ;;  %v169_v17 = vld [vmem:[%s13216_s0 + $0xe0] sm:$0xff] }
  0x21   :  { %518 = vmatpush.msra.mxu1 %v283_v7  ;;  %733 = vmatpush.msra.mxu2 %v241_v8  ;;  %v143_v16 = vld [vmem:[%s13216_s0 + $0x10] sm:$0xff]  ;;  %200 = vst.msk [vmem:[#allocation2 + $0xd0] sm:$0xff] %vm173_vm1, %v167_v12  ;;  %v144_v18 = vld [vmem:[%s13216_s0 + $0x18] sm:$0xff]  ;;  %v170_v19 = vld [vmem:[%s13216_s0 + $0xe8] sm:$0xff] }
  0x22   :  { %406 = vmatpush.msra.mxu0 %v280_v9  ;;  %8053 = vmatpush.msra.mxu3 %v280_v9  ;;  %201 = vst.msk [vmem:[#allocation2 + $0xd8] sm:$0xff] %vm173_vm1, %v168_v15  ;;  %v145_v20 = vld [vmem:[%s13216_s0 + $0x20] sm:$0xff]  ;;  %v171_v21 = vld [vmem:[%s13216_s0 + $0xf0] sm:$0xff]  ;;  %v146_v23 = vld [vmem:[%s13216_s0 + $0x28] sm:$0xff] }
  0x23   :  { %519 = vmatpush.msra.mxu1 %v281_v13  ;;  %734 = vmatpush.msra.mxu2 %v239_v14  ;;  %176 = vst.msk [vmem:[#allocation2 + $0x10] sm:$0xff] %vm173_vm1, %v143_v16  ;;  %v172_v25 = vld [vmem:[%s13216_s0 + $0xf8] sm:$0xff]  ;;  %v147_v27 = vld [vmem:[%s13216_s0 + $0x30] sm:$0xff]  ;;  %v149_v36 = vld [vmem:[%s13216_s0 + $0x40] sm:$0xff] }
  0x24   :  { %8054 = vmatpush.msk.msrb.mxu3 %vm384_vm0, %v287_v1  ;;  %202 = vst.msk [vmem:[#allocation2 + $0xe0] sm:$0xff] %vm173_vm1, %v169_v17  ;;  %v148_v32 = vld [vmem:[%s13216_s0 + $0x38] sm:$0xff]  ;;  %v150_v40 = vld [vmem:[%s13216_s0 + $0x48] sm:$0xff]  ;;  %v151_v44 = vld [vmem:[%s13216_s0 + $0x50] sm:$0xff] }
  0x25   :  { %177 = vst.msk [vmem:[#allocation2 + $0x18] sm:$0xff] %vm173_vm1, %v144_v18  ;;  %v152_v48 = vld [vmem:[%s13216_s0 + $0x58] sm:$0xff]  ;;  %v153_v51 = vld [vmem:[%s13216_s0 + $0x60] sm:$0xff]  ;;  %v154_v54 = vld [vmem:[%s13216_s0 + $0x68] sm:$0xff] }
  0x26   :  { %8055 = vmatpush.msrb.mxu3 %v285_v4  ;;  %v8382_v22 = vld [vmem:[#allocation2] sm:$0xff]  ;;  %203 = vst.msk [vmem:[#allocation2 + $0xe8] sm:$0xff] %vm173_vm1, %v170_v19  ;;  %v155_v57 = vld [vmem:[%s13216_s0 + $0x70] sm:$0xff]  ;;  %v156_v60 = vld [vmem:[%s13216_s0 + $0x78] sm:$0xff] }
  0x27   :  { %v247_v24 = vld [vmem:[#allocation2 + $0x1] sm:$0xff]  ;;  %7755 = vmatmul.msk.f32.vlgmr.msra.gmra.mxu2 %vm173_vm1, %v8382_v22  ;;  %178 = vst.msk [vmem:[#allocation2 + $0x20] sm:$0xff] %vm173_vm1, %v145_v20  ;;  %v159_v6 = vld [vmem:[%s13216_s0 + $0x90] sm:$0xff]  ;;  %v160_v10 = vld [vmem:[%s13216_s0 + $0x98] sm:$0xff] }
  0x28   :  { %8056 = vmatpush.msrb.mxu3 %v283_v7  ;;  %7689 = vmatmul.msk.f32.vlgmr.msra.gmra.mxu0 %vm173_vm1, %v247_v24  ;;  %204 = vst.msk [vmem:[#allocation2 + $0xf0] sm:$0xff] %vm173_vm1, %v171_v21  ;;  %v8409_v28 = vld [vmem:[#allocation2 + $0x8] sm:$0xff]  ;;  %v157_v63 = vld [vmem:[%s13216_s0 + $0x80] sm:$0xff]  ;;  %v984_v12 = vld [vmem:[#allocation7 + $0xb0] sm:$0xf] }
  0x29   :  { %7722 = vmatmul.msk.f32.vlgmr.msra.gmra.mxu1 %vm173_vm1, %v247_v24  ;;  %v8397_v26 = vld [vmem:[#allocation2 + $0xd1] sm:$0xff]  ;;  %179 = vst.msk [vmem:[#allocation2 + $0x28] sm:$0xff] %vm173_vm1, %v146_v23  ;;  %v246_v11 = vld [vmem:[#allocation7 + $0x38] sm:$0xf]  ;;  %7820 = vmatpush.msk.msrb.mxu0 %vm384_vm0, %v984_v12 }
  0x2a   :  { %8057 = vmatpush.msrb.mxu3 %v281_v13  ;;  %205 = vst.msk [vmem:[#allocation2 + $0xf8] sm:$0xff] %vm173_vm1, %v172_v25  ;;  %v248_v30 = vld [vmem:[#allocation2 + $0x9] sm:$0xff]  ;;  %v8555_v9 = vld [vmem:[#allocation2 + $0xd8] sm:$0xff]  ;;  %v242_v16 = vld [vmem:[#allocation7 + $0x18] sm:$0xff] }
  0x2b   :  { %7715 = vmatmul.msk.f32.vlgmr.msra.gmra.mxu3 %vm173_vm1, %v8397_v26  ;;  %180 = vst.msk [vmem:[#allocation2 + $0x30] sm:$0xff] %vm173_vm1, %v147_v27  ;;  %v8413_v31 = vld [vmem:[#allocation2 + $0xd9] sm:$0xff]  ;;  %v8424_v33 = vld [vmem:[#allocation2 + $0x10] sm:$0xff]  ;;  %v162_v25 = vld [vmem:[%s13216_s0 + $0xa8] sm:$0xff] }
  0x2c   :  { %8058 = vmatpush.msk.msra.mxu3 %vm384_vm0, %v8334_v2  ;;  %3481 = vst [vmem:[#allocation4 + $0x108] sm:$0xff] %v8240_v29  ;;  %v249_v34 = vld [vmem:[#allocation2 + $0x11] sm:$0xff]  ;;  %v158_v2 = vld [vmem:[%s13216_s0 + $0x88] sm:$0xff]  ;;  %v8571_v18 = vld [vmem:[#allocation2 + $0xe0] sm:$0xff] }
  0x2d   :  { %2442 = vst [vmem:[#allocation3 + $0x1e8] sm:$0xff] %v8240_v29  ;;  %v275_v35 = vld [vmem:[#allocation2 + $0xe1] sm:$0xff]  ;;  %v8436_v37 = vld [vmem:[#allocation2 + $0x18] sm:$0xff]  ;;  %v240_v17 = vld [vmem:[#allocation7 + $0x8] sm:$0xff] }
  0x2e   :  { %8059 = vmatpush.msra.mxu3 %v8338_v5  ;;  %2443 = vst [vmem:[#allocation3 + $0x60] sm:$0xff] %v8240_v29  ;;  %v250_v38 = vld [vmem:[#allocation2 + $0x19] sm:$0xff]  ;;  %v8541_v5 = vld [vmem:[#allocation2 + $0xd0] sm:$0xff]  ;;  %v8586_v24 = vld [vmem:[#allocation2 + $0xe8] sm:$0xff] }
  0x2f   :  { %7756 = vmatmul.msk.f32.gmra.mxu2 %vm173_vm1, %v8409_v28  ;;  %3480 = vst [vmem:[#allocation4 + $0x100] sm:$0xff] %v8240_v29  ;;  %v276_v39 = vld [vmem:[#allocation2 + $0xe9] sm:$0xff]  ;;  %v8447_v41 = vld [vmem:[#allocation2 + $0x20] sm:$0xff] }
  0x30   :  { %8060 = vmatpush.msra.mxu3 %v241_v8  ;;  %7690 = vmatmul.msk.f32.gmra.mxu0 %vm173_vm1, %v248_v30  ;;  %5326 = vst [vmem:[#allocation5 + $0xf8] sm:$0xff] %v8240_v29  ;;  %v251_v42 = vld [vmem:[#allocation2 + $0x21] sm:$0xff] }
  0x31   :  { %7723 = vmatmul.msk.f32.gmra.mxu1 %vm173_vm1, %v248_v30  ;;  %5327 = vst [vmem:[#allocation5 + $0x70] sm:$0xff] %v8240_v29  ;;  %v277_v43 = vld [vmem:[#allocation2 + $0xf1] sm:$0xff]  ;;  %v8458_v45 = vld [vmem:[#allocation2 + $0x28] sm:$0xff]  ;;  %v278_v47 = vld [vmem:[#allocation2 + $0xf9] sm:$0xff] }
  0x32   :  { %8061 = vmatpush.msra.mxu3 %v239_v14  ;;  %6364 = vst [vmem:[#allocation6 + $0x100] sm:$0xff] %v8240_v29  ;;  %v252_v46 = vld [vmem:[#allocation2 + $0x29] sm:$0xff]  ;;  %v161_v19 = vld [vmem:[%s13216_s0 + $0xa0] sm:$0xff] }
  0x33   :  { %7716 = vmatmul.msk.f32.gmra.mxu3 %vm173_vm1, %v8413_v31  ;;  %6365 = vst [vmem:[#allocation6 + $0x108] sm:$0xff] %v8240_v29  ;;  %v8469_v49 = vld [vmem:[#allocation2 + $0x30] sm:$0xff]  ;;  %v985_v20 = vld [vmem:[#allocation7 + $0xb8] sm:$0xf] }
  0x34   :  { %181 = vst.msk [vmem:[#allocation2 + $0x38] sm:$0xff] %vm173_vm1, %v148_v32  ;;  %v244_v14 = vld [vmem:[#allocation7 + $0x28] sm:$0xff]  ;;  %7853 = vmatpush.msk.msrb.mxu1 %vm384_vm0, %v985_v20 }
  0x35   :  { %182 = vst.msk [vmem:[#allocation2 + $0x40] sm:$0xff] %vm173_vm1, %v149_v36  ;;  %v163_v32 = vld [vmem:[%s13216_s0 + $0xb0] sm:$0xff] }
  0x36   :  { %183 = vst.msk [vmem:[#allocation2 + $0x48] sm:$0xff] %vm173_vm1, %v150_v40 }
  0x37   :  { %7757 = vmatmul.msk.f32.gmra.mxu2 %vm173_vm1, %v8424_v33  ;;  %184 = vst.msk [vmem:[#allocation2 + $0x50] sm:$0xff] %vm173_vm1, %v151_v44  ;;  %v164_v44 = vld [vmem:[%s13216_s0 + $0xb8] sm:$0xff] }
  0x38   :  { %7691 = vmatmul.msk.f32.gmra.mxu0 %vm173_vm1, %v249_v34  ;;  %185 = vst.msk [vmem:[#allocation2 + $0x58] sm:$0xff] %vm173_vm1, %v152_v48 }
  0x39   :  { %7724 = vmatmul.msk.f32.gmra.mxu1 %vm173_vm1, %v249_v34  ;;  %186 = vst.msk [vmem:[#allocation2 + $0x60] sm:$0xff] %vm173_vm1, %v153_v51 }
  0x3a   :  { %187 = vst.msk [vmem:[#allocation2 + $0x68] sm:$0xff] %vm173_vm1, %v154_v54 }
  0x3b   :  { %7717 = vmatmul.msk.f32.gmra.mxu3 %vm173_vm1, %v275_v35  ;;  %v253_v50 = vld [vmem:[#allocation2 + $0x31] sm:$0xff]  ;;  %188 = vst.msk [vmem:[#allocation2 + $0x70] sm:$0xff] %vm173_vm1, %v155_v57 }
  0x3c   :  { %v8481_v52 = vld [vmem:[#allocation2 + $0x38] sm:$0xff]  ;;  %v8493_v55 = vld [vmem:[#allocation2 + $0x40] sm:$0xff]  ;;  %189 = vst.msk [vmem:[#allocation2 + $0x78] sm:$0xff] %vm173_vm1, %v156_v60 }
  0x3d   :  { %v254_v53 = vld [vmem:[#allocation2 + $0x39] sm:$0xff]  ;;  %v255_v56 = vld [vmem:[#allocation2 + $0x41] sm:$0xff]  ;;  %190 = vst.msk [vmem:[#allocation2 + $0x80] sm:$0xff] %vm173_vm1, %v157_v63 }
  0x3e   :  { %v8504_v58 = vld [vmem:[#allocation2 + $0x48] sm:$0xff]  ;;  %v8515_v61 = vld [vmem:[#allocation2 + $0x50] sm:$0xff]  ;;  %191 = vst.msk [vmem:[#allocation2 + $0x88] sm:$0xff] %vm173_vm1, %v158_v2 }
  0x3f   :  { %7758 = vmatmul.msk.f32.gmra.mxu2 %vm173_vm1, %v8436_v37  ;;  %v256_v59 = vld [vmem:[#allocation2 + $0x49] sm:$0xff]  ;;  %v257_v62 = vld [vmem:[#allocation2 + $0x51] sm:$0xff]  ;;  %192 = vst.msk [vmem:[#allocation2 + $0x90] sm:$0xff] %vm173_vm1, %v159_v6 }
  0x40   :  { %7692 = vmatmul.msk.f32.gmra.mxu0 %vm173_vm1, %v250_v38  ;;  %v8526_v0 = vld [vmem:[#allocation2 + $0x58] sm:$0xff]  ;;  %v8537_v3 = vld [vmem:[#allocation2 + $0x60] sm:$0xff]  ;;  %193 = vst.msk [vmem:[#allocation2 + $0x98] sm:$0xff] %vm173_vm1, %v160_v10 }
  0x41   :  { %7725 = vmatmul.msk.f32.gmra.mxu1 %vm173_vm1, %v250_v38  ;;  %v258_v1 = vld [vmem:[#allocation2 + $0x59] sm:$0xff]  ;;  %v259_v4 = vld [vmem:[#allocation2 + $0x61] sm:$0xff]  ;;  %194 = vst.msk [vmem:[#allocation2 + $0xa0] sm:$0xff] %vm173_vm1, %v161_v19 }
  0x42   :  { %v8551_v7 = vld [vmem:[#allocation2 + $0x68] sm:$0xff]  ;;  %v8567_v13 = vld [vmem:[#allocation2 + $0x70] sm:$0xff]  ;;  %195 = vst.msk [vmem:[#allocation2 + $0xa8] sm:$0xff] %vm173_vm1, %v162_v25 }
  0x43   :  { %7718 = vmatmul.msk.f32.gmra.mxu3 %vm173_vm1, %v276_v39  ;;  %v260_v8 = vld [vmem:[#allocation2 + $0x69] sm:$0xff]  ;;  %v261_v15 = vld [vmem:[#allocation2 + $0x71] sm:$0xff]  ;;  %196 = vst.msk [vmem:[#allocation2 + $0xb0] sm:$0xff] %vm173_vm1, %v163_v32 }
  0x44   :  { %v8582_v21 = vld [vmem:[#allocation2 + $0x78] sm:$0xff]  ;;  %197 = vst.msk [vmem:[#allocation2 + $0xb8] sm:$0xff] %vm173_vm1, %v164_v44  ;;  %v983_v25 = vld [vmem:[#allocation7 + $0xa8] sm:$0xff] }
  0x45   :  { %v262_v23 = vld [vmem:[#allocation2 + $0x79] sm:$0xff]  ;;  %v263_v30 = vld [vmem:[#allocation2 + $0x81] sm:$0xff]  ;;  %1214 = vmatpush.msrb.mxu1 %v983_v25 }
  0x46   :  { %v8614_v36 = vld [vmem:[#allocation2 + $0x88] sm:$0xff]  ;;  %v8634_v48 = vld [vmem:[#allocation2 + $0x90] sm:$0xff] }
  0x47   :  { %7759 = vmatmul.msk.f32.gmra.mxu2 %vm173_vm1, %v8447_v41  ;;  %v264_v40 = vld [vmem:[#allocation2 + $0x89] sm:$0xff]  ;;  %v8652_v60 = vld [vmem:[#allocation2 + $0x98] sm:$0xff] }
  0x48   :  { %7693 = vmatmul.msk.f32.gmra.mxu0 %vm173_vm1, %v251_v42 }
  0x49   :  { %7726 = vmatmul.msk.f32.gmra.mxu1 %vm173_vm1, %v251_v42  ;;  %v267_v12 = vld [vmem:[#allocation2 + $0xa1] sm:$0xff] }
  0x4b   :  { %7719 = vmatmul.msk.f32.gmra.mxu3 %vm173_vm1, %v277_v43 }
  0x4f   :  { %7760 = vmatmul.msk.f32.gmra.mxu2 %vm173_vm1, %v8458_v45 }
  0x50   :  { %7694 = vmatmul.msk.f32.gmra.mxu0 %vm173_vm1, %v252_v46 }
  0x51   :  { %7727 = vmatmul.msk.f32.gmra.mxu1 %vm173_vm1, %v252_v46 }
  0x53   :  { %7720 = vmatmul.msk.f32.gmra.mxu3 %vm173_vm1, %v278_v47 }
  0x57   :  { %7761 = vmatmul.msk.f32.gmra.mxu2 %vm173_vm1, %v8469_v49 }
  0x58   :  { %7695 = vmatmul.msk.f32.gmra.mxu0 %vm173_vm1, %v253_v50 }
  0x59   :  { %7728 = vmatmul.msk.f32.gmra.mxu1 %vm173_vm1, %v253_v50 }
  0x5b   :  { %7748 = vmatmul.msk.f32.vlgmr.msrb.gmra.mxu3 %vm173_vm1, %v8397_v26  ;;  %v8596_v26 = vld [vmem:[#allocation2 + $0x80] sm:$0xff] }
  0x5c   :  { %7787 = vmatpush.msk.msrb.mxu3 %vm384_vm0, %v246_v11 }
  0x5e   :  { %845 = vmatpush.msrb.mxu3 %v244_v14 }
  0x5f   :  { %7762 = vmatmul.msk.f32.gmra.mxu2 %vm173_vm1, %v8481_v52 }
  0x60   :  { %7696 = vmatmul.msk.f32.gmra.mxu0 %vm173_vm1, %v254_v53  ;;  %846 = vmatpush.msrb.mxu3 %v242_v16 }
  0x61   :  { %7729 = vmatmul.msk.f32.gmra.mxu1 %vm173_vm1, %v254_v53  ;;  %v265_v53 = vld [vmem:[#allocation2 + $0x91] sm:$0xff] }
  0x62   :  { %847 = vmatpush.msrb.mxu3 %v240_v17  ;;  %v8684_v17 = vld [vmem:[#allocation2 + $0xa8] sm:$0xff] }
  0x63   :  { %7749 = vmatmul.msk.f32.gmra.mxu3 %vm173_vm1, %v8413_v31  ;;  %v8602_v31 = vld [vmem:[#allocation2 + $0xf0] sm:$0xff] }
  0x67   :  { %7763 = vmatmul.msk.f32.gmra.mxu2 %vm173_vm1, %v8493_v55 }
  0x68   :  { %7697 = vmatmul.msk.f32.gmra.mxu0 %vm173_vm1, %v255_v56 }
  0x69   :  { %7730 = vmatmul.msk.f32.gmra.mxu1 %vm173_vm1, %v255_v56  ;;  %v165_v56 = vld [vmem:[%s13216_s0 + $0xc0] sm:$0xff] }
  0x6a   :  { %198 = vst.msk [vmem:[#allocation2 + $0xc0] sm:$0xff] %vm173_vm1, %v165_v56  ;;  %v981_v56 = vld [vmem:[#allocation7 + $0x98] sm:$0xff] }
  0x6b   :  { %7750 = vmatmul.msk.f32.gmra.mxu3 %vm173_vm1, %v275_v35  ;;  %1215 = vmatpush.msrb.mxu1 %v981_v56 }
  0x6f   :  { %7764 = vmatmul.msk.f32.gmra.mxu2 %vm173_vm1, %v8504_v58 }
  0x70   :  { %7698 = vmatmul.msk.f32.gmra.mxu0 %vm173_vm1, %v256_v59 }
  0x71   :  { %7731 = vmatmul.msk.f32.gmra.mxu1 %vm173_vm1, %v256_v59  ;;  %v8727_v25 = vld [vmem:[#allocation2 + $0xc0] sm:$0xff] }
  0x73   :  { %7751 = vmatmul.msk.f32.gmra.mxu3 %vm173_vm1, %v276_v39 }
  0x77   :  { %7765 = vmatmul.msk.f32.gmra.mxu2 %vm173_vm1, %v8515_v61 }
  0x78   :  { %7699 = vmatmul.msk.f32.gmra.mxu0 %vm173_vm1, %v257_v62 }
  0x79   :  { %7732 = vmatmul.msk.f32.gmra.mxu1 %vm173_vm1, %v257_v62 }
  0x7b   :  { %7752 = vmatmul.msk.f32.gmra.mxu3 %vm173_vm1, %v277_v43  ;;  %v8622_v43 = vld [vmem:[#allocation2 + $0xf8] sm:$0xff] }
  0x7f   :  { %7766 = vmatmul.msk.f32.gmra.mxu2 %vm173_vm1, %v8526_v0 }
  0x80   :  { %7700 = vmatmul.msk.f32.gmra.mxu0 %vm173_vm1, %v258_v1 }
  0x81   :  { %7733 = vmatmul.msk.f32.gmra.mxu1 %vm173_vm1, %v258_v1  ;;  %v266_v1 = vld [vmem:[#allocation2 + $0x99] sm:$0xff] }
  0x83   :  { %7753 = vmatmul.msk.f32.gmra.mxu3 %vm173_vm1, %v278_v47 }
  0x87   :  { %7767 = vmatmul.msk.f32.gmra.mxu2 %vm173_vm1, %v8537_v3 }
  0x88   :  { %7701 = vmatmul.msk.f32.gmra.mxu0 %vm173_vm1, %v259_v4 }
  0x89   :  { %7734 = vmatmul.msk.f32.gmra.mxu1 %vm173_vm1, %v259_v4 }
  0x8b   :  { %7781 = vmatmul.msk.f32.vlgmr.msra.gmra.mxu3 %vm173_vm1, %v8541_v5 }
  0x8f   :  { %7768 = vmatmul.msk.f32.gmra.mxu2 %vm173_vm1, %v8551_v7 }
  0x90   :  { %7702 = vmatmul.msk.f32.gmra.mxu0 %vm173_vm1, %v260_v8 }
  0x91   :  { %7735 = vmatmul.msk.f32.gmra.mxu1 %vm173_vm1, %v260_v8  ;;  %v8670_v8 = vld [vmem:[#allocation2 + $0xa0] sm:$0xff] }
  0x93   :  { %7782 = vmatmul.msk.f32.gmra.mxu3 %vm173_vm1, %v8555_v9 }
  0x97   :  { %7769 = vmatmul.msk.f32.gmra.mxu2 %vm173_vm1, %v8567_v13 }
  0x98   :  { %7703 = vmatmul.msk.f32.gmra.mxu0 %vm173_vm1, %v261_v15 }
  0x99   :  { %7736 = vmatmul.msk.f32.gmra.mxu1 %vm173_vm1, %v261_v15  ;;  %v982_v15 = vld [vmem:[#allocation7 + $0xa0] sm:$0xff] }
  0x9a   :  { %1101 = vmatpush.msrb.mxu0 %v982_v15 }
  0x9b   :  { %7783 = vmatmul.msk.f32.gmra.mxu3 %vm173_vm1, %v8571_v18 }
  0x9f   :  { %7770 = vmatmul.msk.f32.gmra.mxu2 %vm173_vm1, %v8582_v21 }
  0xa0   :  { %7704 = vmatmul.msk.f32.gmra.mxu0 %vm173_vm1, %v262_v23 }
  0xa1   :  { %7737 = vmatmul.msk.f32.gmra.mxu1 %vm173_vm1, %v262_v23  ;;  %v268_v23 = vld [vmem:[#allocation2 + $0xa9] sm:$0xff] }
  0xa3   :  { %7784 = vmatmul.msk.f32.gmra.mxu3 %vm173_vm1, %v8586_v24 }
  0xa5   :  { %v408_v27 = vpop.f32.mrf.mxu0 }
  0xa6   :  { %v8598_v29 = vpop.f32.mrf.mxu1 }
  0xa7   :  { %7771 = vmatmul.msk.f32.gmra.mxu2 %vm173_vm1, %v8596_v26 }
  0xa8   :  { %7705 = vmatmul.msk.f32.gmra.mxu0 %vm173_vm1, %v263_v30 }
  0xa9   :  { %7738 = vmatmul.msk.f32.gmra.mxu1 %vm173_vm1, %v263_v30  ;;  %v1417_v30 = vld [vmem:[#allocation7 + $0xf0] sm:$0xf] }
  0xaa   :  { %v736_v34 = vpop.f32.mrf.mxu2  ;;  %7886 = vmatpush.msk.msrb.mxu2 %vm384_vm0, %v1417_v30 }
  0xab   :  { %7785 = vmatmul.msk.f32.gmra.mxu3 %vm173_vm1, %v8602_v31  ;;  %v8612_v35 = vadd.f32 %v736_v34, %v408_v27  ;;  %v8699_v34 = vld [vmem:[#allocation2 + $0xb0] sm:$0xff] }
  0xad   :  { %v411_v39 = vpop.f32.mrf.mxu0 }
  0xae   :  { %v8616_v38 = vpop.f32.mrf.mxu3  ;;  %v8618_v42 = vpop.f32.mrf.mxu1 }
  0xaf   :  { %13244 = vst [vmem:[#allocation21_spill] sm:$0xff] %v8616_v38  ;;  %7772 = vmatmul.msk.f32.gmra.mxu2 %vm173_vm1, %v8614_v36  ;;  %v951_v38 = vld [vmem:[#allocation2 + $0x32] sm:$0xff] }
  0xb0   :  { %7706 = vmatmul.msk.f32.gmra.mxu0 %vm173_vm1, %v264_v40 }
  0xb1   :  { %7739 = vmatmul.msk.f32.gmra.mxu1 %vm173_vm1, %v264_v40 }
  0xb2   :  { %v739_v46 = vpop.f32.mrf.mxu2 }
  0xb3   :  { %7786 = vmatmul.msk.f32.gmra.mxu3 %vm173_vm1, %v8622_v43  ;;  %v8632_v47 = vadd.f32 %v739_v46, %v411_v39  ;;  %v1415_v39 = vld [vmem:[#allocation7 + $0xe0] sm:$0xff]  ;;  %v269_v46 = vld [vmem:[#allocation2 + $0xb1] sm:$0xff] }
  0xb4   :  { %1534 = vmatpush.msrb.mxu2 %v1415_v39 }
  0xb5   :  { %v414_v51 = vpop.f32.mrf.mxu0 }
  0xb6   :  { %v8636_v50 = vpop.f32.mrf.mxu3  ;;  %v8638_v54 = vpop.f32.mrf.mxu1 }
  0xb7   :  { %13245 = vst [vmem:[#allocation22_spill] sm:$0xff] %v8636_v50  ;;  %7773 = vmatmul.msk.f32.gmra.mxu2 %vm173_vm1, %v8634_v48 }
  0xb8   :  { %7707 = vmatmul.msk.f32.gmra.mxu0 %vm173_vm1, %v265_v53 }
  0xb9   :  { %7740 = vmatmul.msk.f32.gmra.mxu1 %vm173_vm1, %v265_v53  ;;  %v980_v53 = vld [vmem:[#allocation7 + $0x90] sm:$0xff] }
  0xba   :  { %v742_v57 = vpop.f32.mrf.mxu2  ;;  %1102 = vmatpush.msrb.mxu0 %v980_v53 }
  0xbb   :  { %7788 = vmatmul.msk.f32.vlgmr.msrb.gmra.mxu3 %vm173_vm1, %v8382_v22  ;;  %v8650_v59 = vadd.f32 %v742_v57, %v414_v51  ;;  %v166_v22 = vld [vmem:[%s13216_s0 + $0xc8] sm:$0xff]  ;;  %v1413_v57 = vld [vmem:[#allocation7 + $0xd0] sm:$0xff] }
  0xbc   :  { %199 = vst.msk [vmem:[#allocation2 + $0xc8] sm:$0xff] %vm173_vm1, %v166_v22  ;;  %1535 = vmatpush.msrb.mxu2 %v1413_v57 }
  0xbd   :  { %v417_v63 = vpop.f32.mrf.mxu0 }
  0xbe   :  { %v8654_v62 = vpop.f32.mrf.mxu3  ;;  %v8656_v2 = vpop.f32.mrf.mxu1 }
  0xbf   :  { %13246 = vst [vmem:[#allocation23_spill] sm:$0xff] %v8654_v62  ;;  %7774 = vmatmul.msk.f32.gmra.mxu2 %vm173_vm1, %v8652_v60 }
  0xc0   :  { %7708 = vmatmul.msk.f32.gmra.mxu0 %vm173_vm1, %v266_v1 }
  0xc1   :  { %7741 = vmatmul.msk.f32.gmra.mxu1 %vm173_vm1, %v266_v1  ;;  %v1411_v1 = vld [vmem:[#allocation7 + $0xc0] sm:$0xff] }
  0xc2   :  { %v745_v4 = vpop.f32.mrf.mxu2  ;;  %1536 = vmatpush.msrb.mxu2 %v1411_v1 }
  0xc3   :  { %7789 = vmatmul.msk.f32.gmra.mxu3 %vm173_vm1, %v8409_v28  ;;  %v8668_v6 = vadd.f32 %v745_v4, %v417_v63  ;;  %v979_v63 = vld [vmem:[#allocation7 + $0x88] sm:$0xff]  ;;  %v271_v39 = vld [vmem:[#allocation2 + $0xc1] sm:$0xff] }
  0xc4   :  { %1216 = vmatpush.msrb.mxu1 %v979_v63  ;;  %v8741_v53 = vld [vmem:[#allocation2 + $0xc8] sm:$0xff] }
  0xc5   :  { %v420_v11 = vpop.f32.mrf.mxu0 }
  0xc6   :  { %v8672_v10 = vpop.f32.mrf.mxu3  ;;  %v8674_v14 = vpop.f32.mrf.mxu1 }
  0xc7   :  { %13247 = vst [vmem:[#allocation24_spill] sm:$0xff] %v8672_v10  ;;  %7775 = vmatmul.msk.f32.gmra.mxu2 %vm173_vm1, %v8670_v8 }
  0xc8   :  { %7709 = vmatmul.msk.f32.gmra.mxu0 %vm173_vm1, %v267_v12 }
  0xc9   :  { %7742 = vmatmul.msk.f32.gmra.mxu1 %vm173_vm1, %v267_v12 }
  0xca   :  { %v748_v28 = vpop.f32.mrf.mxu2 }
  0xcb   :  { %7790 = vmatmul.msk.f32.gmra.mxu3 %vm173_vm1, %v8424_v33  ;;  %v8682_v16 = vadd.f32 %v748_v28, %v420_v11  ;;  %v8713_v11 = vld [vmem:[#allocation2 + $0xb8] sm:$0xff] }
  0xcc   :  { %v270_v28 = vld [vmem:[#allocation2 + $0xb9] sm:$0xff] }
  0xcd   :  { %v423_v20 = vpop.f32.mrf.mxu0 }
  0xce   :  { %v8686_v19 = vpop.f32.mrf.mxu3  ;;  %v8688_v27 = vpop.f32.mrf.mxu1 }
  0xcf   :  { %13248 = vst [vmem:[#allocation25_spill] sm:$0xff] %v8686_v19  ;;  %7776 = vmatmul.msk.f32.gmra.mxu2 %vm173_vm1, %v8684_v17 }
  0xd0   :  { %7710 = vmatmul.msk.f32.gmra.mxu0 %vm173_vm1, %v268_v23 }
  0xd1   :  { %7743 = vmatmul.msk.f32.gmra.mxu1 %vm173_vm1, %v268_v23 }
  0xd2   :  { %v751_v33 = vpop.f32.mrf.mxu2 }
  0xd3   :  { %7791 = vmatmul.msk.f32.gmra.mxu3 %vm173_vm1, %v8436_v37  ;;  %v8696_v32 = vadd.f32 %v751_v33, %v423_v20  ;;  %v978_v37 = vld [vmem:[#allocation7 + $0x80] sm:$0xff] }
  0xd4   :  { %1103 = vmatpush.msrb.mxu0 %v978_v37  ;;  %v272_v37 = vld [vmem:[#allocation2 + $0xc9] sm:$0xff] }
  0xd5   :  { %v426_v44 = vpop.f32.mrf.mxu0 }
  0xd6   :  { %v8701_v40 = vpop.f32.mrf.mxu3  ;;  %v8703_v51 = vpop.f32.mrf.mxu1 }
  0xd7   :  { %13249 = vst [vmem:[#allocation26_spill] sm:$0xff] %v8701_v40  ;;  %7777 = vmatmul.msk.f32.gmra.mxu2 %vm173_vm1, %v8699_v34 }
  0xd8   :  { %7711 = vmatmul.msk.f32.gmra.mxu0 %vm173_vm1, %v269_v46 }
  0xd9   :  { %7744 = vmatmul.msk.f32.gmra.mxu1 %vm173_vm1, %v269_v46 }
  0xda   :  { %v754_v22 = vpop.f32.mrf.mxu2 }
  0xdb   :  { %7792 = vmatmul.msk.f32.gmra.mxu3 %vm173_vm1, %v8447_v41  ;;  %v8711_v4 = vadd.f32 %v754_v22, %v426_v44  ;;  %v8755_v22 = vld [vmem:[#allocation2 + $0x3] sm:$0xff] }
  0xdd   :  { %v429_v15 = vpop.f32.mrf.mxu0 }
  0xde   :  { %v8715_v12 = vpop.f32.mrf.mxu3  ;;  %v8717_v20 = vpop.f32.mrf.mxu1 }
  0xdf   :  { %13250 = vst [vmem:[#allocation27_spill] sm:$0xff] %v8715_v12  ;;  %7778 = vmatmul.msk.f32.gmra.mxu2 %vm173_vm1, %v8713_v11  ;;  %v950_v12 = vld [vmem:[#allocation2 + $0x2a] sm:$0xff] }
  0xe0   :  { %13251 = vst [vmem:[#allocation28_spill] sm:$0xff] %v8717_v20  ;;  %7712 = vmatmul.msk.f32.gmra.mxu0 %vm173_vm1, %v270_v28 }
  0xe1   :  { %7745 = vmatmul.msk.f32.gmra.mxu1 %vm173_vm1, %v270_v28 }
  0xe2   :  { %v757_v41 = vpop.f32.mrf.mxu2 }
  0xe3   :  { %7793 = vmatmul.msk.f32.gmra.mxu3 %vm173_vm1, %v8458_v45  ;;  %v8725_v23 = vadd.f32 %v757_v41, %v429_v15  ;;  %v945_v41 = vld [vmem:[#allocation2 + $0x2] sm:$0xff] }
  0xe5   :  { %v432_v30 = vpop.f32.mrf.mxu0 }
  0xe6   :  { %v8729_v33 = vpop.f32.mrf.mxu3  ;;  %v8731_v44 = vpop.f32.mrf.mxu1 }
  0xe7   :  { %13252 = vst [vmem:[#allocation29_spill] sm:$0xff] %v8729_v33  ;;  %7779 = vmatmul.msk.f32.gmra.mxu2 %vm173_vm1, %v8727_v25  ;;  %v949_v33 = vld [vmem:[#allocation2 + $0x22] sm:$0xff] }
  0xe8   :  { %13253 = vst [vmem:[#allocation30_spill] sm:$0xff] %v8731_v44  ;;  %7713 = vmatmul.msk.f32.gmra.mxu0 %vm173_vm1, %v271_v39  ;;  %v966_v44 = vld [vmem:[#allocation2 + $0xaa] sm:$0xff] }
  0xe9   :  { %7746 = vmatmul.msk.f32.gmra.mxu1 %vm173_vm1, %v271_v39 }
  0xea   :  { %v760_v45 = vpop.f32.mrf.mxu2 }
  0xeb   :  { %7794 = vmatmul.msk.f32.gmra.mxu3 %vm173_vm1, %v8469_v49  ;;  %v8739_v46 = vadd.f32 %v760_v45, %v432_v30  ;;  %v8769_v45 = vld [vmem:[#allocation2 + $0xb] sm:$0xff] }
  0xed   :  { %13254 = vst [vmem:[#allocation31_spill] sm:$0xff] %v8739_v46  ;;  %v435_v57 = vpop.f32.mrf.mxu0 }
  0xee   :  { %v8743_v56 = vpop.f32.mrf.mxu3  ;;  %v8745_v63 = vpop.f32.mrf.mxu1 }
  0xef   :  { %13255 = vst [vmem:[#allocation32_spill] sm:$0xff] %v8743_v56  ;;  %7780 = vmatmul.msk.f32.gmra.mxu2 %vm173_vm1, %v8741_v53 }
  0xf0   :  { %13256 = vst [vmem:[#allocation33_spill] sm:$0xff] %v8745_v63  ;;  %7714 = vmatmul.msk.f32.gmra.mxu0 %vm173_vm1, %v272_v37  ;;  %v963_v63 = vld [vmem:[#allocation2 + $0x92] sm:$0xff] }
  0xf1   :  { %7747 = vmatmul.msk.f32.gmra.mxu1 %vm173_vm1, %v272_v37 }
  0xf2   :  { %v763_v49 = vpop.f32.mrf.mxu2 }
  0xf3   :  { %7795 = vmatmul.msk.f32.gmra.mxu3 %vm173_vm1, %v8481_v52  ;;  %v8753_v1 = vadd.f32 %v763_v49, %v435_v57  ;;  %v946_v49 = vld [vmem:[#allocation2 + $0xa] sm:$0xff] }
  0xf5   :  { %13257 = vst [vmem:[#allocation34_spill] sm:$0xff] %v8753_v1  ;;  %v438_v28 = vpop.f32.mrf.mxu0 }
  0xf6   :  { %v8757_v15 = vpop.f32.mrf.mxu3  ;;  %v8759_v30 = vpop.f32.mrf.mxu1 }
  0xf7   :  { %13258 = vst [vmem:[#allocation35_spill] sm:$0xff] %v8757_v15  ;;  %7887 = vmatmul.msk.f32.vlgmr.msrb.gmra.mxu2 %vm173_vm1, %v8755_v22  ;;  %v947_v15 = vld [vmem:[#allocation2 + $0x12] sm:$0xff] }
  0xf8   :  { %13259 = vst [vmem:[#allocation36_spill] sm:$0xff] %v8759_v30  ;;  %7821 = vmatmul.msk.f32.vlgmr.msrb.gmra.mxu0 %vm173_vm1, %v945_v41 }
  0xf9   :  { %7854 = vmatmul.msk.f32.vlgmr.msrb.gmra.mxu1 %vm173_vm1, %v945_v41 }
  0xfa   :  { %v766_v52 = vpop.f32.mrf.mxu2 }
  0xfb   :  { %7796 = vmatmul.msk.f32.gmra.mxu3 %vm173_vm1, %v8493_v55  ;;  %v8767_v39 = vadd.f32 %v766_v52, %v438_v28  ;;  %v1418_v28 = vld [vmem:[#allocation7 + $0xf8] sm:$0xf]  ;;  %v8784_v52 = vld [vmem:[#allocation2 + $0x13] sm:$0xff] }
  0xfc   :  { %7919 = vmatpush.msk.msra.mxu3 %vm384_vm0, %v1418_v28 }
  0xfd   :  { %13260 = vst [vmem:[#allocation37_spill] sm:$0xff] %v8767_v39  ;;  %v441_v37 = vpop.f32.mrf.mxu0  ;;  %v962_v39 = vld [vmem:[#allocation2 + $0x8a] sm:$0xff] }
  0xfe   :  { %v8771_v57 = vpop.f32.mrf.mxu3  ;;  %v8773_v40 = vpop.f32.mrf.mxu1 }
  0xff   :  { %13261 = vst [vmem:[#allocation38_spill] sm:$0xff] %v8771_v57  ;;  %7888 = vmatmul.msk.f32.gmra.mxu2 %vm173_vm1, %v8769_v45 }
 0x100   :  { %13262 = vst [vmem:[#allocation39_spill] sm:$0xff] %v8773_v40  ;;  %7822 = vmatmul.msk.f32.gmra.mxu0 %vm173_vm1, %v946_v49 }
 0x101   :  { %7855 = vmatmul.msk.f32.gmra.mxu1 %vm173_vm1, %v946_v49  ;;  %v8798_v49 = vld [vmem:[#allocation2 + $0x1b] sm:$0xff] }
 0x102   :  { %v769_v55 = vpop.f32.mrf.mxu2 }
 0x103   :  { %7797 = vmatmul.msk.f32.gmra.mxu3 %vm173_vm1, %v8504_v58  ;;  %v8781_v41 = vadd.f32 %v769_v55, %v441_v37 }
 0x105   :  { %13263 = vst [vmem:[#allocation40_spill] sm:$0xff] %v8781_v41  ;;  %v444_v19 = vpop.f32.mrf.mxu0 }
 0x106   :  { %v8786_v57 = vpop.f32.mrf.mxu3  ;;  %v8788_v10 = vpop.f32.mrf.mxu1 }
 0x107   :  { %13264 = vst [vmem:[#allocation41_spill] sm:$0xff] %v8786_v57  ;;  %7889 = vmatmul.msk.f32.gmra.mxu2 %vm173_vm1, %v8784_v52  ;;  %v948_v57 = vld [vmem:[#allocation2 + $0x1a] sm:$0xff] }
 0x108   :  { %13265 = vst [vmem:[#allocation42_spill] sm:$0xff] %v8788_v10  ;;  %7823 = vmatmul.msk.f32.gmra.mxu0 %vm173_vm1, %v947_v15 }
 0x109   :  { %7856 = vmatmul.msk.f32.gmra.mxu1 %vm173_vm1, %v947_v15  ;;  %v8812_v15 = vld [vmem:[#allocation2 + $0x23] sm:$0xff] }
 0x10a   :  { %v772_v58 = vpop.f32.mrf.mxu2 }
 0x10b   :  { %7798 = vmatmul.msk.f32.gmra.mxu3 %vm173_vm1, %v8515_v61  ;;  %v8796_v37 = vadd.f32 %v772_v58, %v444_v19 }
 0x10d   :  { %13266 = vst [vmem:[#allocation43_spill] sm:$0xff] %v8796_v37  ;;  %v447_v28 = vpop.f32.mrf.mxu0  ;;  %v959_v37 = vld [vmem:[#allocation2 + $0x72] sm:$0xff] }
 0x10e   :  { %v8800_v55 = vpop.f32.mrf.mxu3  ;;  %v8802_v56 = vpop.f32.mrf.mxu1 }
 0x10f   :  { %13267 = vst [vmem:[#allocation44_spill] sm:$0xff] %v8800_v55  ;;  %7890 = vmatmul.msk.f32.gmra.mxu2 %vm173_vm1, %v8798_v49 }
 0x110   :  { %13268 = vst [vmem:[#allocation45_spill] sm:$0xff] %v8802_v56  ;;  %7824 = vmatmul.msk.f32.gmra.mxu0 %vm173_vm1, %v948_v57  ;;  %v958_v56 = vld [vmem:[#allocation2 + $0x6a] sm:$0xff] }
 0x111   :  { %7857 = vmatmul.msk.f32.gmra.mxu1 %vm173_vm1, %v948_v57 }
 0x112   :  { %v775_v61 = vpop.f32.mrf.mxu2 }
 0x113   :  { %7799 = vmatmul.msk.f32.gmra.mxu3 %vm173_vm1, %v8526_v0  ;;  %v8810_v19 = vadd.f32 %v775_v61, %v447_v28  ;;  %v8826_v28 = vld [vmem:[#allocation2 + $0x2b] sm:$0xff] }
 0x115   :  { %13269 = vst [vmem:[#allocation46_spill] sm:$0xff] %v8810_v19  ;;  %v450_v62 = vpop.f32.mrf.mxu0  ;;  %v957_v19 = vld [vmem:[#allocation2 + $0x62] sm:$0xff] }
 0x116   :  { %v8814_v58 = vpop.f32.mrf.mxu3  ;;  %v8816_v50 = vpop.f32.mrf.mxu1 }
 0x117   :  { %13270 = vst [vmem:[#allocation47_spill] sm:$0xff] %v8814_v58  ;;  %7891 = vmatmul.msk.f32.gmra.mxu2 %vm173_vm1, %v8812_v15 }
 0x118   :  { %13271 = vst [vmem:[#allocation48_spill] sm:$0xff] %v8816_v50  ;;  %7825 = vmatmul.msk.f32.gmra.mxu0 %vm173_vm1, %v949_v33 }
 0x119   :  { %7858 = vmatmul.msk.f32.gmra.mxu1 %vm173_vm1, %v949_v33  ;;  %v8840_v33 = vld [vmem:[#allocation2 + $0x33] sm:$0xff] }
 0x11a   :  { %v778_v0 = vpop.f32.mrf.mxu2 }
 0x11b   :  { %7800 = vmatmul.msk.f32.gmra.mxu3 %vm173_vm1, %v8537_v3  ;;  %v8824_v57 = vadd.f32 %v778_v0, %v450_v62 }
 0x11d   :  { %13272 = vst [vmem:[#allocation49_spill] sm:$0xff] %v8824_v57  ;;  %v453_v58 = vpop.f32.mrf.mxu0  ;;  %v955_v57 = vld [vmem:[#allocation2 + $0x52] sm:$0xff] }
 0x11e   :  { %v8828_v61 = vpop.f32.mrf.mxu3  ;;  %v8830_v55 = vpop.f32.mrf.mxu1 }
 0x11f   :  { %13273 = vst [vmem:[#allocation50_spill] sm:$0xff] %v8828_v61  ;;  %7892 = vmatmul.msk.f32.gmra.mxu2 %vm173_vm1, %v8826_v28 }
 0x120   :  { %13274 = vst [vmem:[#allocation51_spill] sm:$0xff] %v8830_v55  ;;  %7826 = vmatmul.msk.f32.gmra.mxu0 %vm173_vm1, %v950_v12 }
 0x121   :  { %7859 = vmatmul.msk.f32.gmra.mxu1 %vm173_vm1, %v950_v12 }
 0x122   :  { %v781_v3 = vpop.f32.mrf.mxu2 }
 0x123   :  { %7801 = vmatmul.msk.f32.gmra.mxu3 %vm173_vm1, %v8551_v7  ;;  %v8838_v62 = vadd.f32 %v781_v3, %v453_v58  ;;  %v8854_v58 = vld [vmem:[#allocation2 + $0x3b] sm:$0xff] }
 0x125   :  { %13275 = vst [vmem:[#allocation52_spill] sm:$0xff] %v8838_v62  ;;  %v456_v61 = vpop.f32.mrf.mxu0  ;;  %v952_v62 = vld [vmem:[#allocation2 + $0x3a] sm:$0xff] }
 0x126   :  { %v8842_v0 = vpop.f32.mrf.mxu3  ;;  %v8844_v55 = vpop.f32.mrf.mxu1 }
 0x127   :  { %13276 = vst [vmem:[#allocation53_spill] sm:$0xff] %v8842_v0  ;;  %7893 = vmatmul.msk.f32.gmra.mxu2 %vm173_vm1, %v8840_v33 }
 0x128   :  { %13277 = vst [vmem:[#allocation54_spill] sm:$0xff] %v8844_v55  ;;  %7827 = vmatmul.msk.f32.gmra.mxu0 %vm173_vm1, %v951_v38 }
 0x129   :  { %7860 = vmatmul.msk.f32.gmra.mxu1 %vm173_vm1, %v951_v38 }
 0x12a   :  { %v784_v7 = vpop.f32.mrf.mxu2 }
 0x12b   :  { %7802 = vmatmul.msk.f32.gmra.mxu3 %vm173_vm1, %v8567_v13  ;;  %v8852_v12 = vadd.f32 %v784_v7, %v456_v61  ;;  %v8868_v61 = vld [vmem:[#allocation2 + $0x43] sm:$0xff] }
 0x12d   :  { %13278 = vst [vmem:[#allocation55_spill] sm:$0xff] %v8852_v12  ;;  %v459_v0 = vpop.f32.mrf.mxu0  ;;  %v953_v12 = vld [vmem:[#allocation2 + $0x42] sm:$0xff] }
 0x12e   :  { %v8856_v3 = vpop.f32.mrf.mxu3  ;;  %v8858_v55 = vpop.f32.mrf.mxu1 }
 0x12f   :  { %13279 = vst [vmem:[#allocation56_spill] sm:$0xff] %v8856_v3  ;;  %7894 = vmatmul.msk.f32.gmra.mxu2 %vm173_vm1, %v8854_v58 }
 0x130   :  { %13280 = vst [vmem:[#allocation57_spill] sm:$0xff] %v8858_v55  ;;  %7828 = vmatmul.msk.f32.gmra.mxu0 %vm173_vm1, %v952_v62 }
 0x131   :  { %7861 = vmatmul.msk.f32.gmra.mxu1 %vm173_vm1, %v952_v62 }
 0x132   :  { %v787_v13 = vpop.f32.mrf.mxu2 }
 0x133   :  { %7803 = vmatmul.msk.f32.gmra.mxu3 %vm173_vm1, %v8582_v21  ;;  %v8866_v38 = vadd.f32 %v787_v13, %v459_v0  ;;  %v8882_v0 = vld [vmem:[#allocation2 + $0x4b] sm:$0xff] }
 0x135   :  { %13281 = vst [vmem:[#allocation58_spill] sm:$0xff] %v8866_v38  ;;  %v462_v3 = vpop.f32.mrf.mxu0  ;;  %v954_v38 = vld [vmem:[#allocation2 + $0x4a] sm:$0xff] }
 0x136   :  { %v8870_v7 = vpop.f32.mrf.mxu3  ;;  %v8872_v55 = vpop.f32.mrf.mxu1 }
 0x137   :  { %13282 = vst [vmem:[#allocation59_spill] sm:$0xff] %v8870_v7  ;;  %7895 = vmatmul.msk.f32.gmra.mxu2 %vm173_vm1, %v8868_v61 }
 0x138   :  { %13283 = vst [vmem:[#allocation60_spill] sm:$0xff] %v8872_v55  ;;  %7829 = vmatmul.msk.f32.gmra.mxu0 %vm173_vm1, %v953_v12 }
 0x139   :  { %7862 = vmatmul.msk.f32.gmra.mxu1 %vm173_vm1, %v953_v12  ;;  %v1416_v12 = vld [vmem:[#allocation7 + $0xe8] sm:$0xff] }
 0x13a   :  { %v790_v21 = vpop.f32.mrf.mxu2  ;;  %1647 = vmatpush.msra.mxu3 %v1416_v12 }
 0x13b   :  { %7804 = vmatmul.msk.f32.gmra.mxu3 %vm173_vm1, %v8596_v26  ;;  %v8880_v62 = vadd.f32 %v790_v21, %v462_v3  ;;  %v8896_v21 = vld [vmem:[#allocation2 + $0x53] sm:$0xff] }
 0x13d   :  { %13284 = vst [vmem:[#allocation61_spill] sm:$0xff] %v8880_v62  ;;  %v465_v7 = vpop.f32.mrf.mxu0 }
 0x13e   :  { %v8884_v13 = vpop.f32.mrf.mxu3  ;;  %v8886_v55 = vpop.f32.mrf.mxu1 }
 0x13f   :  { %13285 = vst [vmem:[#allocation62_spill] sm:$0xff] %v8886_v55  ;;  %7896 = vmatmul.msk.f32.gmra.mxu2 %vm173_vm1, %v8882_v0 }
 0x140   :  { %7830 = vmatmul.msk.f32.gmra.mxu0 %vm173_vm1, %v954_v38 }
 0x141   :  { %7863 = vmatmul.msk.f32.gmra.mxu1 %vm173_vm1, %v954_v38 }
 0x142   :  { %v793_v26 = vpop.f32.mrf.mxu2 }
 0x143   :  { %7805 = vmatmul.msk.f32.gmra.mxu3 %vm173_vm1, %v8614_v36  ;;  %v8894_v3 = vadd.f32 %v793_v26, %v465_v7  ;;  %v8910_v7 = vld [vmem:[#allocation2 + $0x5b] sm:$0xff] }
 0x145   :  { %13286 = vst [vmem:[#allocation63_spill] sm:$0xff] %v8894_v3  ;;  %v468_v55 = vpop.f32.mrf.mxu0  ;;  %v956_v3 = vld [vmem:[#allocation2 + $0x5a] sm:$0xff] }
 0x146   :  { %v8898_v62 = vpop.f32.mrf.mxu3  ;;  %v8900_v50 = vpop.f32.mrf.mxu1 }
 0x147   :  { %13287 = vst [vmem:[#allocation64_spill] sm:$0xff] %v8900_v50  ;;  %7897 = vmatmul.msk.f32.gmra.mxu2 %vm173_vm1, %v8896_v21 }
 0x148   :  { %7831 = vmatmul.msk.f32.gmra.mxu0 %vm173_vm1, %v955_v57 }
 0x149   :  { %7864 = vmatmul.msk.f32.gmra.mxu1 %vm173_vm1, %v955_v57  ;;  %v8924_v57 = vld [vmem:[#allocation2 + $0x63] sm:$0xff] }
 0x14a   :  { %v796_v36 = vpop.f32.mrf.mxu2 }
 0x14b   :  { %7806 = vmatmul.msk.f32.gmra.mxu3 %vm173_vm1, %v8634_v48  ;;  %v8908_v38 = vadd.f32 %v796_v36, %v468_v55 }
 0x14d   :  { %13288 = vst [vmem:[#allocation65_spill] sm:$0xff] %v8908_v38  ;;  %v471_v12 = vpop.f32.mrf.mxu0 }
 0x14e   :  { %v8912_v26 = vpop.f32.mrf.mxu3  ;;  %v8914_v50 = vpop.f32.mrf.mxu1 }
 0x14f   :  { %13289 = vst [vmem:[#allocation66_spill] sm:$0xff] %v8914_v50  ;;  %7898 = vmatmul.msk.f32.gmra.mxu2 %vm173_vm1, %v8910_v7 }
 0x150   :  { %7832 = vmatmul.msk.f32.gmra.mxu0 %vm173_vm1, %v956_v3 }
 0x151   :  { %7865 = vmatmul.msk.f32.gmra.mxu1 %vm173_vm1, %v956_v3 }
 0x152   :  { %v799_v48 = vpop.f32.mrf.mxu2 }
 0x153   :  { %7807 = vmatmul.msk.f32.gmra.mxu3 %vm173_vm1, %v8652_v60  ;;  %v8922_v55 = vadd.f32 %v799_v48, %v471_v12  ;;  %v8938_v12 = vld [vmem:[#allocation2 + $0x6b] sm:$0xff] }
 0x155   :  { %13290 = vst [vmem:[#allocation67_spill] sm:$0xff] %v8922_v55  ;;  %v474_v38 = vpop.f32.mrf.mxu0 }
 0x156   :  { %v8926_v36 = vpop.f32.mrf.mxu3  ;;  %v8928_v50 = vpop.f32.mrf.mxu1 }
 0x157   :  { %13291 = vst [vmem:[#allocation68_spill] sm:$0xff] %v8928_v50  ;;  %7899 = vmatmul.msk.f32.gmra.mxu2 %vm173_vm1, %v8924_v57 }
 0x158   :  { %7833 = vmatmul.msk.f32.gmra.mxu0 %vm173_vm1, %v957_v19 }
 0x159   :  { %7866 = vmatmul.msk.f32.gmra.mxu1 %vm173_vm1, %v957_v19  ;;  %v1850_v19 = vld [vmem:[#allocation7 + $0x130] sm:$0xf] }
 0x15a   :  { %v802_v60 = vpop.f32.mrf.mxu2  ;;  %7952 = vmatpush.msk.msra.mxu0 %vm384_vm0, %v1850_v19 }
 0x15b   :  { %7808 = vmatmul.msk.f32.gmra.mxu3 %vm173_vm1, %v8670_v8  ;;  %v8936_v3 = vadd.f32 %v802_v60, %v474_v38  ;;  %v8953_v60 = vld [vmem:[#allocation2 + $0x73] sm:$0xff] }
 0x15d   :  { %13292 = vst [vmem:[#allocation69_spill] sm:$0xff] %v8936_v3  ;;  %v477_v55 = vpop.f32.mrf.mxu0 }
 0x15e   :  { %v8940_v48 = vpop.f32.mrf.mxu3  ;;  %v8942_v50 = vpop.f32.mrf.mxu1 }
 0x15f   :  { %13293 = vst [vmem:[#allocation70_spill] sm:$0xff] %v8942_v50  ;;  %7900 = vmatmul.msk.f32.gmra.mxu2 %vm173_vm1, %v8938_v12 }
 0x160   :  { %7834 = vmatmul.msk.f32.gmra.mxu0 %vm173_vm1, %v958_v56 }
 0x161   :  { %7867 = vmatmul.msk.f32.gmra.mxu1 %vm173_vm1, %v958_v56  ;;  %v1851_v56 = vld [vmem:[#allocation7 + $0x138] sm:$0xf] }
 0x162   :  { %v805_v8 = vpop.f32.mrf.mxu2  ;;  %7985 = vmatpush.msk.msra.mxu1 %vm384_vm0, %v1851_v56 }
 0x163   :  { %7809 = vmatmul.msk.f32.gmra.mxu3 %vm173_vm1, %v8684_v17  ;;  %v8950_v38 = vadd.f32 %v805_v8, %v477_v55  ;;  %v8968_v8 = vld [vmem:[#allocation2 + $0x7b] sm:$0xff] }
 0x165   :  { %13294 = vst [vmem:[#allocation71_spill] sm:$0xff] %v8950_v38  ;;  %v480_v50 = vpop.f32.mrf.mxu0  ;;  %v960_v38 = vld [vmem:[#allocation2 + $0x7a] sm:$0xff] }
 0x166   :  { %v8955_v3 = vpop.f32.mrf.mxu3  ;;  %v8957_v10 = vpop.f32.mrf.mxu1 }
 0x167   :  { %13295 = vst [vmem:[#allocation72_spill] sm:$0xff] %v8957_v10  ;;  %7901 = vmatmul.msk.f32.gmra.mxu2 %vm173_vm1, %v8953_v60 }
 0x168   :  { %7835 = vmatmul.msk.f32.gmra.mxu0 %vm173_vm1, %v959_v37 }
 0x169   :  { %7868 = vmatmul.msk.f32.gmra.mxu1 %vm173_vm1, %v959_v37  ;;  %v8982_v37 = vld [vmem:[#allocation2 + $0x83] sm:$0xff] }
 0x16a   :  { %v808_v17 = vpop.f32.mrf.mxu2 }
 0x16b   :  { %7810 = vmatmul.msk.f32.gmra.mxu3 %vm173_vm1, %v8699_v34  ;;  %v8965_v55 = vadd.f32 %v808_v17, %v480_v50 }
 0x16d   :  { %13296 = vst [vmem:[#allocation73_spill] sm:$0xff] %v8965_v55  ;;  %v483_v10 = vpop.f32.mrf.mxu0  ;;  %v961_v55 = vld [vmem:[#allocation2 + $0x82] sm:$0xff] }
 0x16e   :  { %v8970_v19 = vpop.f32.mrf.mxu3  ;;  %v8972_v41 = vpop.f32.mrf.mxu1 }
 0x16f   :  { %13297 = vst [vmem:[#allocation74_spill] sm:$0xff] %v8972_v41  ;;  %7902 = vmatmul.msk.f32.gmra.mxu2 %vm173_vm1, %v8968_v8 }
 0x170   :  { %7836 = vmatmul.msk.f32.gmra.mxu0 %vm173_vm1, %v960_v38 }
 0x171   :  { %7869 = vmatmul.msk.f32.gmra.mxu1 %vm173_vm1, %v960_v38 }
 0x172   :  { %v811_v50 = vpop.f32.mrf.mxu2 }
 0x173   :  { %7811 = vmatmul.msk.f32.gmra.mxu3 %vm173_vm1, %v8713_v11  ;;  %v8980_v34 = vadd.f32 %v811_v50, %v483_v10  ;;  %v8997_v50 = vld [vmem:[#allocation2 + $0x8b] sm:$0xff] }
 0x175   :  { %13298 = vst [vmem:[#allocation75_spill] sm:$0xff] %v8980_v34  ;;  %v1105_v56 = vpop.f32.mrf.mxu0 }
 0x176   :  { %v8984_v17 = vpop.f32.mrf.mxu3  ;;  %v8986_v41 = vpop.f32.mrf.mxu1  ;;  %v1314_v11 = vadd.f32 %v1105_v56, %v8612_v35 }
 0x177   :  { %13299 = vst [vmem:[#allocation76_spill] sm:$0xff] %v8984_v17  ;;  %7903 = vmatmul.msk.f32.gmra.mxu2 %vm173_vm1, %v8982_v37 }
 0x178   :  { %7837 = vmatmul.msk.f32.gmra.mxu0 %vm173_vm1, %v961_v55 }
 0x179   :  { %7870 = vmatmul.msk.f32.gmra.mxu1 %vm173_vm1, %v961_v55  ;;  %v1414_v55 = vld [vmem:[#allocation7 + $0xd8] sm:$0xff] }
 0x17a   :  { %v1538_v10 = vpop.f32.mrf.mxu2  ;;  %1648 = vmatpush.msra.mxu3 %v1414_v55  ;;  %v964_v55 = vld [vmem:[#allocation2 + $0x9a] sm:$0xff] }
 0x17b   :  { %7812 = vmatmul.msk.f32.gmra.mxu3 %vm173_vm1, %v8727_v25  ;;  %v8995_v38 = vadd.f32 %v1538_v10, %v1314_v11  ;;  %v9012_v11 = vld [vmem:[#allocation2 + $0x93] sm:$0xff] }
 0x17d   :  { %v1108_v40 = vpop.f32.mrf.mxu0 }
 0x17e   :  { %v8999_v34 = vpop.f32.mrf.mxu3  ;;  %v9001_v30 = vpop.f32.mrf.mxu1  ;;  %v1316_v35 = vadd.f32 %v1108_v40, %v8632_v47 }
 0x17f   :  { %13300 = vst [vmem:[#allocation77_spill] sm:$0xff] %v8999_v34  ;;  %7904 = vmatmul.msk.f32.gmra.mxu2 %vm173_vm1, %v8997_v50 }
 0x180   :  { %7838 = vmatmul.msk.f32.gmra.mxu0 %vm173_vm1, %v962_v39 }
 0x181   :  { %7871 = vmatmul.msk.f32.gmra.mxu1 %vm173_vm1, %v962_v39  ;;  %v9027_v39 = vld [vmem:[#allocation2 + $0x9b] sm:$0xff] }
 0x182   :  { %v1541_v25 = vpop.f32.mrf.mxu2 }
 0x183   :  { %7813 = vmatmul.msk.f32.gmra.mxu3 %vm173_vm1, %v8741_v53  ;;  %v9010_v56 = vadd.f32 %v1541_v25, %v1316_v35 }
 0x185   :  { %v1111_v1 = vpop.f32.mrf.mxu0 }
 0x186   :  { %v9014_v10 = vpop.f32.mrf.mxu3  ;;  %v9016_v46 = vpop.f32.mrf.mxu1  ;;  %v1318_v47 = vadd.f32 %v1111_v1, %v8650_v59  ;;  %v9042_v1 = vld [vmem:[#allocation2 + $0xa3] sm:$0xff] }
 0x187   :  { %13301 = vst [vmem:[#allocation78_spill] sm:$0xff] %v9014_v10  ;;  %7905 = vmatmul.msk.f32.gmra.mxu2 %vm173_vm1, %v9012_v11 }
 0x188   :  { %7839 = vmatmul.msk.f32.gmra.mxu0 %vm173_vm1, %v963_v63 }
 0x189   :  { %7872 = vmatmul.msk.f32.gmra.mxu1 %vm173_vm1, %v963_v63 }
 0x18a   :  { %v1544_v40 = vpop.f32.mrf.mxu2 }
 0x18b   :  { %7814 = vmatmul.msk.f32.gmra.mxu3 %vm173_vm1, %v8541_v5  ;;  %v9025_v53 = vadd.f32 %v1544_v40, %v1318_v47 }
 0x18d   :  { %v1114_v25 = vpop.f32.mrf.mxu0 }
 0x18e   :  { %v9029_v35 = vpop.f32.mrf.mxu3  ;;  %v9031_v10 = vpop.f32.mrf.mxu1  ;;  %v1320_v5 = vadd.f32 %v1114_v25, %v8668_v6 }
 0x18f   :  { %13302 = vst [vmem:[#allocation79_spill] sm:$0xff] %v9029_v35  ;;  %7906 = vmatmul.msk.f32.gmra.mxu2 %vm173_vm1, %v9027_v39  ;;  %v965_v35 = vld [vmem:[#allocation2 + $0xa2] sm:$0xff] }
 0x190   :  { %7840 = vmatmul.msk.f32.gmra.mxu0 %vm173_vm1, %v964_v55 }
 0x191   :  { %7873 = vmatmul.msk.f32.gmra.mxu1 %vm173_vm1, %v964_v55  ;;  %v1412_v55 = vld [vmem:[#allocation7 + $0xc8] sm:$0xff] }
 0x192   :  { %v1547_v59 = vpop.f32.mrf.mxu2  ;;  %1649 = vmatpush.msra.mxu3 %v1412_v55  ;;  %v9072_v55 = vld [vmem:[#allocation2 + $0xb3] sm:$0xff] }
 0x193   :  { %7815 = vmatmul.msk.f32.gmra.mxu3 %vm173_vm1, %v8555_v9  ;;  %v9040_v63 = vadd.f32 %v1547_v59, %v1320_v5  ;;  %v9057_v5 = vld [vmem:[#allocation2 + $0xab] sm:$0xff] }
 0x195   :  { %v1117_v40 = vpop.f32.mrf.mxu0 }
 0x196   :  { %v9044_v47 = vpop.f32.mrf.mxu3  ;;  %v9046_v34 = vpop.f32.mrf.mxu1  ;;  %v1322_v9 = vadd.f32 %v1117_v40, %v8682_v16 }
 0x197   :  { %13303 = vst [vmem:[#allocation80_spill] sm:$0xff] %v9044_v47  ;;  %7907 = vmatmul.msk.f32.gmra.mxu2 %vm173_vm1, %v9042_v1 }
 0x198   :  { %7841 = vmatmul.msk.f32.gmra.mxu0 %vm173_vm1, %v965_v35 }
 0x199   :  { %7874 = vmatmul.msk.f32.gmra.mxu1 %vm173_vm1, %v965_v35  ;;  %v1848_v35 = vld [vmem:[#allocation7 + $0x120] sm:$0xff] }
 0x19a   :  { %v1550_v6 = vpop.f32.mrf.mxu2  ;;  %1967 = vmatpush.msra.mxu0 %v1848_v35 }
 0x19b   :  { %7816 = vmatmul.msk.f32.gmra.mxu3 %vm173_vm1, %v8571_v18  ;;  %v9055_v25 = vadd.f32 %v1550_v6, %v1322_v9 }
 0x19d   :  { %v1120_v47 = vpop.f32.mrf.mxu0 }
 0x19e   :  { %v9059_v59 = vpop.f32.mrf.mxu3  ;;  %v9061_v17 = vpop.f32.mrf.mxu1  ;;  %v1324_v18 = vadd.f32 %v1120_v47, %v8696_v32 }
 0x19f   :  { %13304 = vst [vmem:[#allocation81_spill] sm:$0xff] %v9059_v59  ;;  %7908 = vmatmul.msk.f32.gmra.mxu2 %vm173_vm1, %v9057_v5  ;;  %v967_v59 = vld [vmem:[#allocation2 + $0xb2] sm:$0xff] }
 0x1a0   :  { %7842 = vmatmul.msk.f32.gmra.mxu0 %vm173_vm1, %v966_v44 }
 0x1a1   :  { %7875 = vmatmul.msk.f32.gmra.mxu1 %vm173_vm1, %v966_v44  ;;  %v1849_v44 = vld [vmem:[#allocation7 + $0x128] sm:$0xff] }
 0x1a2   :  { %v1553_v16 = vpop.f32.mrf.mxu2  ;;  %2080 = vmatpush.msra.mxu1 %v1849_v44  ;;  %v969_v44 = vld [vmem:[#allocation2 + $0xc2] sm:$0xff] }
 0x1a3   :  { %7817 = vmatmul.msk.f32.gmra.mxu3 %vm173_vm1, %v8586_v24  ;;  %v9070_v40 = vadd.f32 %v1553_v16, %v1324_v18  ;;  %v9087_v18 = vld [vmem:[#allocation2 + $0xbb] sm:$0xff] }
 0x1a5   :  { %v1123_v6 = vpop.f32.mrf.mxu0 }
 0x1a6   :  { %v9074_v9 = vpop.f32.mrf.mxu3  ;;  %v9076_v20 = vpop.f32.mrf.mxu1  ;;  %v1326_v24 = vadd.f32 %v1123_v6, %v8711_v4  ;;  %v9102_v6 = vld [vmem:[#allocation2 + $0xc3] sm:$0xff] }
 0x1a7   :  { %13305 = vst [vmem:[#allocation82_spill] sm:$0xff] %v9074_v9  ;;  %7909 = vmatmul.msk.f32.gmra.mxu2 %vm173_vm1, %v9072_v55  ;;  %v968_v9 = vld [vmem:[#allocation2 + $0xba] sm:$0xff] }
 0x1a8   :  { %13306 = vst [vmem:[#allocation83_spill] sm:$0xff] %v9076_v20  ;;  %7843 = vmatmul.msk.f32.gmra.mxu0 %vm173_vm1, %v967_v59 }
 0x1a9   :  { %7876 = vmatmul.msk.f32.gmra.mxu1 %vm173_vm1, %v967_v59 }
 0x1aa   :  { %v1556_v32 = vpop.f32.mrf.mxu2 }
 0x1ab   :  { %7818 = vmatmul.msk.f32.gmra.mxu3 %vm173_vm1, %v8602_v31  ;;  %v9085_v47 = vadd.f32 %v1556_v32, %v1326_v24 }
 0x1ad   :  { %v1126_v35 = vpop.f32.mrf.mxu0 }
 0x1ae   :  { %v9089_v16 = vpop.f32.mrf.mxu3  ;;  %v9091_v20 = vpop.f32.mrf.mxu1  ;;  %v1328_v31 = vadd.f32 %v1126_v35, %v8725_v23  ;;  %v970_v35 = vld [vmem:[#allocation2 + $0xca] sm:$0xff] }
 0x1af   :  { %13307 = vst [vmem:[#allocation84_spill] sm:$0xff] %v9089_v16  ;;  %7910 = vmatmul.msk.f32.gmra.mxu2 %vm173_vm1, %v9087_v18 }
 0x1b0   :  { %7844 = vmatmul.msk.f32.gmra.mxu0 %vm173_vm1, %v968_v9 }
 0x1b1   :  { %7877 = vmatmul.msk.f32.gmra.mxu1 %vm173_vm1, %v968_v9 }
 0x1b2   :  { %v1559_v4 = vpop.f32.mrf.mxu2 }
 0x1b3   :  { %7819 = vmatmul.msk.f32.gmra.mxu3 %vm173_vm1, %v8622_v43  ;;  %v9100_v59 = vadd.f32 %v1559_v4, %v1328_v31  ;;  %v9116_v43 = vld [vmem:[#allocation2 + $0xcb] sm:$0xff] }
 0x1b5   :  { %v9106_v32 = vpop.f32.mrf.mxu0 }
 0x1b6   :  { %v9104_v24 = vpop.f32.mrf.mxu3  ;;  %v9108_v16 = vpop.f32.mrf.mxu1 }
 0x1b7   :  { %13308 = vst [vmem:[#allocation85_spill] sm:$0xff] %v9104_v24  ;;  %7911 = vmatmul.msk.f32.gmra.mxu2 %vm173_vm1, %v9102_v6 }
 0x1b8   :  { %13309 = vst [vmem:[#allocation86_spill] sm:$0xff] %v9108_v16  ;;  %7845 = vmatmul.msk.f32.gmra.mxu0 %vm173_vm1, %v969_v44  ;;  %v1844_v16 = vld [vmem:[#allocation7 + $0x100] sm:$0xff] }
 0x1b9   :  { %7878 = vmatmul.msk.f32.gmra.mxu1 %vm173_vm1, %v969_v44 }
 0x1bb   :  { %7920 = vmatmul.msk.f32.vlgmr.msra.gmra.mxu3 %vm173_vm1, %v8755_v22  ;;  %v9130_v22 = vld [vmem:[#allocation2 + $0xd3] sm:$0xff] }
 0x1bd   :  { %v9120_v9 = vpop.f32.mrf.mxu0 }
 0x1be   :  { %v9118_v23 = vpop.f32.mrf.mxu3  ;;  %13311 = vst [vmem:[#allocation88_spill] sm:$0xff] %v9120_v9  ;;  %v9122_v31 = vpop.f32.mrf.mxu1  ;;  %v1847_v9 = vld [vmem:[#allocation7 + $0x118] sm:$0xff] }
 0x1bf   :  { %13310 = vst [vmem:[#allocation87_spill] sm:$0xff] %v9118_v23  ;;  %7912 = vmatmul.msk.f32.gmra.mxu2 %vm173_vm1, %v9116_v43  ;;  %v971_v23 = vld [vmem:[#allocation2 + $0xd2] sm:$0xff]  ;;  %2081 = vmatpush.msra.mxu1 %v1847_v9 }
 0x1c0   :  { %13312 = vst [vmem:[#allocation89_spill] sm:$0xff] %v9122_v31  ;;  %7846 = vmatmul.msk.f32.gmra.mxu0 %vm173_vm1, %v970_v35 }
 0x1c1   :  { %7879 = vmatmul.msk.f32.gmra.mxu1 %vm173_vm1, %v970_v35 }
 0x1c3   :  { %7921 = vmatmul.msk.f32.gmra.mxu3 %vm173_vm1, %v8769_v45  ;;  %v9144_v45 = vld [vmem:[#allocation2 + $0xdb] sm:$0xff] }
 0x1c5   :  { %v9134_v44 = vpop.f32.mrf.mxu0 }
 0x1c6   :  { %v9132_v4 = vpop.f32.mrf.mxu3  ;;  %13314 = vst [vmem:[#allocation91_spill] sm:$0xff] %v9134_v44  ;;  %v9136_v24 = vpop.f32.mrf.mxu1  ;;  %v972_v44 = vld [vmem:[#allocation2 + $0xda] sm:$0xff] }
 0x1c7   :  { %13313 = vst [vmem:[#allocation90_spill] sm:$0xff] %v9132_v4  ;;  %7913 = vmatmul.msk.f32.gmra.mxu2 %vm173_vm1, %v9130_v22 }
 0x1c8   :  { %13315 = vst [vmem:[#allocation92_spill] sm:$0xff] %v9136_v24  ;;  %7847 = vmatmul.msk.f32.gmra.mxu0 %vm173_vm1, %v971_v23 }
 0x1c9   :  { %7880 = vmatmul.msk.f32.gmra.mxu1 %vm173_vm1, %v971_v23 }
 0x1cb   :  { %7922 = vmatmul.msk.f32.gmra.mxu3 %vm173_vm1, %v8784_v52  ;;  %v9158_v52 = vld [vmem:[#allocation2 + $0xe3] sm:$0xff] }
 0x1cd   :  { %v9148_v4 = vpop.f32.mrf.mxu0 }
 0x1ce   :  { %v9146_v35 = vpop.f32.mrf.mxu3  ;;  %13317 = vst [vmem:[#allocation94_spill] sm:$0xff] %v9148_v4  ;;  %v9150_v31 = vpop.f32.mrf.mxu1  ;;  %v973_v4 = vld [vmem:[#allocation2 + $0xe2] sm:$0xff] }
 0x1cf   :  { %13316 = vst [vmem:[#allocation93_spill] sm:$0xff] %v9146_v35  ;;  %7914 = vmatmul.msk.f32.gmra.mxu2 %vm173_vm1, %v9144_v45 }
 0x1d0   :  { %13318 = vst [vmem:[#allocation95_spill] sm:$0xff] %v9150_v31  ;;  %7848 = vmatmul.msk.f32.gmra.mxu0 %vm173_vm1, %v972_v44  ;;  %v1846_v31 = vld [vmem:[#allocation7 + $0x110] sm:$0xff] }
 0x1d1   :  { %7881 = vmatmul.msk.f32.gmra.mxu1 %vm173_vm1, %v972_v44  ;;  %1968 = vmatpush.msra.mxu0 %v1846_v31  ;;  %v9172_v44 = vld [vmem:[#allocation2 + $0xeb] sm:$0xff] }
 0x1d3   :  { %7923 = vmatmul.msk.f32.gmra.mxu3 %vm173_vm1, %v8798_v49  ;;  %v1845_v49 = vld [vmem:[#allocation7 + $0x108] sm:$0xff]  ;;  %1969 = vmatpush.msra.mxu0 %v1844_v16 }
 0x1d4   :  { %2082 = vmatpush.msra.mxu1 %v1845_v49 }
 0x1d5   :  { %v9162_v35 = vpop.f32.mrf.mxu0 }
 0x1d6   :  { %v9160_v23 = vpop.f32.mrf.mxu3  ;;  %13320 = vst [vmem:[#allocation97_spill] sm:$0xff] %v9162_v35  ;;  %v9164_v24 = vpop.f32.mrf.mxu1  ;;  %v974_v35 = vld [vmem:[#allocation2 + $0xea] sm:$0xff] }
 0x1d7   :  { %13319 = vst [vmem:[#allocation96_spill] sm:$0xff] %v9160_v23  ;;  %7915 = vmatmul.msk.f32.gmra.mxu2 %vm173_vm1, %v9158_v52 }
 0x1d8   :  { %13321 = vst [vmem:[#allocation98_spill] sm:$0xff] %v9164_v24  ;;  %7849 = vmatmul.msk.f32.gmra.mxu0 %vm173_vm1, %v973_v4 }
 0x1d9   :  { %7882 = vmatmul.msk.f32.gmra.mxu1 %vm173_vm1, %v973_v4  ;;  %v975_v4 = vld [vmem:[#allocation2 + $0xf2] sm:$0xff] }
 0x1db   :  { %7924 = vmatmul.msk.f32.gmra.mxu3 %vm173_vm1, %v8812_v15  ;;  %v9186_v15 = vld [vmem:[#allocation2 + $0xf3] sm:$0xff] }
 0x1dd   :  { %v9176_v24 = vpop.f32.mrf.mxu0 }
 0x1de   :  { %v9174_v23 = vpop.f32.mrf.mxu3  ;;  %v9178_v31 = vpop.f32.mrf.mxu1 }
 0x1df   :  { %13322 = vst [vmem:[#allocation99_spill] sm:$0xff] %v9174_v23  ;;  %7916 = vmatmul.msk.f32.gmra.mxu2 %vm173_vm1, %v9172_v44  ;;  %v976_v23 = vld [vmem:[#allocation2 + $0xfa] sm:$0xff] }
 0x1e0   :  { %7850 = vmatmul.msk.f32.gmra.mxu0 %vm173_vm1, %v974_v35 }
 0x1e1   :  { %7883 = vmatmul.msk.f32.gmra.mxu1 %vm173_vm1, %v974_v35 }
 0x1e3   :  { %7925 = vmatmul.msk.f32.gmra.mxu3 %vm173_vm1, %v8826_v28  ;;  %v9200_v28 = vld [vmem:[#allocation2 + $0xfb] sm:$0xff] }
 0x1e5   :  { %v9190_v9 = vpop.f32.mrf.mxu0 }
 0x1e6   :  { %v9188_v16 = vpop.f32.mrf.mxu3  ;;  %13324 = vst [vmem:[#allocation101_spill] sm:$0xff] %v9190_v9  ;;  %v9192_v49 = vpop.f32.mrf.mxu1 }
 0x1e7   :  { %13323 = vst [vmem:[#allocation100_spill] sm:$0xff] %v9188_v16  ;;  %7917 = vmatmul.msk.f32.gmra.mxu2 %vm173_vm1, %v9186_v15 }
 0x1e8   :  { %13325 = vst [vmem:[#allocation102_spill] sm:$0xff] %v9192_v49  ;;  %7851 = vmatmul.msk.f32.gmra.mxu0 %vm173_vm1, %v975_v4 }
 0x1e9   :  { %7884 = vmatmul.msk.f32.gmra.mxu1 %vm173_vm1, %v975_v4 }
 0x1eb   :  { %7926 = vmatmul.msk.f32.gmra.mxu3 %vm173_vm1, %v8840_v33 }
 0x1ed   :  { %v9204_v16 = vpop.f32.mrf.mxu0 }
 0x1ee   :  { %v9202_v35 = vpop.f32.mrf.mxu3  ;;  %13327 = vst [vmem:[#allocation104_spill] sm:$0xff] %v9204_v16  ;;  %v9206_v9 = vpop.f32.mrf.mxu1  ;;  %v1827_v16 = vld [vmem:[#allocation2 + $0x84] sm:$0xff] }
 0x1ef   :  { %13326 = vst [vmem:[#allocation103_spill] sm:$0xff] %v9202_v35  ;;  %7918 = vmatmul.msk.f32.gmra.mxu2 %vm173_vm1, %v9200_v28  ;;  %v1811_v35 = vld [vmem:[#allocation2 + $0x4] sm:$0xff] }
 0x1f0   :  { %13328 = vst [vmem:[#allocation105_spill] sm:$0xff] %v9206_v9  ;;  %7852 = vmatmul.msk.f32.gmra.mxu0 %vm173_vm1, %v976_v23 }
 0x1f1   :  { %7885 = vmatmul.msk.f32.gmra.mxu1 %vm173_vm1, %v976_v23  ;;  %v2914_v23 = vld [vmem:[%s13219_s3 + $0x78] sm:$0xff] }
 0x1f2   :  { %2931 = vmatpush.msra.mxu2 %v2914_v23 }
 0x1f3   :  { %7927 = vmatmul.msk.f32.gmra.mxu3 %vm173_vm1, %v8854_v58 }
 0x1f5   :  { %v9216_v4 = vpop.f32.mrf.mxu0 }
 0x1f6   :  { %v9214_v33 = vpop.f32.mrf.mxu3  ;;  %13330 = vst [vmem:[#allocation107_spill] sm:$0xff] %v9216_v4  ;;  %v9218_v49 = vpop.f32.mrf.mxu1  ;;  %v1812_v4 = vld [vmem:[#allocation2 + $0xc] sm:$0xff] }
 0x1f7   :  { %13329 = vst [vmem:[#allocation106_spill] sm:$0xff] %v9214_v33 }
 0x1f8   :  { %13331 = vst [vmem:[#allocation108_spill] sm:$0xff] %v9218_v49  ;;  %7953 = vmatmul.msk.f32.vlgmr.msra.gmra.mxu0 %vm173_vm1, %v1811_v35  ;;  %v2900_v49 = vld [vmem:[%s13219_s3 + $0x8] sm:$0xff] }
 0x1f9   :  { %7986 = vmatmul.msk.f32.vlgmr.msra.gmra.mxu1 %vm173_vm1, %v1811_v35 }
 0x1fb   :  { %7928 = vmatmul.msk.f32.gmra.mxu3 %vm173_vm1, %v8868_v61  ;;  %v2930_v61 = vld [vmem:[%s13219_s3 + $0xf8] sm:$0xff] }
 0x1fc   :  { %3044 = vmatpush.msrb.mxu3 %v2930_v61 }
 0x1fd   :  { %v9229_v33 = vpop.f32.mrf.mxu0 }
 0x1fe   :  { %v9227_v58 = vpop.f32.mrf.mxu3  ;;  %13333 = vst [vmem:[#allocation110_spill] sm:$0xff] %v9229_v33  ;;  %v9231_v9 = vpop.f32.mrf.mxu1 }
 0x1ff   :  { %13332 = vst [vmem:[#allocation109_spill] sm:$0xff] %v9227_v58  ;;  %v1813_v58 = vld [vmem:[#allocation2 + $0x14] sm:$0xff] }
 0x200   :  { %13334 = vst [vmem:[#allocation111_spill] sm:$0xff] %v9231_v9  ;;  %7954 = vmatmul.msk.f32.gmra.mxu0 %vm173_vm1, %v1812_v4 }
 0x201   :  { %7987 = vmatmul.msk.f32.gmra.mxu1 %vm173_vm1, %v1812_v4 }
 0x203   :  { %7929 = vmatmul.msk.f32.gmra.mxu3 %vm173_vm1, %v8882_v0  ;;  %v2913_v0 = vld [vmem:[%s13219_s3 + $0x70] sm:$0xff] }
 0x204   :  { %2932 = vmatpush.msra.mxu2 %v2913_v0 }
 0x205   :  { %v9242_v23 = vpop.f32.mrf.mxu0 }
 0x206   :  { %v9240_v35 = vpop.f32.mrf.mxu3  ;;  %13336 = vst [vmem:[#allocation113_spill] sm:$0xff] %v9242_v23  ;;  %v9244_v33 = vpop.f32.mrf.mxu1 }
 0x207   :  { %13335 = vst [vmem:[#allocation112_spill] sm:$0xff] %v9240_v35  ;;  %v1814_v35 = vld [vmem:[#allocation2 + $0x1c] sm:$0xff] }
 0x208   :  { %13337 = vst [vmem:[#allocation114_spill] sm:$0xff] %v9244_v33  ;;  %7955 = vmatmul.msk.f32.gmra.mxu0 %vm173_vm1, %v1813_v58  ;;  %v2908_v33 = vld [vmem:[%s13219_s3 + $0x48] sm:$0xff] }
 0x209   :  { %7988 = vmatmul.msk.f32.gmra.mxu1 %vm173_vm1, %v1813_v58 }
 0x20b   :  { %7930 = vmatmul.msk.f32.gmra.mxu3 %vm173_vm1, %v8896_v21  ;;  %v2929_v21 = vld [vmem:[%s13219_s3 + $0xf0] sm:$0xff] }
 0x20c   :  { %3045 = vmatpush.msrb.mxu3 %v2929_v21 }
 0x20d   :  { %v9255_v61 = vpop.f32.mrf.mxu0 }
 0x20e   :  { %v9253_v4 = vpop.f32.mrf.mxu3  ;;  %13339 = vst [vmem:[#allocation116_spill] sm:$0xff] %v9255_v61  ;;  %v9257_v23 = vpop.f32.mrf.mxu1 }
 0x20f   :  { %13338 = vst [vmem:[#allocation115_spill] sm:$0xff] %v9253_v4  ;;  %v1815_v4 = vld [vmem:[#allocation2 + $0x24] sm:$0xff] }
 0x210   :  { %13340 = vst [vmem:[#allocation117_spill] sm:$0xff] %v9257_v23  ;;  %7956 = vmatmul.msk.f32.gmra.mxu0 %vm173_vm1, %v1814_v35 }
 0x211   :  { %7989 = vmatmul.msk.f32.gmra.mxu1 %vm173_vm1, %v1814_v35 }
 0x213   :  { %7931 = vmatmul.msk.f32.gmra.mxu3 %vm173_vm1, %v8910_v7  ;;  %v2912_v7 = vld [vmem:[%s13219_s3 + $0x68] sm:$0xff] }
 0x214   :  { %2933 = vmatpush.msra.mxu2 %v2912_v7 }
 0x215   :  { %v9268_v0 = vpop.f32.mrf.mxu0 }
 0x216   :  { %v9266_v58 = vpop.f32.mrf.mxu3  ;;  %13342 = vst [vmem:[#allocation119_spill] sm:$0xff] %v9268_v0  ;;  %v9270_v61 = vpop.f32.mrf.mxu1 }
 0x217   :  { %13341 = vst [vmem:[#allocation118_spill] sm:$0xff] %v9266_v58  ;;  %v1816_v58 = vld [vmem:[#allocation2 + $0x2c] sm:$0xff]  ;;  %v9283_v0 = vpop.f32.mrf.mxu2 }
 0x218   :  { %13343 = vst [vmem:[#allocation120_spill] sm:$0xff] %v9270_v61  ;;  %7957 = vmatmul.msk.f32.gmra.mxu0 %vm173_vm1, %v1815_v4 }
 0x219   :  { %7990 = vmatmul.msk.f32.gmra.mxu1 %vm173_vm1, %v1815_v4 }
 0x21b   :  { %7932 = vmatmul.msk.f32.gmra.mxu3 %vm173_vm1, %v8924_v57  ;;  %v2928_v57 = vld [vmem:[%s13219_s3 + $0xe8] sm:$0xff] }
 0x21c   :  { %3046 = vmatpush.msrb.mxu3 %v2928_v57 }
 0x21d   :  { %v9281_v21 = vpop.f32.mrf.mxu0 }
 0x21e   :  { %v9279_v35 = vpop.f32.mrf.mxu3  ;;  %13345 = vst [vmem:[#allocation122_spill] sm:$0xff] %v9281_v21  ;;  %v9285_v61 = vpop.f32.mrf.mxu1 }
 0x21f   :  { %13344 = vst [vmem:[#allocation121_spill] sm:$0xff] %v9279_v35  ;;  %v1817_v35 = vld [vmem:[#allocation2 + $0x34] sm:$0xff] }
 0x220   :  { %13346 = vst [vmem:[#allocation123_spill] sm:$0xff] %v9285_v61  ;;  %7958 = vmatmul.msk.f32.gmra.mxu0 %vm173_vm1, %v1816_v58  ;;  %v9300_v61 = vpop.f32.mrf.mxu2 }
 0x221   :  { %7991 = vmatmul.msk.f32.gmra.mxu1 %vm173_vm1, %v1816_v58 }
 0x223   :  { %7933 = vmatmul.msk.f32.gmra.mxu3 %vm173_vm1, %v8938_v12  ;;  %v2911_v12 = vld [vmem:[%s13219_s3 + $0x60] sm:$0xff] }
 0x224   :  { %2934 = vmatpush.msra.mxu2 %v2911_v12 }
 0x225   :  { %v9296_v7 = vpop.f32.mrf.mxu0 }
 0x226   :  { %v9294_v4 = vpop.f32.mrf.mxu3  ;;  %13348 = vst [vmem:[#allocation125_spill] sm:$0xff] %v9296_v7  ;;  %v9298_v21 = vpop.f32.mrf.mxu1 }
 0x227   :  { %13347 = vst [vmem:[#allocation124_spill] sm:$0xff] %v9294_v4  ;;  %v1818_v4 = vld [vmem:[#allocation2 + $0x3c] sm:$0xff] }
 0x228   :  { %13349 = vst [vmem:[#allocation126_spill] sm:$0xff] %v9298_v21  ;;  %7959 = vmatmul.msk.f32.gmra.mxu0 %vm173_vm1, %v1817_v35 }
 0x229   :  { %7992 = vmatmul.msk.f32.gmra.mxu1 %vm173_vm1, %v1817_v35  ;;  %v9317_v35 = vpop.f32.mrf.mxu2 }
 0x22b   :  { %7934 = vmatmul.msk.f32.gmra.mxu3 %vm173_vm1, %v8953_v60  ;;  %v2927_v60 = vld [vmem:[%s13219_s3 + $0xe0] sm:$0xff] }
 0x22c   :  { %3047 = vmatpush.msrb.mxu3 %v2927_v60 }
 0x22d   :  { %v9311_v57 = vpop.f32.mrf.mxu0 }
 0x22e   :  { %v9309_v58 = vpop.f32.mrf.mxu3  ;;  %13351 = vst [vmem:[#allocation128_spill] sm:$0xff] %v9311_v57  ;;  %v9313_v21 = vpop.f32.mrf.mxu1  ;;  %v1819_v57 = vld [vmem:[#allocation2 + $0x44] sm:$0xff] }
 0x22f   :  { %13350 = vst [vmem:[#allocation127_spill] sm:$0xff] %v9309_v58 }
 0x230   :  { %13352 = vst [vmem:[#allocation129_spill] sm:$0xff] %v9313_v21  ;;  %7960 = vmatmul.msk.f32.gmra.mxu0 %vm173_vm1, %v1818_v4 }
 0x231   :  { %7993 = vmatmul.msk.f32.gmra.mxu1 %vm173_vm1, %v1818_v4  ;;  %v9337_v4 = vpop.f32.mrf.mxu2 }
 0x233   :  { %7935 = vmatmul.msk.f32.gmra.mxu3 %vm173_vm1, %v8968_v8  ;;  %v2910_v8 = vld [vmem:[%s13219_s3 + $0x58] sm:$0xff] }
 0x234   :  { %2935 = vmatpush.msra.mxu2 %v2910_v8 }
 0x235   :  { %v9326_v58 = vpop.f32.mrf.mxu0 }
 0x236   :  { %v9324_v12 = vpop.f32.mrf.mxu3  ;;  %13354 = vst [vmem:[#allocation131_spill] sm:$0xff] %v9326_v58  ;;  %v9328_v21 = vpop.f32.mrf.mxu1  ;;  %v1820_v58 = vld [vmem:[#allocation2 + $0x4c] sm:$0xff] }
 0x237   :  { %13353 = vst [vmem:[#allocation130_spill] sm:$0xff] %v9324_v12 }
 0x238   :  { %13355 = vst [vmem:[#allocation132_spill] sm:$0xff] %v9328_v21  ;;  %7961 = vmatmul.msk.f32.gmra.mxu0 %vm173_vm1, %v1819_v57 }
 0x239   :  { %7994 = vmatmul.msk.f32.gmra.mxu1 %vm173_vm1, %v1819_v57  ;;  %v9356_v7 = vpop.f32.mrf.mxu2 }
 0x23b   :  { %7936 = vmatmul.msk.f32.gmra.mxu3 %vm173_vm1, %v8982_v37  ;;  %v2926_v37 = vld [vmem:[%s13219_s3 + $0xd8] sm:$0xff] }
 0x23c   :  { %3048 = vmatpush.msrb.mxu3 %v2926_v37 }
 0x23d   :  { %v9341_v12 = vpop.f32.mrf.mxu0 }
 0x23e   :  { %v9339_v60 = vpop.f32.mrf.mxu3  ;;  %13356 = vst [vmem:[#allocation133_spill] sm:$0xff] %v9341_v12  ;;  %v9343_v21 = vpop.f32.mrf.mxu1  ;;  %v1821_v12 = vld [vmem:[#allocation2 + $0x54] sm:$0xff] }
 0x23f   :  { %13357 = vst [vmem:[#allocation134_spill] sm:$0xff] %v9343_v21 }
 0x240   :  { %7962 = vmatmul.msk.f32.gmra.mxu0 %vm173_vm1, %v1820_v58 }
 0x241   :  { %7995 = vmatmul.msk.f32.gmra.mxu1 %vm173_vm1, %v1820_v58 }
 0x243   :  { %7937 = vmatmul.msk.f32.gmra.mxu3 %vm173_vm1, %v8997_v50  ;;  %v2909_v50 = vld [vmem:[%s13219_s3 + $0x50] sm:$0xff] }
 0x244   :  { %2936 = vmatpush.msra.mxu2 %v2909_v50 }
 0x245   :  { %v9354_v8 = vpop.f32.mrf.mxu0 }
 0x246   :  { %v9352_v57 = vpop.f32.mrf.mxu3  ;;  %13358 = vst [vmem:[#allocation135_spill] sm:$0xff] %v9354_v8  ;;  %v9358_v21 = vpop.f32.mrf.mxu1  ;;  %v1822_v8 = vld [vmem:[#allocation2 + $0x5c] sm:$0xff]  ;;  %2937 = vmatpush.msra.mxu2 %v2908_v33  ;;  %v2905_v33 = vld [vmem:[%s13219_s3 + $0x30] sm:$0xff] }
 0x247   :  { %13359 = vst [vmem:[#allocation136_spill] sm:$0xff] %v9358_v21  ;;  %v9373_v21 = vpop.f32.mrf.mxu2 }
 0x248   :  { %7963 = vmatmul.msk.f32.gmra.mxu0 %vm173_vm1, %v1821_v12 }
 0x249   :  { %7996 = vmatmul.msk.f32.gmra.mxu1 %vm173_vm1, %v1821_v12 }
 0x24b   :  { %7938 = vmatmul.msk.f32.gmra.mxu3 %vm173_vm1, %v9012_v11  ;;  %v2925_v11 = vld [vmem:[%s13219_s3 + $0xd0] sm:$0xff] }
 0x24c   :  { %3049 = vmatpush.msrb.mxu3 %v2925_v11  ;;  %v2906_v11 = vld [vmem:[%s13219_s3 + $0x38] sm:$0xff] }
 0x24d   :  { %v9369_v37 = vpop.f32.mrf.mxu0 }
 0x24e   :  { %v9367_v58 = vpop.f32.mrf.mxu3  ;;  %13360 = vst [vmem:[#allocation137_spill] sm:$0xff] %v9369_v37  ;;  %v9371_v23 = vpop.f32.mrf.mxu1  ;;  %v1823_v37 = vld [vmem:[#allocation2 + $0x64] sm:$0xff] }
 0x24f   :  { %13361 = vst [vmem:[#allocation138_spill] sm:$0xff] %v9371_v23 }
 0x250   :  { %7964 = vmatmul.msk.f32.gmra.mxu0 %vm173_vm1, %v1822_v8 }
 0x251   :  { %7997 = vmatmul.msk.f32.gmra.mxu1 %vm173_vm1, %v1822_v8  ;;  %v9396_v8 = vpop.f32.mrf.mxu2 }
 0x252   :  { %13364 = vst [vmem:[#allocation141_spill] sm:$0xff] %v9396_v8 }
 0x253   :  { %7939 = vmatmul.msk.f32.gmra.mxu3 %vm173_vm1, %v9027_v39  ;;  %v2907_v39 = vld [vmem:[%s13219_s3 + $0x40] sm:$0xff] }
 0x254   :  { %2938 = vmatpush.msra.mxu2 %v2907_v39  ;;  %v2903_v39 = vld [vmem:[%s13219_s3 + $0x20] sm:$0xff] }
 0x255   :  { %v9384_v50 = vpop.f32.mrf.mxu0 }
 0x256   :  { %v9382_v12 = vpop.f32.mrf.mxu3  ;;  %13362 = vst [vmem:[#allocation139_spill] sm:$0xff] %v9384_v50  ;;  %v9386_v23 = vpop.f32.mrf.mxu1  ;;  %2939 = vmatpush.msra.mxu2 %v2906_v11  ;;  %v2902_v11 = vld [vmem:[%s13219_s3 + $0x18] sm:$0xff] }
 0x257   :  { %13363 = vst [vmem:[#allocation140_spill] sm:$0xff] %v9386_v23 }
 0x258   :  { %7965 = vmatmul.msk.f32.gmra.mxu0 %vm173_vm1, %v1823_v37  ;;  %2940 = vmatpush.msra.mxu2 %v2905_v33 }
 0x259   :  { %7998 = vmatmul.msk.f32.gmra.mxu1 %vm173_vm1, %v1823_v37  ;;  %v1824_v37 = vld [vmem:[#allocation2 + $0x6c] sm:$0xff]  ;;  %v9425_v33 = vpop.f32.mrf.mxu2 }
 0x25a   :  { %13367 = vst [vmem:[#allocation144_spill] sm:$0xff] %v9425_v33 }
 0x25b   :  { %7940 = vmatmul.msk.f32.gmra.mxu3 %vm173_vm1, %v9042_v1  ;;  %v2904_v1 = vld [vmem:[%s13219_s3 + $0x28] sm:$0xff] }
 0x25c   :  { %2941 = vmatpush.msra.mxu2 %v2904_v1  ;;  %v2924_v1 = vld [vmem:[%s13219_s3 + $0xc8] sm:$0xff] }
 0x25d   :  { %v9405_v50 = vpop.f32.mrf.mxu0  ;;  %3050 = vmatpush.msrb.mxu3 %v2924_v1 }
 0x25e   :  { %v9403_v23 = vpop.f32.mrf.mxu3  ;;  %13365 = vst [vmem:[#allocation142_spill] sm:$0xff] %v9405_v50  ;;  %v9410_v9 = vpop.f32.mrf.mxu1  ;;  %2942 = vmatpush.msra.mxu2 %v2903_v39 }
 0x25f   :  { %13366 = vst [vmem:[#allocation143_spill] sm:$0xff] %v9410_v9 }
 0x260   :  { %7966 = vmatmul.msk.f32.gmra.mxu0 %vm173_vm1, %v1824_v37  ;;  %2943 = vmatpush.msra.mxu2 %v2902_v11  ;;  %v2899_v11 = vld [vmem:[%s13219_s3] sm:$0xff] }
 0x261   :  { %7999 = vmatmul.msk.f32.gmra.mxu1 %vm173_vm1, %v1824_v37  ;;  %v1825_v37 = vld [vmem:[#allocation2 + $0x74] sm:$0xff] }
 0x263   :  { %7941 = vmatmul.msk.f32.gmra.mxu3 %vm173_vm1, %v9057_v5  ;;  %v2901_v5 = vld [vmem:[%s13219_s3 + $0x10] sm:$0xff] }
 0x264   :  { %2944 = vmatpush.msra.mxu2 %v2901_v5  ;;  %v1826_v5 = vld [vmem:[#allocation2 + $0x7c] sm:$0xff] }
 0x265   :  { %v9429_v50 = vpop.f32.mrf.mxu0 }
 0x266   :  { %v9427_v9 = vpop.f32.mrf.mxu3  ;;  %13368 = vst [vmem:[#allocation145_spill] sm:$0xff] %v9429_v50  ;;  %v9437_v39 = vpop.f32.mrf.mxu1  ;;  %2945 = vmatpush.msra.mxu2 %v2900_v49  ;;  %v8033_v50 = vld [vmem:[%s13219_s3 + $0x178] sm:$0xff] }
 0x267   :  { %13369 = vst [vmem:[#allocation146_spill] sm:$0xff] %v9437_v39  ;;  %v8049_v49 = vld [vmem:[%s13219_s3 + $0x1f8] sm:$0xff]  ;;  %3190 = vmatpush.msrb.mxu0 %v8033_v50 }
 0x268   :  { %7967 = vmatmul.msk.f32.gmra.mxu0 %vm173_vm1, %v1825_v37  ;;  %2946 = vmatpush.msra.mxu2 %v2899_v11  ;;  %v2244_v11 = vld [vmem:[%s13218_s2] sm:$0x3] }
 0x269   :  { %8000 = vmatmul.msk.f32.gmra.mxu1 %vm173_vm1, %v1825_v37  ;;  %v9459_v37 = vpop.f32.mrf.mxu2 }
 0x26a   :  { %13371 = vst [vmem:[#allocation148_spill] sm:$0xff] %v9459_v37  ;;  %3303 = vmatpush.msrb.mxu1 %v8049_v49  ;;  %v9473_v37 = vperm.slane %v2244_v11, 0 }
 0x26b   :  { %7942 = vmatmul.msk.f32.gmra.mxu3 %vm173_vm1, %v9072_v55  ;;  %v850_v55 = vadd.f32 %v8884_v13, %v8598_v29  ;;  %v2923_v29 = vld [vmem:[%s13219_s3 + $0xc0] sm:$0xff] }
 0x26c   :  { %3051 = vmatpush.msrb.mxu3 %v2923_v29 }
 0x26d   :  { %v9451_v1 = vpop.f32.mrf.mxu0 }
 0x26e   :  { %v9449_v39 = vpop.f32.mrf.mxu3  ;;  %13370 = vst [vmem:[#allocation147_spill] sm:$0xff] %v9451_v1  ;;  %v9461_v33 = vpop.f32.mrf.mxu1  ;;  %v1315_v1 = vadd.f32 %v8986_v41, %v850_v55 }
 0x26f   :  { %13372 = vst [vmem:[#allocation149_spill] sm:$0xff] %v9461_v33 }
 0x270   :  { %7968 = vmatmul.msk.f32.gmra.mxu0 %vm173_vm1, %v1826_v5  ;;  %v1748_v50 = vadd.f32 %v9339_v60, %v1315_v1  ;;  %v853_v60 = vadd.f32 %v8898_v62, %v8618_v42  ;;  %v8032_v42 = vld [vmem:[%s13219_s3 + $0x170] sm:$0xff] }
 0x271   :  { %8001 = vmatmul.msk.f32.gmra.mxu1 %vm173_vm1, %v1826_v5  ;;  %v9478_v5 = vperm.slane %v2244_v11, 1  ;;  %v9484_v41 = vpop.f32.mrf.mxu2  ;;  %v8048_v62 = vld [vmem:[%s13219_s3 + $0x1f0] sm:$0xff]  ;;  %3191 = vmatpush.msrb.mxu0 %v8032_v42 }
 0x272   :  { %3304 = vmatpush.msrb.mxu1 %v8048_v62 }
 0x273   :  { %7943 = vmatmul.msk.f32.gmra.mxu3 %vm173_vm1, %v9087_v18 }
 0x275   :  { %v1971_v33 = vpop.f32.mrf.mxu0 }
 0x276   :  { %v9476_v49 = vpop.f32.mrf.mxu3  ;;  %v2180_v13 = vadd.f32 %v1971_v33, %v8995_v38  ;;  %v2084_v8 = vpop.f32.mrf.mxu1  ;;  %v1317_v38 = vadd.f32 %v9001_v30, %v853_v60 }
 0x277   :  { %v2181_v18 = vadd.f32 %v2084_v8, %v1748_v50 }
 0x278   :  { %v2250_v55 = vadd.f32 %v9473_v37, %v2180_v13  ;;  %7969 = vmatmul.msk.f32.gmra.mxu0 %vm173_vm1, %v1827_v16  ;;  %v1750_v33 = vadd.f32 %v9352_v57, %v1317_v38 }
 0x279   :  { %8002 = vmatmul.msk.f32.gmra.mxu1 %vm173_vm1, %v1827_v16  ;;  %v2251_v1 = vadd.f32 %v9478_v5, %v2181_v18  ;;  %v1828_v16 = vld [vmem:[#allocation2 + $0x8c] sm:$0xff]  ;;  %v856_v18 = vadd.f32 %v8912_v26, %v8638_v54  ;;  %v9511_v60 = vpop.f32.mrf.mxu2  ;;  %v1829_v26 = vld [vmem:[#allocation2 + $0x94] sm:$0xff] }
 0x27a   :  { %v2314_v11 = vmax.f32 %v2250_v55, 0.0  ;;  %13373 = vst [vmem:[#allocation150_spill] sm:$0xff] %v9511_v60 }
 0x27b   :  { %7944 = vmatmul.msk.f32.gmra.mxu3 %vm173_vm1, %v9102_v6  ;;  %v2315_v8 = vmax.f32 %v2251_v1, 0.0 }
 0x27c   :  { %2378 = vst [vmem:[#allocation3 + $0xc8] sm:$0xff] %v2314_v11 }
 0x27d   :  { %2379 = vst [vmem:[#allocation3 + $0x8] sm:$0xff] %v2315_v8  ;;  %v1974_v29 = vpop.f32.mrf.mxu0 }
 0x27e   :  { %v9496_v50 = vpop.f32.mrf.mxu3  ;;  %v2182_v6 = vadd.f32 %v1974_v29, %v9010_v56  ;;  %v2087_v30 = vpop.f32.mrf.mxu1  ;;  %v1319_v56 = vadd.f32 %v9016_v46, %v856_v18 }
 0x27f   :  { %v2183_v13 = vadd.f32 %v2087_v30, %v1750_v33  ;;  %v2922_v30 = vld [vmem:[%s13219_s3 + $0xb8] sm:$0xff] }
 0x280   :  { %v2252_v57 = vadd.f32 %v9473_v37, %v2182_v6  ;;  %7970 = vmatmul.msk.f32.gmra.mxu0 %vm173_vm1, %v1828_v16  ;;  %3052 = vmatpush.msrb.mxu3 %v2922_v30 }
 0x281   :  { %8003 = vmatmul.msk.f32.gmra.mxu1 %vm173_vm1, %v1828_v16  ;;  %v2253_v55 = vadd.f32 %v9478_v5, %v2183_v13  ;;  %v1752_v16 = vadd.f32 %v9367_v58, %v1319_v56 }
 0x282   :  { %v2316_v1 = vmax.f32 %v2252_v57, 0.0 }
 0x283   :  { %7945 = vmatmul.msk.f32.gmra.mxu3 %vm173_vm1, %v9116_v43  ;;  %v2317_v38 = vmax.f32 %v2253_v55, 0.0  ;;  %v2508_v33 = vld [vmem:[#allocation3 + $0xc8] sm:$0xfe] }
 0x284   :  { %v2641_v29 = vrot.slane %v2508_v33, 1  ;;  %v2642_v42 = vrot.slane %v2316_v1, 1  ;;  %v2509_v62 = vld [vmem:[#allocation3 + $0x8] sm:$0xfe] }
 0x285   :  { %v1977_v54 = vpop.f32.mrf.mxu0  ;;  %v2644_v13 = vrot.slane %v2509_v62, 1  ;;  %v2645_v43 = vrot.slane %v2317_v38, 1 }
 0x286   :  { %v9517_v6 = vpop.f32.mrf.mxu3  ;;  %v2184_v46 = vadd.f32 %v1977_v54, %v9025_v53  ;;  %v2090_v57 = vpop.f32.mrf.mxu1  ;;  %v2643_v18 = vsel %vm2640_vm2, %v2641_v29, %v2642_v42  ;;  %v859_v53 = vadd.f32 %v8926_v36, %v8656_v2  ;;  %v2921_v2 = vld [vmem:[%s13219_s3 + $0xb0] sm:$0xff] }
 0x287   :  { %v2185_v55 = vadd.f32 %v2090_v57, %v1752_v16  ;;  %v9524_v33 = vmax.f32 %v2314_v11, %v2643_v18  ;;  %v2646_v58 = vsel %vm2640_vm2, %v2644_v13, %v2645_v43  ;;  %v9542_v54 = vpop.f32.mrf.mxu2  ;;  %v1830_v13 = vld [vmem:[#allocation2 + $0x9c] sm:$0xff]  ;;  %3053 = vmatpush.msrb.mxu3 %v2921_v2 }
 0x288   :  { %v2254_v56 = vadd.f32 %v9473_v37, %v2184_v46  ;;  %7971 = vmatmul.msk.f32.gmra.mxu0 %vm173_vm1, %v1829_v26  ;;  %v9530_v60 = vmax.f32 %v2315_v8, %v2646_v58  ;;  %v1321_v29 = vadd.f32 %v9031_v10, %v859_v53  ;;  %v8047_v10 = vld [vmem:[%s13219_s3 + $0x1e8] sm:$0xff]  ;;  %v2918_v2 = vld [vmem:[%s13219_s3 + $0x98] sm:$0xff] }
 0x289   :  { %8004 = vmatmul.msk.f32.gmra.mxu1 %vm173_vm1, %v1829_v26  ;;  %v9535_v62 = vadd.f32 %v9478_v5, %v2185_v55  ;;  %2947 = vmatmul.f32.vlgmr.msra.gmra.mxu2 %v9524_v33 }
 0x28a   :  { %v2318_v11 = vmax.f32 %v2254_v56, 0.0  ;;  %v1754_v36 = vadd.f32 %v9382_v12, %v1321_v29  ;;  %3305 = vmatpush.msrb.mxu1 %v8047_v10  ;;  %v2920_v12 = vld [vmem:[%s13219_s3 + $0xa8] sm:$0xff]  ;;  %v862_v29 = vadd.f32 %v8940_v48, %v8674_v14  ;;  %v2917_v14 = vld [vmem:[%s13219_s3 + $0x90] sm:$0xff] }
 0x28b   :  { %7946 = vmatmul.msk.f32.gmra.mxu3 %vm173_vm1, %v9130_v22  ;;  %v2319_v16 = vmax.f32 %v9535_v62, 0.0  ;;  %v8031_v22 = vld [vmem:[%s13219_s3 + $0x168] sm:$0xff] }
 0x28c   :  { %v2647_v8 = vrot.slane %v2318_v11, 1  ;;  %3192 = vmatpush.msrb.mxu0 %v8031_v22  ;;  %3054 = vmatpush.msrb.mxu3 %v2920_v12  ;;  %v1831_v10 = vld [vmem:[#allocation2 + $0xa4] sm:$0xff] }
 0x28d   :  { %v1980_v30 = vpop.f32.mrf.mxu0  ;;  %v2649_v46 = vrot.slane %v2319_v16, 1  ;;  %v2916_v12 = vld [vmem:[%s13219_s3 + $0x88] sm:$0xff] }
 0x28e   :  { %v9548_v26 = vpop.f32.mrf.mxu3  ;;  %v2186_v57 = vadd.f32 %v1980_v30, %v9040_v63  ;;  %v2093_v18 = vpop.f32.mrf.mxu1  ;;  %v2648_v55 = vsel %vm2640_vm2, %v2642_v42, %v2647_v8  ;;  %v2919_v63 = vld [vmem:[%s13219_s3 + $0xa0] sm:$0xff] }
 0x28f   :  { %v2187_v58 = vadd.f32 %v2093_v18, %v1754_v36  ;;  %v9561_v56 = vmax.f32 %v2316_v1, %v2648_v55  ;;  %v2650_v53 = vsel %vm2640_vm2, %v2645_v43, %v2649_v46  ;;  %3055 = vmatpush.msrb.mxu3 %v2919_v63  ;;  %v1323_v36 = vadd.f32 %v9046_v34, %v862_v29 }
 0x290   :  { %v2256_v62 = vadd.f32 %v9473_v37, %v2186_v57  ;;  %7972 = vmatmul.msk.f32.gmra.mxu0 %vm173_vm1, %v1830_v13  ;;  %v9570_v42 = vmax.f32 %v2317_v38, %v2650_v53  ;;  %v9588_v57 = vpop.f32.mrf.mxu2  ;;  %v865_v63 = vadd.f32 %v8955_v3, %v8688_v27  ;;  %v8030_v27 = vld [vmem:[%s13219_s3 + $0x160] sm:$0xff] }
 0x291   :  { %8005 = vmatmul.msk.f32.gmra.mxu1 %vm173_vm1, %v1830_v13  ;;  %v2257_v1 = vadd.f32 %v9478_v5, %v2187_v58  ;;  %2950 = vmatmul.f32.gmra.mxu2 %v9561_v56  ;;  %v1756_v48 = vadd.f32 %v9403_v23, %v1323_v36  ;;  %v8046_v3 = vld [vmem:[%s13219_s3 + $0x1e0] sm:$0xff] }
 0x292   :  { %v2320_v43 = vmax.f32 %v2256_v62, 0.0  ;;  %3056 = vmatpush.msrb.mxu3 %v2918_v2  ;;  %v1325_v29 = vadd.f32 %v9061_v17, %v865_v63  ;;  %3193 = vmatpush.msrb.mxu0 %v8030_v27 }
 0x293   :  { %7947 = vmatmul.msk.f32.gmra.mxu3 %vm173_vm1, %v9144_v45  ;;  %v2321_v38 = vmax.f32 %v2257_v1, 0.0  ;;  %3306 = vmatpush.msrb.mxu1 %v8046_v3 }
 0x294   :  { %v2651_v30 = vrot.slane %v2320_v43, 1  ;;  %3057 = vmatpush.msrb.mxu3 %v2917_v14  ;;  %v1758_v36 = vadd.f32 %v9427_v9, %v1325_v29  ;;  %v1833_v29 = vld [vmem:[#allocation2 + $0xb4] sm:$0xff] }
 0x295   :  { %v1983_v22 = vpop.f32.mrf.mxu0  ;;  %v2653_v45 = vrot.slane %v2321_v38, 1 }
 0x296   :  { %v9586_v13 = vpop.f32.mrf.mxu3  ;;  %v2188_v18 = vadd.f32 %v1983_v22, %v9055_v25  ;;  %v2096_v34 = vpop.f32.mrf.mxu1  ;;  %v2652_v55 = vsel %vm2640_vm2, %v2647_v8, %v2651_v30  ;;  %3058 = vmatpush.msrb.mxu3 %v2916_v12  ;;  %v2915_v25 = vld [vmem:[%s13219_s3 + $0x80] sm:$0xff] }
 0x297   :  { %v2189_v58 = vadd.f32 %v2096_v34, %v1756_v48  ;;  %v9595_v53 = vmax.f32 %v2318_v11, %v2652_v55  ;;  %v2654_v23 = vsel %vm2640_vm2, %v2649_v46, %v2653_v45  ;;  %v1832_v48 = vld [vmem:[#allocation2 + $0xac] sm:$0xff] }
 0x298   :  { %v2258_v62 = vadd.f32 %v9473_v37, %v2188_v18  ;;  %7973 = vmatmul.msk.f32.gmra.mxu0 %vm173_vm1, %v1831_v10  ;;  %v9604_v8 = vmax.f32 %v2319_v16, %v2654_v23  ;;  %3059 = vmatpush.msrb.mxu3 %v2915_v25  ;;  %v9627_v55 = vpop.f32.mrf.mxu2 }
 0x299   :  { %8006 = vmatmul.msk.f32.gmra.mxu1 %vm173_vm1, %v1831_v10  ;;  %v2259_v11 = vadd.f32 %v9478_v5, %v2189_v58  ;;  %2953 = vmatmul.f32.gmra.mxu2 %v9595_v53 }
 0x29a   :  { %v2322_v46 = vmax.f32 %v2258_v62, 0.0 }
 0x29b   :  { %7948 = vmatmul.msk.f32.gmra.mxu3 %vm173_vm1, %v9158_v52  ;;  %v2323_v1 = vmax.f32 %v2259_v11, 0.0 }
 0x29c   :  { %v2655_v2 = vrot.slane %v2322_v46, 1 }
 0x29d   :  { %v1986_v14 = vpop.f32.mrf.mxu0  ;;  %v2657_v22 = vrot.slane %v2323_v1, 1 }
 0x29e   :  { %v9614_v16 = vpop.f32.mrf.mxu3  ;;  %v2190_v52 = vadd.f32 %v1986_v14, %v9070_v40  ;;  %v2099_v17 = vpop.f32.mrf.mxu1  ;;  %v2656_v10 = vsel %vm2640_vm2, %v2651_v30, %v2655_v2  ;;  %v868_v40 = vadd.f32 %v8970_v19, %v8703_v51 }
 0x29f   :  { %v2191_v9 = vadd.f32 %v2099_v17, %v1758_v36  ;;  %v9624_v18 = vmax.f32 %v2320_v43, %v2656_v10  ;;  %v2658_v34 = vsel %vm2640_vm2, %v2653_v45, %v2657_v22  ;;  %v13374_v45 = vld [vmem:[#allocation83_spill] sm:$0xff]  ;;  %v13376_v17 = vld [vmem:[#allocation76_spill] sm:$0xff] }
 0x2a0   :  { %v2260_v12 = vadd.f32 %v9473_v37, %v2190_v52  ;;  %7974 = vmatmul.msk.f32.gmra.mxu0 %vm173_vm1, %v1832_v48  ;;  %v9632_v58 = vmax.f32 %v2321_v38, %v2658_v34  ;;  %v1327_v23 = vadd.f32 %v13374_v45, %v868_v40  ;;  %v13375_v52 = vld [vmem:[#allocation28_spill] sm:$0xff]  ;;  %v8029_v45 = vld [vmem:[%s13219_s3 + $0x158] sm:$0xff] }
 0x2a1   :  { %8007 = vmatmul.msk.f32.gmra.mxu1 %vm173_vm1, %v1832_v48  ;;  %v2261_v30 = vadd.f32 %v9478_v5, %v2191_v9  ;;  %2956 = vmatmul.f32.gmra.mxu2 %v9624_v18  ;;  %v871_v10 = vadd.f32 %v13376_v17, %v13375_v52 }
 0x2a2   :  { %v2324_v43 = vmax.f32 %v2260_v12, 0.0  ;;  %v1760_v63 = vadd.f32 %v9449_v39, %v1327_v23  ;;  %v8045_v23 = vld [vmem:[%s13219_s3 + $0x1d8] sm:$0xff]  ;;  %3194 = vmatpush.msrb.mxu0 %v8029_v45  ;;  %v1835_v45 = vld [vmem:[#allocation2 + $0xc4] sm:$0xff] }
 0x2a3   :  { %7949 = vmatmul.msk.f32.gmra.mxu3 %vm173_vm1, %v9172_v44  ;;  %v2325_v62 = vmax.f32 %v2261_v30, 0.0  ;;  %v1834_v30 = vld [vmem:[#allocation2 + $0xbc] sm:$0xff]  ;;  %3307 = vmatpush.msrb.mxu1 %v8045_v23 }
 0x2a4   :  { %v2659_v25 = vrot.slane %v2324_v43, 1 }
 0x2a5   :  { %v1989_v38 = vpop.f32.mrf.mxu0  ;;  %v2661_v36 = vrot.slane %v2325_v62, 1 }
 0x2a6   :  { %v9642_v11 = vpop.f32.mrf.mxu3  ;;  %v2192_v51 = vadd.f32 %v1989_v38, %v9085_v47  ;;  %v2102_v19 = vpop.f32.mrf.mxu1  ;;  %v2660_v14 = vsel %vm2640_vm2, %v2655_v2, %v2659_v25 }
 0x2a7   :  { %v2193_v48 = vadd.f32 %v2102_v19, %v1760_v63  ;;  %v9646_v27 = vmax.f32 %v2322_v46, %v2660_v14  ;;  %v2662_v44 = vsel %vm2640_vm2, %v2657_v22, %v2661_v36  ;;  %v9658_v2 = vpop.f32.mrf.mxu2  ;;  %v1329_v22 = vadd.f32 %v9091_v20, %v871_v10 }
 0x2a8   :  { %v2262_v3 = vadd.f32 %v9473_v37, %v2192_v51  ;;  %7975 = vmatmul.msk.f32.gmra.mxu0 %vm173_vm1, %v1833_v29  ;;  %v9652_v39 = vmax.f32 %v2323_v1, %v2662_v44 }
 0x2a9   :  { %8008 = vmatmul.msk.f32.gmra.mxu1 %vm173_vm1, %v1833_v29  ;;  %v2263_v47 = vadd.f32 %v9478_v5, %v2193_v48  ;;  %2959 = vmatmul.f32.gmra.mxu2 %v9646_v27  ;;  %v1762_v1 = vadd.f32 %v9476_v49, %v1329_v22  ;;  %v13377_v48 = vld [vmem:[#allocation30_spill] sm:$0xff] }
 0x2aa   :  { %v2326_v46 = vmax.f32 %v2262_v3, 0.0  ;;  %v13379_v3 = vld [vmem:[#allocation31_spill] sm:$0xff] }
 0x2ab   :  { %7950 = vmatmul.msk.f32.gmra.mxu3 %vm173_vm1, %v9186_v15  ;;  %v2327_v9 = vmax.f32 %v2263_v47, 0.0 }
 0x2ac   :  { %v2663_v34 = vrot.slane %v2326_v46, 1 }
 0x2ad   :  { %v1992_v40 = vpop.f32.mrf.mxu0  ;;  %v2665_v63 = vrot.slane %v2327_v9, 1 }
 0x2ae   :  { %v9664_v12 = vpop.f32.mrf.mxu3  ;;  %v2194_v15 = vadd.f32 %v1992_v40, %v9100_v59  ;;  %v2105_v20 = vpop.f32.mrf.mxu1  ;;  %v2664_v38 = vsel %vm2640_vm2, %v2659_v25, %v2663_v34  ;;  %v13378_v59 = vld [vmem:[#allocation77_spill] sm:$0xff] }
 0x2af   :  { %v2195_v49 = vadd.f32 %v2105_v20, %v1762_v1  ;;  %v9674_v29 = vmax.f32 %v2324_v43, %v2664_v38  ;;  %v2666_v51 = vsel %vm2640_vm2, %v2661_v36, %v2665_v63  ;;  %v874_v44 = vadd.f32 %v13378_v59, %v13377_v48  ;;  %v13380_v36 = vld [vmem:[#allocation86_spill] sm:$0xff]  ;;  %v9692_v47 = vpop.f32.mrf.mxu2 }
 0x2b0   :  { %v2264_v19 = vadd.f32 %v9473_v37, %v2194_v15  ;;  %7976 = vmatmul.msk.f32.gmra.mxu0 %vm173_vm1, %v1834_v30  ;;  %v9680_v14 = vmax.f32 %v2325_v62, %v2666_v51  ;;  %v1330_v43 = vadd.f32 %v9106_v32, %v13379_v3  ;;  %v13381_v51 = vld [vmem:[#allocation33_spill] sm:$0xff] }
 0x2b1   :  { %8009 = vmatmul.msk.f32.gmra.mxu1 %vm173_vm1, %v1834_v30  ;;  %v2265_v25 = vadd.f32 %v9478_v5, %v2195_v49  ;;  %2962 = vmatmul.f32.gmra.mxu2 %v9674_v29  ;;  %v1331_v17 = vadd.f32 %v13380_v36, %v874_v44 }
 0x2b2   :  { %v2328_v52 = vmax.f32 %v2264_v19, 0.0  ;;  %v1763_v62 = vadd.f32 %v9283_v0, %v1330_v43  ;;  %v13382_v19 = vld [vmem:[#allocation78_spill] sm:$0xff] }
 0x2b3   :  { %7951 = vmatmul.msk.f32.gmra.mxu3 %vm173_vm1, %v9200_v28  ;;  %v2329_v10 = vmax.f32 %v2265_v25, 0.0  ;;  %v1764_v1 = vadd.f32 %v9496_v50, %v1331_v17  ;;  %v877_v48 = vadd.f32 %v13382_v19, %v13381_v51 }
 0x2b4   :  { %v2667_v22 = vrot.slane %v2328_v52, 1 }
 0x2b5   :  { %v1995_v30 = vpop.f32.mrf.mxu0  ;;  %v2669_v23 = vrot.slane %v2329_v10, 1 }
 0x2b6   :  { %v9695_v40 = vpop.f32.mrf.mxu3  ;;  %v2196_v32 = vadd.f32 %v1995_v30, %v1763_v62  ;;  %v2108_v15 = vpop.f32.mrf.mxu1  ;;  %v2668_v20 = vsel %vm2640_vm2, %v2663_v34, %v2667_v22  ;;  %v13383_v34 = vld [vmem:[#allocation34_spill] sm:$0xff] }
 0x2b7   :  { %v2197_v28 = vadd.f32 %v2108_v15, %v1764_v1  ;;  %v9698_v38 = vmax.f32 %v2326_v46, %v2668_v20  ;;  %v2670_v49 = vsel %vm2640_vm2, %v2665_v63, %v2669_v23  ;;  %v13384_v46 = vld [vmem:[#allocation88_spill] sm:$0xff]  ;;  %v13385_v63 = vld [vmem:[#allocation89_spill] sm:$0xff]  ;;  %v9724_v20 = vpop.f32.mrf.mxu2 }
 0x2b8   :  { %v2266_v0 = vadd.f32 %v9473_v37, %v2196_v32  ;;  %7977 = vmatmul.msk.f32.gmra.mxu0 %vm173_vm1, %v1835_v45  ;;  %v9704_v50 = vmax.f32 %v2327_v9, %v2670_v49  ;;  %v1332_v44 = vadd.f32 %v13384_v46, %v13383_v34  ;;  %v1333_v3 = vadd.f32 %v13385_v63, %v877_v48  ;;  %v1836_v30 = vld [vmem:[#allocation2 + $0xcc] sm:$0xff]  ;;  %v13387_v34 = vld [vmem:[#allocation79_spill] sm:$0xff] }
 0x2b9   :  { %8010 = vmatmul.msk.f32.gmra.mxu1 %vm173_vm1, %v1835_v45  ;;  %v2267_v59 = vadd.f32 %v9478_v5, %v2197_v28  ;;  %2965 = vmatmul.f32.gmra.mxu2 %v9698_v38  ;;  %v8028_v45 = vld [vmem:[%s13219_s3 + $0x150] sm:$0xff] }
 0x2ba   :  { %v2330_v25 = vmax.f32 %v2266_v0, 0.0  ;;  %v1765_v36 = vadd.f32 %v9300_v61, %v1332_v44  ;;  %v1766_v17 = vadd.f32 %v9517_v6, %v1333_v3  ;;  %v8044_v32 = vld [vmem:[%s13219_s3 + $0x1d0] sm:$0xff]  ;;  %3195 = vmatpush.msrb.mxu0 %v8028_v45  ;;  %v13389_v44 = vld [vmem:[#allocation91_spill] sm:$0xff]  ;;  %v13390_v3 = vld [vmem:[#allocation92_spill] sm:$0xff] }
 0x2bb   :  { %3060 = vmatmul.f32.vlgmr.msrb.gmra.mxu3 %v9530_v60  ;;  %v2331_v43 = vmax.f32 %v2267_v59, 0.0  ;;  %3308 = vmatpush.msrb.mxu1 %v8044_v32  ;;  %v13386_v59 = vld [vmem:[#allocation36_spill] sm:$0xff] }
 0x2bc   :  { %v2671_v9 = vrot.slane %v2330_v25, 1  ;;  %v880_v46 = vadd.f32 %v13387_v34, %v13386_v59 }
 0x2bd   :  { %v1998_v1 = vpop.f32.mrf.mxu0  ;;  %v2673_v15 = vrot.slane %v2331_v43, 1 }
 0x2be   :  { %v9716_v62 = vpop.f32.mrf.mxu3  ;;  %v2198_v28 = vadd.f32 %v1998_v1, %v1765_v36  ;;  %v2111_v61 = vpop.f32.mrf.mxu1  ;;  %v2672_v49 = vsel %vm2640_vm2, %v2667_v22, %v2671_v9  ;;  %v1335_v36 = vadd.f32 %v13390_v3, %v880_v46 }
 0x2bf   :  { %v2199_v6 = vadd.f32 %v2111_v61, %v1766_v17  ;;  %v9727_v0 = vmax.f32 %v2328_v52, %v2672_v49  ;;  %v2674_v51 = vsel %vm2640_vm2, %v2669_v23, %v2673_v15  ;;  %v13388_v52 = vld [vmem:[#allocation37_spill] sm:$0xff]  ;;  %v9765_v46 = vpop.f32.mrf.mxu2 }
 0x2c0   :  { %v9731_v19 = vadd.f32 %v9473_v37, %v2198_v28  ;;  %7978 = vmatmul.msk.f32.gmra.mxu0 %vm173_vm1, %v1836_v30  ;;  %v9735_v48 = vmax.f32 %v2329_v10, %v2674_v51  ;;  %v1334_v23 = vadd.f32 %v13389_v44, %v13388_v52  ;;  %v1837_v28 = vld [vmem:[#allocation2 + $0xd4] sm:$0xff] }
 0x2c1   :  { %8011 = vmatmul.msk.f32.gmra.mxu1 %vm173_vm1, %v1836_v30  ;;  %v9740_v22 = vadd.f32 %v9478_v5, %v2199_v6  ;;  %2968 = vmatmul.f32.gmra.mxu2 %v9727_v0  ;;  %v1768_v30 = vadd.f32 %v9548_v26, %v1335_v36 }
 0x2c2   :  { %v2332_v63 = vmax.f32 %v9731_v19, 0.0  ;;  %v1767_v17 = vadd.f32 %v9317_v35, %v1334_v23  ;;  %v8027_v19 = vld [vmem:[%s13219_s3 + $0x148] sm:$0xff]  ;;  %v13392_v23 = vld [vmem:[#allocation80_spill] sm:$0xff] }
 0x2c3   :  { %3063 = vmatmul.f32.gmra.mxu3 %v9570_v42  ;;  %v2333_v10 = vmax.f32 %v9740_v22, 0.0  ;;  %v8043_v35 = vld [vmem:[%s13219_s3 + $0x1c8] sm:$0xff]  ;;  %3196 = vmatpush.msrb.mxu0 %v8027_v19  ;;  %v8021_v22 = vld [vmem:[%s13219_s3 + $0x118] sm:$0xff] }
 0x2c4   :  { %v2675_v1 = vrot.slane %v2332_v63, 1  ;;  %3309 = vmatpush.msrb.mxu1 %v8043_v35 }
 0x2c5   :  { %v2001_v32 = vpop.f32.mrf.mxu0  ;;  %v2677_v61 = vrot.slane %v2333_v10, 1 }
 0x2c6   :  { %v9751_v45 = vpop.f32.mrf.mxu3  ;;  %v2200_v49 = vadd.f32 %v2001_v32, %v1767_v17  ;;  %v2114_v6 = vpop.f32.mrf.mxu1  ;;  %v2676_v51 = vsel %vm2640_vm2, %v2671_v9, %v2675_v1  ;;  %v8026_v9 = vld [vmem:[%s13219_s3 + $0x140] sm:$0xff] }
 0x2c7   :  { %v2201_v26 = vadd.f32 %v2114_v6, %v1768_v30  ;;  %v9762_v59 = vmax.f32 %v2330_v25, %v2676_v51  ;;  %v2678_v34 = vsel %vm2640_vm2, %v2673_v15, %v2677_v61  ;;  %v8042_v25 = vld [vmem:[%s13219_s3 + $0x1c0] sm:$0xff]  ;;  %v13391_v15 = vld [vmem:[#allocation39_spill] sm:$0xff]  ;;  %3197 = vmatpush.msrb.mxu0 %v8026_v9  ;;  %v13394_v30 = vld [vmem:[#allocation94_spill] sm:$0xff] }
 0x2c8   :  { %v9768_v52 = vadd.f32 %v9473_v37, %v2200_v49  ;;  %7979 = vmatmul.msk.f32.gmra.mxu0 %vm173_vm1, %v1837_v28  ;;  %v9778_v44 = vmax.f32 %v2331_v43, %v2678_v34  ;;  %v883_v3 = vadd.f32 %v13392_v23, %v13391_v15  ;;  %v13393_v17 = vld [vmem:[#allocation40_spill] sm:$0xff]  ;;  %3310 = vmatpush.msrb.mxu1 %v8042_v25  ;;  %v8025_v43 = vld [vmem:[%s13219_s3 + $0x138] sm:$0xff]  ;;  %v8024_v34 = vld [vmem:[%s13219_s3 + $0x130] sm:$0xff] }
 0x2c9   :  { %8012 = vmatmul.msk.f32.gmra.mxu1 %vm173_vm1, %v1837_v28  ;;  %v9783_v36 = vadd.f32 %v9478_v5, %v2201_v26  ;;  %2971 = vmatmul.f32.gmra.mxu2 %v9762_v59  ;;  %v1336_v32 = vadd.f32 %v13394_v30, %v13393_v17  ;;  %v8041_v49 = vld [vmem:[%s13219_s3 + $0x1b8] sm:$0xff]  ;;  %v8040_v9 = vld [vmem:[%s13219_s3 + $0x1b0] sm:$0xff] }
 0x2ca   :  { %v2334_v28 = vmax.f32 %v9768_v52, 0.0  ;;  %v13395_v6 = vld [vmem:[#allocation95_spill] sm:$0xff]  ;;  %3198 = vmatpush.msrb.mxu0 %v8025_v43  ;;  %3311 = vmatpush.msrb.mxu1 %v8041_v49  ;;  %v8023_v43 = vld [vmem:[%s13219_s3 + $0x128] sm:$0xff] }
 0x2cb   :  { %3066 = vmatmul.f32.gmra.mxu3 %v9604_v8  ;;  %v1337_v51 = vadd.f32 %v13395_v6, %v883_v3  ;;  %v13231_v19 = vmax.f32 %v9783_v36, 0.0  ;;  %v1769_v35 = vadd.f32 %v9337_v4, %v1336_v32  ;;  %v1838_v3 = vld [vmem:[#allocation2 + $0xdc] sm:$0xff]  ;;  %v13404_v52 = vmax.f32 %v9783_v36, 0.0 }
 0x2cc   :  { %v2679_v26 = vrot.slane %v2334_v28, 1  ;;  %3199 = vmatpush.msrb.mxu0 %v8024_v34  ;;  %3312 = vmatpush.msrb.mxu1 %v8040_v9  ;;  %v8038_v34 = vld [vmem:[%s13219_s3 + $0x1a0] sm:$0xff]  ;;  %v13398_v9 = vld [vmem:[#allocation81_spill] sm:$0xff] }
 0x2cd   :  { %v1770_v25 = vadd.f32 %v9586_v13, %v1337_v51  ;;  %v2004_v23 = vpop.f32.mrf.mxu0  ;;  %v2681_v4 = vrot.slane %v13231_v19, 1  ;;  %v8039_v13 = vld [vmem:[%s13219_s3 + $0x1a8] sm:$0xff] }
 0x2ce   :  { %v9808_v15 = vpop.f32.mrf.mxu3  ;;  %v2202_v17 = vadd.f32 %v2004_v23, %v1769_v35  ;;  %v2117_v30 = vpop.f32.mrf.mxu1  ;;  %v2680_v32 = vsel %vm2640_vm2, %v2675_v1, %v2679_v26  ;;  %3200 = vmatpush.msrb.mxu0 %v8023_v43  ;;  %v8022_v1 = vld [vmem:[%s13219_s3 + $0x120] sm:$0xff]  ;;  %3313 = vmatpush.msrb.mxu1 %v8039_v13 }
 0x2cf   :  { %v2203_v49 = vadd.f32 %v2117_v30, %v1770_v25  ;;  %v9819_v6 = vmax.f32 %v2332_v63, %v2680_v32  ;;  %v2682_v51 = vsel %vm2640_vm2, %v2677_v61, %v2681_v4  ;;  %v13397_v61 = vld [vmem:[#allocation42_spill] sm:$0xff]  ;;  %v9845_v32 = vpop.f32.mrf.mxu2 }
 0x2d0   :  { %v9823_v35 = vadd.f32 %v9473_v37, %v2202_v17  ;;  %7980 = vmatmul.msk.f32.gmra.mxu0 %vm173_vm1, %v1838_v3  ;;  %v9835_v63 = vmax.f32 %v2333_v10, %v2682_v51  ;;  %v886_v25 = vadd.f32 %v13398_v9, %v13397_v61  ;;  %v13400_v17 = vld [vmem:[#allocation97_spill] sm:$0xff]  ;;  %13401 = vst [vmem:[#allocation28_spill] sm:$0xff] %v9845_v32  ;;  %v8037_v10 = vld [vmem:[%s13219_s3 + $0x198] sm:$0xff] }
 0x2d1   :  { %13396 = vst [vmem:[#allocation83_spill] sm:$0xff] %v9819_v6  ;;  %8013 = vmatmul.msk.f32.gmra.mxu1 %vm173_vm1, %v1838_v3  ;;  %v9840_v23 = vadd.f32 %v9478_v5, %v2203_v49  ;;  %2974 = vmatmul.f32.gmra.mxu2 %v9819_v6  ;;  %v13399_v3 = vld [vmem:[#allocation43_spill] sm:$0xff]  ;;  %v13402_v49 = vld [vmem:[#allocation98_spill] sm:$0xff] }
 0x2d2   :  { %v1338_v30 = vadd.f32 %v13400_v17, %v13399_v3  ;;  %v2336_v43 = vmax.f32 %v9823_v35, 0.0  ;;  %3201 = vmatpush.msrb.mxu0 %v8022_v1  ;;  %v1339_v13 = vadd.f32 %v13402_v49, %v886_v25  ;;  %3314 = vmatpush.msrb.mxu1 %v8038_v34  ;;  %v8020_v35 = vld [vmem:[%s13219_s3 + $0x110] sm:$0xff]  ;;  %v1839_v49 = vld [vmem:[#allocation2 + $0xe4] sm:$0xff] }
 0x2d3   :  { %3069 = vmatmul.f32.gmra.mxu3 %v9632_v58  ;;  %v2337_v51 = vmax.f32 %v9840_v23, 0.0  ;;  %v8036_v1 = vld [vmem:[%s13219_s3 + $0x190] sm:$0xff] }
 0x2d4   :  { %v1771_v61 = vadd.f32 %v9356_v7, %v1338_v30  ;;  %v2683_v9 = vrot.slane %v2336_v43, 1  ;;  %3202 = vmatpush.msrb.mxu0 %v8021_v22  ;;  %v1772_v3 = vadd.f32 %v9614_v16, %v1339_v13  ;;  %3315 = vmatpush.msrb.mxu1 %v8037_v10  ;;  %v8019_v22 = vld [vmem:[%s13219_s3 + $0x108] sm:$0xff] }
 0x2d5   :  { %v2007_v25 = vpop.f32.mrf.mxu0  ;;  %v2685_v34 = vrot.slane %v2337_v51, 1  ;;  %v8035_v16 = vld [vmem:[%s13219_s3 + $0x188] sm:$0xff] }
 0x2d6   :  { %v9865_v17 = vpop.f32.mrf.mxu3  ;;  %v2204_v23 = vadd.f32 %v2007_v25, %v1771_v61  ;;  %v2120_v7 = vpop.f32.mrf.mxu1  ;;  %v2684_v30 = vsel %vm2640_vm2, %v2679_v26, %v2683_v9  ;;  %3203 = vmatpush.msrb.mxu0 %v8020_v35  ;;  %3316 = vmatpush.msrb.mxu1 %v8036_v1  ;;  %v8018_v26 = vld [vmem:[%s13219_s3 + $0x100] sm:$0xff]  ;;  %v13405_v61 = vld [vmem:[#allocation45_spill] sm:$0xff]  ;;  %v13406_v35 = vld [vmem:[#allocation82_spill] sm:$0xff] }
 0x2d7   :  { %v2205_v19 = vadd.f32 %v2120_v7, %v1772_v3  ;;  %v9873_v32 = vmax.f32 %v2334_v28, %v2684_v30  ;;  %v2686_v10 = vsel %vm2640_vm2, %v2681_v4, %v2685_v34  ;;  %v889_v1 = vadd.f32 %v13406_v35, %v13405_v61  ;;  %v8034_v4 = vld [vmem:[%s13219_s3 + $0x180] sm:$0xff]  ;;  %v13407_v25 = vld [vmem:[#allocation46_spill] sm:$0xff]  ;;  %v9901_v30 = vpop.f32.mrf.mxu2 }
 0x2d8   :  { %v2274_v13 = vadd.f32 %v9473_v37, %v2204_v23  ;;  %7981 = vmatmul.msk.f32.gmra.mxu0 %vm173_vm1, %v1839_v49  ;;  %v9887_v28 = vmax.f32 %v13404_v52, %v2686_v10  ;;  %3317 = vmatpush.msrb.mxu1 %v8035_v16  ;;  %13408 = vst [vmem:[#allocation30_spill] sm:$0xff] %v9901_v30 }
 0x2d9   :  { %13403 = vst [vmem:[#allocation76_spill] sm:$0xff] %v9873_v32  ;;  %8014 = vmatmul.msk.f32.gmra.mxu1 %vm173_vm1, %v1839_v49  ;;  %v2275_v3 = vadd.f32 %v9478_v5, %v2205_v19  ;;  %2977 = vmatmul.f32.gmra.mxu2 %v9873_v32  ;;  %v1340_v49 = vadd.f32 %v9176_v24, %v13407_v25  ;;  %v1840_v24 = vld [vmem:[#allocation2 + $0xec] sm:$0xff] }
 0x2da   :  { %3204 = vmatpush.msrb.mxu0 %v8019_v22  ;;  %v2338_v23 = vmax.f32 %v2274_v13, 0.0  ;;  %v1341_v36 = vadd.f32 %v9178_v31, %v889_v1  ;;  %3318 = vmatpush.msrb.mxu1 %v8034_v4  ;;  %v13411_v4 = vld [vmem:[#allocation84_spill] sm:$0xff] }
 0x2db   :  { %3072 = vmatmul.f32.gmra.mxu3 %v9652_v39  ;;  %v2339_v7 = vmax.f32 %v2275_v3, 0.0  ;;  %v1773_v19 = vadd.f32 %v9373_v21, %v1340_v49  ;;  %v13410_v3 = vld [vmem:[#allocation48_spill] sm:$0xff] }
 0x2dc   :  { %3205 = vmatpush.msrb.mxu0 %v8018_v26  ;;  %v2687_v22 = vrot.slane %v2338_v23, 1  ;;  %v1774_v10 = vadd.f32 %v9642_v11, %v1341_v36  ;;  %v892_v49 = vadd.f32 %v13411_v4, %v13410_v3 }
 0x2dd   :  { %v2010_v61 = vpop.f32.mrf.mxu0  ;;  %v2689_v13 = vrot.slane %v2339_v7, 1 }
 0x2de   :  { %v9904_v52 = vpop.f32.mrf.mxu3  ;;  %v2206_v35 = vadd.f32 %v2010_v61, %v1773_v19  ;;  %v2123_v25 = vpop.f32.mrf.mxu1  ;;  %v2688_v16 = vsel %vm2640_vm2, %v2683_v9, %v2687_v22  ;;  %v13412_v9 = vld [vmem:[#allocation49_spill] sm:$0xff] }
 0x2df   :  { %v2207_v31 = vadd.f32 %v2123_v25, %v1774_v10  ;;  %v9907_v1 = vmax.f32 %v2336_v43, %v2688_v16  ;;  %v2690_v21 = vsel %vm2640_vm2, %v2685_v34, %v2689_v13  ;;  %v13413_v43 = vld [vmem:[#allocation101_spill] sm:$0xff]  ;;  %v13414_v34 = vld [vmem:[#allocation102_spill] sm:$0xff] }
 0x2e0   :  { %v2276_v26 = vadd.f32 %v9473_v37, %v2206_v35  ;;  %7982 = vmatmul.msk.f32.gmra.mxu0 %vm173_vm1, %v1840_v24  ;;  %v9913_v11 = vmax.f32 %v2337_v51, %v2690_v21  ;;  %v1342_v19 = vadd.f32 %v13413_v43, %v13412_v9  ;;  %v1343_v61 = vadd.f32 %v13414_v34, %v892_v49  ;;  %v13415_v25 = vld [vmem:[#allocation141_spill] sm:$0xff] }
 0x2e1   :  { %13409 = vst [vmem:[#allocation77_spill] sm:$0xff] %v9907_v1  ;;  %8015 = vmatmul.msk.f32.gmra.mxu1 %vm173_vm1, %v1840_v24  ;;  %v2277_v36 = vadd.f32 %v9478_v5, %v2207_v31  ;;  %2980 = vmatmul.f32.gmra.mxu2 %v9907_v1  ;;  %v1841_v31 = vld [vmem:[#allocation2 + $0xf4] sm:$0xff]  ;;  %v9927_v1 = vpop.f32.mrf.mxu2  ;;  %v13419_v34 = vld [vmem:[#allocation85_spill] sm:$0xff] }
 0x2e2   :  { %v2340_v10 = vmax.f32 %v2276_v26, 0.0  ;;  %v1775_v24 = vadd.f32 %v13415_v25, %v1342_v19  ;;  %v1776_v16 = vadd.f32 %v9664_v12, %v1343_v61  ;;  %13416 = vst [vmem:[#allocation31_spill] sm:$0xff] %v9927_v1  ;;  %v13418_v19 = vld [vmem:[#allocation51_spill] sm:$0xff] }
 0x2e3   :  { %3075 = vmatmul.f32.gmra.mxu3 %v9680_v14  ;;  %v2341_v35 = vmax.f32 %v2277_v36, 0.0  ;;  %v895_v61 = vadd.f32 %v13419_v34, %v13418_v19 }
 0x2e4   :  { %v2691_v51 = vrot.slane %v2340_v10, 1 }
 0x2e5   :  { %v2013_v3 = vpop.f32.mrf.mxu0  ;;  %v2693_v4 = vrot.slane %v2341_v35, 1 }
 0x2e6   :  { %v9925_v21 = vpop.f32.mrf.mxu3  ;;  %v2208_v30 = vadd.f32 %v2013_v3, %v1775_v24  ;;  %v2126_v9 = vpop.f32.mrf.mxu1  ;;  %v2692_v26 = vsel %vm2640_vm2, %v2687_v22, %v2691_v51  ;;  %v13420_v22 = vld [vmem:[#allocation52_spill] sm:$0xff] }
 0x2e7   :  { %v2209_v43 = vadd.f32 %v2126_v9, %v1776_v16  ;;  %v9930_v32 = vmax.f32 %v2338_v23, %v2692_v26  ;;  %v2694_v49 = vsel %vm2640_vm2, %v2689_v13, %v2693_v4  ;;  %v13421_v23 = vld [vmem:[#allocation104_spill] sm:$0xff] }
 0x2e8   :  { %v2278_v36 = vadd.f32 %v9473_v37, %v2208_v30  ;;  %7983 = vmatmul.msk.f32.gmra.mxu0 %vm173_vm1, %v1841_v31  ;;  %v9936_v12 = vmax.f32 %v2339_v7, %v2694_v49  ;;  %v1344_v24 = vadd.f32 %v13421_v23, %v13420_v22  ;;  %v13422_v30 = vld [vmem:[#allocation105_spill] sm:$0xff]  ;;  %v13423_v9 = vld [vmem:[#allocation144_spill] sm:$0xff] }
 0x2e9   :  { %13417 = vst [vmem:[#allocation86_spill] sm:$0xff] %v9930_v32  ;;  %8016 = vmatmul.msk.f32.gmra.mxu1 %vm173_vm1, %v1841_v31  ;;  %v2279_v25 = vadd.f32 %v9478_v5, %v2209_v43  ;;  %2983 = vmatmul.f32.gmra.mxu2 %v9930_v32  ;;  %v1345_v13 = vadd.f32 %v13422_v30, %v895_v61  ;;  %v1842_v43 = vld [vmem:[#allocation2 + $0xfc] sm:$0xff]  ;;  %v13426_v30 = vld [vmem:[#allocation54_spill] sm:$0xff] }
 0x2ea   :  { %v2342_v16 = vmax.f32 %v2278_v36, 0.0  ;;  %v1777_v31 = vadd.f32 %v13423_v9, %v1344_v24 }
 0x2eb   :  { %3078 = vmatmul.f32.gmra.mxu3 %v9704_v50  ;;  %v2343_v3 = vmax.f32 %v2279_v25, 0.0  ;;  %v1778_v26 = vadd.f32 %v9695_v40, %v1345_v13  ;;  %v9954_v25 = vpop.f32.mrf.mxu2  ;;  %v13427_v13 = vld [vmem:[#allocation87_spill] sm:$0xff] }
 0x2ec   :  { %v2695_v7 = vrot.slane %v2342_v16, 1  ;;  %13425 = vst [vmem:[#allocation78_spill] sm:$0xff] %v9954_v25  ;;  %v898_v9 = vadd.f32 %v13427_v13, %v13426_v30 }
 0x2ed   :  { %v2016_v19 = vpop.f32.mrf.mxu0  ;;  %v2697_v34 = vrot.slane %v2343_v3, 1 }
 0x2ee   :  { %v9948_v49 = vpop.f32.mrf.mxu3  ;;  %v2210_v32 = vadd.f32 %v2016_v19, %v1777_v31  ;;  %v2129_v1 = vpop.f32.mrf.mxu1  ;;  %v2696_v22 = vsel %vm2640_vm2, %v2691_v51, %v2695_v7 }
 0x2ef   :  { %v2211_v36 = vadd.f32 %v2129_v1, %v1778_v26  ;;  %v9951_v23 = vmax.f32 %v2340_v10, %v2696_v22  ;;  %v2698_v61 = vsel %vm2640_vm2, %v2693_v4, %v2697_v34  ;;  %v13428_v1 = vld [vmem:[#allocation55_spill] sm:$0xff]  ;;  %v13431_v22 = vld [vmem:[#allocation148_spill] sm:$0xff] }
 0x2f0   :  { %v2280_v24 = vadd.f32 %v9473_v37, %v2210_v32  ;;  %7984 = vmatmul.msk.f32.gmra.mxu0 %vm173_vm1, %v1842_v43  ;;  %v9959_v40 = vmax.f32 %v2341_v35, %v2698_v61  ;;  %v13429_v10 = vld [vmem:[#allocation107_spill] sm:$0xff]  ;;  %v13430_v32 = vld [vmem:[#allocation108_spill] sm:$0xff] }
 0x2f1   :  { %13424 = vst [vmem:[#allocation33_spill] sm:$0xff] %v9951_v23  ;;  %8017 = vmatmul.msk.f32.gmra.mxu1 %vm173_vm1, %v1842_v43  ;;  %v2281_v51 = vadd.f32 %v9478_v5, %v2211_v36  ;;  %2986 = vmatmul.f32.gmra.mxu2 %v9951_v23  ;;  %v1346_v4 = vadd.f32 %v13429_v10, %v13428_v1 }
 0x2f2   :  { %v2344_v31 = vmax.f32 %v2280_v24, 0.0  ;;  %v1347_v26 = vadd.f32 %v13430_v32, %v898_v9 }
 0x2f3   :  { %3081 = vmatmul.f32.gmra.mxu3 %v9735_v48  ;;  %v2345_v19 = vmax.f32 %v2281_v51, 0.0  ;;  %v1779_v43 = vadd.f32 %v13431_v22, %v1346_v4  ;;  %v13432_v51 = vld [vmem:[#allocation57_spill] sm:$0xff]  ;;  %v13433_v4 = vld [vmem:[#allocation90_spill] sm:$0xff] }
 0x2f4   :  { %v2699_v35 = vrot.slane %v2344_v31, 1  ;;  %v1780_v61 = vadd.f32 %v9716_v62, %v1347_v26  ;;  %v901_v32 = vadd.f32 %v13433_v4, %v13432_v51 }
 0x2f5   :  { %v2019_v30 = vpop.f32.mrf.mxu0  ;;  %v2701_v36 = vrot.slane %v2345_v19, 1 }
 0x2f6   :  { %v9971_v25 = vpop.f32.mrf.mxu3  ;;  %v2212_v13 = vadd.f32 %v2019_v30, %v1779_v43  ;;  %v2132_v23 = vpop.f32.mrf.mxu1  ;;  %v2700_v6 = vsel %vm2640_vm2, %v2695_v7, %v2699_v35  ;;  %v13434_v7 = vld [vmem:[#allocation58_spill] sm:$0xff] }
 0x2f7   :  { %v2213_v1 = vadd.f32 %v2132_v23, %v1780_v61  ;;  %v9974_v24 = vmax.f32 %v2342_v16, %v2700_v6  ;;  %v2702_v10 = vsel %vm2640_vm2, %v2697_v34, %v2701_v36  ;;  %v13435_v6 = vld [vmem:[#allocation110_spill] sm:$0xff]  ;;  %v9988_v23 = vpop.f32.mrf.mxu2 }
 0x2f8   :  { %v2282_v9 = vadd.f32 %v9473_v37, %v2212_v13  ;;  %3206 = vmatmul.f32.vlgmr.msrb.gmra.mxu0 %v9524_v33  ;;  %v9980_v62 = vmax.f32 %v2343_v3, %v2702_v10  ;;  %v1348_v16 = vadd.f32 %v13435_v6, %v13434_v7  ;;  %v13436_v33 = vld [vmem:[#allocation111_spill] sm:$0xff] }
 0x2f9   :  { %3319 = vmatmul.f32.vlgmr.msrb.gmra.mxu1 %v9530_v60  ;;  %v2283_v26 = vadd.f32 %v9478_v5, %v2213_v1  ;;  %2989 = vmatmul.f32.gmra.mxu2 %v9974_v24  ;;  %v1349_v22 = vadd.f32 %v13436_v33, %v901_v32  ;;  %v3609_v1 = vld [vmem:[#allocation9 + $0x1f0] sm:$0xff] }
 0x2fa   :  { %v2346_v34 = vmax.f32 %v2282_v9, 0.0  ;;  %v1781_v3 = vadd.f32 %v9484_v41, %v1348_v16  ;;  %3611 = vmatpush.msrb.mxu2 %v3609_v1  ;;  %v13438_v16 = vld [vmem:[#allocation93_spill] sm:$0xff]  ;;  %v13442_v1 = vld [vmem:[#allocation150_spill] sm:$0xff] }
 0x2fb   :  { %3084 = vmatmul.f32.gmra.mxu3 %v9778_v44  ;;  %v2347_v60 = vmax.f32 %v2283_v26, 0.0  ;;  %v1782_v61 = vadd.f32 %v9751_v45, %v1349_v22  ;;  %v13437_v26 = vld [vmem:[#allocation60_spill] sm:$0xff] }
 0x2fc   :  { %v2703_v43 = vrot.slane %v2346_v34, 1  ;;  %v904_v33 = vadd.f32 %v13438_v16, %v13437_v26 }
 0x2fd   :  { %v2022_v13 = vpop.f32.mrf.mxu0  ;;  %v2705_v10 = vrot.slane %v2347_v60, 1 }
 0x2fe   :  { %v9994_v30 = vpop.f32.mrf.mxu3  ;;  %v2214_v51 = vadd.f32 %v2022_v13, %v1781_v3  ;;  %v2135_v4 = vpop.f32.mrf.mxu1  ;;  %v2704_v7 = vsel %vm2640_vm2, %v2699_v35, %v2703_v43  ;;  %v13439_v35 = vld [vmem:[#allocation61_spill] sm:$0xff] }
 0x2ff   :  { %v2215_v9 = vadd.f32 %v2135_v4, %v1782_v61  ;;  %v9997_v6 = vmax.f32 %v2344_v31, %v2704_v7  ;;  %v2706_v32 = vsel %vm2640_vm2, %v2701_v36, %v2705_v10  ;;  %v13440_v31 = vld [vmem:[#allocation113_spill] sm:$0xff]  ;;  %v13441_v36 = vld [vmem:[#allocation114_spill] sm:$0xff] }
 0x300   :  { %v2284_v41 = vadd.f32 %v9473_v37, %v2214_v51  ;;  %3209 = vmatmul.f32.gmra.mxu0 %v9561_v56  ;;  %v10003_v45 = vmax.f32 %v2345_v19, %v2706_v32  ;;  %v1350_v3 = vadd.f32 %v13440_v31, %v13439_v35  ;;  %v1351_v13 = vadd.f32 %v13441_v36, %v904_v33  ;;  %v10014_v19 = vpop.f32.mrf.mxu2  ;;  %v3610_v32 = vld [vmem:[#allocation9 + $0x1f8] sm:$0xff]  ;;  %v13443_v36 = vld [vmem:[#allocation62_spill] sm:$0xff] }
 0x301   :  { %3322 = vmatmul.f32.gmra.mxu1 %v9570_v42  ;;  %v2285_v22 = vadd.f32 %v9478_v5, %v2215_v9  ;;  %2992 = vmatmul.f32.gmra.mxu2 %v9997_v6 }
 0x302   :  { %v2348_v61 = vmax.f32 %v2284_v41, 0.0  ;;  %v1783_v42 = vadd.f32 %v13442_v1, %v1350_v3  ;;  %v1784_v4 = vadd.f32 %v9808_v15, %v1351_v13  ;;  %3724 = vmatpush.msra.mxu3 %v3610_v32  ;;  %v13444_v13 = vld [vmem:[#allocation96_spill] sm:$0xff] }
 0x303   :  { %3087 = vmatmul.f32.gmra.mxu3 %v9835_v63  ;;  %v2349_v56 = vmax.f32 %v2285_v22, 0.0  ;;  %v907_v1 = vadd.f32 %v13444_v13, %v13443_v36 }
 0x304   :  { %v2707_v51 = vrot.slane %v2348_v61, 1 }
 0x305   :  { %v2025_v9 = vpop.f32.mrf.mxu0  ;;  %v2709_v26 = vrot.slane %v2349_v56, 1 }
 0x306   :  { %v10017_v7 = vpop.f32.mrf.mxu3  ;;  %v2216_v16 = vadd.f32 %v2025_v9, %v1783_v42  ;;  %v2138_v35 = vpop.f32.mrf.mxu1  ;;  %v2708_v41 = vsel %vm2640_vm2, %v2703_v43, %v2707_v51  ;;  %v13445_v43 = vld [vmem:[#allocation63_spill] sm:$0xff] }
 0x307   :  { %v2217_v31 = vadd.f32 %v2138_v35, %v1784_v4  ;;  %v10020_v33 = vmax.f32 %v2346_v34, %v2708_v41  ;;  %v2710_v22 = vsel %vm2640_vm2, %v2705_v10, %v2709_v26  ;;  %v13446_v34 = vld [vmem:[#allocation116_spill] sm:$0xff]  ;;  %v13447_v10 = vld [vmem:[#allocation117_spill] sm:$0xff] }
 0x308   :  { %v2286_v3 = vadd.f32 %v9473_v37, %v2216_v16  ;;  %3212 = vmatmul.f32.gmra.mxu0 %v9595_v53  ;;  %v10026_v15 = vmax.f32 %v2347_v60, %v2710_v22  ;;  %v1352_v4 = vadd.f32 %v13446_v34, %v13445_v43  ;;  %v1353_v32 = vadd.f32 %v13447_v10, %v907_v1  ;;  %v3607_v22 = vld [vmem:[#allocation9 + $0x1e0] sm:$0xff]  ;;  %v13449_v10 = vld [vmem:[#allocation99_spill] sm:$0xff] }
 0x309   :  { %3325 = vmatmul.f32.gmra.mxu1 %v9604_v8  ;;  %v2287_v42 = vadd.f32 %v9478_v5, %v2217_v31  ;;  %2995 = vmatmul.f32.gmra.mxu2 %v10020_v33 }
 0x30a   :  { %v2350_v9 = vmax.f32 %v2286_v3, 0.0  ;;  %v1785_v8 = vadd.f32 %v9542_v54, %v1352_v4  ;;  %v1786_v35 = vadd.f32 %v9865_v17, %v1353_v32  ;;  %3612 = vmatpush.msrb.mxu2 %v3607_v22  ;;  %v13448_v4 = vld [vmem:[#allocation64_spill] sm:$0xff] }
 0x30b   :  { %3090 = vmatmul.f32.gmra.mxu3 %v9887_v28  ;;  %v2351_v53 = vmax.f32 %v2287_v42, 0.0  ;;  %v910_v32 = vadd.f32 %v13449_v10, %v13448_v4 }
 0x30c   :  { %v10037_v60 = vpop.f32.mrf.mxu2  ;;  %v2711_v16 = vrot.slane %v2350_v9, 1 }
 0x30d   :  { %v2028_v31 = vpop.f32.mrf.mxu0  ;;  %v2713_v36 = vrot.slane %v2351_v53, 1 }
 0x30e   :  { %v10040_v41 = vpop.f32.mrf.mxu3  ;;  %v2218_v13 = vadd.f32 %v2028_v31, %v1785_v8  ;;  %v2141_v43 = vpop.f32.mrf.mxu1  ;;  %v2712_v3 = vsel %vm2640_vm2, %v2707_v51, %v2711_v16  ;;  %v13450_v51 = vld [vmem:[#allocation65_spill] sm:$0xff] }
 0x30f   :  { %v2219_v34 = vadd.f32 %v2141_v43, %v1786_v35  ;;  %v10043_v1 = vmax.f32 %v2348_v61, %v2712_v3  ;;  %v2714_v54 = vsel %vm2640_vm2, %v2709_v26, %v2713_v36  ;;  %v13451_v61 = vld [vmem:[#allocation119_spill] sm:$0xff]  ;;  %v13452_v26 = vld [vmem:[#allocation120_spill] sm:$0xff] }
 0x310   :  { %v2288_v42 = vadd.f32 %v9473_v37, %v2218_v13  ;;  %3215 = vmatmul.f32.gmra.mxu0 %v9624_v18  ;;  %v10049_v17 = vmax.f32 %v2349_v56, %v2714_v54  ;;  %v1354_v35 = vadd.f32 %v13451_v61, %v13450_v51  ;;  %v1355_v22 = vadd.f32 %v13452_v26, %v910_v32  ;;  %v3608_v54 = vld [vmem:[#allocation9 + $0x1e8] sm:$0xff]  ;;  %v13454_v26 = vld [vmem:[#allocation100_spill] sm:$0xff] }
 0x311   :  { %3328 = vmatmul.f32.gmra.mxu1 %v9632_v58  ;;  %v2289_v8 = vadd.f32 %v9478_v5, %v2219_v34  ;;  %2998 = vmatmul.f32.gmra.mxu2 %v10043_v1 }
 0x312   :  { %v2352_v31 = vmax.f32 %v2288_v42, 0.0  ;;  %v1787_v58 = vadd.f32 %v9588_v57, %v1354_v35  ;;  %v1788_v43 = vadd.f32 %v9904_v52, %v1355_v22  ;;  %3725 = vmatpush.msra.mxu3 %v3608_v54  ;;  %v13453_v35 = vld [vmem:[#allocation66_spill] sm:$0xff] }
 0x313   :  { %3093 = vmatmul.f32.gmra.mxu3 %v9913_v11  ;;  %v2353_v18 = vmax.f32 %v2289_v8, 0.0  ;;  %v913_v22 = vadd.f32 %v13454_v26, %v13453_v35 }
 0x314   :  { %v10060_v56 = vpop.f32.mrf.mxu2  ;;  %v2715_v13 = vrot.slane %v2352_v31, 1 }
 0x315   :  { %v2031_v34 = vpop.f32.mrf.mxu0  ;;  %v2717_v4 = vrot.slane %v2353_v18, 1 }
 0x316   :  { %v10063_v3 = vpop.f32.mrf.mxu3  ;;  %v2220_v10 = vadd.f32 %v2031_v34, %v1787_v58  ;;  %v2144_v51 = vpop.f32.mrf.mxu1  ;;  %v2716_v42 = vsel %vm2640_vm2, %v2711_v16, %v2715_v13  ;;  %v13455_v16 = vld [vmem:[#allocation67_spill] sm:$0xff] }
 0x317   :  { %v2221_v61 = vadd.f32 %v2144_v51, %v1788_v43  ;;  %v10066_v32 = vmax.f32 %v2350_v9, %v2716_v42  ;;  %v2718_v57 = vsel %vm2640_vm2, %v2713_v36, %v2717_v4  ;;  %v13456_v9 = vld [vmem:[#allocation122_spill] sm:$0xff]  ;;  %v13457_v36 = vld [vmem:[#allocation123_spill] sm:$0xff] }
 0x318   :  { %v2290_v8 = vadd.f32 %v9473_v37, %v2220_v10  ;;  %3218 = vmatmul.f32.gmra.mxu0 %v9646_v27  ;;  %v10072_v52 = vmax.f32 %v2351_v53, %v2718_v57  ;;  %v1356_v43 = vadd.f32 %v13456_v9, %v13455_v16  ;;  %v1357_v54 = vadd.f32 %v13457_v36, %v913_v22  ;;  %v3605_v57 = vld [vmem:[#allocation9 + $0x1d0] sm:$0xff] }
 0x319   :  { %3331 = vmatmul.f32.gmra.mxu1 %v9652_v39  ;;  %v2291_v58 = vadd.f32 %v9478_v5, %v2221_v61  ;;  %3001 = vmatmul.f32.gmra.mxu2 %v10066_v32  ;;  %v13459_v36 = vld [vmem:[#allocation103_spill] sm:$0xff] }
 0x31a   :  { %v2354_v34 = vmax.f32 %v2290_v8, 0.0  ;;  %v1789_v39 = vadd.f32 %v9627_v55, %v1356_v43  ;;  %v1790_v51 = vadd.f32 %v9925_v21, %v1357_v54  ;;  %3613 = vmatpush.msrb.mxu2 %v3605_v57  ;;  %v13458_v43 = vld [vmem:[#allocation68_spill] sm:$0xff] }
 0x31b   :  { %3096 = vmatmul.f32.gmra.mxu3 %v9936_v12  ;;  %v2355_v27 = vmax.f32 %v2291_v58, 0.0  ;;  %v916_v54 = vadd.f32 %v13459_v36, %v13458_v43 }
 0x31c   :  { %v10083_v53 = vpop.f32.mrf.mxu2  ;;  %v2719_v10 = vrot.slane %v2354_v34, 1 }
 0x31d   :  { %v2034_v61 = vpop.f32.mrf.mxu0  ;;  %v2721_v35 = vrot.slane %v2355_v27, 1 }
 0x31e   :  { %v10086_v42 = vpop.f32.mrf.mxu3  ;;  %v2222_v26 = vadd.f32 %v2034_v61, %v1789_v39  ;;  %v2147_v16 = vpop.f32.mrf.mxu1  ;;  %v2720_v8 = vsel %vm2640_vm2, %v2715_v13, %v2719_v10  ;;  %v13460_v13 = vld [vmem:[#allocation69_spill] sm:$0xff] }
 0x31f   :  { %v2223_v9 = vadd.f32 %v2147_v16, %v1790_v51  ;;  %v10089_v22 = vmax.f32 %v2352_v31, %v2720_v8  ;;  %v2722_v55 = vsel %vm2640_vm2, %v2717_v4, %v2721_v35  ;;  %v13461_v31 = vld [vmem:[#allocation125_spill] sm:$0xff]  ;;  %v13462_v4 = vld [vmem:[#allocation126_spill] sm:$0xff] }
 0x320   :  { %v2292_v58 = vadd.f32 %v9473_v37, %v2222_v26  ;;  %3221 = vmatmul.f32.gmra.mxu0 %v9674_v29  ;;  %v10095_v21 = vmax.f32 %v2353_v18, %v2722_v55  ;;  %v1358_v51 = vadd.f32 %v13461_v31, %v13460_v13  ;;  %v1359_v57 = vadd.f32 %v13462_v4, %v916_v54  ;;  %v3606_v55 = vld [vmem:[#allocation9 + $0x1d8] sm:$0xff]  ;;  %v13464_v4 = vld [vmem:[#allocation106_spill] sm:$0xff] }
 0x321   :  { %3334 = vmatmul.f32.gmra.mxu1 %v9680_v14  ;;  %v2293_v39 = vadd.f32 %v9478_v5, %v2223_v9  ;;  %3004 = vmatmul.f32.gmra.mxu2 %v10089_v22 }
 0x322   :  { %v2356_v61 = vmax.f32 %v2292_v58, 0.0  ;;  %v1791_v14 = vadd.f32 %v9658_v2, %v1358_v51  ;;  %v1792_v16 = vadd.f32 %v9948_v49, %v1359_v57  ;;  %3726 = vmatpush.msra.mxu3 %v3606_v55  ;;  %v13463_v51 = vld [vmem:[#allocation70_spill] sm:$0xff] }
 0x323   :  { %3099 = vmatmul.f32.gmra.mxu3 %v9959_v40  ;;  %v2357_v29 = vmax.f32 %v2293_v39, 0.0  ;;  %v919_v57 = vadd.f32 %v13464_v4, %v13463_v51 }
 0x324   :  { %v10106_v18 = vpop.f32.mrf.mxu2  ;;  %v2723_v26 = vrot.slane %v2356_v61, 1 }
 0x325   :  { %v2037_v9 = vpop.f32.mrf.mxu0  ;;  %v2725_v43 = vrot.slane %v2357_v29, 1 }
 0x326   :  { %v10109_v8 = vpop.f32.mrf.mxu3  ;;  %v2224_v36 = vadd.f32 %v2037_v9, %v1791_v14  ;;  %v2150_v13 = vpop.f32.mrf.mxu1  ;;  %v2724_v58 = vsel %vm2640_vm2, %v2719_v10, %v2723_v26  ;;  %v13465_v10 = vld [vmem:[#allocation71_spill] sm:$0xff] }
 0x327   :  { %v2225_v31 = vadd.f32 %v2150_v13, %v1792_v16  ;;  %v10112_v54 = vmax.f32 %v2354_v34, %v2724_v58  ;;  %v2726_v2 = vsel %vm2640_vm2, %v2721_v35, %v2725_v43  ;;  %v13466_v34 = vld [vmem:[#allocation128_spill] sm:$0xff]  ;;  %v13467_v35 = vld [vmem:[#allocation129_spill] sm:$0xff] }
 0x328   :  { %v2294_v39 = vadd.f32 %v9473_v37, %v2224_v36  ;;  %3224 = vmatmul.f32.gmra.mxu0 %v9698_v38  ;;  %v10118_v49 = vmax.f32 %v2355_v27, %v2726_v2  ;;  %v1360_v16 = vadd.f32 %v13466_v34, %v13465_v10  ;;  %v1361_v55 = vadd.f32 %v13467_v35, %v919_v57  ;;  %v3603_v2 = vld [vmem:[#allocation9 + $0x1c0] sm:$0xff] }
 0x329   :  { %3337 = vmatmul.f32.gmra.mxu1 %v9704_v50  ;;  %v2295_v14 = vadd.f32 %v9478_v5, %v2225_v31  ;;  %3007 = vmatmul.f32.gmra.mxu2 %v10112_v54  ;;  %v13469_v35 = vld [vmem:[#allocation109_spill] sm:$0xff] }
 0x32a   :  { %v2358_v9 = vmax.f32 %v2294_v39, 0.0  ;;  %v1793_v50 = vadd.f32 %v9692_v47, %v1360_v16  ;;  %v1794_v13 = vadd.f32 %v9971_v25, %v1361_v55  ;;  %3614 = vmatpush.msrb.mxu2 %v3603_v2  ;;  %v13468_v16 = vld [vmem:[#allocation72_spill] sm:$0xff] }
 0x32b   :  { %3102 = vmatmul.f32.gmra.mxu3 %v9980_v62  ;;  %v2359_v38 = vmax.f32 %v2295_v14, 0.0  ;;  %v922_v55 = vadd.f32 %v13469_v35, %v13468_v16 }
 0x32c   :  { %v10129_v27 = vpop.f32.mrf.mxu2  ;;  %v2727_v36 = vrot.slane %v2358_v9, 1 }
 0x32d   :  { %v2040_v31 = vpop.f32.mrf.mxu0  ;;  %v2729_v51 = vrot.slane %v2359_v38, 1 }
 0x32e   :  { %v10132_v58 = vpop.f32.mrf.mxu3  ;;  %v2226_v4 = vadd.f32 %v2040_v31, %v1793_v50  ;;  %v2153_v10 = vpop.f32.mrf.mxu1  ;;  %v2728_v39 = vsel %vm2640_vm2, %v2723_v26, %v2727_v36  ;;  %v13470_v26 = vld [vmem:[#allocation73_spill] sm:$0xff] }
 0x32f   :  { %v2227_v34 = vadd.f32 %v2153_v10, %v1794_v13  ;;  %v10135_v57 = vmax.f32 %v2356_v61, %v2728_v39  ;;  %v2730_v47 = vsel %vm2640_vm2, %v2725_v43, %v2729_v51  ;;  %v13471_v61 = vld [vmem:[#allocation131_spill] sm:$0xff]  ;;  %v13472_v43 = vld [vmem:[#allocation132_spill] sm:$0xff] }
 0x330   :  { %v2296_v14 = vadd.f32 %v9473_v37, %v2226_v4  ;;  %3227 = vmatmul.f32.gmra.mxu0 %v9727_v0  ;;  %v10141_v25 = vmax.f32 %v2357_v29, %v2730_v47  ;;  %v1362_v13 = vadd.f32 %v13471_v61, %v13470_v26  ;;  %v1363_v2 = vadd.f32 %v13472_v43, %v922_v55  ;;  %v3604_v47 = vld [vmem:[#allocation9 + $0x1c8] sm:$0xff]  ;;  %v13475_v43 = vld [vmem:[#allocation112_spill] sm:$0xff] }
 0x331   :  { %3340 = vmatmul.f32.gmra.mxu1 %v9735_v48  ;;  %v2297_v50 = vadd.f32 %v9478_v5, %v2227_v34  ;;  %3010 = vmatmul.f32.gmra.mxu2 %v10135_v57 }
 0x332   :  { %v2360_v31 = vmax.f32 %v2296_v14, 0.0  ;;  %v1795_v48 = vadd.f32 %v9724_v20, %v1362_v13  ;;  %v1796_v10 = vadd.f32 %v9994_v30, %v1363_v2  ;;  %3727 = vmatpush.msra.mxu3 %v3604_v47  ;;  %v13474_v13 = vld [vmem:[#allocation74_spill] sm:$0xff] }
 0x333   :  { %3105 = vmatmul.f32.gmra.mxu3 %v10003_v45  ;;  %v2361_v0 = vmax.f32 %v2297_v50, 0.0  ;;  %v925_v2 = vadd.f32 %v13475_v43, %v13474_v13 }
 0x334   :  { %v10152_v29 = vpop.f32.mrf.mxu2  ;;  %v2731_v4 = vrot.slane %v2360_v31, 1 }
 0x335   :  { %v2043_v34 = vpop.f32.mrf.mxu0  ;;  %v2733_v16 = vrot.slane %v2361_v0, 1 }
 0x336   :  { %v10155_v39 = vpop.f32.mrf.mxu3  ;;  %v2228_v35 = vadd.f32 %v2043_v34, %v1795_v48  ;;  %v2156_v26 = vpop.f32.mrf.mxu1  ;;  %v2732_v14 = vsel %vm2640_vm2, %v2727_v36, %v2731_v4  ;;  %v13476_v36 = vld [vmem:[#allocation75_spill] sm:$0xff] }
 0x337   :  { %v2229_v61 = vadd.f32 %v2156_v26, %v1796_v10  ;;  %v10158_v55 = vmax.f32 %v2358_v9, %v2732_v14  ;;  %v2734_v20 = vsel %vm2640_vm2, %v2729_v51, %v2733_v16  ;;  %v13477_v9 = vld [vmem:[#allocation133_spill] sm:$0xff]  ;;  %v13478_v51 = vld [vmem:[#allocation134_spill] sm:$0xff] }
 0x338   :  { %v2298_v50 = vadd.f32 %v9473_v37, %v2228_v35  ;;  %3230 = vmatmul.f32.gmra.mxu0 %v9762_v59  ;;  %v10164_v30 = vmax.f32 %v2359_v38, %v2734_v20  ;;  %v1364_v10 = vadd.f32 %v13477_v9, %v13476_v36  ;;  %v1365_v47 = vadd.f32 %v13478_v51, %v925_v2  ;;  %v3601_v20 = vld [vmem:[#allocation9 + $0x1b0] sm:$0xff] }
 0x339   :  { %13473 = vst [vmem:[#allocation34_spill] sm:$0xff] %v10158_v55  ;;  %3343 = vmatmul.f32.gmra.mxu1 %v9778_v44  ;;  %v2299_v48 = vadd.f32 %v9478_v5, %v2229_v61  ;;  %3013 = vmatmul.f32.gmra.mxu2 %v10158_v55 }
 0x33a   :  { %v2362_v34 = vmax.f32 %v2298_v50, 0.0  ;;  %v1797_v44 = vadd.f32 %v9765_v46, %v1364_v10  ;;  %v1798_v26 = vadd.f32 %v10017_v7, %v1365_v47  ;;  %3615 = vmatpush.msrb.mxu2 %v3601_v20  ;;  %v13481_v10 = vld [vmem:[#allocation44_spill] sm:$0xff]  ;;  %v13482_v47 = vld [vmem:[#allocation83_spill] sm:$0xff] }
 0x33b   :  { %3108 = vmatmul.f32.gmra.mxu3 %v10026_v15  ;;  %v2363_v59 = vmax.f32 %v2299_v48, 0.0  ;;  %v13480_v48 = vld [vmem:[#allocation21_spill] sm:$0xff] }
 0x33c   :  { %v10175_v38 = vpop.f32.mrf.mxu2  ;;  %v2735_v35 = vrot.slane %v2362_v34, 1  ;;  %v815_v51 = vadd.f32 %v13481_v10, %v13480_v48  ;;  %v13487_v48 = vld [vmem:[#allocation28_spill] sm:$0xff] }
 0x33d   :  { %v2046_v61 = vpop.f32.mrf.mxu0  ;;  %v2737_v13 = vrot.slane %v2363_v59, 1 }
 0x33e   :  { %v10178_v14 = vpop.f32.mrf.mxu3  ;;  %v2230_v43 = vadd.f32 %v2046_v61, %v1797_v44  ;;  %v2159_v36 = vpop.f32.mrf.mxu1  ;;  %v2736_v50 = vsel %vm2640_vm2, %v2731_v4, %v2735_v35  ;;  %v13483_v44 = vld [vmem:[#allocation27_spill] sm:$0xff] }
 0x33f   :  { %v2231_v9 = vadd.f32 %v2159_v36, %v1798_v26  ;;  %v10181_v2 = vmax.f32 %v2360_v31, %v2736_v50  ;;  %v2738_v46 = vsel %vm2640_vm2, %v2733_v16, %v2737_v13  ;;  %v13484_v61 = vld [vmem:[#allocation115_spill] sm:$0xff]  ;;  %v13486_v36 = vld [vmem:[#allocation136_spill] sm:$0xff] }
 0x340   :  { %v2300_v7 = vadd.f32 %v9473_v37, %v2230_v43  ;;  %3233 = vmatmul.f32.gmra.mxu0 %v13482_v47  ;;  %v10189_v55 = vmax.f32 %v2361_v0, %v2738_v46  ;;  %v928_v4 = vadd.f32 %v13484_v61, %v13483_v44  ;;  %v13485_v31 = vld [vmem:[#allocation135_spill] sm:$0xff]  ;;  %v3602_v44 = vld [vmem:[#allocation9 + $0x1b8] sm:$0xff] }
 0x341   :  { %13479 = vst [vmem:[#allocation88_spill] sm:$0xff] %v10181_v2  ;;  %3346 = vmatmul.f32.gmra.mxu1 %v9835_v63  ;;  %v2301_v26 = vadd.f32 %v9478_v5, %v2231_v9  ;;  %3016 = vmatmul.f32.gmra.mxu2 %v10181_v2  ;;  %v1366_v16 = vadd.f32 %v13485_v31, %v815_v51 }
 0x342   :  { %v2364_v20 = vmax.f32 %v2300_v7, 0.0  ;;  %v1367_v43 = vadd.f32 %v13486_v36, %v928_v4  ;;  %3728 = vmatpush.msra.mxu3 %v3602_v44  ;;  %v13491_v36 = vld [vmem:[#allocation47_spill] sm:$0xff] }
 0x343   :  { %3111 = vmatmul.f32.gmra.mxu3 %v10049_v17  ;;  %v2365_v50 = vmax.f32 %v2301_v26, 0.0  ;;  %v1799_v10 = vadd.f32 %v13487_v48, %v1366_v16  ;;  %v13490_v16 = vld [vmem:[#allocation22_spill] sm:$0xff] }
 0x344   :  { %v10199_v63 = vpop.f32.mrf.mxu2  ;;  %v2739_v0 = vrot.slane %v2364_v20, 1  ;;  %v1800_v46 = vadd.f32 %v10040_v41, %v1367_v43  ;;  %v818_v48 = vadd.f32 %v13491_v36, %v13490_v16  ;;  %v13492_v43 = vld [vmem:[#allocation76_spill] sm:$0xff]  ;;  %v13497_v16 = vld [vmem:[#allocation30_spill] sm:$0xff] }
 0x345   :  { %13488 = vst [vmem:[#allocation89_spill] sm:$0xff] %v10199_v63  ;;  %v2049_v9 = vpop.f32.mrf.mxu0  ;;  %v2741_v61 = vrot.slane %v2365_v50, 1 }
 0x346   :  { %v10202_v47 = vpop.f32.mrf.mxu3  ;;  %v2232_v2 = vadd.f32 %v2049_v9, %v1799_v10  ;;  %v2162_v51 = vpop.f32.mrf.mxu1  ;;  %v2740_v7 = vsel %vm2640_vm2, %v2735_v35, %v2739_v0  ;;  %v13493_v10 = vld [vmem:[#allocation29_spill] sm:$0xff]  ;;  %v13494_v9 = vld [vmem:[#allocation118_spill] sm:$0xff] }
 0x347   :  { %v2233_v31 = vadd.f32 %v2162_v51, %v1800_v46  ;;  %v10205_v4 = vmax.f32 %v2362_v34, %v2740_v7  ;;  %v2742_v26 = vsel %vm2640_vm2, %v2737_v13, %v2741_v61  ;;  %v931_v35 = vadd.f32 %v13494_v9, %v13493_v10  ;;  %v13495_v34 = vld [vmem:[#allocation137_spill] sm:$0xff]  ;;  %v13496_v51 = vld [vmem:[#allocation138_spill] sm:$0xff] }
 0x348   :  { %v2302_v41 = vadd.f32 %v9473_v37, %v2232_v2  ;;  %3236 = vmatmul.f32.gmra.mxu0 %v13492_v43  ;;  %v10213_v63 = vmax.f32 %v2363_v59, %v2742_v26  ;;  %v1368_v13 = vadd.f32 %v13495_v34, %v818_v48  ;;  %v3599_v10 = vld [vmem:[#allocation9 + $0x1a0] sm:$0xff] }
 0x349   :  { %13489 = vst [vmem:[#allocation36_spill] sm:$0xff] %v10205_v4  ;;  %3349 = vmatmul.f32.gmra.mxu1 %v9887_v28  ;;  %v2303_v46 = vadd.f32 %v9478_v5, %v2233_v31  ;;  %3019 = vmatmul.f32.gmra.mxu2 %v10205_v4  ;;  %v1369_v2 = vadd.f32 %v13496_v51, %v931_v35  ;;  %v13501_v51 = vld [vmem:[#allocation50_spill] sm:$0xff] }
 0x34a   :  { %v2366_v44 = vmax.f32 %v2302_v41, 0.0  ;;  %v1801_v36 = vadd.f32 %v13497_v16, %v1368_v13  ;;  %3616 = vmatpush.msrb.mxu2 %v3599_v10  ;;  %v13500_v13 = vld [vmem:[#allocation23_spill] sm:$0xff] }
 0x34b   :  { %3114 = vmatmul.f32.gmra.mxu3 %v10072_v52  ;;  %v2367_v7 = vmax.f32 %v2303_v46, 0.0  ;;  %v1802_v26 = vadd.f32 %v10063_v3, %v1369_v2  ;;  %v821_v16 = vadd.f32 %v13501_v51, %v13500_v13  ;;  %v13502_v2 = vld [vmem:[#allocation77_spill] sm:$0xff]  ;;  %v13507_v13 = vld [vmem:[#allocation31_spill] sm:$0xff] }
 0x34c   :  { %v10223_v28 = vpop.f32.mrf.mxu2  ;;  %v2743_v59 = vrot.slane %v2366_v44, 1 }
 0x34d   :  { %13498 = vst [vmem:[#allocation79_spill] sm:$0xff] %v10223_v28  ;;  %v2052_v31 = vpop.f32.mrf.mxu0  ;;  %v2745_v9 = vrot.slane %v2367_v7, 1 }
 0x34e   :  { %v10226_v43 = vpop.f32.mrf.mxu3  ;;  %v2234_v4 = vadd.f32 %v2052_v31, %v1801_v36  ;;  %v2165_v48 = vpop.f32.mrf.mxu1  ;;  %v2744_v41 = vsel %vm2640_vm2, %v2739_v0, %v2743_v59  ;;  %v13503_v36 = vld [vmem:[#allocation32_spill] sm:$0xff]  ;;  %v13504_v31 = vld [vmem:[#allocation121_spill] sm:$0xff] }
 0x34f   :  { %v2235_v34 = vadd.f32 %v2165_v48, %v1802_v26  ;;  %v10229_v35 = vmax.f32 %v2364_v20, %v2744_v41  ;;  %v2746_v46 = vsel %vm2640_vm2, %v2741_v61, %v2745_v9  ;;  %v934_v0 = vadd.f32 %v13504_v31, %v13503_v36  ;;  %v13505_v20 = vld [vmem:[#allocation139_spill] sm:$0xff]  ;;  %v13506_v48 = vld [vmem:[#allocation140_spill] sm:$0xff]  ;;  %v3600_v36 = vld [vmem:[#allocation9 + $0x1a8] sm:$0xff] }
 0x350   :  { %v2304_v3 = vadd.f32 %v9473_v37, %v2234_v4  ;;  %3239 = vmatmul.f32.gmra.mxu0 %v13502_v2  ;;  %v10237_v28 = vmax.f32 %v2365_v50, %v2746_v46  ;;  %v1370_v61 = vadd.f32 %v13505_v20, %v821_v16  ;;  %3729 = vmatpush.msra.mxu3 %v3600_v36  ;;  %v13514_v36 = vld [vmem:[#allocation124_spill] sm:$0xff] }
 0x351   :  { %13499 = vst [vmem:[#allocation37_spill] sm:$0xff] %v10229_v35  ;;  %3352 = vmatmul.f32.gmra.mxu1 %v9913_v11  ;;  %v2305_v26 = vadd.f32 %v9478_v5, %v2235_v34  ;;  %3022 = vmatmul.f32.gmra.mxu2 %v10229_v35  ;;  %v1371_v4 = vadd.f32 %v13506_v48, %v934_v0  ;;  %v13511_v48 = vld [vmem:[#allocation53_spill] sm:$0xff] }
 0x352   :  { %v2368_v10 = vmax.f32 %v2304_v3, 0.0  ;;  %v1803_v51 = vadd.f32 %v13507_v13, %v1370_v61  ;;  %v13510_v61 = vld [vmem:[#allocation24_spill] sm:$0xff] }
 0x353   :  { %3117 = vmatmul.f32.gmra.mxu3 %v10095_v21  ;;  %v2369_v41 = vmax.f32 %v2305_v26, 0.0  ;;  %v1804_v46 = vadd.f32 %v10086_v42, %v1371_v4  ;;  %v824_v13 = vadd.f32 %v13511_v48, %v13510_v61  ;;  %v13512_v4 = vld [vmem:[#allocation86_spill] sm:$0xff] }
 0x354   :  { %v10247_v11 = vpop.f32.mrf.mxu2  ;;  %v2747_v50 = vrot.slane %v2368_v10, 1 }
 0x355   :  { %13508 = vst [vmem:[#allocation91_spill] sm:$0xff] %v10247_v11  ;;  %v2055_v34 = vpop.f32.mrf.mxu0  ;;  %v2749_v31 = vrot.slane %v2369_v41, 1 }
 0x356   :  { %v10250_v2 = vpop.f32.mrf.mxu3  ;;  %v2236_v35 = vadd.f32 %v2055_v34, %v1803_v51  ;;  %v2168_v16 = vpop.f32.mrf.mxu1  ;;  %v2748_v3 = vsel %vm2640_vm2, %v2743_v59, %v2747_v50  ;;  %v3597_v51 = vld [vmem:[#allocation9 + $0x190] sm:$0xff] }
 0x357   :  { %v2237_v20 = vadd.f32 %v2168_v16, %v1804_v46  ;;  %v10253_v0 = vmax.f32 %v2366_v44, %v2748_v3  ;;  %v2750_v26 = vsel %vm2640_vm2, %v2745_v9, %v2749_v31  ;;  %v13513_v59 = vld [vmem:[#allocation35_spill] sm:$0xff]  ;;  %v13515_v9 = vld [vmem:[#allocation142_spill] sm:$0xff]  ;;  %3617 = vmatpush.msrb.mxu2 %v3597_v51  ;;  %v3595_v3 = vld [vmem:[#allocation9 + $0x180] sm:$0xff] }
 0x358   :  { %v10259_v42 = vadd.f32 %v9473_v37, %v2236_v35  ;;  %3242 = vmatmul.f32.gmra.mxu0 %v13512_v4  ;;  %v10263_v34 = vmax.f32 %v2367_v7, %v2750_v26  ;;  %v937_v46 = vadd.f32 %v13514_v36, %v13513_v59  ;;  %v1372_v16 = vadd.f32 %v13515_v9, %v824_v13  ;;  %v13517_v26 = vld [vmem:[#allocation78_spill] sm:$0xff]  ;;  %v3593_v59 = vld [vmem:[#allocation9 + $0x170] sm:$0xff] }
 0x359   :  { %13509 = vst [vmem:[#allocation92_spill] sm:$0xff] %v10253_v0  ;;  %3355 = vmatmul.f32.gmra.mxu1 %v9936_v12  ;;  %v10268_v44 = vadd.f32 %v9478_v5, %v2237_v20  ;;  %3025 = vmatmul.f32.gmra.mxu2 %v10253_v0  ;;  %v13516_v12 = vld [vmem:[#allocation143_spill] sm:$0xff] }
 0x35a   :  { %v2370_v35 = vmax.f32 %v10259_v42, 0.0  ;;  %v1373_v61 = vadd.f32 %v13516_v12, %v937_v46  ;;  %v1805_v48 = vadd.f32 %v13517_v26, %v1372_v16  ;;  %3618 = vmatpush.msrb.mxu2 %v3595_v3  ;;  %v3591_v16 = vld [vmem:[#allocation9 + $0x160] sm:$0xff]  ;;  %v13521_v3 = vld [vmem:[#allocation56_spill] sm:$0xff] }
 0x35b   :  { %3120 = vmatmul.f32.gmra.mxu3 %v10118_v49  ;;  %v2371_v7 = vmax.f32 %v10268_v44, 0.0  ;;  %v13520_v26 = vld [vmem:[#allocation25_spill] sm:$0xff] }
 0x35c   :  { %v10277_v4 = vpop.f32.mrf.mxu2  ;;  %v2751_v20 = vrot.slane %v2370_v35, 1  ;;  %v1806_v36 = vadd.f32 %v10109_v8, %v1373_v61  ;;  %3619 = vmatpush.msrb.mxu2 %v3593_v59  ;;  %v13522_v61 = vld [vmem:[#allocation33_spill] sm:$0xff]  ;;  %v13524_v59 = vld [vmem:[#allocation127_spill] sm:$0xff] }
 0x35d   :  { %13518 = vst [vmem:[#allocation39_spill] sm:$0xff] %v10277_v4  ;;  %v2058_v42 = vpop.f32.mrf.mxu0  ;;  %v2753_v9 = vrot.slane %v2371_v7, 1  ;;  %v827_v4 = vadd.f32 %v13521_v3, %v13520_v26  ;;  %v3587_v26 = vld [vmem:[#allocation9 + $0x140] sm:$0xff] }
 0x35e   :  { %v10280_v13 = vpop.f32.mrf.mxu3  ;;  %v2238_v0 = vadd.f32 %v2058_v42, %v1805_v48  ;;  %v2171_v51 = vpop.f32.mrf.mxu1  ;;  %v2752_v11 = vsel %vm2640_vm2, %v2747_v50, %v2751_v20  ;;  %v13523_v50 = vld [vmem:[#allocation38_spill] sm:$0xff]  ;;  %3620 = vmatpush.msrb.mxu2 %v3591_v16 }
 0x35f   :  { %v2239_v46 = vadd.f32 %v2171_v51, %v1806_v36  ;;  %v10283_v44 = vmax.f32 %v2368_v10, %v2752_v11  ;;  %v2754_v12 = vsel %vm2640_vm2, %v2749_v31, %v2753_v9  ;;  %v940_v36 = vadd.f32 %v13524_v59, %v13523_v50  ;;  %v3589_v11 = vld [vmem:[#allocation9 + $0x150] sm:$0xff]  ;;  %v13525_v31 = vld [vmem:[#allocation145_spill] sm:$0xff]  ;;  %v13526_v51 = vld [vmem:[#allocation146_spill] sm:$0xff] }
 0x360   :  { %v10289_v8 = vadd.f32 %v9473_v37, %v2238_v0  ;;  %3245 = vmatmul.f32.gmra.mxu0 %v13522_v61  ;;  %v10293_v48 = vmax.f32 %v2369_v41, %v2754_v12  ;;  %v1374_v42 = vadd.f32 %v13525_v31, %v827_v4  ;;  %v3598_v12 = vld [vmem:[#allocation9 + $0x198] sm:$0xff]  ;;  %3621 = vmatpush.msrb.mxu2 %v3589_v11 }
 0x361   :  { %13519 = vst [vmem:[#allocation80_spill] sm:$0xff] %v10283_v44  ;;  %3358 = vmatmul.f32.gmra.mxu1 %v9959_v40  ;;  %v10298_v10 = vadd.f32 %v9478_v5, %v2239_v46  ;;  %3028 = vmatmul.f32.gmra.mxu2 %v10283_v44  ;;  %v1375_v40 = vadd.f32 %v13526_v51, %v940_v36  ;;  %v13527_v44 = vld [vmem:[#allocation26_spill] sm:$0xff] }
 0x362   :  { %v2372_v0 = vmax.f32 %v10289_v8, 0.0  ;;  %v1807_v3 = vadd.f32 %v9988_v23, %v1374_v42  ;;  %3730 = vmatpush.msra.mxu3 %v3598_v12  ;;  %3622 = vmatpush.msrb.mxu2 %v3587_v26  ;;  %v3585_v23 = vld [vmem:[#allocation9 + $0x130] sm:$0xff] }
 0x363   :  { %3123 = vmatmul.f32.gmra.mxu3 %v10141_v25  ;;  %v2373_v41 = vmax.f32 %v10298_v10, 0.0  ;;  %v1808_v4 = vadd.f32 %v10132_v58, %v1375_v40  ;;  %v13528_v12 = vld [vmem:[#allocation59_spill] sm:$0xff] }
 0x364   :  { %v10307_v46 = vpop.f32.mrf.mxu2  ;;  %v2755_v61 = vrot.slane %v2372_v0, 1  ;;  %v830_v11 = vadd.f32 %v13528_v12, %v13527_v44  ;;  %3623 = vmatpush.msrb.mxu2 %v3585_v23  ;;  %v13532_v44 = vld [vmem:[#allocation149_spill] sm:$0xff] }
 0x365   :  { %v2061_v8 = vpop.f32.mrf.mxu0  ;;  %v2757_v59 = vrot.slane %v2373_v41, 1 }
 0x366   :  { %v10310_v50 = vpop.f32.mrf.mxu3  ;;  %v2240_v16 = vadd.f32 %v2061_v8, %v1807_v3  ;;  %v2174_v31 = vpop.f32.mrf.mxu1  ;;  %v2756_v36 = vsel %vm2640_vm2, %v2751_v20, %v2755_v61  ;;  %v13529_v3 = vld [vmem:[#allocation41_spill] sm:$0xff]  ;;  %v13530_v20 = vld [vmem:[#allocation130_spill] sm:$0xff] }
 0x367   :  { %v2241_v10 = vadd.f32 %v2174_v31, %v1808_v4  ;;  %v10313_v51 = vmax.f32 %v2370_v35, %v2756_v36  ;;  %v2758_v42 = vsel %vm2640_vm2, %v2753_v9, %v2757_v59  ;;  %v943_v26 = vadd.f32 %v13530_v20, %v13529_v3  ;;  %v3583_v4 = vld [vmem:[#allocation9 + $0x120] sm:$0xff]  ;;  %v13531_v9 = vld [vmem:[#allocation147_spill] sm:$0xff] }
 0x368   :  { %v2310_v58 = vadd.f32 %v9473_v37, %v2240_v16  ;;  %3248 = vmatmul.f32.gmra.mxu0 %v9974_v24  ;;  %v10321_v40 = vmax.f32 %v2371_v7, %v2758_v42  ;;  %v1376_v8 = vadd.f32 %v13531_v9, %v830_v11  ;;  %3624 = vmatpush.msrb.mxu2 %v3583_v4  ;;  %v3579_v9 = vld [vmem:[#allocation9 + $0x100] sm:$0xff] }
 0x369   :  { %3361 = vmatmul.f32.gmra.mxu1 %v9980_v62  ;;  %v2311_v35 = vadd.f32 %v9478_v5, %v2241_v10  ;;  %3031 = vmatmul.f32.gmra.mxu2 %v10313_v51  ;;  %v1377_v24 = vadd.f32 %v13532_v44, %v943_v26  ;;  %v3581_v62 = vld [vmem:[#allocation9 + $0x110] sm:$0xff] }
 0x36a   :  { %v2374_v31 = vmax.f32 %v2310_v58, 0.0  ;;  %v1809_v7 = vadd.f32 %v10014_v19, %v1376_v8  ;;  %3625 = vmatpush.msrb.mxu2 %v3581_v62 }
 0x36b   :  { %3126 = vmatmul.f32.gmra.mxu3 %v10164_v30  ;;  %v2375_v16 = vmax.f32 %v2311_v35, 0.0  ;;  %v1810_v10 = vadd.f32 %v10155_v39, %v1377_v24 }
 0x36c   :  { %v10331_v36 = vpop.f32.mrf.mxu2  ;;  %v2759_v42 = vrot.slane %v2374_v31, 1  ;;  %3626 = vmatpush.msrb.mxu2 %v3579_v9 }
 0x36d   :  { %v2064_v3 = vpop.f32.mrf.mxu0  ;;  %v2761_v11 = vrot.slane %v2375_v16, 1 }
 0x36e   :  { %v10334_v12 = vpop.f32.mrf.mxu3  ;;  %v2242_v58 = vadd.f32 %v2064_v3, %v1809_v7  ;;  %v2177_v20 = vpop.f32.mrf.mxu1  ;;  %v2760_v23 = vsel %vm2640_vm2, %v2755_v61, %v2759_v42  ;;  %v3062_v7 = vadd.f32 %v10178_v14, %v10037_v60 }
 0x36f   :  { %v2243_v26 = vadd.f32 %v2177_v20, %v1810_v10  ;;  %v10337_v35 = vmax.f32 %v2372_v0, %v2760_v23  ;;  %v2762_v19 = vsel %vm2640_vm2, %v2757_v59, %v2761_v11  ;;  %v3596_v59 = vld [vmem:[#allocation9 + $0x188] sm:$0xff] }
 0x370   :  { %v2312_v8 = vadd.f32 %v9473_v37, %v2242_v58  ;;  %3251 = vmatmul.f32.gmra.mxu0 %v9997_v6  ;;  %v10343_v39 = vmax.f32 %v2373_v41, %v2762_v19  ;;  %3731 = vmatpush.msra.mxu3 %v3596_v59  ;;  %v2572_v41 = vld [vmem:[#allocation3 + $0x1e8] sm:$0x1]  ;;  %v3594_v19 = vld [vmem:[#allocation9 + $0x178] sm:$0xff] }
 0x371   :  { %3364 = vmatmul.f32.gmra.mxu1 %v10003_v45  ;;  %v10346_v4 = vadd.f32 %v9478_v5, %v2243_v26  ;;  %3034 = vmatmul.f32.gmra.mxu2 %v10337_v35  ;;  %v2767_v20 = vrot.slane %v2572_v41, 1  ;;  %v3592_v41 = vld [vmem:[#allocation9 + $0x168] sm:$0xff] }
 0x372   :  { %v2376_v61 = vmax.f32 %v2312_v8, 0.0  ;;  %3732 = vmatpush.msra.mxu3 %v3594_v19 }
 0x373   :  { %3129 = vmatmul.f32.gmra.mxu3 %v10189_v55  ;;  %v2377_v0 = vmax.f32 %v10346_v4, 0.0 }
 0x374   :  { %v10351_v44 = vpop.f32.mrf.mxu2  ;;  %v2763_v37 = vrot.slane %v2376_v61, 1  ;;  %3733 = vmatpush.msra.mxu3 %v3592_v41 }
 0x375   :  { %v3207_v45 = vpop.f32.mrf.mxu0  ;;  %v10357_v5 = vrot.slane %v2377_v0, 1 }
 0x376   :  { %v10353_v6 = vpop.f32.mrf.mxu3  ;;  %v3320_v24 = vpop.f32.mrf.mxu1  ;;  %v2764_v62 = vsel %vm2640_vm2, %v2759_v42, %v2763_v37  ;;  %v2768_v14 = vsel %vm2640_vm2, %v2763_v37, %v2767_v20  ;;  %v3586_v20 = vld [vmem:[#allocation9 + $0x138] sm:$0xff] }
 0x377   :  { %v3321_v10 = vadd.f32 %v3320_v24, %v3207_v45  ;;  %v10362_v3 = vmax.f32 %v2374_v31, %v2764_v62  ;;  %v2766_v58 = vsel %vm2640_vm2, %v2761_v11, %v10357_v5  ;;  %v10382_v11 = vmax.f32 %v2376_v61, %v2768_v14 }
 0x378   :  { %3254 = vmatmul.f32.gmra.mxu0 %v10020_v33  ;;  %v10368_v23 = vmax.f32 %v2375_v16, %v2766_v58 }
 0x379   :  { %3367 = vmatmul.f32.gmra.mxu1 %v10026_v15  ;;  %v10370_v26 = vmax.f32 %v3062_v7, %v3321_v10  ;;  %3037 = vmatmul.f32.gmra.mxu2 %v10362_v3  ;;  %v3065_v15 = vadd.f32 %v10202_v47, %v10060_v56  ;;  %v3588_v7 = vld [vmem:[#allocation9 + $0x148] sm:$0xff] }
 0x37b   :  { %3132 = vmatmul.f32.gmra.mxu3 %v10213_v63  ;;  %3448 = vst [vmem:[#allocation4] sm:$0xff] %v10370_v26 }
 0x37c   :  { %v10375_v60 = vpop.f32.mrf.mxu2 }
 0x37d   :  { %v3210_v33 = vpop.f32.mrf.mxu0 }
 0x37e   :  { %v10378_v31 = vpop.f32.mrf.mxu3  ;;  %v3323_v42 = vpop.f32.mrf.mxu1 }
 0x37f   :  { %v3324_v16 = vadd.f32 %v3323_v42, %v3210_v33  ;;  %v3582_v33 = vld [vmem:[#allocation9 + $0x118] sm:$0xff]  ;;  %v3074_v42 = vadd.f32 %v10280_v13, %v10129_v27 }
 0x380   :  { %3257 = vmatmul.f32.gmra.mxu0 %v10043_v1  ;;  %v3068_v1 = vadd.f32 %v10226_v43, %v10083_v53  ;;  %v3590_v43 = vld [vmem:[#allocation9 + $0x158] sm:$0xff] }
 0x381   :  { %3370 = vmatmul.f32.gmra.mxu1 %v10049_v17  ;;  %v10386_v9 = vmax.f32 %v3065_v15, %v3324_v16  ;;  %3040 = vmatmul.f32.gmra.mxu2 %v10382_v11  ;;  %v3580_v16 = vld [vmem:[#allocation9 + $0x108] sm:$0xff] }
 0x382   :  { %3734 = vmatpush.msra.mxu3 %v3590_v43 }
 0x383   :  { %3135 = vmatmul.f32.gmra.mxu3 %v10237_v28  ;;  %3449 = vst [vmem:[#allocation4 + $0x8] sm:$0xff] %v10386_v9 }
 0x384   :  { %v10391_v8 = vpop.f32.mrf.mxu2  ;;  %3735 = vmatpush.msra.mxu3 %v3588_v7 }
 0x385   :  { %v3213_v47 = vpop.f32.mrf.mxu0 }
 0x386   :  { %v10393_v56 = vpop.f32.mrf.mxu3  ;;  %v3326_v61 = vpop.f32.mrf.mxu1  ;;  %3736 = vmatpush.msra.mxu3 %v3586_v20 }
 0x387   :  { %v3327_v17 = vadd.f32 %v3326_v61, %v3213_v47  ;;  %v3544_v61 = vld [vmem:[#allocation9 + $0xf0] sm:$0xff] }
 0x388   :  { %3260 = vmatmul.f32.gmra.mxu0 %v10066_v32 }
 0x389   :  { %3373 = vmatmul.f32.gmra.mxu1 %v10072_v52  ;;  %v10399_v59 = vmax.f32 %v3068_v1, %v3327_v17  ;;  %v3071_v52 = vadd.f32 %v10250_v2, %v10106_v18  ;;  %v3584_v2 = vld [vmem:[#allocation9 + $0x128] sm:$0xff]  ;;  %3837 = vmatpush.msra.mxu0 %v3544_v61  ;;  %v3077_v1 = vadd.f32 %v10310_v50, %v10152_v29 }
 0x38a   :  { %v10402_v37 = vld [vmem:[#allocation4 + $0x2] sm:$0xff]  ;;  %3737 = vmatpush.msra.mxu3 %v3584_v2 }
 0x38b   :  { %3138 = vmatmul.f32.gmra.mxu3 %v10263_v34  ;;  %3450 = vst [vmem:[#allocation4 + $0x10] sm:$0xff] %v10399_v59  ;;  %3627 = vmatmul.f32.vlgmr.msrb.gmra.mxu2 %v10402_v37 }
 0x38c   :  { %v10406_v45 = vpop.f32.mrf.mxu2  ;;  %3738 = vmatpush.msra.mxu3 %v3582_v33 }
 0x38d   :  { %v3216_v53 = vpop.f32.mrf.mxu0 }
 0x38e   :  { %v10408_v24 = vpop.f32.mrf.mxu3  ;;  %v3329_v32 = vpop.f32.mrf.mxu1  ;;  %3739 = vmatpush.msra.mxu3 %v3580_v16 }
 0x38f   :  { %v3330_v62 = vadd.f32 %v3329_v32, %v3216_v53 }
 0x390   :  { %3263 = vmatmul.f32.gmra.mxu0 %v10089_v22 }
 0x391   :  { %3376 = vmatmul.f32.gmra.mxu1 %v10095_v21  ;;  %v10414_v10 = vmax.f32 %v3071_v52, %v3330_v62  ;;  %v2573_v52 = vld [vmem:[#allocation3 + $0x60] sm:$0x1]  ;;  %v13533_v62 = vld [vmem:[#allocation34_spill] sm:$0xff] }
 0x392   :  { %v10417_v58 = vld [vmem:[#allocation4 + $0xa] sm:$0xff]  ;;  %v2769_v20 = vrot.slane %v2573_v52, 1 }
 0x393   :  { %3141 = vmatmul.f32.gmra.mxu3 %v10293_v48  ;;  %3451 = vst [vmem:[#allocation4 + $0x18] sm:$0xff] %v10414_v10  ;;  %3630 = vmatmul.f32.gmra.mxu2 %v10417_v58 }
 0x394   :  { %v10421_v18 = vpop.f32.mrf.mxu2 }
 0x395   :  { %v3219_v21 = vpop.f32.mrf.mxu0 }
 0x396   :  { %v10423_v22 = vpop.f32.mrf.mxu3  ;;  %v3332_v14 = vpop.f32.mrf.mxu1 }
 0x397   :  { %v3333_v15 = vadd.f32 %v3332_v14, %v3219_v21  ;;  %v3542_v21 = vld [vmem:[#allocation9 + $0xe0] sm:$0xff] }
 0x398   :  { %3266 = vmatmul.f32.gmra.mxu0 %v10112_v54 }
 0x399   :  { %3379 = vmatmul.f32.gmra.mxu1 %v10118_v49  ;;  %v10429_v19 = vmax.f32 %v3074_v42, %v3333_v15  ;;  %3838 = vmatpush.msra.mxu0 %v3542_v21  ;;  %v13534_v42 = vld [vmem:[#allocation89_spill] sm:$0xff] }
 0x39a   :  { %v10432_v47 = vld [vmem:[#allocation4 + $0x12] sm:$0xff]  ;;  %v3083_v15 = vadd.f32 %v10353_v6, %v13534_v42 }
 0x39b   :  { %3144 = vmatmul.f32.gmra.mxu3 %v10321_v40  ;;  %3452 = vst [vmem:[#allocation4 + $0x20] sm:$0xff] %v10429_v19  ;;  %3633 = vmatmul.f32.gmra.mxu2 %v10432_v47 }
 0x39c   :  { %v10436_v27 = vpop.f32.mrf.mxu2 }
 0x39d   :  { %v3222_v54 = vpop.f32.mrf.mxu0 }
 0x39e   :  { %v10438_v13 = vpop.f32.mrf.mxu3  ;;  %v3335_v49 = vpop.f32.mrf.mxu1 }
 0x39f   :  { %v3336_v17 = vadd.f32 %v3335_v49, %v3222_v54  ;;  %v13535_v54 = vld [vmem:[#allocation88_spill] sm:$0xff] }
 0x3a0   :  { %3269 = vmatmul.f32.gmra.mxu0 %v10135_v57  ;;  %v3080_v57 = vadd.f32 %v10334_v12, %v10175_v38 }
 0x3a1   :  { %3382 = vmatmul.f32.gmra.mxu1 %v10141_v25  ;;  %v10444_v41 = vmax.f32 %v3077_v1, %v3336_v17  ;;  %v13536_v17 = vld [vmem:[#allocation79_spill] sm:$0xff] }
 0x3a2   :  { %v10447_v53 = vld [vmem:[#allocation4 + $0x1a] sm:$0xff] }
 0x3a3   :  { %3147 = vmatmul.f32.gmra.mxu3 %v10343_v39  ;;  %3453 = vst [vmem:[#allocation4 + $0x28] sm:$0xff] %v10444_v41  ;;  %3636 = vmatmul.f32.gmra.mxu2 %v10447_v53 }
 0x3a4   :  { %v10451_v32 = vpop.f32.mrf.mxu2 }
 0x3a5   :  { %v3225_v29 = vpop.f32.mrf.mxu0 }
 0x3a6   :  { %v10453_v43 = vpop.f32.mrf.mxu3  ;;  %v3338_v50 = vpop.f32.mrf.mxu1 }
 0x3a7   :  { %v3339_v25 = vadd.f32 %v3338_v50, %v3225_v29  ;;  %v3086_v29 = vadd.f32 %v10378_v31, %v13536_v17  ;;  %v13537_v50 = vld [vmem:[#allocation36_spill] sm:$0xff]  ;;  %v3543_v31 = vld [vmem:[#allocation9 + $0xe8] sm:$0xff]  ;;  %v3536_v17 = vld [vmem:[#allocation9 + $0xb0] sm:$0xff] }
 0x3a8   :  { %3272 = vmatmul.f32.gmra.mxu0 %v13533_v62  ;;  %v3540_v62 = vld [vmem:[#allocation9 + $0xd0] sm:$0xff] }
 0x3a9   :  { %3385 = vmatmul.f32.gmra.mxu1 %v10164_v30  ;;  %v10459_v7 = vmax.f32 %v3080_v57, %v3339_v25  ;;  %v2770_v30 = vsel %vm2640_vm2, %v10357_v5, %v2769_v20  ;;  %v3545_v25 = vld [vmem:[#allocation9 + $0xf8] sm:$0xff]  ;;  %3839 = vmatpush.msra.mxu0 %v3540_v62 }
 0x3aa   :  { %v10462_v2 = vld [vmem:[#allocation4 + $0x22] sm:$0xff]  ;;  %v10476_v61 = vmax.f32 %v2377_v0, %v2770_v30  ;;  %3950 = vmatpush.msra.mxu1 %v3545_v25 }
 0x3ab   :  { %3150 = vmatmul.f32.gmra.mxu3 %v10368_v23  ;;  %3454 = vst [vmem:[#allocation4 + $0x30] sm:$0xff] %v10459_v7  ;;  %3639 = vmatmul.f32.gmra.mxu2 %v10462_v2  ;;  %v3541_v30 = vld [vmem:[#allocation9 + $0xd8] sm:$0xff] }
 0x3ac   :  { %v10466_v14 = vpop.f32.mrf.mxu2  ;;  %3951 = vmatpush.msra.mxu1 %v3543_v31  ;;  %v3533_v31 = vld [vmem:[#allocation9 + $0x98] sm:$0xff] }
 0x3ad   :  { %v3228_v12 = vpop.f32.mrf.mxu0 }
 0x3ae   :  { %v10468_v38 = vpop.f32.mrf.mxu3  ;;  %v3341_v33 = vpop.f32.mrf.mxu1  ;;  %3952 = vmatpush.msra.mxu1 %v3541_v30 }
 0x3af   :  { %v3342_v16 = vadd.f32 %v3341_v33, %v3228_v12 }
 0x3b0   :  { %3275 = vmatmul.f32.gmra.mxu0 %v13535_v54  ;;  %v3539_v54 = vld [vmem:[#allocation9 + $0xc8] sm:$0xff] }
 0x3b1   :  { %3388 = vmatmul.f32.gmra.mxu1 %v10189_v55  ;;  %v10480_v49 = vmax.f32 %v3083_v15, %v3342_v16  ;;  %v13539_v15 = vld [vmem:[#allocation37_spill] sm:$0xff] }
 0x3b2   :  { %v10483_v1 = vld [vmem:[#allocation4 + $0x2a] sm:$0xff]  ;;  %3953 = vmatpush.msra.mxu1 %v3539_v54  ;;  %v3528_v54 = vld [vmem:[#allocation9 + $0x70] sm:$0xff] }
 0x3b3   :  { %3153 = vmatmul.f32.gmra.mxu3 %v10476_v61  ;;  %3455 = vst [vmem:[#allocation4 + $0x38] sm:$0xff] %v10480_v49  ;;  %3642 = vmatmul.f32.gmra.mxu2 %v10483_v1  ;;  %v3538_v16 = vld [vmem:[#allocation9 + $0xc0] sm:$0xff] }
 0x3b4   :  { %v10487_v6 = vpop.f32.mrf.mxu2  ;;  %3840 = vmatpush.msra.mxu0 %v3538_v16 }
 0x3b5   :  { %v3231_v4 = vpop.f32.mrf.mxu0 }
 0x3b6   :  { %v10489_v5 = vpop.f32.mrf.mxu3  ;;  %v3344_v0 = vpop.f32.mrf.mxu1  ;;  %3841 = vmatpush.msra.mxu0 %v3536_v17  ;;  %v3529_v17 = vld [vmem:[#allocation9 + $0x78] sm:$0xff] }
 0x3b7   :  { %v3345_v55 = vadd.f32 %v3344_v0, %v3231_v4 }
 0x3b8   :  { %3278 = vmatmul.f32.gmra.mxu0 %v13537_v50 }
 0x3b9   :  { %3391 = vmatmul.f32.gmra.mxu1 %v10213_v63  ;;  %v10495_v52 = vmax.f32 %v3086_v29, %v3345_v55  ;;  %v3537_v29 = vld [vmem:[#allocation9 + $0xb8] sm:$0xff]  ;;  %v3535_v55 = vld [vmem:[#allocation9 + $0xa8] sm:$0xff] }
 0x3ba   :  { %v10498_v57 = vld [vmem:[#allocation4 + $0x32] sm:$0xff]  ;;  %3954 = vmatpush.msra.mxu1 %v3537_v29 }
 0x3bb   :  { %3740 = vmatmul.f32.vlgmr.msra.gmra.mxu3 %v10402_v37  ;;  %3456 = vst [vmem:[#allocation4 + $0x40] sm:$0xff] %v10495_v52  ;;  %3645 = vmatmul.f32.gmra.mxu2 %v10498_v57  ;;  %v13538_v37 = vld [vmem:[#allocation91_spill] sm:$0xff]  ;;  %v3527_v29 = vld [vmem:[#allocation9 + $0x68] sm:$0xff] }
 0x3bc   :  { %v10502_v20 = vpop.f32.mrf.mxu2  ;;  %v3089_v33 = vadd.f32 %v10393_v56, %v13538_v37  ;;  %3955 = vmatpush.msra.mxu1 %v3535_v55  ;;  %v13541_v37 = vld [vmem:[#allocation92_spill] sm:$0xff] }
 0x3bd   :  { %v3234_v63 = vpop.f32.mrf.mxu0 }
 0x3be   :  { %v10504_v21 = vpop.f32.mrf.mxu3  ;;  %v3347_v12 = vpop.f32.mrf.mxu1  ;;  %3956 = vmatpush.msra.mxu1 %v3533_v31 }
 0x3bf   :  { %v3348_v42 = vadd.f32 %v3347_v12, %v3234_v63  ;;  %v13540_v63 = vld [vmem:[#allocation39_spill] sm:$0xff] }
 0x3c0   :  { %3281 = vmatmul.f32.gmra.mxu0 %v13539_v15  ;;  %v3092_v12 = vadd.f32 %v10408_v24, %v13540_v63  ;;  %v13542_v63 = vld [vmem:[#allocation80_spill] sm:$0xff] }
 0x3c1   :  { %3394 = vmatmul.f32.gmra.mxu1 %v10237_v28  ;;  %v10510_v4 = vmax.f32 %v3089_v33, %v3348_v42  ;;  %v3534_v28 = vld [vmem:[#allocation9 + $0xa0] sm:$0xff]  ;;  %v3531_v42 = vld [vmem:[#allocation9 + $0x88] sm:$0xff] }
 0x3c2   :  { %v10513_v0 = vld [vmem:[#allocation4 + $0x3a] sm:$0xff]  ;;  %3842 = vmatpush.msra.mxu0 %v3534_v28  ;;  %v3530_v33 = vld [vmem:[#allocation9 + $0x80] sm:$0xff]  ;;  %3957 = vmatpush.msra.mxu1 %v3531_v42 }
 0x3c3   :  { %3743 = vmatmul.f32.gmra.mxu3 %v10417_v58  ;;  %3457 = vst [vmem:[#allocation4 + $0x48] sm:$0xff] %v10510_v4  ;;  %3648 = vmatmul.f32.gmra.mxu2 %v10513_v0  ;;  %v3532_v58 = vld [vmem:[#allocation9 + $0x90] sm:$0xff] }
 0x3c4   :  { %v10517_v56 = vpop.f32.mrf.mxu2  ;;  %3843 = vmatpush.msra.mxu0 %v3532_v58  ;;  %3958 = vmatpush.msra.mxu1 %v3529_v17  ;;  %v3095_v58 = vadd.f32 %v10423_v22, %v10307_v46  ;;  %v3520_v42 = vld [vmem:[#allocation9 + $0x30] sm:$0xff]  ;;  %v3521_v46 = vld [vmem:[#allocation9 + $0x38] sm:$0xff] }
 0x3c5   :  { %v3237_v25 = vpop.f32.mrf.mxu0 }
 0x3c6   :  { %v10519_v50 = vpop.f32.mrf.mxu3  ;;  %v3350_v62 = vpop.f32.mrf.mxu1  ;;  %3844 = vmatpush.msra.mxu0 %v3530_v33  ;;  %3959 = vmatpush.msra.mxu1 %v3527_v29  ;;  %v3516_v29 = vld [vmem:[#allocation9 + $0x10] sm:$0xff] }
 0x3c7   :  { %v3351_v30 = vadd.f32 %v3350_v62, %v3237_v25  ;;  %v3525_v62 = vld [vmem:[#allocation9 + $0x58] sm:$0xff] }
 0x3c8   :  { %3284 = vmatmul.f32.gmra.mxu0 %v13541_v37  ;;  %3960 = vmatpush.msra.mxu1 %v3525_v62  ;;  %v3523_v37 = vld [vmem:[#allocation9 + $0x48] sm:$0xff] }
 0x3c9   :  { %3397 = vmatmul.f32.gmra.mxu1 %v10263_v34  ;;  %v10525_v15 = vmax.f32 %v3092_v12, %v3351_v30  ;;  %3845 = vmatpush.msra.mxu0 %v3528_v54  ;;  %v3526_v34 = vld [vmem:[#allocation9 + $0x60] sm:$0xff] }
 0x3ca   :  { %v10528_v16 = vld [vmem:[#allocation4 + $0x42] sm:$0xff]  ;;  %v3522_v12 = vld [vmem:[#allocation9 + $0x40] sm:$0xff]  ;;  %3961 = vmatpush.msra.mxu1 %v3523_v37 }
 0x3cb   :  { %3746 = vmatmul.f32.gmra.mxu3 %v10432_v47  ;;  %3458 = vst [vmem:[#allocation4 + $0x50] sm:$0xff] %v10525_v15  ;;  %3651 = vmatmul.f32.gmra.mxu2 %v10528_v16  ;;  %v3524_v47 = vld [vmem:[#allocation9 + $0x50] sm:$0xff] }
 0x3cc   :  { %v10532_v24 = vpop.f32.mrf.mxu2  ;;  %3846 = vmatpush.msra.mxu0 %v3526_v34  ;;  %3962 = vmatpush.msra.mxu1 %v3521_v46 }
 0x3cd   :  { %v3240_v55 = vpop.f32.mrf.mxu0 }
 0x3ce   :  { %v10534_v28 = vpop.f32.mrf.mxu3  ;;  %v3353_v25 = vpop.f32.mrf.mxu1  ;;  %3847 = vmatpush.msra.mxu0 %v3524_v47  ;;  %v3517_v47 = vld [vmem:[#allocation9 + $0x18] sm:$0xff] }
 0x3cf   :  { %v3354_v31 = vadd.f32 %v3353_v25, %v3240_v55  ;;  %v3098_v55 = vadd.f32 %v10438_v13, %v10331_v36 }
 0x3d0   :  { %3287 = vmatmul.f32.gmra.mxu0 %v13542_v63  ;;  %v3515_v63 = vld [vmem:[#allocation9 + $0x8] sm:$0xff] }
 0x3d1   :  { %3400 = vmatmul.f32.gmra.mxu1 %v10293_v48  ;;  %v10540_v30 = vmax.f32 %v3095_v58, %v3354_v31  ;;  %3848 = vmatpush.msra.mxu0 %v3522_v12  ;;  %v3518_v48 = vld [vmem:[#allocation9 + $0x20] sm:$0xff]  ;;  %v3101_v12 = vadd.f32 %v10453_v43, %v10351_v44 }
 0x3d2   :  { %v10543_v33 = vld [vmem:[#allocation4 + $0x4a] sm:$0xff] }
 0x3d3   :  { %3749 = vmatmul.f32.gmra.mxu3 %v10447_v53  ;;  %3459 = vst [vmem:[#allocation4 + $0x58] sm:$0xff] %v10540_v30  ;;  %3654 = vmatmul.f32.gmra.mxu2 %v10543_v33  ;;  %v3519_v53 = vld [vmem:[#allocation9 + $0x28] sm:$0xff]  ;;  %v3514_v58 = vld [vmem:[#allocation9] sm:$0xff] }
 0x3d4   :  { %v10547_v22 = vpop.f32.mrf.mxu2  ;;  %3849 = vmatpush.msra.mxu0 %v3520_v42  ;;  %3963 = vmatpush.msra.mxu1 %v3519_v53 }
 0x3d5   :  { %v3243_v17 = vpop.f32.mrf.mxu0 }
 0x3d6   :  { %v10549_v54 = vpop.f32.mrf.mxu3  ;;  %v3356_v34 = vpop.f32.mrf.mxu1  ;;  %3850 = vmatpush.msra.mxu0 %v3518_v48  ;;  %3964 = vmatpush.msra.mxu1 %v3517_v47 }
 0x3d7   :  { %v3357_v25 = vadd.f32 %v3356_v34, %v3243_v17 }
 0x3d8   :  { %3290 = vmatmul.f32.gmra.mxu0 %v10313_v51  ;;  %3965 = vmatpush.msra.mxu1 %v3515_v63 }
 0x3d9   :  { %3403 = vmatmul.f32.gmra.mxu1 %v10321_v40  ;;  %v10555_v62 = vmax.f32 %v3098_v55, %v3357_v25  ;;  %3851 = vmatpush.msra.mxu0 %v3516_v29 }
 0x3da   :  { %v10558_v31 = vld [vmem:[#allocation4 + $0x52] sm:$0xff] }
 0x3db   :  { %3752 = vmatmul.f32.gmra.mxu3 %v10462_v2  ;;  %3460 = vst [vmem:[#allocation4 + $0x60] sm:$0xff] %v10555_v62  ;;  %3657 = vmatmul.f32.gmra.mxu2 %v10558_v31 }
 0x3dc   :  { %v10562_v36 = vpop.f32.mrf.mxu2  ;;  %3852 = vmatpush.msra.mxu0 %v3514_v58  ;;  %v4126_v58 = vld [vmem:[#allocation9 + $0x2f0] sm:$0xff] }
 0x3dd   :  { %v3246_v40 = vpop.f32.mrf.mxu0  ;;  %4128 = vmatpush.msra.mxu2 %v4126_v58 }
 0x3de   :  { %v10564_v51 = vpop.f32.mrf.mxu3  ;;  %v3359_v13 = vpop.f32.mrf.mxu1 }
 0x3df   :  { %v3360_v2 = vadd.f32 %v3359_v13, %v3246_v40 }
 0x3e0   :  { %3293 = vmatmul.f32.gmra.mxu0 %v10337_v35  ;;  %v3104_v35 = vadd.f32 %v10468_v38, %v10375_v60 }
 0x3e1   :  { %3406 = vmatmul.f32.gmra.mxu1 %v10343_v39  ;;  %v10570_v37 = vmax.f32 %v3101_v12, %v3360_v2  ;;  %v4127_v2 = vld [vmem:[#allocation9 + $0x2f8] sm:$0xff] }
 0x3e2   :  { %v10573_v42 = vld [vmem:[#allocation4 + $0x5a] sm:$0xff]  ;;  %4241 = vmatpush.msrb.mxu3 %v4127_v2 }
 0x3e3   :  { %3755 = vmatmul.f32.gmra.mxu3 %v10483_v1  ;;  %3461 = vst [vmem:[#allocation4 + $0x68] sm:$0xff] %v10570_v37  ;;  %3660 = vmatmul.f32.gmra.mxu2 %v10573_v42 }
 0x3e4   :  { %v10577_v46 = vpop.f32.mrf.mxu2 }
 0x3e5   :  { %v3249_v44 = vpop.f32.mrf.mxu0 }
 0x3e6   :  { %v10579_v48 = vpop.f32.mrf.mxu3  ;;  %v3362_v43 = vpop.f32.mrf.mxu1 }
 0x3e7   :  { %v3363_v39 = vadd.f32 %v3362_v43, %v3249_v44 }
 0x3e8   :  { %3296 = vmatmul.f32.gmra.mxu0 %v10362_v3  ;;  %v3107_v3 = vadd.f32 %v10489_v5, %v10391_v8 }
 0x3e9   :  { %3409 = vmatmul.f32.gmra.mxu1 %v10368_v23  ;;  %v10585_v1 = vmax.f32 %v3104_v35, %v3363_v39 }
 0x3ea   :  { %v10588_v17 = vld [vmem:[#allocation4 + $0x62] sm:$0xff] }
 0x3eb   :  { %3758 = vmatmul.f32.gmra.mxu3 %v10498_v57  ;;  %3462 = vst [vmem:[#allocation4 + $0x70] sm:$0xff] %v10585_v1  ;;  %3663 = vmatmul.f32.gmra.mxu2 %v10588_v17 }
 0x3ec   :  { %v10592_v34 = vpop.f32.mrf.mxu2 }
 0x3ed   :  { %v3252_v60 = vpop.f32.mrf.mxu0 }
 0x3ee   :  { %v10594_v53 = vpop.f32.mrf.mxu3  ;;  %v3365_v38 = vpop.f32.mrf.mxu1 }
 0x3ef   :  { %v3366_v23 = vadd.f32 %v3365_v38, %v3252_v60  ;;  %v4124_v60 = vld [vmem:[#allocation9 + $0x2e0] sm:$0xff] }
 0x3f0   :  { %3299 = vmatmul.f32.gmra.mxu0 %v10382_v11  ;;  %v3110_v11 = vadd.f32 %v10504_v21, %v10406_v45  ;;  %4129 = vmatpush.msra.mxu2 %v4124_v60 }
 0x3f1   :  { %3412 = vmatmul.f32.gmra.mxu1 %v10476_v61  ;;  %v10600_v57 = vmax.f32 %v3107_v3, %v3366_v23 }
 0x3f2   :  { %v10603_v29 = vld [vmem:[#allocation4 + $0x6a] sm:$0xff] }
 0x3f3   :  { %3761 = vmatmul.f32.gmra.mxu3 %v10513_v0  ;;  %3463 = vst [vmem:[#allocation4 + $0x78] sm:$0xff] %v10600_v57  ;;  %3666 = vmatmul.f32.gmra.mxu2 %v10603_v29 }
 0x3f4   :  { %v10607_v55 = vpop.f32.mrf.mxu2 }
 0x3f5   :  { %v3255_v8 = vpop.f32.mrf.mxu0 }
 0x3f6   :  { %v10609_v25 = vpop.f32.mrf.mxu3  ;;  %v3368_v5 = vpop.f32.mrf.mxu1 }
 0x3f7   :  { %v3369_v61 = vadd.f32 %v3368_v5, %v3255_v8  ;;  %v4125_v5 = vld [vmem:[#allocation9 + $0x2e8] sm:$0xff] }
 0x3f8   :  { %3853 = vmatmul.f32.vlgmr.msra.gmra.mxu0 %v10370_v26  ;;  %4242 = vmatpush.msrb.mxu3 %v4125_v5 }
 0x3f9   :  { %3966 = vmatmul.f32.vlgmr.msra.gmra.mxu1 %v10370_v26  ;;  %v10615_v0 = vmax.f32 %v3110_v11, %v3369_v61  ;;  %v3113_v26 = vadd.f32 %v10519_v50, %v10421_v18 }
 0x3fa   :  { %v10618_v47 = vld [vmem:[#allocation4 + $0x72] sm:$0xff] }
 0x3fb   :  { %3764 = vmatmul.f32.gmra.mxu3 %v10528_v16  ;;  %3464 = vst [vmem:[#allocation4 + $0x80] sm:$0xff] %v10615_v0  ;;  %3669 = vmatmul.f32.gmra.mxu2 %v10618_v47 }
 0x3fc   :  { %v10622_v63 = vpop.f32.mrf.mxu2 }
 0x3fd   :  { %v3258_v21 = vpop.f32.mrf.mxu0 }
 0x3fe   :  { %v10624_v45 = vpop.f32.mrf.mxu3  ;;  %v3371_v40 = vpop.f32.mrf.mxu1 }
 0x3ff   :  { %v3372_v13 = vadd.f32 %v3371_v40, %v3258_v21  ;;  %v4122_v40 = vld [vmem:[#allocation9 + $0x2d0] sm:$0xff] }
 0x400   :  { %3856 = vmatmul.f32.gmra.mxu0 %v10386_v9  ;;  %4130 = vmatpush.msra.mxu2 %v4122_v40 }
 0x401   :  { %3969 = vmatmul.f32.gmra.mxu1 %v10386_v9  ;;  %v10630_v16 = vmax.f32 %v3113_v26, %v3372_v13  ;;  %v3116_v9 = vadd.f32 %v10534_v28, %v10436_v27 }
 0x402   :  { %v10633_v12 = vld [vmem:[#allocation4 + $0x7a] sm:$0xff] }
 0x403   :  { %3767 = vmatmul.f32.gmra.mxu3 %v10543_v33  ;;  %3465 = vst [vmem:[#allocation4 + $0x88] sm:$0xff] %v10630_v16  ;;  %3672 = vmatmul.f32.gmra.mxu2 %v10633_v12 }
 0x404   :  { %v10637_v44 = vpop.f32.mrf.mxu2 }
 0x405   :  { %v3261_v50 = vpop.f32.mrf.mxu0 }
 0x406   :  { %v10639_v18 = vpop.f32.mrf.mxu3  ;;  %v3374_v43 = vpop.f32.mrf.mxu1 }
 0x407   :  { %v3375_v35 = vadd.f32 %v3374_v43, %v3261_v50  ;;  %v4123_v43 = vld [vmem:[#allocation9 + $0x2d8] sm:$0xff] }
 0x408   :  { %3859 = vmatmul.f32.gmra.mxu0 %v10399_v59  ;;  %4243 = vmatpush.msrb.mxu3 %v4123_v43 }
 0x409   :  { %3972 = vmatmul.f32.gmra.mxu1 %v10399_v59  ;;  %v10645_v33 = vmax.f32 %v3116_v9, %v3375_v35  ;;  %v3119_v59 = vadd.f32 %v10549_v54, %v10451_v32 }
 0x40a   :  { %v10648_v39 = vld [vmem:[#allocation4 + $0x82] sm:$0xff] }
 0x40b   :  { %3770 = vmatmul.f32.gmra.mxu3 %v10558_v31  ;;  %3466 = vst [vmem:[#allocation4 + $0x90] sm:$0xff] %v10645_v33  ;;  %3675 = vmatmul.f32.gmra.mxu2 %v10648_v39 }
 0x40d   :  { %v3264_v27 = vpop.f32.mrf.mxu0 }
 0x40e   :  { %v10652_v38 = vpop.f32.mrf.mxu3  ;;  %v3377_v28 = vpop.f32.mrf.mxu1 }
 0x40f   :  { %v10654_v3 = vpop.f32.mrf.mxu2  ;;  %v3378_v23 = vadd.f32 %v3377_v28, %v3264_v27  ;;  %v4120_v28 = vld [vmem:[#allocation9 + $0x2c0] sm:$0xff] }
 0x410   :  { %13543 = vst [vmem:[#allocation40_spill] sm:$0xff] %v10654_v3  ;;  %3862 = vmatmul.f32.gmra.mxu0 %v10414_v10  ;;  %4131 = vmatpush.msra.mxu2 %v4120_v28 }
 0x411   :  { %3975 = vmatmul.f32.gmra.mxu1 %v10414_v10  ;;  %v10660_v31 = vmax.f32 %v3119_v59, %v3378_v23  ;;  %v3122_v10 = vadd.f32 %v10564_v51, %v10466_v14 }
 0x412   :  { %v10663_v8 = vld [vmem:[#allocation4 + $0x8a] sm:$0xff] }
 0x413   :  { %3773 = vmatmul.f32.gmra.mxu3 %v10573_v42  ;;  %3467 = vst [vmem:[#allocation4 + $0x98] sm:$0xff] %v10660_v31  ;;  %3678 = vmatmul.f32.gmra.mxu2 %v10663_v8 }
 0x415   :  { %v3267_v32 = vpop.f32.mrf.mxu0 }
 0x416   :  { %v10667_v11 = vpop.f32.mrf.mxu3  ;;  %v3380_v54 = vpop.f32.mrf.mxu1 }
 0x417   :  { %v10669_v61 = vpop.f32.mrf.mxu2  ;;  %v3381_v58 = vadd.f32 %v3380_v54, %v3267_v32  ;;  %v4121_v54 = vld [vmem:[#allocation9 + $0x2c8] sm:$0xff] }
 0x418   :  { %13544 = vst [vmem:[#allocation94_spill] sm:$0xff] %v10669_v61  ;;  %3865 = vmatmul.f32.gmra.mxu0 %v10429_v19  ;;  %4244 = vmatpush.msrb.mxu3 %v4121_v54 }
 0x419   :  { %3978 = vmatmul.f32.gmra.mxu1 %v10429_v19  ;;  %v10675_v42 = vmax.f32 %v3122_v10, %v3381_v58  ;;  %v3125_v19 = vadd.f32 %v10579_v48, %v10487_v6 }
 0x41a   :  { %v10678_v21 = vld [vmem:[#allocation4 + $0x92] sm:$0xff] }
 0x41b   :  { %3776 = vmatmul.f32.gmra.mxu3 %v10588_v17  ;;  %3468 = vst [vmem:[#allocation4 + $0xa0] sm:$0xff] %v10675_v42  ;;  %3681 = vmatmul.f32.gmra.mxu2 %v10678_v21 }
 0x41d   :  { %v3270_v14 = vpop.f32.mrf.mxu0 }
 0x41e   :  { %v10682_v26 = vpop.f32.mrf.mxu3  ;;  %v3383_v51 = vpop.f32.mrf.mxu1 }
 0x41f   :  { %v10684_v13 = vpop.f32.mrf.mxu2  ;;  %v3384_v2 = vadd.f32 %v3383_v51, %v3270_v14  ;;  %v4118_v51 = vld [vmem:[#allocation9 + $0x2b0] sm:$0xff] }
 0x420   :  { %13545 = vst [vmem:[#allocation95_spill] sm:$0xff] %v10684_v13  ;;  %3868 = vmatmul.f32.gmra.mxu0 %v10444_v41  ;;  %4132 = vmatpush.msra.mxu2 %v4118_v51 }
 0x421   :  { %3981 = vmatmul.f32.gmra.mxu1 %v10444_v41  ;;  %v10690_v17 = vmax.f32 %v3125_v19, %v3384_v2  ;;  %v3128_v41 = vadd.f32 %v10594_v53, %v10502_v20 }
 0x422   :  { %v10693_v50 = vld [vmem:[#allocation4 + $0x9a] sm:$0xff] }
 0x423   :  { %3779 = vmatmul.f32.gmra.mxu3 %v10603_v29  ;;  %3469 = vst [vmem:[#allocation4 + $0xa8] sm:$0xff] %v10690_v17  ;;  %3684 = vmatmul.f32.gmra.mxu2 %v10693_v50 }
 0x425   :  { %v3273_v6 = vpop.f32.mrf.mxu0 }
 0x426   :  { %v10697_v9 = vpop.f32.mrf.mxu3  ;;  %v3386_v48 = vpop.f32.mrf.mxu1 }
 0x427   :  { %v10699_v35 = vpop.f32.mrf.mxu2  ;;  %v3387_v60 = vadd.f32 %v3386_v48, %v3273_v6  ;;  %v4119_v48 = vld [vmem:[#allocation9 + $0x2b8] sm:$0xff] }
 0x428   :  { %13546 = vst [vmem:[#allocation42_spill] sm:$0xff] %v10699_v35  ;;  %3871 = vmatmul.f32.gmra.mxu0 %v10459_v7  ;;  %4245 = vmatpush.msrb.mxu3 %v4119_v48 }
 0x429   :  { %3984 = vmatmul.f32.gmra.mxu1 %v10459_v7  ;;  %v10705_v29 = vmax.f32 %v3128_v41, %v3387_v60  ;;  %v3131_v7 = vadd.f32 %v10609_v25, %v10517_v56 }
 0x42a   :  { %v10708_v27 = vld [vmem:[#allocation4 + $0xa2] sm:$0xff] }
 0x42b   :  { %3782 = vmatmul.f32.gmra.mxu3 %v10618_v47  ;;  %3470 = vst [vmem:[#allocation4 + $0xb0] sm:$0xff] %v10705_v29  ;;  %3687 = vmatmul.f32.gmra.mxu2 %v10708_v27 }
 0x42d   :  { %v3276_v20 = vpop.f32.mrf.mxu0 }
 0x42e   :  { %v10712_v59 = vpop.f32.mrf.mxu3  ;;  %v3389_v53 = vpop.f32.mrf.mxu1 }
 0x42f   :  { %v10714_v23 = vpop.f32.mrf.mxu2  ;;  %v3390_v5 = vadd.f32 %v3389_v53, %v3276_v20  ;;  %v4116_v53 = vld [vmem:[#allocation9 + $0x2a0] sm:$0xff] }
 0x430   :  { %13547 = vst [vmem:[#allocation81_spill] sm:$0xff] %v10714_v23  ;;  %3874 = vmatmul.f32.gmra.mxu0 %v10480_v49  ;;  %4133 = vmatpush.msra.mxu2 %v4116_v53 }
 0x431   :  { %3987 = vmatmul.f32.gmra.mxu1 %v10480_v49  ;;  %v10720_v47 = vmax.f32 %v3131_v7, %v3390_v5  ;;  %v3134_v49 = vadd.f32 %v10624_v45, %v10532_v24 }
 0x432   :  { %v10723_v32 = vld [vmem:[#allocation4 + $0xaa] sm:$0xff] }
 0x433   :  { %3785 = vmatmul.f32.gmra.mxu3 %v10633_v12  ;;  %3471 = vst [vmem:[#allocation4 + $0xb8] sm:$0xff] %v10720_v47  ;;  %3690 = vmatmul.f32.gmra.mxu2 %v10723_v32 }
 0x435   :  { %v3279_v56 = vpop.f32.mrf.mxu0 }
 0x436   :  { %v10727_v10 = vpop.f32.mrf.mxu3  ;;  %v3392_v25 = vpop.f32.mrf.mxu1 }
 0x437   :  { %v10729_v58 = vpop.f32.mrf.mxu2  ;;  %v3393_v40 = vadd.f32 %v3392_v25, %v3279_v56  ;;  %v4117_v25 = vld [vmem:[#allocation9 + $0x2a8] sm:$0xff] }
 0x438   :  { %13548 = vst [vmem:[#allocation43_spill] sm:$0xff] %v10729_v58  ;;  %3877 = vmatmul.f32.gmra.mxu0 %v10495_v52  ;;  %4246 = vmatpush.msrb.mxu3 %v4117_v25 }
 0x439   :  { %3990 = vmatmul.f32.gmra.mxu1 %v10495_v52  ;;  %v10735_v12 = vmax.f32 %v3134_v49, %v3393_v40  ;;  %v3137_v52 = vadd.f32 %v10639_v18, %v10547_v22 }
 0x43a   :  { %v10738_v14 = vld [vmem:[#allocation4 + $0xb2] sm:$0xff] }
 0x43b   :  { %3788 = vmatmul.f32.gmra.mxu3 %v10648_v39  ;;  %3472 = vst [vmem:[#allocation4 + $0xc0] sm:$0xff] %v10735_v12  ;;  %3693 = vmatmul.f32.gmra.mxu2 %v10738_v14 }
 0x43d   :  { %v3282_v24 = vpop.f32.mrf.mxu0 }
 0x43e   :  { %v10742_v19 = vpop.f32.mrf.mxu3  ;;  %v3395_v45 = vpop.f32.mrf.mxu1 }
 0x43f   :  { %v10744_v2 = vpop.f32.mrf.mxu2  ;;  %v3396_v43 = vadd.f32 %v3395_v45, %v3282_v24 }
 0x440   :  { %13549 = vst [vmem:[#allocation97_spill] sm:$0xff] %v10744_v2  ;;  %3880 = vmatmul.f32.gmra.mxu0 %v10510_v4 }
 0x441   :  { %3993 = vmatmul.f32.gmra.mxu1 %v10510_v4  ;;  %v10750_v39 = vmax.f32 %v3137_v52, %v3396_v43  ;;  %v3140_v4 = vadd.f32 %v10652_v38, %v10562_v36  ;;  %v4112_v52 = vld [vmem:[#allocation9 + $0x280] sm:$0xff] }
 0x442   :  { %v10753_v6 = vld [vmem:[#allocation4 + $0xba] sm:$0xff] }
 0x443   :  { %3791 = vmatmul.f32.gmra.mxu3 %v10663_v8  ;;  %3473 = vst [vmem:[#allocation4 + $0xc8] sm:$0xff] %v10750_v39  ;;  %3696 = vmatmul.f32.gmra.mxu2 %v10753_v6 }
 0x445   :  { %v3285_v22 = vpop.f32.mrf.mxu0 }
 0x446   :  { %v10757_v41 = vpop.f32.mrf.mxu3  ;;  %v3398_v18 = vpop.f32.mrf.mxu1 }
 0x447   :  { %v10759_v60 = vpop.f32.mrf.mxu2  ;;  %v3399_v28 = vadd.f32 %v3398_v18, %v3285_v22  ;;  %v4108_v22 = vld [vmem:[#allocation9 + $0x260] sm:$0xff] }
 0x448   :  { %13550 = vst [vmem:[#allocation98_spill] sm:$0xff] %v10759_v60  ;;  %3883 = vmatmul.f32.gmra.mxu0 %v10525_v15 }
 0x449   :  { %3996 = vmatmul.f32.gmra.mxu1 %v10525_v15  ;;  %v10765_v8 = vmax.f32 %v3140_v4, %v3399_v28  ;;  %v3143_v15 = vadd.f32 %v10667_v11, %v10577_v46  ;;  %v4106_v28 = vld [vmem:[#allocation9 + $0x250] sm:$0xff] }
 0x44a   :  { %v10768_v20 = vld [vmem:[#allocation4 + $0xc2] sm:$0xff] }
 0x44b   :  { %3794 = vmatmul.f32.gmra.mxu3 %v10678_v21  ;;  %3474 = vst [vmem:[#allocation4 + $0xd0] sm:$0xff] %v10765_v8  ;;  %3699 = vmatmul.f32.gmra.mxu2 %v10768_v20 }
 0x44d   :  { %v3288_v36 = vpop.f32.mrf.mxu0 }
 0x44e   :  { %v10772_v7 = vpop.f32.mrf.mxu3  ;;  %v3401_v38 = vpop.f32.mrf.mxu1 }
 0x44f   :  { %v10774_v5 = vpop.f32.mrf.mxu2  ;;  %v3402_v54 = vadd.f32 %v3401_v38, %v3288_v36  ;;  %v4115_v36 = vld [vmem:[#allocation9 + $0x298] sm:$0xff] }
 0x450   :  { %13551 = vst [vmem:[#allocation45_spill] sm:$0xff] %v10774_v5  ;;  %3886 = vmatmul.f32.gmra.mxu0 %v10540_v30  ;;  %4247 = vmatpush.msrb.mxu3 %v4115_v36  ;;  %v4476_v5 = vld [vmem:[#allocation9 + $0x3c8] sm:$0xff] }
 0x451   :  { %3999 = vmatmul.f32.gmra.mxu1 %v10540_v30  ;;  %v10780_v21 = vmax.f32 %v3143_v15, %v3402_v54  ;;  %v3146_v30 = vadd.f32 %v10682_v26, %v10592_v34  ;;  %v4110_v34 = vld [vmem:[#allocation9 + $0x270] sm:$0xff] }
 0x452   :  { %v10783_v56 = vld [vmem:[#allocation4 + $0xca] sm:$0xff]  ;;  %v4102_v54 = vld [vmem:[#allocation9 + $0x230] sm:$0xff] }
 0x453   :  { %3797 = vmatmul.f32.gmra.mxu3 %v10693_v50  ;;  %3475 = vst [vmem:[#allocation4 + $0xd8] sm:$0xff] %v10780_v21  ;;  %3702 = vmatmul.f32.gmra.mxu2 %v10783_v56  ;;  %v4114_v50 = vld [vmem:[#allocation9 + $0x290] sm:$0xff] }
 0x454   :  { %4134 = vmatpush.msra.mxu2 %v4114_v50 }
 0x455   :  { %v3291_v46 = vpop.f32.mrf.mxu0 }
 0x456   :  { %v10787_v49 = vpop.f32.mrf.mxu3  ;;  %v3404_v11 = vpop.f32.mrf.mxu1  ;;  %4135 = vmatpush.msra.mxu2 %v4112_v52 }
 0x457   :  { %v10789_v40 = vpop.f32.mrf.mxu2  ;;  %v3405_v51 = vadd.f32 %v3404_v11, %v3291_v46  ;;  %v4100_v11 = vld [vmem:[#allocation9 + $0x220] sm:$0xff] }
 0x458   :  { %13552 = vst [vmem:[#allocation82_spill] sm:$0xff] %v10789_v40  ;;  %3889 = vmatmul.f32.gmra.mxu0 %v10555_v62  ;;  %4136 = vmatpush.msra.mxu2 %v4110_v34  ;;  %v3155_v34 = vadd.f32 %v10727_v10, %v10637_v44 }
 0x459   :  { %4002 = vmatmul.f32.gmra.mxu1 %v10555_v62  ;;  %v10795_v24 = vmax.f32 %v3146_v30, %v3405_v51  ;;  %v4098_v51 = vld [vmem:[#allocation9 + $0x210] sm:$0xff] }
 0x45a   :  { %v10798_v45 = vld [vmem:[#allocation4 + $0xd2] sm:$0xff]  ;;  %4137 = vmatpush.msra.mxu2 %v4108_v22 }
 0x45b   :  { %3800 = vmatmul.f32.gmra.mxu3 %v10708_v27  ;;  %3476 = vst [vmem:[#allocation4 + $0xe0] sm:$0xff] %v10795_v24  ;;  %3705 = vmatmul.f32.gmra.mxu2 %v10798_v45  ;;  %v3149_v27 = vadd.f32 %v10697_v9, %v10607_v55  ;;  %v4104_v55 = vld [vmem:[#allocation9 + $0x240] sm:$0xff]  ;;  %v4113_v22 = vld [vmem:[#allocation9 + $0x288] sm:$0xff] }
 0x45c   :  { %4138 = vmatpush.msra.mxu2 %v4106_v28  ;;  %4248 = vmatpush.msrb.mxu3 %v4113_v22 }
 0x45d   :  { %v3294_v43 = vpop.f32.mrf.mxu0 }
 0x45e   :  { %v10802_v26 = vpop.f32.mrf.mxu3  ;;  %v3407_v48 = vpop.f32.mrf.mxu1  ;;  %4139 = vmatpush.msra.mxu2 %v4104_v55 }
 0x45f   :  { %v10804_v62 = vpop.f32.mrf.mxu2  ;;  %v3408_v18 = vadd.f32 %v3407_v48, %v3294_v43 }
 0x460   :  { %13553 = vst [vmem:[#allocation46_spill] sm:$0xff] %v10804_v62  ;;  %3892 = vmatmul.f32.gmra.mxu0 %v10570_v37  ;;  %4140 = vmatpush.msra.mxu2 %v4102_v54 }
 0x461   :  { %4005 = vmatmul.f32.gmra.mxu1 %v10570_v37  ;;  %v10810_v4 = vmax.f32 %v3149_v27, %v3408_v18 }
 0x462   :  { %v10813_v53 = vld [vmem:[#allocation4 + $0xda] sm:$0xff]  ;;  %4141 = vmatpush.msra.mxu2 %v4100_v11 }
 0x463   :  { %3803 = vmatmul.f32.gmra.mxu3 %v10723_v32  ;;  %3477 = vst [vmem:[#allocation4 + $0xe8] sm:$0xff] %v10810_v4  ;;  %3708 = vmatmul.f32.gmra.mxu2 %v10813_v53  ;;  %v3152_v32 = vadd.f32 %v10712_v59, %v10622_v63 }
 0x464   :  { %4142 = vmatpush.msra.mxu2 %v4098_v51 }
 0x465   :  { %v3297_v38 = vpop.f32.mrf.mxu0 }
 0x466   :  { %v10817_v9 = vpop.f32.mrf.mxu3  ;;  %v3410_v37 = vpop.f32.mrf.mxu1 }
 0x467   :  { %v10819_v15 = vpop.f32.mrf.mxu2  ;;  %v3411_v25 = vadd.f32 %v3410_v37, %v3297_v38 }
 0x468   :  { %13554 = vst [vmem:[#allocation48_spill] sm:$0xff] %v10819_v15  ;;  %3895 = vmatmul.f32.gmra.mxu0 %v10585_v1  ;;  %v4480_v15 = vld [vmem:[#allocation9 + $0x3e8] sm:$0xff] }
 0x469   :  { %4008 = vmatmul.f32.gmra.mxu1 %v10585_v1  ;;  %v10825_v46 = vmax.f32 %v3152_v32, %v3411_v25  ;;  %v4096_v1 = vld [vmem:[#allocation9 + $0x200] sm:$0xff] }
 0x46a   :  { %v10828_v30 = vld [vmem:[#allocation4 + $0xe2] sm:$0xff]  ;;  %4143 = vmatpush.msra.mxu2 %v4096_v1  ;;  %v4105_v1 = vld [vmem:[#allocation9 + $0x248] sm:$0xff] }
 0x46b   :  { %3806 = vmatmul.f32.gmra.mxu3 %v10738_v14  ;;  %3478 = vst [vmem:[#allocation4 + $0xf0] sm:$0xff] %v10825_v46  ;;  %3711 = vmatmul.f32.gmra.mxu2 %v10828_v30 }
 0x46d   :  { %v3300_v59 = vpop.f32.mrf.mxu0 }
 0x46e   :  { %v10832_v63 = vpop.f32.mrf.mxu3  ;;  %v3413_v50 = vpop.f32.mrf.mxu1 }
 0x46f   :  { %v10834_v52 = vpop.f32.mrf.mxu2  ;;  %v3414_v14 = vadd.f32 %v3413_v50, %v3300_v59  ;;  %v4107_v50 = vld [vmem:[#allocation9 + $0x258] sm:$0xff] }
 0x470   :  { %13555 = vst [vmem:[#allocation84_spill] sm:$0xff] %v10834_v52  ;;  %3898 = vmatmul.f32.gmra.mxu0 %v10600_v57 }
 0x471   :  { %4011 = vmatmul.f32.gmra.mxu1 %v10600_v57  ;;  %v10840_v43 = vmax.f32 %v3155_v34, %v3414_v14  ;;  %v4101_v34 = vld [vmem:[#allocation9 + $0x228] sm:$0xff] }
 0x472   :  { %v10843_v48 = vld [vmem:[#allocation4 + $0xea] sm:$0xff] }
 0x473   :  { %3809 = vmatmul.f32.gmra.mxu3 %v10753_v6  ;;  %3479 = vst [vmem:[#allocation4 + $0xf8] sm:$0xff] %v10840_v43  ;;  %3714 = vmatmul.f32.gmra.mxu2 %v10843_v48 }
 0x475   :  { %v10849_v44 = vpop.f32.mrf.mxu0 }
 0x476   :  { %v10847_v27 = vpop.f32.mrf.mxu3  ;;  %13556 = vst [vmem:[#allocation49_spill] sm:$0xff] %v10849_v44  ;;  %v10851_v10 = vpop.f32.mrf.mxu1 }
 0x477   :  { %v10853_v57 = vpop.f32.mrf.mxu2 }
 0x478   :  { %13557 = vst [vmem:[#allocation101_spill] sm:$0xff] %v10853_v57  ;;  %3901 = vmatmul.f32.gmra.mxu0 %v10615_v0 }
 0x479   :  { %4014 = vmatmul.f32.gmra.mxu1 %v10615_v0 }
 0x47a   :  { %v10858_v6 = vld [vmem:[#allocation4 + $0xf2] sm:$0xff]  ;;  %v10872_v0 = vld [vmem:[#allocation4 + $0xfa] sm:$0xff] }
 0x47b   :  { %3812 = vmatmul.f32.gmra.mxu3 %v10768_v20  ;;  %3717 = vmatmul.f32.gmra.mxu2 %v10858_v6  ;;  %v4111_v20 = vld [vmem:[#allocation9 + $0x278] sm:$0xff] }
 0x47c   :  { %4249 = vmatpush.msrb.mxu3 %v4111_v20 }
 0x47d   :  { %v10863_v28 = vpop.f32.mrf.mxu0 }
 0x47e   :  { %v10861_v18 = vpop.f32.mrf.mxu3  ;;  %13558 = vst [vmem:[#allocation102_spill] sm:$0xff] %v10863_v28  ;;  %v10865_v36 = vpop.f32.mrf.mxu1 }
 0x47f   :  { %v10867_v55 = vpop.f32.mrf.mxu2 }
 0x480   :  { %13559 = vst [vmem:[#allocation141_spill] sm:$0xff] %v10867_v55  ;;  %3904 = vmatmul.f32.gmra.mxu0 %v10630_v16 }
 0x481   :  { %4017 = vmatmul.f32.gmra.mxu1 %v10630_v16  ;;  %v10886_v16 = vld [vmem:[#allocation4 + $0x4] sm:$0xff] }
 0x483   :  { %3815 = vmatmul.f32.gmra.mxu3 %v10783_v56  ;;  %3720 = vmatmul.f32.gmra.mxu2 %v10872_v0  ;;  %v4109_v56 = vld [vmem:[#allocation9 + $0x268] sm:$0xff] }
 0x484   :  { %4250 = vmatpush.msrb.mxu3 %v4109_v56 }
 0x485   :  { %v10877_v37 = vpop.f32.mrf.mxu0 }
 0x486   :  { %v10875_v38 = vpop.f32.mrf.mxu3  ;;  %13560 = vst [vmem:[#allocation51_spill] sm:$0xff] %v10877_v37  ;;  %v10879_v54 = vpop.f32.mrf.mxu1  ;;  %4251 = vmatpush.msrb.mxu3 %v4107_v50  ;;  %v4097_v50 = vld [vmem:[#allocation9 + $0x208] sm:$0xff] }
 0x487   :  { %v10881_v32 = vpop.f32.mrf.mxu2 }
 0x488   :  { %13561 = vst [vmem:[#allocation85_spill] sm:$0xff] %v10881_v32  ;;  %3907 = vmatmul.f32.gmra.mxu0 %v10645_v33  ;;  %4252 = vmatpush.msrb.mxu3 %v4105_v1  ;;  %v4481_v1 = vld [vmem:[#allocation9 + $0x3f0] sm:$0xff] }
 0x489   :  { %4020 = vmatmul.f32.gmra.mxu1 %v10645_v33  ;;  %v10900_v33 = vld [vmem:[#allocation4 + $0xc] sm:$0xff]  ;;  %4483 = vmatpush.msrb.mxu0 %v4481_v1 }
 0x48b   :  { %3818 = vmatmul.f32.gmra.mxu3 %v10798_v45  ;;  %4144 = vmatmul.f32.vlgmr.msra.gmra.mxu2 %v10886_v16  ;;  %v4103_v45 = vld [vmem:[#allocation9 + $0x238] sm:$0xff] }
 0x48c   :  { %4253 = vmatpush.msrb.mxu3 %v4103_v45 }
 0x48d   :  { %v10891_v11 = vpop.f32.mrf.mxu0 }
 0x48e   :  { %v10889_v25 = vpop.f32.mrf.mxu3  ;;  %13562 = vst [vmem:[#allocation52_spill] sm:$0xff] %v10891_v11  ;;  %v10893_v51 = vpop.f32.mrf.mxu1  ;;  %4254 = vmatpush.msrb.mxu3 %v4101_v34 }
 0x48f   :  { %v10895_v59 = vpop.f32.mrf.mxu2 }
 0x490   :  { %13563 = vst [vmem:[#allocation104_spill] sm:$0xff] %v10895_v59  ;;  %3910 = vmatmul.f32.gmra.mxu0 %v10660_v31 }
 0x491   :  { %4023 = vmatmul.f32.gmra.mxu1 %v10660_v31  ;;  %v4099_v31 = vld [vmem:[#allocation9 + $0x218] sm:$0xff] }
 0x492   :  { %4255 = vmatpush.msrb.mxu3 %v4099_v31 }
 0x493   :  { %3821 = vmatmul.f32.gmra.mxu3 %v10813_v53  ;;  %4147 = vmatmul.f32.gmra.mxu2 %v10900_v33  ;;  %v10914_v53 = vld [vmem:[#allocation4 + $0x14] sm:$0xff] }
 0x494   :  { %4256 = vmatpush.msrb.mxu3 %v4097_v50 }
 0x495   :  { %v10905_v22 = vpop.f32.mrf.mxu0 }
 0x496   :  { %v10903_v14 = vpop.f32.mrf.mxu3  ;;  %13564 = vst [vmem:[#allocation105_spill] sm:$0xff] %v10905_v22  ;;  %v10907_v20 = vpop.f32.mrf.mxu1 }
 0x497   :  { %v10909_v56 = vpop.f32.mrf.mxu2 }
 0x498   :  { %13565 = vst [vmem:[#allocation144_spill] sm:$0xff] %v10909_v56  ;;  %3913 = vmatmul.f32.gmra.mxu0 %v10675_v42 }
 0x499   :  { %4026 = vmatmul.f32.gmra.mxu1 %v10675_v42  ;;  %v10928_v42 = vld [vmem:[#allocation4 + $0x1c] sm:$0xff] }
 0x49b   :  { %3824 = vmatmul.f32.gmra.mxu3 %v10828_v30  ;;  %4150 = vmatmul.f32.gmra.mxu2 %v10914_v53 }
 0x49d   :  { %v10919_v34 = vpop.f32.mrf.mxu0 }
 0x49e   :  { %v10917_v45 = vpop.f32.mrf.mxu3  ;;  %13566 = vst [vmem:[#allocation54_spill] sm:$0xff] %v10919_v34  ;;  %v10921_v56 = vpop.f32.mrf.mxu1  ;;  %v4418_v34 = vld [vmem:[#allocation4 + $0x6] sm:$0xff] }
 0x49f   :  { %v10923_v31 = vpop.f32.mrf.mxu2 }
 0x4a0   :  { %13567 = vst [vmem:[#allocation87_spill] sm:$0xff] %v10923_v31  ;;  %3916 = vmatmul.f32.gmra.mxu0 %v10690_v17 }
 0x4a1   :  { %4029 = vmatmul.f32.gmra.mxu1 %v10690_v17  ;;  %v10942_v17 = vld [vmem:[#allocation4 + $0x24] sm:$0xff] }
 0x4a3   :  { %3827 = vmatmul.f32.gmra.mxu3 %v10843_v48  ;;  %4153 = vmatmul.f32.gmra.mxu2 %v10928_v42  ;;  %v4479_v48 = vld [vmem:[#allocation9 + $0x3e0] sm:$0xff] }
 0x4a4   :  { %4484 = vmatpush.msrb.mxu0 %v4479_v48 }
 0x4a5   :  { %v10933_v50 = vpop.f32.mrf.mxu0 }
 0x4a6   :  { %v10931_v30 = vpop.f32.mrf.mxu3  ;;  %13568 = vst [vmem:[#allocation55_spill] sm:$0xff] %v10933_v50  ;;  %v10935_v1 = vpop.f32.mrf.mxu1 }
 0x4a7   :  { %v10937_v59 = vpop.f32.mrf.mxu2 }
 0x4a8   :  { %13569 = vst [vmem:[#allocation107_spill] sm:$0xff] %v10937_v59  ;;  %3919 = vmatmul.f32.gmra.mxu0 %v10705_v29 }
 0x4a9   :  { %4032 = vmatmul.f32.gmra.mxu1 %v10705_v29  ;;  %v10956_v29 = vld [vmem:[#allocation4 + $0x2c] sm:$0xff] }
 0x4ab   :  { %3830 = vmatmul.f32.gmra.mxu3 %v10858_v6  ;;  %4156 = vmatmul.f32.gmra.mxu2 %v10942_v17 }
 0x4ad   :  { %v10947_v32 = vpop.f32.mrf.mxu0 }
 0x4ae   :  { %v10945_v31 = vpop.f32.mrf.mxu3  ;;  %13570 = vst [vmem:[#allocation108_spill] sm:$0xff] %v10947_v32  ;;  %v10949_v55 = vpop.f32.mrf.mxu1 }
 0x4af   :  { %v10951_v57 = vpop.f32.mrf.mxu2 }
 0x4b0   :  { %13571 = vst [vmem:[#allocation148_spill] sm:$0xff] %v10951_v57  ;;  %3922 = vmatmul.f32.gmra.mxu0 %v10720_v47  ;;  %v4482_v57 = vld [vmem:[#allocation9 + $0x3f8] sm:$0xff] }
 0x4b1   :  { %4035 = vmatmul.f32.gmra.mxu1 %v10720_v47  ;;  %v10970_v47 = vld [vmem:[#allocation4 + $0x34] sm:$0xff] }
 0x4b2   :  { %4596 = vmatpush.msrb.mxu1 %v4482_v57  ;;  %v10984_v57 = vld [vmem:[#allocation4 + $0x3c] sm:$0xff] }
 0x4b3   :  { %3833 = vmatmul.f32.gmra.mxu3 %v10872_v0  ;;  %4159 = vmatmul.f32.gmra.mxu2 %v10956_v29  ;;  %v4477_v0 = vld [vmem:[#allocation9 + $0x3d0] sm:$0xff] }
 0x4b4   :  { %4485 = vmatpush.msrb.mxu0 %v4477_v0  ;;  %4597 = vmatpush.msrb.mxu1 %v4480_v15  ;;  %v4473_v0 = vld [vmem:[#allocation9 + $0x3b0] sm:$0xff]  ;;  %v4471_v15 = vld [vmem:[#allocation9 + $0x3a0] sm:$0xff] }
 0x4b5   :  { %v10961_v48 = vpop.f32.mrf.mxu0 }
 0x4b6   :  { %v10959_v6 = vpop.f32.mrf.mxu3  ;;  %13572 = vst [vmem:[#allocation57_spill] sm:$0xff] %v10961_v48  ;;  %v10963_v59 = vpop.f32.mrf.mxu1 }
 0x4b7   :  { %v10965_v52 = vpop.f32.mrf.mxu2 }
 0x4b8   :  { %13573 = vst [vmem:[#allocation90_spill] sm:$0xff] %v10965_v52  ;;  %3925 = vmatmul.f32.gmra.mxu0 %v10735_v12 }
 0x4b9   :  { %4038 = vmatmul.f32.gmra.mxu1 %v10735_v12  ;;  %v4478_v12 = vld [vmem:[#allocation9 + $0x3d8] sm:$0xff] }
 0x4ba   :  { %4598 = vmatpush.msrb.mxu1 %v4478_v12 }
 0x4bb   :  { %4257 = vmatmul.f32.vlgmr.msrb.gmra.mxu3 %v10886_v16  ;;  %4162 = vmatmul.f32.gmra.mxu2 %v10970_v47  ;;  %v4475_v16 = vld [vmem:[#allocation9 + $0x3c0] sm:$0xff] }
 0x4bc   :  { %4486 = vmatpush.msrb.mxu0 %v4475_v16  ;;  %4599 = vmatpush.msrb.mxu1 %v4476_v5  ;;  %v4470_v16 = vld [vmem:[#allocation9 + $0x398] sm:$0xff]  ;;  %v4467_v5 = vld [vmem:[#allocation9 + $0x380] sm:$0xff] }
 0x4bd   :  { %v10975_v40 = vpop.f32.mrf.mxu0 }
 0x4be   :  { %v10973_v62 = vpop.f32.mrf.mxu3  ;;  %13574 = vst [vmem:[#allocation58_spill] sm:$0xff] %v10975_v40  ;;  %v10977_v52 = vpop.f32.mrf.mxu1  ;;  %v4474_v40 = vld [vmem:[#allocation9 + $0x3b8] sm:$0xff]  ;;  %4487 = vmatpush.msrb.mxu0 %v4473_v0  ;;  %v4468_v0 = vld [vmem:[#allocation9 + $0x388] sm:$0xff] }
 0x4bf   :  { %v10979_v48 = vpop.f32.mrf.mxu2  ;;  %4600 = vmatpush.msrb.mxu1 %v4474_v40  ;;  %v4465_v40 = vld [vmem:[#allocation9 + $0x370] sm:$0xff] }
 0x4c0   :  { %13575 = vst [vmem:[#allocation110_spill] sm:$0xff] %v10979_v48  ;;  %3928 = vmatmul.f32.gmra.mxu0 %v10750_v39  ;;  %v4472_v48 = vld [vmem:[#allocation9 + $0x3a8] sm:$0xff] }
 0x4c1   :  { %4041 = vmatmul.f32.gmra.mxu1 %v10750_v39  ;;  %4488 = vmatpush.msrb.mxu0 %v4471_v15  ;;  %v4466_v15 = vld [vmem:[#allocation9 + $0x378] sm:$0xff] }
 0x4c2   :  { %4601 = vmatpush.msrb.mxu1 %v4472_v48 }
 0x4c3   :  { %4260 = vmatmul.f32.gmra.mxu3 %v10900_v33  ;;  %4165 = vmatmul.f32.gmra.mxu2 %v10984_v57  ;;  %v4469_v33 = vld [vmem:[#allocation9 + $0x390] sm:$0xff] }
 0x4c4   :  { %4489 = vmatpush.msrb.mxu0 %v4469_v33  ;;  %4602 = vmatpush.msrb.mxu1 %v4470_v16  ;;  %v4461_v16 = vld [vmem:[#allocation9 + $0x350] sm:$0xff] }
 0x4c5   :  { %v10989_v60 = vpop.f32.mrf.mxu0 }
 0x4c6   :  { %v10987_v32 = vpop.f32.mrf.mxu3  ;;  %13576 = vst [vmem:[#allocation111_spill] sm:$0xff] %v10989_v60  ;;  %v10991_v39 = vpop.f32.mrf.mxu1  ;;  %v10998_v60 = vld [vmem:[#allocation4 + $0x44] sm:$0xff]  ;;  %4490 = vmatpush.msrb.mxu0 %v4467_v5  ;;  %4603 = vmatpush.msrb.mxu1 %v4468_v0  ;;  %v4459_v0 = vld [vmem:[#allocation9 + $0x340] sm:$0xff] }
 0x4c7   :  { %v10993_v12 = vpop.f32.mrf.mxu2  ;;  %v4462_v5 = vld [vmem:[#allocation9 + $0x358] sm:$0xff] }
 0x4c8   :  { %13577 = vst [vmem:[#allocation60_spill] sm:$0xff] %v10993_v12  ;;  %3931 = vmatmul.f32.gmra.mxu0 %v10765_v8  ;;  %v4463_v12 = vld [vmem:[#allocation9 + $0x360] sm:$0xff]  ;;  %4604 = vmatpush.msrb.mxu1 %v4466_v15  ;;  %v4457_v15 = vld [vmem:[#allocation9 + $0x330] sm:$0xff] }
 0x4c9   :  { %4044 = vmatmul.f32.gmra.mxu1 %v10765_v8  ;;  %4491 = vmatpush.msrb.mxu0 %v4465_v40  ;;  %v4460_v40 = vld [vmem:[#allocation9 + $0x348] sm:$0xff] }
 0x4cb   :  { %4263 = vmatmul.f32.gmra.mxu3 %v10914_v53  ;;  %4168 = vmatmul.f32.gmra.mxu2 %v10998_v60  ;;  %v4464_v53 = vld [vmem:[#allocation9 + $0x368] sm:$0xff] }
 0x4cc   :  { %4492 = vmatpush.msrb.mxu0 %v4463_v12  ;;  %4605 = vmatpush.msrb.mxu1 %v4464_v53 }
 0x4cd   :  { %v11003_v50 = vpop.f32.mrf.mxu0 }
 0x4ce   :  { %v11001_v48 = vpop.f32.mrf.mxu3  ;;  %13578 = vst [vmem:[#allocation93_spill] sm:$0xff] %v11003_v50  ;;  %v11005_v8 = vpop.f32.mrf.mxu1  ;;  %4493 = vmatpush.msrb.mxu0 %v4461_v16  ;;  %v11012_v50 = vld [vmem:[#allocation4 + $0x4c] sm:$0xff]  ;;  %4606 = vmatpush.msrb.mxu1 %v4462_v5  ;;  %v4456_v16 = vld [vmem:[#allocation9 + $0x328] sm:$0xff]  ;;  %v4453_v5 = vld [vmem:[#allocation9 + $0x310] sm:$0xff] }
 0x4cf   :  { %v11007_v33 = vpop.f32.mrf.mxu2 }
 0x4d0   :  { %13579 = vst [vmem:[#allocation61_spill] sm:$0xff] %v11007_v33  ;;  %3934 = vmatmul.f32.gmra.mxu0 %v10780_v21  ;;  %v4458_v33 = vld [vmem:[#allocation9 + $0x338] sm:$0xff]  ;;  %4607 = vmatpush.msrb.mxu1 %v4460_v40  ;;  %v4451_v40 = vld [vmem:[#allocation9 + $0x300] sm:$0xff] }
 0x4d1   :  { %4047 = vmatmul.f32.gmra.mxu1 %v10780_v21  ;;  %4494 = vmatpush.msrb.mxu0 %v4459_v0  ;;  %v4454_v0 = vld [vmem:[#allocation9 + $0x318] sm:$0xff] }
 0x4d2   :  { %4608 = vmatpush.msrb.mxu1 %v4458_v33 }
 0x4d3   :  { %4266 = vmatmul.f32.gmra.mxu3 %v10928_v42  ;;  %4171 = vmatmul.f32.gmra.mxu2 %v11012_v50  ;;  %v4455_v42 = vld [vmem:[#allocation9 + $0x320] sm:$0xff] }
 0x4d4   :  { %4495 = vmatpush.msrb.mxu0 %v4457_v15  ;;  %4609 = vmatpush.msrb.mxu1 %v4456_v16  ;;  %v4452_v15 = vld [vmem:[#allocation9 + $0x308] sm:$0xff] }
 0x4d5   :  { %v11017_v2 = vpop.f32.mrf.mxu0 }
 0x4d6   :  { %v11015_v12 = vpop.f32.mrf.mxu3  ;;  %13580 = vst [vmem:[#allocation113_spill] sm:$0xff] %v11017_v2  ;;  %v11019_v21 = vpop.f32.mrf.mxu1  ;;  %4496 = vmatpush.msrb.mxu0 %v4455_v42  ;;  %v11026_v2 = vld [vmem:[#allocation4 + $0x54] sm:$0xff]  ;;  %4610 = vmatpush.msrb.mxu1 %v4454_v0 }
 0x4d7   :  { %v11021_v53 = vpop.f32.mrf.mxu2 }
 0x4d8   :  { %13581 = vst [vmem:[#allocation114_spill] sm:$0xff] %v11021_v53  ;;  %3937 = vmatmul.f32.gmra.mxu0 %v10795_v24  ;;  %4611 = vmatpush.msrb.mxu1 %v4452_v15  ;;  %v11051_v15 = vld [vmem:[#allocation4 + $0x64] sm:$0xff] }
 0x4d9   :  { %4050 = vmatmul.f32.gmra.mxu1 %v10795_v24  ;;  %4497 = vmatpush.msrb.mxu0 %v4453_v5 }
 0x4db   :  { %4269 = vmatmul.f32.gmra.mxu3 %v10942_v17  ;;  %4174 = vmatmul.f32.gmra.mxu2 %v11026_v2  ;;  %v4074_v17 = vld [vmem:[#allocation4 + $0x5c] sm:$0xff] }
 0x4dc   :  { %4498 = vmatpush.msrb.mxu0 %v4451_v40 }
 0x4dd   :  { %v11031_v33 = vpop.f32.mrf.mxu0 }
 0x4de   :  { %v11029_v53 = vpop.f32.mrf.mxu3  ;;  %13582 = vst [vmem:[#allocation150_spill] sm:$0xff] %v11031_v33  ;;  %v11033_v24 = vpop.f32.mrf.mxu1 }
 0x4df   :  { %v11035_v42 = vpop.f32.mrf.mxu2 }
 0x4e0   :  { %13583 = vst [vmem:[#allocation62_spill] sm:$0xff] %v11035_v42  ;;  %3940 = vmatmul.f32.gmra.mxu0 %v10810_v4 }
 0x4e1   :  { %4053 = vmatmul.f32.gmra.mxu1 %v10810_v4 }
 0x4e3   :  { %4272 = vmatmul.f32.gmra.mxu3 %v10956_v29  ;;  %4177 = vmatmul.f32.gmra.mxu2 %v4074_v17 }
 0x4e5   :  { %v11042_v5 = vpop.f32.mrf.mxu0 }
 0x4e6   :  { %v11040_v16 = vpop.f32.mrf.mxu3  ;;  %13584 = vst [vmem:[#allocation96_spill] sm:$0xff] %v11042_v5  ;;  %v11044_v0 = vpop.f32.mrf.mxu1 }
 0x4e7   :  { %v11046_v40 = vpop.f32.mrf.mxu2 }
 0x4e8   :  { %13585 = vst [vmem:[#allocation63_spill] sm:$0xff] %v11046_v40  ;;  %3943 = vmatmul.f32.gmra.mxu0 %v10825_v46 }
 0x4e9   :  { %4056 = vmatmul.f32.gmra.mxu1 %v10825_v46  ;;  %v11065_v46 = vld [vmem:[#allocation4 + $0x6c] sm:$0xff] }
 0x4eb   :  { %4275 = vmatmul.f32.gmra.mxu3 %v10970_v47  ;;  %4180 = vmatmul.f32.gmra.mxu2 %v11051_v15 }
 0x4ed   :  { %v11056_v29 = vpop.f32.mrf.mxu0 }
 0x4ee   :  { %v11054_v4 = vpop.f32.mrf.mxu3  ;;  %13586 = vst [vmem:[#allocation116_spill] sm:$0xff] %v11056_v29  ;;  %v11058_v42 = vpop.f32.mrf.mxu1 }
 0x4ef   :  { %v11060_v5 = vpop.f32.mrf.mxu2 }
 0x4f0   :  { %13587 = vst [vmem:[#allocation117_spill] sm:$0xff] %v11060_v5  ;;  %3946 = vmatmul.f32.gmra.mxu0 %v10840_v43 }
 0x4f1   :  { %4059 = vmatmul.f32.gmra.mxu1 %v10840_v43  ;;  %v11077_v43 = vld [vmem:[#allocation4 + $0x74] sm:$0xff] }
 0x4f3   :  { %4278 = vmatmul.f32.gmra.mxu3 %v10984_v57  ;;  %4183 = vmatmul.f32.gmra.mxu2 %v11065_v46  ;;  %v4836_v57 = vld [vmem:[#allocation9 + $0x4f0] sm:$0xff] }
 0x4f4   :  { %4838 = vmatpush.msrb.mxu2 %v4836_v57 }
 0x4f5   :  { %v11070_v40 = vpop.f32.mrf.mxu0 }
 0x4f6   :  { %v11068_v47 = vpop.f32.mrf.mxu3  ;;  %13588 = vst [vmem:[#allocation64_spill] sm:$0xff] %v11070_v40  ;;  %v11072_v33 = vpop.f32.mrf.mxu1 }
 0x4f7   :  { %v11074_v29 = vpop.f32.mrf.mxu2 }
 0x4f8   :  { %13589 = vst [vmem:[#allocation99_spill] sm:$0xff] %v11074_v29  ;;  %4499 = vmatmul.f32.vlgmr.msrb.gmra.mxu0 %v4418_v34  ;;  %v4419_v29 = vld [vmem:[#allocation4 + $0xe] sm:$0xff] }
 0x4f9   :  { %4612 = vmatmul.f32.vlgmr.msrb.gmra.mxu1 %v4418_v34  ;;  %v4837_v34 = vld [vmem:[#allocation9 + $0x4f8] sm:$0xff] }
 0x4fa   :  { %4951 = vmatpush.msra.mxu3 %v4837_v34 }
 0x4fb   :  { %4281 = vmatmul.f32.gmra.mxu3 %v10998_v60  ;;  %4186 = vmatmul.f32.gmra.mxu2 %v11077_v43  ;;  %v11089_v60 = vld [vmem:[#allocation4 + $0x7c] sm:$0xff] }
 0x4fd   :  { %v11082_v58 = vpop.f32.mrf.mxu0 }
 0x4fe   :  { %v11080_v5 = vpop.f32.mrf.mxu3  ;;  %13591 = vst [vmem:[#allocation119_spill] sm:$0xff] %v11082_v58  ;;  %v11084_v40 = vpop.f32.mrf.mxu1 }
 0x4ff   :  { %13590 = vst [vmem:[#allocation65_spill] sm:$0xff] %v11080_v5  ;;  %v11086_v22 = vpop.f32.mrf.mxu2  ;;  %v4829_v5 = vld [vmem:[#allocation9 + $0x4b8] sm:$0xff] }
 0x500   :  { %13592 = vst [vmem:[#allocation120_spill] sm:$0xff] %v11086_v22  ;;  %4502 = vmatmul.f32.gmra.mxu0 %v4419_v29  ;;  %v4420_v22 = vld [vmem:[#allocation4 + $0x16] sm:$0xff] }
 0x501   :  { %4615 = vmatmul.f32.gmra.mxu1 %v4419_v29  ;;  %v4834_v29 = vld [vmem:[#allocation9 + $0x4e0] sm:$0xff] }
 0x502   :  { %4839 = vmatpush.msrb.mxu2 %v4834_v29 }
 0x503   :  { %4284 = vmatmul.f32.gmra.mxu3 %v11012_v50  ;;  %4189 = vmatmul.f32.gmra.mxu2 %v11089_v60  ;;  %v11101_v50 = vld [vmem:[#allocation4 + $0x84] sm:$0xff] }
 0x505   :  { %v11094_v23 = vpop.f32.mrf.mxu0 }
 0x506   :  { %v11092_v57 = vpop.f32.mrf.mxu3  ;;  %13594 = vst [vmem:[#allocation100_spill] sm:$0xff] %v11094_v23  ;;  %v11096_v58 = vpop.f32.mrf.mxu1 }
 0x507   :  { %13593 = vst [vmem:[#allocation66_spill] sm:$0xff] %v11092_v57  ;;  %v11098_v11 = vpop.f32.mrf.mxu2  ;;  %v4427_v57 = vld [vmem:[#allocation4 + $0x4e] sm:$0xff] }
 0x508   :  { %13595 = vst [vmem:[#allocation67_spill] sm:$0xff] %v11098_v11  ;;  %4505 = vmatmul.f32.gmra.mxu0 %v4420_v22  ;;  %v4421_v11 = vld [vmem:[#allocation4 + $0x1e] sm:$0xff] }
 0x509   :  { %4618 = vmatmul.f32.gmra.mxu1 %v4420_v22  ;;  %v11112_v22 = vld [vmem:[#allocation4 + $0x8c] sm:$0xff] }
 0x50b   :  { %4287 = vmatmul.f32.gmra.mxu3 %v11026_v2  ;;  %4192 = vmatmul.f32.gmra.mxu2 %v11101_v50  ;;  %v4835_v2 = vld [vmem:[#allocation9 + $0x4e8] sm:$0xff] }
 0x50c   :  { %4952 = vmatpush.msra.mxu3 %v4835_v2 }
 0x50d   :  { %v11106_v35 = vpop.f32.mrf.mxu0 }
 0x50e   :  { %v11104_v34 = vpop.f32.mrf.mxu3  ;;  %13597 = vst [vmem:[#allocation123_spill] sm:$0xff] %v11106_v35  ;;  %v11108_v23 = vpop.f32.mrf.mxu1  ;;  %v4422_v35 = vld [vmem:[#allocation4 + $0x26] sm:$0xff] }
 0x50f   :  { %13596 = vst [vmem:[#allocation122_spill] sm:$0xff] %v11104_v34  ;;  %v11110_v37 = vpop.f32.mrf.mxu2 }
 0x510   :  { %13598 = vst [vmem:[#allocation68_spill] sm:$0xff] %v11110_v37  ;;  %4508 = vmatmul.f32.gmra.mxu0 %v4421_v11 }
 0x511   :  { %4621 = vmatmul.f32.gmra.mxu1 %v4421_v11  ;;  %v11124_v11 = vld [vmem:[#allocation4 + $0x94] sm:$0xff] }
 0x513   :  { %4290 = vmatmul.f32.gmra.mxu3 %v4074_v17  ;;  %4195 = vmatmul.f32.gmra.mxu2 %v11112_v22  ;;  %v4832_v17 = vld [vmem:[#allocation9 + $0x4d0] sm:$0xff] }
 0x514   :  { %4840 = vmatpush.msrb.mxu2 %v4832_v17 }
 0x515   :  { %v11117_v29 = vpop.f32.mrf.mxu0 }
 0x516   :  { %v11115_v13 = vpop.f32.mrf.mxu3  ;;  %13600 = vst [vmem:[#allocation69_spill] sm:$0xff] %v11117_v29  ;;  %v11121_v61 = vpop.f32.mrf.mxu1 }
 0x517   :  { %13599 = vst [vmem:[#allocation103_spill] sm:$0xff] %v11115_v13  ;;  %v11119_v28 = vpop.f32.mrf.mxu2 }
 0x518   :  { %13601 = vst [vmem:[#allocation125_spill] sm:$0xff] %v11119_v28  ;;  %4511 = vmatmul.f32.gmra.mxu0 %v4422_v35  ;;  %v4423_v28 = vld [vmem:[#allocation4 + $0x2e] sm:$0xff] }
 0x519   :  { %4624 = vmatmul.f32.gmra.mxu1 %v4422_v35  ;;  %v11136_v35 = vld [vmem:[#allocation4 + $0x9c] sm:$0xff] }
 0x51b   :  { %4293 = vmatmul.f32.gmra.mxu3 %v11051_v15  ;;  %4198 = vmatmul.f32.gmra.mxu2 %v11124_v11  ;;  %v4833_v15 = vld [vmem:[#allocation9 + $0x4d8] sm:$0xff] }
 0x51c   :  { %4953 = vmatpush.msra.mxu3 %v4833_v15 }
 0x51d   :  { %v11129_v13 = vpop.f32.mrf.mxu0 }
 0x51e   :  { %v11127_v2 = vpop.f32.mrf.mxu3  ;;  %13603 = vst [vmem:[#allocation70_spill] sm:$0xff] %v11129_v13  ;;  %v11133_v34 = vpop.f32.mrf.mxu1 }
 0x51f   :  { %13602 = vst [vmem:[#allocation126_spill] sm:$0xff] %v11127_v2  ;;  %v11131_v29 = vpop.f32.mrf.mxu2 }
 0x520   :  { %13604 = vst [vmem:[#allocation106_spill] sm:$0xff] %v11131_v29  ;;  %4514 = vmatmul.f32.gmra.mxu0 %v4423_v28  ;;  %v4424_v29 = vld [vmem:[#allocation4 + $0x36] sm:$0xff] }
 0x521   :  { %4627 = vmatmul.f32.gmra.mxu1 %v4423_v28  ;;  %v11146_v28 = vld [vmem:[#allocation4 + $0xa4] sm:$0xff] }
 0x523   :  { %4296 = vmatmul.f32.gmra.mxu3 %v11065_v46  ;;  %4201 = vmatmul.f32.gmra.mxu2 %v11136_v35  ;;  %v4830_v46 = vld [vmem:[#allocation9 + $0x4c0] sm:$0xff] }
 0x524   :  { %4841 = vmatpush.msrb.mxu2 %v4830_v46 }
 0x525   :  { %v11141_v2 = vpop.f32.mrf.mxu0 }
 0x526   :  { %v11139_v17 = vpop.f32.mrf.mxu3  ;;  %13606 = vst [vmem:[#allocation128_spill] sm:$0xff] %v11141_v2  ;;  %v11149_v37 = vpop.f32.mrf.mxu1 }
 0x527   :  { %13605 = vst [vmem:[#allocation71_spill] sm:$0xff] %v11139_v17  ;;  %v11143_v13 = vpop.f32.mrf.mxu2 }
 0x528   :  { %13607 = vst [vmem:[#allocation129_spill] sm:$0xff] %v11143_v13  ;;  %4517 = vmatmul.f32.gmra.mxu0 %v4424_v29  ;;  %v4425_v13 = vld [vmem:[#allocation4 + $0x3e] sm:$0xff] }
 0x529   :  { %4630 = vmatmul.f32.gmra.mxu1 %v4424_v29  ;;  %v4831_v29 = vld [vmem:[#allocation9 + $0x4c8] sm:$0xff] }
 0x52a   :  { %4954 = vmatpush.msra.mxu3 %v4831_v29  ;;  %v3968_v29 = vadd.f32 %v10851_v10, %v10742_v19  ;;  %v3971_v19 = vadd.f32 %v10865_v36, %v10757_v41  ;;  %v3974_v41 = vadd.f32 %v10879_v54, %v10772_v7  ;;  %v3977_v7 = vadd.f32 %v10893_v51, %v10787_v49  ;;  %v4820_v51 = vld [vmem:[#allocation9 + $0x470] sm:$0xff] }
 0x52b   :  { %4299 = vmatmul.f32.gmra.mxu3 %v11077_v43  ;;  %4204 = vmatmul.f32.gmra.mxu2 %v11146_v28  ;;  %v11158_v43 = vld [vmem:[#allocation4 + $0xac] sm:$0xff]  ;;  %v3980_v49 = vadd.f32 %v10907_v20, %v10802_v26  ;;  %v11238_v26 = vld [vmem:[#allocation4 + $0xdc] sm:$0xff] }
 0x52c   :  { %4955 = vmatpush.msra.mxu3 %v4829_v5  ;;  %v4826_v5 = vld [vmem:[#allocation9 + $0x4a0] sm:$0xff]  ;;  %v4825_v20 = vld [vmem:[#allocation9 + $0x498] sm:$0xff] }
 0x52d   :  { %v11153_v17 = vpop.f32.mrf.mxu0 }
 0x52e   :  { %v11151_v15 = vpop.f32.mrf.mxu3  ;;  %13609 = vst [vmem:[#allocation109_spill] sm:$0xff] %v11153_v17 }
 0x52f   :  { %13608 = vst [vmem:[#allocation72_spill] sm:$0xff] %v11151_v15  ;;  %v11155_v2 = vpop.f32.mrf.mxu2  ;;  %v11165_v15 = vpop.f32.mrf.mxu1 }
 0x530   :  { %13610 = vst [vmem:[#allocation73_spill] sm:$0xff] %v11155_v2  ;;  %4520 = vmatmul.f32.gmra.mxu0 %v4425_v13  ;;  %v4426_v2 = vld [vmem:[#allocation4 + $0x46] sm:$0xff] }
 0x531   :  { %4633 = vmatmul.f32.gmra.mxu1 %v4425_v13  ;;  %v11170_v13 = vld [vmem:[#allocation4 + $0xb4] sm:$0xff] }
 0x533   :  { %4302 = vmatmul.f32.gmra.mxu3 %v11089_v60  ;;  %4207 = vmatmul.f32.gmra.mxu2 %v11158_v43  ;;  %v4828_v60 = vld [vmem:[#allocation9 + $0x4b0] sm:$0xff] }
 0x534   :  { %4842 = vmatpush.msrb.mxu2 %v4828_v60 }
 0x535   :  { %v11163_v46 = vpop.f32.mrf.mxu0 }
 0x536   :  { %v11161_v44 = vpop.f32.mrf.mxu3  ;;  %13612 = vst [vmem:[#allocation132_spill] sm:$0xff] %v11163_v46  ;;  %4843 = vmatpush.msrb.mxu2 %v4826_v5 }
 0x537   :  { %13611 = vst [vmem:[#allocation131_spill] sm:$0xff] %v11161_v44  ;;  %v11167_v17 = vpop.f32.mrf.mxu2 }
 0x538   :  { %13613 = vst [vmem:[#allocation74_spill] sm:$0xff] %v11167_v17  ;;  %4523 = vmatmul.f32.gmra.mxu0 %v4426_v2 }
 0x539   :  { %4636 = vmatmul.f32.gmra.mxu1 %v4426_v2  ;;  %v11181_v2 = vpop.f32.mrf.mxu1 }
 0x53b   :  { %4305 = vmatmul.f32.gmra.mxu3 %v11101_v50  ;;  %4210 = vmatmul.f32.gmra.mxu2 %v11170_v13  ;;  %v11184_v50 = vld [vmem:[#allocation4 + $0xbc] sm:$0xff] }
 0x53d   :  { %v11175_v46 = vpop.f32.mrf.mxu0 }
 0x53e   :  { %v4258_v44 = vpop.f32.mrf.mxu3  ;;  %13614 = vst [vmem:[#allocation112_spill] sm:$0xff] %v11175_v46  ;;  %v4428_v46 = vld [vmem:[#allocation4 + $0x56] sm:$0xff] }
 0x53f   :  { %v11177_v3 = vadd.f32 %v4258_v44, %v3968_v29  ;;  %v11179_v17 = vpop.f32.mrf.mxu2 }
 0x540   :  { %4526 = vmatmul.f32.gmra.mxu0 %v4427_v57 }
 0x541   :  { %4639 = vmatmul.f32.gmra.mxu1 %v4427_v57  ;;  %v11195_v57 = vpop.f32.mrf.mxu1 }
 0x543   :  { %4308 = vmatmul.f32.gmra.mxu3 %v11112_v22  ;;  %4213 = vmatmul.f32.gmra.mxu2 %v11184_v50  ;;  %v11198_v22 = vld [vmem:[#allocation4 + $0xc4] sm:$0xff] }
 0x545   :  { %v11189_v10 = vpop.f32.mrf.mxu0 }
 0x546   :  { %v4261_v44 = vpop.f32.mrf.mxu3  ;;  %13615 = vst [vmem:[#allocation75_spill] sm:$0xff] %v11189_v10 }
 0x547   :  { %v11191_v60 = vadd.f32 %v4261_v44, %v3971_v19  ;;  %v11193_v29 = vpop.f32.mrf.mxu2 }
 0x548   :  { %4529 = vmatmul.f32.gmra.mxu0 %v4428_v46 }
 0x549   :  { %13616 = vst [vmem:[#allocation133_spill] sm:$0xff] %v11191_v60  ;;  %4642 = vmatmul.f32.gmra.mxu1 %v4428_v46  ;;  %v4429_v46 = vld [vmem:[#allocation4 + $0x5e] sm:$0xff]  ;;  %v11215_v54 = vpop.f32.mrf.mxu1 }
 0x54a   :  { %v4827_v60 = vld [vmem:[#allocation9 + $0x4a8] sm:$0xff] }
 0x54b   :  { %4311 = vmatmul.f32.gmra.mxu3 %v11124_v11  ;;  %4216 = vmatmul.f32.gmra.mxu2 %v11198_v22  ;;  %v11210_v11 = vld [vmem:[#allocation4 + $0xcc] sm:$0xff] }
 0x54c   :  { %4956 = vmatpush.msra.mxu3 %v4827_v60  ;;  %v11224_v60 = vld [vmem:[#allocation4 + $0xd4] sm:$0xff] }
 0x54d   :  { %v11203_v19 = vpop.f32.mrf.mxu0 }
 0x54e   :  { %v4264_v36 = vpop.f32.mrf.mxu3  ;;  %13617 = vst [vmem:[#allocation134_spill] sm:$0xff] %v11203_v19  ;;  %4957 = vmatpush.msra.mxu3 %v4825_v20  ;;  %v4810_v20 = vld [vmem:[#allocation9 + $0x420] sm:$0xff] }
 0x54f   :  { %v11205_v44 = vadd.f32 %v4264_v36, %v3974_v41  ;;  %v11207_v10 = vpop.f32.mrf.mxu2 }
 0x550   :  { %4532 = vmatmul.f32.gmra.mxu0 %v4429_v46 }
 0x551   :  { %13618 = vst [vmem:[#allocation21_spill] sm:$0xff] %v11205_v44  ;;  %4645 = vmatmul.f32.gmra.mxu1 %v4429_v46  ;;  %v4430_v46 = vld [vmem:[#allocation4 + $0x66] sm:$0xff]  ;;  %v4822_v44 = vld [vmem:[#allocation9 + $0x480] sm:$0xff] }
 0x553   :  { %4314 = vmatmul.f32.gmra.mxu3 %v11136_v35  ;;  %4219 = vmatmul.f32.gmra.mxu2 %v11210_v11  ;;  %v4824_v35 = vld [vmem:[#allocation9 + $0x490] sm:$0xff] }
 0x554   :  { %4844 = vmatpush.msrb.mxu2 %v4824_v35 }
 0x555   :  { %v11217_v41 = vpop.f32.mrf.mxu0 }
 0x556   :  { %v4267_v5 = vpop.f32.mrf.mxu3  ;;  %13619 = vst [vmem:[#allocation44_spill] sm:$0xff] %v11217_v41  ;;  %4845 = vmatpush.msrb.mxu2 %v4822_v44  ;;  %v11231_v41 = vpop.f32.mrf.mxu1  ;;  %v4814_v44 = vld [vmem:[#allocation9 + $0x440] sm:$0xff] }
 0x557   :  { %v11219_v36 = vadd.f32 %v4267_v5, %v3977_v7  ;;  %v11221_v19 = vpop.f32.mrf.mxu2 }
 0x558   :  { %13621 = vst [vmem:[#allocation27_spill] sm:$0xff] %v11221_v19  ;;  %4535 = vmatmul.f32.gmra.mxu0 %v4430_v46  ;;  %4846 = vmatpush.msrb.mxu2 %v4820_v51  ;;  %v4816_v19 = vld [vmem:[#allocation9 + $0x450] sm:$0xff] }
 0x559   :  { %13620 = vst [vmem:[#allocation83_spill] sm:$0xff] %v11219_v36  ;;  %4648 = vmatmul.f32.gmra.mxu1 %v4430_v46  ;;  %v4431_v36 = vld [vmem:[#allocation4 + $0x6e] sm:$0xff] }
 0x55b   :  { %4317 = vmatmul.f32.gmra.mxu3 %v11146_v28  ;;  %4222 = vmatmul.f32.gmra.mxu2 %v11224_v60  ;;  %v4818_v28 = vld [vmem:[#allocation9 + $0x460] sm:$0xff] }
 0x55c   :  { %4847 = vmatpush.msrb.mxu2 %v4818_v28  ;;  %v4432_v28 = vld [vmem:[#allocation4 + $0x76] sm:$0xff] }
 0x55d   :  { %v11229_v5 = vpop.f32.mrf.mxu0 }
 0x55e   :  { %v4270_v7 = vpop.f32.mrf.mxu3  ;;  %13622 = vst [vmem:[#allocation115_spill] sm:$0xff] %v11229_v5  ;;  %4848 = vmatpush.msrb.mxu2 %v4816_v19  ;;  %v3986_v19 = vadd.f32 %v10935_v1, %v10832_v63  ;;  %v4823_v63 = vld [vmem:[#allocation9 + $0x488] sm:$0xff]  ;;  %v3989_v1 = vadd.f32 %v10949_v55, %v10847_v27 }
 0x55f   :  { %v11233_v46 = vadd.f32 %v4270_v7, %v3980_v49  ;;  %v11235_v35 = vpop.f32.mrf.mxu2  ;;  %v3983_v49 = vadd.f32 %v10921_v56, %v10817_v9  ;;  %v11252_v9 = vld [vmem:[#allocation4 + $0xe4] sm:$0xff]  ;;  %4958 = vmatpush.msra.mxu3 %v4823_v63 }
 0x560   :  { %4538 = vmatmul.f32.gmra.mxu0 %v4431_v36  ;;  %4849 = vmatpush.msrb.mxu2 %v4814_v44  ;;  %v4808_v56 = vld [vmem:[#allocation9 + $0x410] sm:$0xff] }
 0x561   :  { %13623 = vst [vmem:[#allocation135_spill] sm:$0xff] %v11233_v46  ;;  %4651 = vmatmul.f32.gmra.mxu1 %v4431_v36  ;;  %v11249_v46 = vpop.f32.mrf.mxu1 }
 0x563   :  { %4320 = vmatmul.f32.gmra.mxu3 %v11158_v43  ;;  %4225 = vmatmul.f32.gmra.mxu2 %v11238_v26  ;;  %v4812_v43 = vld [vmem:[#allocation9 + $0x430] sm:$0xff] }
 0x564   :  { %4850 = vmatpush.msrb.mxu2 %v4812_v43  ;;  %v4806_v43 = vld [vmem:[#allocation9 + $0x400] sm:$0xff] }
 0x565   :  { %v11243_v7 = vpop.f32.mrf.mxu0 }
 0x566   :  { %v4273_v51 = vpop.f32.mrf.mxu3  ;;  %13624 = vst [vmem:[#allocation136_spill] sm:$0xff] %v11243_v7  ;;  %4851 = vmatpush.msrb.mxu2 %v4810_v20 }
 0x567   :  { %v11245_v5 = vadd.f32 %v4273_v51, %v3983_v49  ;;  %v11247_v36 = vpop.f32.mrf.mxu2 }
 0x568   :  { %4541 = vmatmul.f32.gmra.mxu0 %v4432_v28  ;;  %4852 = vmatpush.msrb.mxu2 %v4808_v56 }
 0x569   :  { %13625 = vst [vmem:[#allocation28_spill] sm:$0xff] %v11245_v5  ;;  %4654 = vmatmul.f32.gmra.mxu1 %v4432_v28  ;;  %v4433_v28 = vld [vmem:[#allocation4 + $0x7e] sm:$0xff]  ;;  %v11266_v5 = vld [vmem:[#allocation4 + $0xec] sm:$0xff] }
 0x56a   :  { %4853 = vmatpush.msrb.mxu2 %v4806_v43  ;;  %v4434_v43 = vld [vmem:[#allocation4 + $0x86] sm:$0xff] }
 0x56b   :  { %4323 = vmatmul.f32.gmra.mxu3 %v11170_v13  ;;  %4228 = vmatmul.f32.gmra.mxu2 %v11252_v9  ;;  %v11263_v13 = vpop.f32.mrf.mxu1 }
 0x56d   :  { %v11257_v49 = vpop.f32.mrf.mxu0 }
 0x56e   :  { %v4276_v44 = vpop.f32.mrf.mxu3  ;;  %13626 = vst [vmem:[#allocation22_spill] sm:$0xff] %v11257_v49  ;;  %v4435_v49 = vld [vmem:[#allocation4 + $0x8e] sm:$0xff] }
 0x56f   :  { %v11259_v51 = vadd.f32 %v4276_v44, %v3986_v19  ;;  %v11261_v7 = vpop.f32.mrf.mxu2 }
 0x570   :  { %4544 = vmatmul.f32.gmra.mxu0 %v4433_v28 }
 0x571   :  { %4657 = vmatmul.f32.gmra.mxu1 %v4433_v28  ;;  %v3992_v28 = vadd.f32 %v10963_v59, %v10861_v18  ;;  %v3995_v18 = vadd.f32 %v10977_v52, %v10875_v38  ;;  %v3998_v52 = vadd.f32 %v10991_v39, %v10889_v25  ;;  %v4819_v38 = vld [vmem:[#allocation9 + $0x468] sm:$0xff]  ;;  %v11320_v25 = vld [vmem:[#allocation4 + $0x10] sm:$0xff]  ;;  %v4813_v39 = vld [vmem:[#allocation9 + $0x438] sm:$0xff] }
 0x573   :  { %4326 = vmatmul.f32.gmra.mxu3 %v11184_v50  ;;  %4231 = vmatmul.f32.gmra.mxu2 %v11266_v5  ;;  %v11278_v50 = vld [vmem:[#allocation4 + $0xf4] sm:$0xff]  ;;  %v11283_v27 = vpop.f32.mrf.mxu1 }
 0x575   :  { %v11271_v56 = vpop.f32.mrf.mxu0 }
 0x576   :  { %v4279_v20 = vpop.f32.mrf.mxu3 }
 0x577   :  { %v11273_v19 = vadd.f32 %v4279_v20, %v3989_v1  ;;  %v11275_v44 = vpop.f32.mrf.mxu2 }
 0x578   :  { %4547 = vmatmul.f32.gmra.mxu0 %v4434_v43 }
 0x579   :  { %13627 = vst [vmem:[#allocation47_spill] sm:$0xff] %v11273_v19  ;;  %4660 = vmatmul.f32.gmra.mxu1 %v4434_v43  ;;  %v4821_v43 = vld [vmem:[#allocation9 + $0x478] sm:$0xff] }
 0x57a   :  { %4959 = vmatpush.msra.mxu3 %v4821_v43 }
 0x57b   :  { %4329 = vmatmul.f32.gmra.mxu3 %v11198_v22  ;;  %4234 = vmatmul.f32.gmra.mxu2 %v11278_v50  ;;  %v11292_v22 = vld [vmem:[#allocation4 + $0xfc] sm:$0xff] }
 0x57c   :  { %4960 = vmatpush.msra.mxu3 %v4819_v38  ;;  %v4811_v38 = vld [vmem:[#allocation9 + $0x428] sm:$0xff] }
 0x57d   :  { %v11285_v63 = vpop.f32.mrf.mxu0 }
 0x57e   :  { %v4282_v55 = vpop.f32.mrf.mxu3 }
 0x57f   :  { %v11287_v1 = vadd.f32 %v4282_v55, %v3992_v28  ;;  %v11289_v20 = vpop.f32.mrf.mxu2  ;;  %v11299_v28 = vpop.f32.mrf.mxu1 }
 0x580   :  { %13629 = vst [vmem:[#allocation29_spill] sm:$0xff] %v11289_v20  ;;  %4550 = vmatmul.f32.gmra.mxu0 %v4435_v49 }
 0x581   :  { %13628 = vst [vmem:[#allocation76_spill] sm:$0xff] %v11287_v1  ;;  %4663 = vmatmul.f32.gmra.mxu1 %v4435_v49  ;;  %v4436_v49 = vld [vmem:[#allocation4 + $0x96] sm:$0xff] }
 0x583   :  { %4332 = vmatmul.f32.gmra.mxu3 %v11210_v11  ;;  %4237 = vmatmul.f32.gmra.mxu2 %v11292_v22  ;;  %v11306_v11 = vld [vmem:[#allocation4 + $0x8] sm:$0xff] }
 0x585   :  { %v11297_v19 = vpop.f32.mrf.mxu0 }
 0x586   :  { %v4285_v59 = vpop.f32.mrf.mxu3 }
 0x587   :  { %v11301_v55 = vadd.f32 %v4285_v59, %v3995_v18  ;;  %v11303_v1 = vpop.f32.mrf.mxu2 }
 0x588   :  { %13631 = vst [vmem:[#allocation137_spill] sm:$0xff] %v11303_v1  ;;  %4553 = vmatmul.f32.gmra.mxu0 %v4436_v49  ;;  %v11317_v1 = vpop.f32.mrf.mxu1 }
 0x589   :  { %13630 = vst [vmem:[#allocation118_spill] sm:$0xff] %v11301_v55  ;;  %4666 = vmatmul.f32.gmra.mxu1 %v4436_v49  ;;  %v4817_v55 = vld [vmem:[#allocation9 + $0x458] sm:$0xff]  ;;  %v4437_v49 = vld [vmem:[#allocation4 + $0x9e] sm:$0xff] }
 0x58a   :  { %4961 = vmatpush.msra.mxu3 %v4817_v55 }
 0x58b   :  { %4335 = vmatmul.f32.gmra.mxu3 %v11224_v60  ;;  %4854 = vmatmul.f32.vlgmr.msrb.gmra.mxu2 %v11306_v11  ;;  %v4815_v60 = vld [vmem:[#allocation9 + $0x448] sm:$0xff] }
 0x58c   :  { %4962 = vmatpush.msra.mxu3 %v4815_v60  ;;  %v4809_v60 = vld [vmem:[#allocation9 + $0x418] sm:$0xff] }
 0x58d   :  { %v11311_v20 = vpop.f32.mrf.mxu0 }
 0x58e   :  { %v4288_v43 = vpop.f32.mrf.mxu3  ;;  %4963 = vmatpush.msra.mxu3 %v4813_v39 }
 0x58f   :  { %v11313_v18 = vadd.f32 %v4288_v43, %v3998_v52  ;;  %v11315_v59 = vpop.f32.mrf.mxu2  ;;  %v4001_v52 = vadd.f32 %v11005_v8, %v10903_v14  ;;  %v11334_v14 = vld [vmem:[#allocation4 + $0x18] sm:$0xff]  ;;  %v5798_v8 = vld [vmem:[#allocation11 + $0x78] sm:$0xff] }
 0x590   :  { %13633 = vst [vmem:[#allocation30_spill] sm:$0xff] %v11315_v59  ;;  %4556 = vmatmul.f32.gmra.mxu0 %v4437_v49  ;;  %4964 = vmatpush.msra.mxu3 %v4811_v38  ;;  %v4807_v59 = vld [vmem:[#allocation9 + $0x408] sm:$0xff]  ;;  %v11331_v39 = vpop.f32.mrf.mxu1 }
 0x591   :  { %13632 = vst [vmem:[#allocation138_spill] sm:$0xff] %v11313_v18  ;;  %4669 = vmatmul.f32.gmra.mxu1 %v4437_v49  ;;  %5815 = vmatpush.msra.mxu0 %v5798_v8  ;;  %v4007_v8 = vadd.f32 %v11033_v24, %v10931_v30  ;;  %v4010_v30 = vadd.f32 %v11044_v0, %v10945_v31 }
 0x592   :  { %4965 = vmatpush.msra.mxu3 %v4809_v60  ;;  %v4013_v31 = vadd.f32 %v11058_v42, %v10959_v6  ;;  %v4016_v6 = vadd.f32 %v11072_v33, %v10973_v62  ;;  %v4019_v62 = vadd.f32 %v11084_v40, %v10987_v32  ;;  %v4022_v32 = vadd.f32 %v11096_v58, %v11001_v48 }
 0x593   :  { %4338 = vmatmul.f32.gmra.mxu3 %v11238_v26  ;;  %4857 = vmatmul.f32.gmra.mxu2 %v11320_v25  ;;  %v4438_v26 = vld [vmem:[#allocation4 + $0xa6] sm:$0xff]  ;;  %v4025_v58 = vadd.f32 %v11108_v23, %v11015_v12  ;;  %v4028_v23 = vadd.f32 %v11121_v61, %v11029_v53  ;;  %v4031_v61 = vadd.f32 %v11133_v34, %v11040_v16 }
 0x594   :  { %4966 = vmatpush.msra.mxu3 %v4807_v59  ;;  %v4439_v59 = vld [vmem:[#allocation4 + $0xae] sm:$0xff]  ;;  %v4034_v16 = vadd.f32 %v11149_v37, %v11054_v4  ;;  %v4037_v4 = vadd.f32 %v11165_v15, %v11068_v47 }
 0x595   :  { %v11325_v55 = vpop.f32.mrf.mxu0  ;;  %v5790_v37 = vld [vmem:[#allocation11 + $0x38] sm:$0xff]  ;;  %v13661_v15 = vld [vmem:[#allocation65_spill] sm:$0xff] }
 0x596   :  { %v4291_v43 = vpop.f32.mrf.mxu3  ;;  %v5786_v47 = vld [vmem:[#allocation11 + $0x18] sm:$0xff] }
 0x597   :  { %v11327_v18 = vadd.f32 %v4291_v43, %v4001_v52  ;;  %v11329_v49 = vpop.f32.mrf.mxu2  ;;  %v4004_v52 = vadd.f32 %v11019_v21, %v10917_v45 }
 0x598   :  { %13635 = vst [vmem:[#allocation50_spill] sm:$0xff] %v11329_v49  ;;  %4559 = vmatmul.f32.gmra.mxu0 %v4438_v26  ;;  %v11351_v45 = vpop.f32.mrf.mxu1  ;;  %v13677_v49 = vld [vmem:[#allocation102_spill] sm:$0xff] }
 0x599   :  { %13634 = vst [vmem:[#allocation23_spill] sm:$0xff] %v11327_v18  ;;  %4672 = vmatmul.f32.gmra.mxu1 %v4438_v26 }
 0x59b   :  { %4341 = vmatmul.f32.gmra.mxu3 %v11252_v9  ;;  %4860 = vmatmul.f32.gmra.mxu2 %v11334_v14  ;;  %v11346_v9 = vld [vmem:[#allocation4 + $0x20] sm:$0xff] }
 0x59d   :  { %v11339_v43 = vpop.f32.mrf.mxu0 }
 0x59e   :  { %v4294_v38 = vpop.f32.mrf.mxu3 }
 0x59f   :  { %v11341_v60 = vadd.f32 %v4294_v38, %v4004_v52  ;;  %v11343_v26 = vpop.f32.mrf.mxu2 }
 0x5a0   :  { %13637 = vst [vmem:[#allocation32_spill] sm:$0xff] %v11343_v26  ;;  %4562 = vmatmul.f32.gmra.mxu0 %v4439_v59 }
 0x5a1   :  { %13636 = vst [vmem:[#allocation77_spill] sm:$0xff] %v11341_v60  ;;  %4675 = vmatmul.f32.gmra.mxu1 %v4439_v59  ;;  %v4440_v60 = vld [vmem:[#allocation4 + $0xb6] sm:$0xff]  ;;  %v5797_v59 = vld [vmem:[#allocation11 + $0x70] sm:$0xff] }
 0x5a2   :  { %5816 = vmatpush.msra.mxu0 %v5797_v59 }
 0x5a3   :  { %4344 = vmatmul.f32.gmra.mxu3 %v11266_v5  ;;  %4863 = vmatmul.f32.gmra.mxu2 %v11346_v9  ;;  %v11360_v5 = vld [vmem:[#allocation4 + $0x28] sm:$0xff] }
 0x5a5   :  { %v11353_v18 = vpop.f32.mrf.mxu0 }
 0x5a6   :  { %v4297_v21 = vpop.f32.mrf.mxu3 }
 0x5a7   :  { %v11355_v52 = vadd.f32 %v4297_v21, %v4007_v8  ;;  %v11357_v38 = vpop.f32.mrf.mxu2  ;;  %v11367_v8 = vpop.f32.mrf.mxu1 }
 0x5a8   :  { %13639 = vst [vmem:[#allocation139_spill] sm:$0xff] %v11357_v38  ;;  %4565 = vmatmul.f32.gmra.mxu0 %v4440_v60 }
 0x5a9   :  { %13638 = vst [vmem:[#allocation121_spill] sm:$0xff] %v11355_v52  ;;  %4678 = vmatmul.f32.gmra.mxu1 %v4440_v60  ;;  %v4441_v60 = vld [vmem:[#allocation4 + $0xbe] sm:$0xff] }
 0x5ab   :  { %4347 = vmatmul.f32.gmra.mxu3 %v11278_v50  ;;  %4866 = vmatmul.f32.gmra.mxu2 %v11360_v5  ;;  %v11374_v50 = vld [vmem:[#allocation4 + $0x30] sm:$0xff] }
 0x5ad   :  { %v11365_v26 = vpop.f32.mrf.mxu0 }
 0x5ae   :  { %v4300_v24 = vpop.f32.mrf.mxu3 }
 0x5af   :  { %v11369_v21 = vadd.f32 %v4300_v24, %v4010_v30  ;;  %v11371_v52 = vpop.f32.mrf.mxu2  ;;  %v4442_v24 = vld [vmem:[#allocation4 + $0xc6] sm:$0xff] }
 0x5b0   :  { %13641 = vst [vmem:[#allocation31_spill] sm:$0xff] %v11371_v52  ;;  %4568 = vmatmul.f32.gmra.mxu0 %v4441_v60  ;;  %v13671_v52 = vld [vmem:[#allocation49_spill] sm:$0xff] }
 0x5b1   :  { %13640 = vst [vmem:[#allocation140_spill] sm:$0xff] %v11369_v21  ;;  %4681 = vmatmul.f32.gmra.mxu1 %v4441_v60  ;;  %v11385_v21 = vpop.f32.mrf.mxu1  ;;  %v5796_v60 = vld [vmem:[#allocation11 + $0x68] sm:$0xff] }
 0x5b2   :  { %5817 = vmatpush.msra.mxu0 %v5796_v60 }
 0x5b3   :  { %4350 = vmatmul.f32.gmra.mxu3 %v11292_v22  ;;  %4869 = vmatmul.f32.gmra.mxu2 %v11374_v50  ;;  %v11388_v22 = vld [vmem:[#allocation4 + $0x38] sm:$0xff] }
 0x5b5   :  { %v11379_v59 = vpop.f32.mrf.mxu0 }
 0x5b6   :  { %v4303_v0 = vpop.f32.mrf.mxu3 }
 0x5b7   :  { %v11381_v38 = vadd.f32 %v4303_v0, %v4013_v31  ;;  %v11383_v30 = vpop.f32.mrf.mxu2 }
 0x5b8   :  { %13643 = vst [vmem:[#allocation53_spill] sm:$0xff] %v11383_v30  ;;  %4571 = vmatmul.f32.gmra.mxu0 %v4442_v24  ;;  %v4443_v30 = vld [vmem:[#allocation4 + $0xce] sm:$0xff] }
 0x5b9   :  { %13642 = vst [vmem:[#allocation24_spill] sm:$0xff] %v11381_v38  ;;  %4684 = vmatmul.f32.gmra.mxu1 %v4442_v24  ;;  %v11402_v24 = vld [vmem:[#allocation4 + $0x40] sm:$0xff] }
 0x5bb   :  { %4967 = vmatmul.f32.vlgmr.msra.gmra.mxu3 %v11306_v11  ;;  %4872 = vmatmul.f32.gmra.mxu2 %v11388_v22  ;;  %v11399_v11 = vpop.f32.mrf.mxu1 }
 0x5bd   :  { %v11393_v31 = vpop.f32.mrf.mxu0 }
 0x5be   :  { %v4306_v42 = vpop.f32.mrf.mxu3 }
 0x5bf   :  { %v11395_v0 = vadd.f32 %v4306_v42, %v4016_v6  ;;  %v11397_v38 = vpop.f32.mrf.mxu2 }
 0x5c0   :  { %13645 = vst [vmem:[#allocation35_spill] sm:$0xff] %v11397_v38  ;;  %4574 = vmatmul.f32.gmra.mxu0 %v4443_v30  ;;  %v5783_v38 = vld [vmem:[#allocation11] sm:$0xff] }
 0x5c1   :  { %13644 = vst [vmem:[#allocation86_spill] sm:$0xff] %v11395_v0  ;;  %4687 = vmatmul.f32.gmra.mxu1 %v4443_v30  ;;  %v4444_v0 = vld [vmem:[#allocation4 + $0xd6] sm:$0xff] }
 0x5c2   :  { %v5795_v30 = vld [vmem:[#allocation11 + $0x60] sm:$0xff] }
 0x5c3   :  { %4970 = vmatmul.f32.gmra.mxu3 %v11320_v25  ;;  %4875 = vmatmul.f32.gmra.mxu2 %v11402_v24  ;;  %v11414_v25 = vld [vmem:[#allocation4 + $0x48] sm:$0xff]  ;;  %v11419_v40 = vpop.f32.mrf.mxu1 }
 0x5c4   :  { %5818 = vmatpush.msra.mxu0 %v5795_v30 }
 0x5c5   :  { %v11407_v60 = vpop.f32.mrf.mxu0 }
 0x5c6   :  { %v4309_v33 = vpop.f32.mrf.mxu3 }
 0x5c7   :  { %v11409_v6 = vadd.f32 %v4309_v33, %v4019_v62  ;;  %v11411_v42 = vpop.f32.mrf.mxu2 }
 0x5c8   :  { %13647 = vst [vmem:[#allocation142_spill] sm:$0xff] %v11411_v42  ;;  %4577 = vmatmul.f32.gmra.mxu0 %v4444_v0 }
 0x5c9   :  { %13646 = vst [vmem:[#allocation124_spill] sm:$0xff] %v11409_v6  ;;  %4690 = vmatmul.f32.gmra.mxu1 %v4444_v0  ;;  %v4445_v0 = vld [vmem:[#allocation4 + $0xde] sm:$0xff] }
 0x5cb   :  { %4973 = vmatmul.f32.gmra.mxu3 %v11334_v14  ;;  %4878 = vmatmul.f32.gmra.mxu2 %v11414_v25  ;;  %v11428_v14 = vld [vmem:[#allocation4 + $0x50] sm:$0xff]  ;;  %v11433_v30 = vpop.f32.mrf.mxu1 }
 0x5cd   :  { %v11425_v42 = vpop.f32.mrf.mxu0 }
 0x5ce   :  { %v4312_v62 = vpop.f32.mrf.mxu3 }
 0x5cf   :  { %v11421_v33 = vadd.f32 %v4312_v62, %v4022_v32  ;;  %v11423_v6 = vpop.f32.mrf.mxu2 }
 0x5d0   :  { %13649 = vst [vmem:[#allocation78_spill] sm:$0xff] %v11423_v6  ;;  %4580 = vmatmul.f32.gmra.mxu0 %v4445_v0  ;;  %v5794_v6 = vld [vmem:[#allocation11 + $0x58] sm:$0xff] }
 0x5d1   :  { %13648 = vst [vmem:[#allocation143_spill] sm:$0xff] %v11421_v33  ;;  %4693 = vmatmul.f32.gmra.mxu1 %v4445_v0  ;;  %v4446_v33 = vld [vmem:[#allocation4 + $0xe6] sm:$0xff]  ;;  %5819 = vmatpush.msra.mxu0 %v5794_v6 }
 0x5d3   :  { %4976 = vmatmul.f32.gmra.mxu3 %v11346_v9  ;;  %4881 = vmatmul.f32.gmra.mxu2 %v11428_v14  ;;  %v11442_v9 = vld [vmem:[#allocation4 + $0x58] sm:$0xff] }
 0x5d5   :  { %v11439_v0 = vpop.f32.mrf.mxu0 }
 0x5d6   :  { %v4315_v48 = vpop.f32.mrf.mxu3 }
 0x5d7   :  { %v11435_v32 = vadd.f32 %v4315_v48, %v4025_v58  ;;  %v11437_v62 = vpop.f32.mrf.mxu2 }
 0x5d8   :  { %13651 = vst [vmem:[#allocation56_spill] sm:$0xff] %v11437_v62  ;;  %4583 = vmatmul.f32.gmra.mxu0 %v4446_v33 }
 0x5d9   :  { %13650 = vst [vmem:[#allocation25_spill] sm:$0xff] %v11435_v32  ;;  %4696 = vmatmul.f32.gmra.mxu1 %v4446_v33  ;;  %v4447_v32 = vld [vmem:[#allocation4 + $0xee] sm:$0xff]  ;;  %v11451_v33 = vpop.f32.mrf.mxu1 }
 0x5db   :  { %4979 = vmatmul.f32.gmra.mxu3 %v11360_v5  ;;  %4884 = vmatmul.f32.gmra.mxu2 %v11442_v9  ;;  %v11454_v5 = vld [vmem:[#allocation4 + $0x60] sm:$0xff] }
 0x5dd   :  { %v11456_v62 = vpop.f32.mrf.mxu0 }
 0x5de   :  { %v4318_v12 = vpop.f32.mrf.mxu3 }
 0x5df   :  { %v11447_v58 = vadd.f32 %v4318_v12, %v4028_v23  ;;  %v11449_v48 = vpop.f32.mrf.mxu2  ;;  %v4448_v12 = vld [vmem:[#allocation4 + $0xf6] sm:$0xff] }
 0x5e0   :  { %13653 = vst [vmem:[#allocation38_spill] sm:$0xff] %v11449_v48  ;;  %4586 = vmatmul.f32.gmra.mxu0 %v4447_v32  ;;  %v11480_v48 = vld [vmem:[#allocation4 + $0x70] sm:$0xff] }
 0x5e1   :  { %13652 = vst [vmem:[#allocation33_spill] sm:$0xff] %v11447_v58  ;;  %4699 = vmatmul.f32.gmra.mxu1 %v4447_v32  ;;  %v11465_v32 = vpop.f32.mrf.mxu1  ;;  %v5793_v58 = vld [vmem:[#allocation11 + $0x50] sm:$0xff] }
 0x5e2   :  { %5820 = vmatpush.msra.mxu0 %v5793_v58 }
 0x5e3   :  { %4982 = vmatmul.f32.gmra.mxu3 %v11374_v50  ;;  %4887 = vmatmul.f32.gmra.mxu2 %v11454_v5  ;;  %v11468_v50 = vld [vmem:[#allocation4 + $0x68] sm:$0xff] }
 0x5e5   :  { %v11473_v34 = vpop.f32.mrf.mxu0 }
 0x5e6   :  { %v4321_v53 = vpop.f32.mrf.mxu3 }
 0x5e7   :  { %v11461_v6 = vadd.f32 %v4321_v53, %v4031_v61  ;;  %v11463_v23 = vpop.f32.mrf.mxu2 }
 0x5e8   :  { %13655 = vst [vmem:[#allocation145_spill] sm:$0xff] %v11463_v23  ;;  %4589 = vmatmul.f32.gmra.mxu0 %v4448_v12  ;;  %v5792_v23 = vld [vmem:[#allocation11 + $0x48] sm:$0xff] }
 0x5e9   :  { %13654 = vst [vmem:[#allocation127_spill] sm:$0xff] %v11461_v6  ;;  %4702 = vmatmul.f32.gmra.mxu1 %v4448_v12  ;;  %v4449_v12 = vld [vmem:[#allocation4 + $0xfe] sm:$0xff]  ;;  %5821 = vmatpush.msra.mxu0 %v5792_v23  ;;  %v11485_v58 = vpop.f32.mrf.mxu1 }
 0x5ea   :  { %13658 = vst [vmem:[#allocation59_spill] sm:$0xff] %v11485_v58 }
 0x5eb   :  { %4985 = vmatmul.f32.gmra.mxu3 %v11388_v22  ;;  %4890 = vmatmul.f32.gmra.mxu2 %v11468_v50  ;;  %v5791_v22 = vld [vmem:[#allocation11 + $0x40] sm:$0xff] }
 0x5ec   :  { %5822 = vmatpush.msra.mxu0 %v5791_v22  ;;  %v11494_v22 = vld [vmem:[#allocation4 + $0x78] sm:$0xff] }
 0x5ee   :  { %v4324_v61 = vpop.f32.mrf.mxu3  ;;  %5823 = vmatpush.msra.mxu0 %v5790_v37  ;;  %v4040_v37 = vadd.f32 %v11181_v2, %v13661_v15  ;;  %v6057_v2 = vld [vmem:[#allocation11 + $0x178] sm:$0xff] }
 0x5ef   :  { %v11475_v53 = vadd.f32 %v4324_v61, %v4034_v16  ;;  %v11477_v6 = vpop.f32.mrf.mxu2  ;;  %v5789_v61 = vld [vmem:[#allocation11 + $0x30] sm:$0xff]  ;;  %v6073_v15 = vld [vmem:[#allocation11 + $0x1f8] sm:$0xff]  ;;  %6074 = vmatpush.msra.mxu2 %v6057_v2 }
 0x5f0   :  { %13657 = vst [vmem:[#allocation26_spill] sm:$0xff] %v11477_v6  ;;  %4592 = vmatmul.f32.gmra.mxu0 %v4449_v12  ;;  %v5787_v6 = vld [vmem:[#allocation11 + $0x20] sm:$0xff]  ;;  %6187 = vmatpush.msrb.mxu3 %v6073_v15  ;;  %v11522_v15 = vld [vmem:[#allocation4 + $0x88] sm:$0xff] }
 0x5f1   :  { %13656 = vst [vmem:[#allocation146_spill] sm:$0xff] %v11475_v53  ;;  %4705 = vmatmul.f32.gmra.mxu1 %v4449_v12  ;;  %v11491_v12 = vpop.f32.mrf.mxu0  ;;  %5824 = vmatpush.msra.mxu0 %v5789_v61 }
 0x5f3   :  { %4988 = vmatmul.f32.gmra.mxu3 %v11402_v24  ;;  %4893 = vmatmul.f32.gmra.mxu2 %v11480_v48  ;;  %v5788_v24 = vld [vmem:[#allocation11 + $0x28] sm:$0xff] }
 0x5f4   :  { %5825 = vmatpush.msra.mxu0 %v5788_v24 }
 0x5f6   :  { %v4327_v16 = vpop.f32.mrf.mxu3  ;;  %5826 = vmatpush.msra.mxu0 %v5787_v6  ;;  %v11508_v6 = vld [vmem:[#allocation4 + $0x80] sm:$0xff] }
 0x5f7   :  { %v11487_v53 = vadd.f32 %v4327_v16, %v4037_v4  ;;  %v11489_v23 = vpop.f32.mrf.mxu2  ;;  %v5785_v16 = vld [vmem:[#allocation11 + $0x10] sm:$0xff] }
 0x5f8   :  { %13660 = vst [vmem:[#allocation130_spill] sm:$0xff] %v11489_v23  ;;  %5827 = vmatpush.msra.mxu0 %v5786_v47  ;;  %v13666_v47 = vld [vmem:[#allocation66_spill] sm:$0xff] }
 0x5f9   :  { %13659 = vst [vmem:[#allocation41_spill] sm:$0xff] %v11487_v53  ;;  %v11499_v53 = vpop.f32.mrf.mxu1  ;;  %v11505_v23 = vpop.f32.mrf.mxu0 }
 0x5fa   :  { %13662 = vst [vmem:[#allocation147_spill] sm:$0xff] %v11499_v53  ;;  %5828 = vmatpush.msra.mxu0 %v5785_v16 }
 0x5fb   :  { %4991 = vmatmul.f32.gmra.mxu3 %v11414_v25  ;;  %4896 = vmatmul.f32.gmra.mxu2 %v11494_v22  ;;  %v5784_v25 = vld [vmem:[#allocation11 + $0x8] sm:$0xff]  ;;  %13665 = vst [vmem:[#allocation89_spill] sm:$0xff] %v11505_v23 }
 0x5fc   :  { %5829 = vmatpush.msra.mxu0 %v5784_v25  ;;  %v5814_v25 = vld [vmem:[#allocation11 + $0xf8] sm:$0xff] }
 0x5fd   :  { %5928 = vmatpush.msra.mxu1 %v5814_v25 }
 0x5fe   :  { %v4330_v4 = vpop.f32.mrf.mxu3  ;;  %5830 = vmatpush.msra.mxu0 %v5783_v38  ;;  %v13672_v38 = vld [vmem:[#allocation68_spill] sm:$0xff] }
 0x5ff   :  { %v11501_v61 = vadd.f32 %v4330_v4, %v4040_v37  ;;  %v11503_v24 = vpop.f32.mrf.mxu2  ;;  %v4043_v37 = vadd.f32 %v11195_v57, %v13666_v47  ;;  %v11527_v57 = vld [vmem:[%s13221_s5] sm:$0x3] }
 0x600   :  { %13664 = vst [vmem:[#allocation34_spill] sm:$0xff] %v11503_v24 }
 0x601   :  { %13663 = vst [vmem:[#allocation149_spill] sm:$0xff] %v11501_v61  ;;  %v11517_v24 = vpop.f32.mrf.mxu1  ;;  %v11530_v47 = vpop.f32.mrf.mxu0 }
 0x602   :  { %13669 = vst [vmem:[#allocation36_spill] sm:$0xff] %v11517_v24  ;;  %v13676_v24 = vld [vmem:[#allocation94_spill] sm:$0xff] }
 0x603   :  { %4994 = vmatmul.f32.gmra.mxu3 %v11428_v14  ;;  %4899 = vmatmul.f32.gmra.mxu2 %v11508_v6  ;;  %v13670_v14 = vld [vmem:[#allocation40_spill] sm:$0xff]  ;;  %13673 = vst [vmem:[#allocation91_spill] sm:$0xff] %v11530_v47 }
 0x604   :  { %v3855_v53 = vadd.f32 %v13671_v52, %v13670_v14 }
 0x606   :  { %v4333_v4 = vpop.f32.mrf.mxu3  ;;  %v4354_v2 = vadd.f32 %v13672_v38, %v3855_v53  ;;  %v3858_v53 = vadd.f32 %v13677_v49, %v13676_v24 }
 0x607   :  { %v11513_v16 = vadd.f32 %v4333_v4, %v4043_v37  ;;  %v11515_v61 = vpop.f32.mrf.mxu2  ;;  %v13674_v37 = vld [vmem:[#allocation122_spill] sm:$0xff] }
 0x608   :  { %13668 = vst [vmem:[#allocation79_spill] sm:$0xff] %v11515_v61  ;;  %v4046_v4 = vadd.f32 %v11215_v54, %v13674_v37  ;;  %v4709_v52 = vadd.f32 %v11271_v56, %v4354_v2  ;;  %v11547_v54 = vld [vmem:[#allocation4 + $0x90] sm:$0xff]  ;;  %v6056_v56 = vld [vmem:[#allocation11 + $0x170] sm:$0xff] }
 0x609   :  { %13667 = vst [vmem:[#allocation88_spill] sm:$0xff] %v11513_v16  ;;  %v11544_v47 = vpop.f32.mrf.mxu1  ;;  %v6072_v2 = vld [vmem:[#allocation11 + $0x1f0] sm:$0xff]  ;;  %v13679_v37 = vld [vmem:[#allocation125_spill] sm:$0xff]  ;;  %6075 = vmatpush.msra.mxu2 %v6056_v56  ;;  %v11554_v24 = vpop.f32.mrf.mxu0  ;;  %v5810_v56 = vld [vmem:[#allocation11 + $0xd8] sm:$0xff] }
 0x60a   :  { %13678 = vst [vmem:[#allocation39_spill] sm:$0xff] %v11544_v47  ;;  %v4356_v23 = vadd.f32 %v13679_v37, %v3858_v53  ;;  %6188 = vmatpush.msrb.mxu3 %v6072_v2  ;;  %v5811_v37 = vld [vmem:[#allocation11 + $0xe0] sm:$0xff]  ;;  %v13683_v2 = vld [vmem:[#allocation95_spill] sm:$0xff] }
 0x60b   :  { %4997 = vmatmul.f32.gmra.mxu3 %v11442_v9  ;;  %4902 = vmatmul.f32.gmra.mxu2 %v11522_v15  ;;  %v11537_v9 = vperm.slane %v11527_v57, 0  ;;  %13681 = vst [vmem:[#allocation92_spill] sm:$0xff] %v11554_v24 }
 0x60e   :  { %v4336_v25 = vpop.f32.mrf.mxu3 }
 0x60f   :  { %v11539_v14 = vadd.f32 %v4336_v25, %v4046_v4  ;;  %v4855_v16 = vpop.f32.mrf.mxu2  ;;  %v13680_v4 = vld [vmem:[#allocation103_spill] sm:$0xff] }
 0x610   :  { %v5064_v61 = vadd.f32 %v4855_v16, %v4709_v52  ;;  %v5813_v16 = vld [vmem:[#allocation11 + $0xf0] sm:$0xff]  ;;  %v4049_v49 = vadd.f32 %v11231_v41, %v13680_v4  ;;  %v5812_v52 = vld [vmem:[#allocation11 + $0xe8] sm:$0xff] }
 0x611   :  { %13675 = vst [vmem:[#allocation37_spill] sm:$0xff] %v11539_v14  ;;  %5929 = vmatpush.msra.mxu1 %v5813_v16  ;;  %v13684_v14 = vld [vmem:[#allocation51_spill] sm:$0xff] }
 0x612   :  { %v5134_v38 = vadd.f32 %v11537_v9, %v5064_v61  ;;  %v4711_v61 = vadd.f32 %v11285_v63, %v4356_v23  ;;  %v3861_v47 = vadd.f32 %v13684_v14, %v13683_v2  ;;  %v11562_v63 = vld [vmem:[#allocation4 + $0x98] sm:$0xff] }
 0x613   :  { %5000 = vmatmul.f32.gmra.mxu3 %v11454_v5  ;;  %4905 = vmatmul.f32.gmra.mxu2 %v11547_v54  ;;  %v13685_v23 = vld [vmem:[#allocation106_spill] sm:$0xff] }
 0x614   :  { %v5198_v58 = vmax.f32 %v5134_v38, 0.0  ;;  %5930 = vmatpush.msra.mxu1 %v5812_v52  ;;  %v4358_v16 = vadd.f32 %v13685_v23, %v3861_v47  ;;  %v11568_v52 = vpop.f32.mrf.mxu1  ;;  %v5808_v2 = vld [vmem:[#allocation11 + $0xc8] sm:$0xff] }
 0x615   :  { %13687 = vst [vmem:[#allocation65_spill] sm:$0xff] %v11568_v52  ;;  %v13691_v52 = vld [vmem:[#allocation52_spill] sm:$0xff] }
 0x616   :  { %v4339_v5 = vpop.f32.mrf.mxu3  ;;  %5262 = vst [vmem:[#allocation5 + $0x68] sm:$0xff] %v5198_v58  ;;  %5931 = vmatpush.msra.mxu1 %v5811_v37 }
 0x617   :  { %v11556_v25 = vadd.f32 %v4339_v5, %v4049_v49  ;;  %v4858_v53 = vpop.f32.mrf.mxu2  ;;  %v5809_v49 = vld [vmem:[#allocation11 + $0xd0] sm:$0xff] }
 0x618   :  { %v5066_v38 = vadd.f32 %v4858_v53, %v4711_v61  ;;  %5932 = vmatpush.msra.mxu1 %v5810_v56  ;;  %v13686_v61 = vld [vmem:[#allocation126_spill] sm:$0xff]  ;;  %v4713_v53 = vadd.f32 %v11297_v19, %v4358_v16 }
 0x619   :  { %13682 = vst [vmem:[#allocation80_spill] sm:$0xff] %v11556_v25  ;;  %v4052_v5 = vadd.f32 %v11249_v46, %v13686_v61  ;;  %v5807_v61 = vld [vmem:[#allocation11 + $0xc0] sm:$0xff] }
 0x61a   :  { %v5136_v41 = vadd.f32 %v11537_v9, %v5066_v38  ;;  %5933 = vmatpush.msra.mxu1 %v5809_v49  ;;  %v13690_v49 = vld [vmem:[#allocation42_spill] sm:$0xff] }
 0x61b   :  { %5003 = vmatmul.f32.gmra.mxu3 %v11468_v50  ;;  %4908 = vmatmul.f32.gmra.mxu2 %v11562_v63  ;;  %v3864_v19 = vadd.f32 %v13691_v52, %v13690_v49  ;;  %v6055_v52 = vld [vmem:[#allocation11 + $0x168] sm:$0xff] }
 0x61c   :  { %v5200_v4 = vmax.f32 %v5136_v41, 0.0  ;;  %5934 = vmatpush.msra.mxu1 %v5808_v2  ;;  %v11573_v41 = vpop.f32.mrf.mxu0  ;;  %6076 = vmatpush.msra.mxu2 %v6055_v52  ;;  %v5804_v49 = vld [vmem:[#allocation11 + $0xa8] sm:$0xff] }
 0x61d   :  { %v5392_v14 = vld [vmem:[#allocation5 + $0x68] sm:$0xfc]  ;;  %13689 = vst [vmem:[#allocation40_spill] sm:$0xff] %v11573_v41 }
 0x61e   :  { %v4342_v50 = vpop.f32.mrf.mxu3  ;;  %v5525_v38 = vrot.slane %v5392_v14, 2  ;;  %v5526_v37 = vrot.slane %v5200_v4, 2  ;;  %5935 = vmatpush.msra.mxu1 %v5807_v61  ;;  %v5806_v14 = vld [vmem:[#allocation11 + $0xb8] sm:$0xff] }
 0x61f   :  { %v11571_v56 = vadd.f32 %v4342_v50, %v4052_v5  ;;  %v4861_v47 = vpop.f32.mrf.mxu2  ;;  %v11582_v5 = vld [vmem:[#allocation4 + $0xa0] sm:$0xff]  ;;  %v13692_v50 = vld [vmem:[#allocation129_spill] sm:$0xff] }
 0x620   :  { %v5068_v23 = vadd.f32 %v4861_v47, %v4713_v53  ;;  %v5527_v46 = vsel %vm5524_vm3, %v5525_v38, %v5526_v37  ;;  %v4360_v53 = vadd.f32 %v13692_v50, %v3864_v19  ;;  %5936 = vmatpush.msra.mxu1 %v5806_v14  ;;  %v13693_v38 = vld [vmem:[#allocation71_spill] sm:$0xff] }
 0x621   :  { %13688 = vst [vmem:[#allocation66_spill] sm:$0xff] %v11571_v56  ;;  %v11576_v25 = vmax.f32 %v5198_v58, %v5527_v46  ;;  %v5805_v58 = vld [vmem:[#allocation11 + $0xb0] sm:$0xff]  ;;  %v4055_v47 = vadd.f32 %v11263_v13, %v13693_v38  ;;  %v6071_v46 = vld [vmem:[#allocation11 + $0x1e8] sm:$0xff]  ;;  %v11590_v56 = vpop.f32.mrf.mxu1  ;;  %v5803_v13 = vld [vmem:[#allocation11 + $0xa0] sm:$0xff] }
 0x622   :  { %v5138_v16 = vadd.f32 %v11537_v9, %v5068_v23  ;;  %v4715_v23 = vadd.f32 %v11311_v20, %v4360_v53  ;;  %6189 = vmatpush.msrb.mxu3 %v6071_v46  ;;  %13694 = vst [vmem:[#allocation49_spill] sm:$0xff] %v11590_v56  ;;  %5937 = vmatpush.msra.mxu1 %v5805_v58  ;;  %v13696_v38 = vld [vmem:[#allocation81_spill] sm:$0xff]  ;;  %v5802_v58 = vld [vmem:[#allocation11 + $0x98] sm:$0xff] }
 0x623   :  { %5006 = vmatmul.f32.gmra.mxu3 %v11480_v48  ;;  %5831 = vmatmul.f32.vlgmr.msra.gmra.mxu0 %v11576_v25  ;;  %v13697_v20 = vld [vmem:[#allocation105_spill] sm:$0xff] }
 0x624   :  { %v5202_v2 = vmax.f32 %v5138_v16, 0.0  ;;  %4911 = vmatmul.f32.gmra.mxu2 %v11582_v5  ;;  %5938 = vmatpush.msra.mxu1 %v5804_v49  ;;  %v3867_v53 = vadd.f32 %v13697_v20, %v13696_v38  ;;  %v11599_v24 = vpop.f32.mrf.mxu0  ;;  %v13698_v46 = vld [vmem:[#allocation73_spill] sm:$0xff]  ;;  %v5801_v49 = vld [vmem:[#allocation11 + $0x90] sm:$0xff]  ;;  %v5800_v20 = vld [vmem:[#allocation11 + $0x88] sm:$0xff] }
 0x626   :  { %v4345_v61 = vpop.f32.mrf.mxu3  ;;  %v5531_v48 = vrot.slane %v5202_v2, 2  ;;  %5939 = vmatpush.msra.mxu1 %v5803_v13 }
 0x627   :  { %v11592_v19 = vadd.f32 %v4345_v61, %v4055_v47  ;;  %v4864_v16 = vpop.f32.mrf.mxu2  ;;  %v11603_v47 = vld [vmem:[#allocation4 + $0xa8] sm:$0xff] }
 0x628   :  { %v5070_v14 = vadd.f32 %v4864_v16, %v4715_v23  ;;  %v5532_v50 = vsel %vm5524_vm3, %v5526_v37, %v5531_v48  ;;  %v4362_v37 = vadd.f32 %v13698_v46, %v3867_v53  ;;  %v13699_v23 = vld [vmem:[#allocation72_spill] sm:$0xff]  ;;  %5940 = vmatpush.msra.mxu1 %v5802_v58  ;;  %v5799_v46 = vld [vmem:[#allocation11 + $0x80] sm:$0xff] }
 0x629   :  { %13695 = vst [vmem:[#allocation68_spill] sm:$0xff] %v11592_v19  ;;  %v11595_v41 = vmax.f32 %v5200_v4, %v5532_v50  ;;  %v4058_v61 = vadd.f32 %v11283_v27, %v13699_v23  ;;  %v13701_v27 = vld [vmem:[#allocation43_spill] sm:$0xff]  ;;  %v13702_v23 = vld [vmem:[#allocation54_spill] sm:$0xff]  ;;  %v11622_v58 = vld [vmem:[#allocation4 + $0xb0] sm:$0xff] }
 0x62a   :  { %v5140_v52 = vadd.f32 %v11537_v9, %v5070_v14  ;;  %v4717_v16 = vadd.f32 %v11325_v55, %v4362_v37  ;;  %5941 = vmatpush.msra.mxu1 %v5801_v49  ;;  %v3870_v56 = vadd.f32 %v13702_v23, %v13701_v27  ;;  %v13703_v37 = vld [vmem:[#allocation74_spill] sm:$0xff] }
 0x62b   :  { %5009 = vmatmul.f32.gmra.mxu3 %v11494_v22  ;;  %5834 = vmatmul.f32.gmra.mxu0 %v11595_v41 }
 0x62c   :  { %v5204_v4 = vmax.f32 %v5140_v52, 0.0  ;;  %4914 = vmatmul.f32.gmra.mxu2 %v11603_v47  ;;  %v11614_v52 = vpop.f32.mrf.mxu1  ;;  %5942 = vmatpush.msra.mxu1 %v5800_v20 }
 0x62e   :  { %v4348_v14 = vpop.f32.mrf.mxu3  ;;  %v5535_v50 = vrot.slane %v5204_v4, 2  ;;  %5943 = vmatpush.msra.mxu1 %v5799_v46  ;;  %v13706_v46 = vld [vmem:[#allocation97_spill] sm:$0xff] }
 0x62f   :  { %v11611_v22 = vadd.f32 %v4348_v14, %v4058_v61  ;;  %v4867_v38 = vpop.f32.mrf.mxu2  ;;  %v11626_v61 = vpop.f32.mrf.mxu0  ;;  %v6054_v14 = vld [vmem:[#allocation11 + $0x160] sm:$0xff] }
 0x630   :  { %v5072_v19 = vadd.f32 %v4867_v38, %v4717_v16  ;;  %v5536_v53 = vsel %vm5524_vm3, %v5531_v48, %v5535_v50  ;;  %v4364_v48 = vadd.f32 %v13703_v37, %v3870_v56  ;;  %6077 = vmatpush.msra.mxu2 %v6054_v14  ;;  %v13707_v37 = vld [vmem:[#allocation55_spill] sm:$0xff] }
 0x631   :  { %13700 = vst [vmem:[#allocation122_spill] sm:$0xff] %v11611_v22  ;;  %v11616_v13 = vmax.f32 %v5202_v2, %v5536_v53  ;;  %v13704_v2 = vld [vmem:[#allocation131_spill] sm:$0xff]  ;;  %v3873_v22 = vadd.f32 %v13707_v37, %v13706_v46  ;;  %v13708_v46 = vld [vmem:[#allocation98_spill] sm:$0xff] }
 0x632   :  { %v5142_v55 = vadd.f32 %v11537_v9, %v5072_v19  ;;  %v4061_v16 = vadd.f32 %v11299_v28, %v13704_v2  ;;  %v6070_v19 = vld [vmem:[#allocation11 + $0x1e0] sm:$0xff]  ;;  %v4719_v38 = vadd.f32 %v11339_v43, %v4364_v48  ;;  %v11643_v43 = vld [vmem:[#allocation4 + $0xb8] sm:$0xff] }
 0x633   :  { %5012 = vmatmul.f32.gmra.mxu3 %v11508_v6  ;;  %5837 = vmatmul.f32.gmra.mxu0 %v11616_v13  ;;  %v4366_v48 = vadd.f32 %v11179_v17, %v3873_v22 }
 0x634   :  { %v5206_v49 = vmax.f32 %v5142_v55, 0.0  ;;  %4917 = vmatmul.f32.gmra.mxu2 %v11622_v58  ;;  %6190 = vmatpush.msrb.mxu3 %v6070_v19  ;;  %v11640_v2 = vpop.f32.mrf.mxu1 }
 0x635   :  { %v4721_v14 = vadd.f32 %v11353_v18, %v4366_v48  ;;  %v11664_v18 = vld [vmem:[#allocation4 + $0xc0] sm:$0xff] }
 0x636   :  { %v4351_v6 = vpop.f32.mrf.mxu3  ;;  %v5539_v20 = vrot.slane %v5206_v49, 2 }
 0x637   :  { %v11632_v53 = vadd.f32 %v4351_v6, %v4061_v16  ;;  %v4870_v56 = vpop.f32.mrf.mxu2  ;;  %v11654_v19 = vpop.f32.mrf.mxu0 }
 0x638   :  { %v5074_v27 = vadd.f32 %v4870_v56, %v4719_v38  ;;  %v5540_v23 = vsel %vm5524_vm3, %v5535_v50, %v5539_v20  ;;  %v11651_v50 = vperm.slane %v11527_v57, 1 }
 0x639   :  { %13705 = vst [vmem:[#allocation94_spill] sm:$0xff] %v11632_v53  ;;  %v11635_v55 = vmax.f32 %v5204_v4, %v5540_v23  ;;  %v4710_v4 = vadd.f32 %v11317_v1, %v11177_v3  ;;  %v13709_v3 = vld [vmem:[#allocation108_spill] sm:$0xff] }
 0x63a   :  { %v5144_v28 = vadd.f32 %v11537_v9, %v5074_v27  ;;  %v3876_v1 = vadd.f32 %v13709_v3, %v13708_v46 }
 0x63b   :  { %5015 = vmatmul.f32.gmra.mxu3 %v11522_v15  ;;  %5840 = vmatmul.f32.gmra.mxu0 %v11635_v55 }
 0x63c   :  { %v5208_v16 = vmax.f32 %v5144_v28, 0.0  ;;  %4920 = vmatmul.f32.gmra.mxu2 %v11643_v43  ;;  %v4368_v28 = vadd.f32 %v11193_v29, %v3876_v1  ;;  %v13711_v1 = vld [vmem:[#allocation45_spill] sm:$0xff] }
 0x63e   :  { %v4968_v15 = vpop.f32.mrf.mxu3  ;;  %v5543_v38 = vrot.slane %v5208_v16, 2 }
 0x63f   :  { %v5065_v6 = vadd.f32 %v4968_v15, %v4710_v4  ;;  %v4873_v56 = vpop.f32.mrf.mxu2  ;;  %v11671_v4 = vpop.f32.mrf.mxu1  ;;  %v6069_v15 = vld [vmem:[#allocation11 + $0x1d8] sm:$0xff] }
 0x640   :  { %v5076_v27 = vadd.f32 %v4873_v56, %v4721_v14  ;;  %v5544_v17 = vsel %vm5524_vm3, %v5539_v20, %v5543_v38  ;;  %v13710_v20 = vld [vmem:[#allocation133_spill] sm:$0xff]  ;;  %v6053_v14 = vld [vmem:[#allocation11 + $0x158] sm:$0xff]  ;;  %6191 = vmatpush.msrb.mxu3 %v6069_v15  ;;  %v11674_v29 = vpop.f32.mrf.mxu0 }
 0x641   :  { %v5135_v22 = vadd.f32 %v11651_v50, %v5065_v6  ;;  %v11658_v23 = vmax.f32 %v5206_v49, %v5544_v17  ;;  %v4712_v49 = vadd.f32 %v11331_v39, %v13710_v20  ;;  %v4723_v6 = vadd.f32 %v11365_v26, %v4368_v28  ;;  %6078 = vmatpush.msra.mxu2 %v6053_v14  ;;  %v11684_v14 = vld [vmem:[#allocation4 + $0xc8] sm:$0xff] }
 0x642   :  { %v5146_v57 = vadd.f32 %v11537_v9, %v5076_v27 }
 0x643   :  { %v5199_v37 = vmax.f32 %v5135_v22, 0.0  ;;  %5018 = vmatmul.f32.gmra.mxu3 %v11547_v54  ;;  %5843 = vmatmul.f32.gmra.mxu0 %v11658_v23 }
 0x644   :  { %v5210_v48 = vmax.f32 %v5146_v57, 0.0  ;;  %4923 = vmatmul.f32.gmra.mxu2 %v11664_v18  ;;  %v13712_v57 = vld [vmem:[#allocation57_spill] sm:$0xff] }
 0x645   :  { %5263 = vst [vmem:[#allocation5] sm:$0xff] %v5199_v37  ;;  %v3879_v20 = vadd.f32 %v13712_v57, %v13711_v1 }
 0x646   :  { %v4971_v54 = vpop.f32.mrf.mxu3  ;;  %v5547_v56 = vrot.slane %v5210_v48, 2 }
 0x647   :  { %v5067_v27 = vadd.f32 %v4971_v54, %v4712_v49  ;;  %v4876_v17 = vpop.f32.mrf.mxu2  ;;  %v4370_v49 = vadd.f32 %v11207_v10, %v3879_v20 }
 0x648   :  { %v5078_v22 = vadd.f32 %v4876_v17, %v4723_v6  ;;  %v5548_v46 = vsel %vm5524_vm3, %v5543_v38, %v5547_v56 }
 0x649   :  { %v5137_v39 = vadd.f32 %v11651_v50, %v5067_v27  ;;  %v11678_v3 = vmax.f32 %v5208_v16, %v5548_v46  ;;  %v13713_v16 = vld [vmem:[#allocation21_spill] sm:$0xff]  ;;  %v4725_v17 = vadd.f32 %v11379_v59, %v4370_v49  ;;  %v11703_v49 = vpop.f32.mrf.mxu0 }
 0x64a   :  { %v5148_v26 = vadd.f32 %v11537_v9, %v5078_v22  ;;  %v4714_v6 = vadd.f32 %v11351_v45, %v13713_v16  ;;  %v13716_v16 = vld [vmem:[#allocation58_spill] sm:$0xff]  ;;  %13717 = vst [vmem:[#allocation125_spill] sm:$0xff] %v11703_v49 }
 0x64b   :  { %v5201_v28 = vmax.f32 %v5137_v39, 0.0  ;;  %5021 = vmatmul.f32.gmra.mxu3 %v11562_v63  ;;  %5846 = vmatmul.f32.gmra.mxu0 %v11678_v3  ;;  %v11692_v63 = vpop.f32.mrf.mxu1 }
 0x64c   :  { %v5212_v15 = vmax.f32 %v5148_v26, 0.0  ;;  %4926 = vmatmul.f32.gmra.mxu2 %v11684_v14  ;;  %v5393_v38 = vld [vmem:[#allocation5] sm:$0xfc]  ;;  %13714 = vst [vmem:[#allocation102_spill] sm:$0xff] %v11692_v63 }
 0x64d   :  { %v5528_v54 = vrot.slane %v5393_v38, 2  ;;  %v5529_v27 = vrot.slane %v5201_v28, 2  ;;  %v13715_v38 = vld [vmem:[#allocation82_spill] sm:$0xff] }
 0x64e   :  { %v4974_v22 = vpop.f32.mrf.mxu3  ;;  %v5551_v46 = vrot.slane %v5212_v15, 2  ;;  %v3882_v59 = vadd.f32 %v13716_v16, %v13715_v38 }
 0x64f   :  { %v5069_v39 = vadd.f32 %v4974_v22, %v4714_v6  ;;  %v4879_v1 = vpop.f32.mrf.mxu2  ;;  %v5530_v57 = vsel %vm5524_vm3, %v5528_v54, %v5529_v27 }
 0x650   :  { %v5080_v10 = vadd.f32 %v4879_v1, %v4725_v17  ;;  %v11695_v20 = vmax.f32 %v5199_v37, %v5530_v57  ;;  %v5552_v26 = vsel %vm5524_vm3, %v5547_v56, %v5551_v46  ;;  %v11708_v37 = vld [vmem:[#allocation4 + $0xd0] sm:$0xff]  ;;  %v13718_v56 = vld [vmem:[#allocation27_spill] sm:$0xff] }
 0x651   :  { %v5139_v53 = vadd.f32 %v11651_v50, %v5069_v39  ;;  %v11699_v45 = vmax.f32 %v5210_v48, %v5552_v26  ;;  %v4372_v54 = vadd.f32 %v13718_v56, %v3882_v59  ;;  %v13719_v17 = vld [vmem:[#allocation83_spill] sm:$0xff] }
 0x652   :  { %v5150_v63 = vadd.f32 %v11537_v9, %v5080_v10  ;;  %5944 = vmatmul.f32.vlgmr.msra.gmra.mxu1 %v11695_v20  ;;  %v4716_v22 = vadd.f32 %v11367_v8, %v13719_v17  ;;  %v6052_v1 = vld [vmem:[#allocation11 + $0x150] sm:$0xff] }
 0x653   :  { %v5203_v6 = vmax.f32 %v5139_v53, 0.0  ;;  %5024 = vmatmul.f32.gmra.mxu3 %v11582_v5  ;;  %5849 = vmatmul.f32.gmra.mxu0 %v11699_v45  ;;  %v6068_v57 = vld [vmem:[#allocation11 + $0x1d0] sm:$0xff]  ;;  %v4727_v10 = vadd.f32 %v11393_v31, %v4372_v54  ;;  %v11720_v49 = vpop.f32.mrf.mxu1  ;;  %v6051_v31 = vld [vmem:[#allocation11 + $0x148] sm:$0xff] }
 0x654   :  { %v5214_v48 = vmax.f32 %v5150_v63, 0.0  ;;  %4929 = vmatmul.f32.gmra.mxu2 %v11708_v37  ;;  %6192 = vmatpush.msrb.mxu3 %v6068_v57  ;;  %13720 = vst [vmem:[#allocation103_spill] sm:$0xff] %v11720_v49  ;;  %v13721_v54 = vld [vmem:[#allocation46_spill] sm:$0xff]  ;;  %v6048_v49 = vld [vmem:[#allocation11 + $0x130] sm:$0xff] }
 0x655   :  { %v5533_v39 = vrot.slane %v5203_v6, 2  ;;  %6079 = vmatpush.msra.mxu2 %v6052_v1  ;;  %v13722_v1 = vld [vmem:[#allocation111_spill] sm:$0xff] }
 0x656   :  { %v4977_v53 = vpop.f32.mrf.mxu3  ;;  %v5555_v26 = vrot.slane %v5214_v48, 2  ;;  %v3885_v57 = vadd.f32 %v13722_v1, %v13721_v54 }
 0x657   :  { %v5071_v5 = vadd.f32 %v4977_v53, %v4716_v22  ;;  %v4882_v38 = vpop.f32.mrf.mxu2  ;;  %v5534_v16 = vsel %vm5524_vm3, %v5529_v27, %v5533_v39  ;;  %6080 = vmatpush.msra.mxu2 %v6051_v31  ;;  %v11733_v27 = vld [vmem:[#allocation4 + $0xd8] sm:$0xff] }
 0x658   :  { %v5082_v59 = vadd.f32 %v4882_v38, %v4727_v10  ;;  %v11717_v63 = vmax.f32 %v5201_v28, %v5534_v16  ;;  %v5556_v56 = vsel %vm5524_vm3, %v5551_v46, %v5555_v26  ;;  %v6050_v46 = vld [vmem:[#allocation11 + $0x140] sm:$0xff]  ;;  %v11737_v10 = vpop.f32.mrf.mxu0 }
 0x659   :  { %v11723_v8 = vadd.f32 %v11651_v50, %v5071_v5  ;;  %v11725_v17 = vmax.f32 %v5212_v15, %v5556_v56  ;;  %v4374_v15 = vadd.f32 %v11235_v35, %v3885_v57  ;;  %v13723_v5 = vld [vmem:[#allocation135_spill] sm:$0xff]  ;;  %6081 = vmatpush.msra.mxu2 %v6050_v46 }
 0x65a   :  { %v5152_v22 = vadd.f32 %v11537_v9, %v5082_v59  ;;  %5947 = vmatmul.f32.gmra.mxu1 %v11717_v63  ;;  %v4718_v38 = vadd.f32 %v11385_v21, %v13723_v5 }
 0x65b   :  { %v5205_v28 = vmax.f32 %v11723_v8, 0.0  ;;  %5027 = vmatmul.f32.gmra.mxu3 %v11603_v47  ;;  %5852 = vmatmul.f32.gmra.mxu0 %v11725_v17  ;;  %v4729_v59 = vadd.f32 %v11407_v60, %v4374_v15  ;;  %v6049_v8 = vld [vmem:[#allocation11 + $0x138] sm:$0xff]  ;;  %v13725_v15 = vld [vmem:[#allocation93_spill] sm:$0xff] }
 0x65c   :  { %v5216_v53 = vmax.f32 %v5152_v22, 0.0  ;;  %4932 = vmatmul.f32.gmra.mxu2 %v11733_v27  ;;  %v13724_v60 = vld [vmem:[#allocation48_spill] sm:$0xff] }
 0x65d   :  { %v5537_v16 = vrot.slane %v5205_v28, 2  ;;  %6082 = vmatpush.msra.mxu2 %v6049_v8  ;;  %v3888_v5 = vadd.f32 %v13725_v15, %v13724_v60  ;;  %v13727_v8 = vld [vmem:[#allocation28_spill] sm:$0xff] }
 0x65e   :  { %v4980_v47 = vpop.f32.mrf.mxu3  ;;  %v5559_v56 = vrot.slane %v5216_v53, 2  ;;  %v6045_v60 = vld [vmem:[#allocation11 + $0x118] sm:$0xff] }
 0x65f   :  { %v5073_v31 = vadd.f32 %v4980_v47, %v4718_v38  ;;  %v4885_v54 = vpop.f32.mrf.mxu2  ;;  %v5538_v1 = vsel %vm5524_vm3, %v5533_v39, %v5537_v16  ;;  %6083 = vmatpush.msra.mxu2 %v6048_v49  ;;  %v6047_v39 = vld [vmem:[#allocation11 + $0x128] sm:$0xff]  ;;  %v4376_v49 = vadd.f32 %v11247_v36, %v3888_v5  ;;  %v6046_v47 = vld [vmem:[#allocation11 + $0x120] sm:$0xff] }
 0x660   :  { %v5084_v35 = vadd.f32 %v4885_v54, %v4729_v59  ;;  %v11744_v57 = vmax.f32 %v5203_v6, %v5538_v1  ;;  %v5560_v22 = vsel %vm5524_vm3, %v5555_v26, %v5559_v56  ;;  %v11756_v59 = vpop.f32.mrf.mxu1  ;;  %v11760_v26 = vld [vmem:[#allocation4 + $0xe0] sm:$0xff]  ;;  %v6067_v1 = vld [vmem:[#allocation11 + $0x1c8] sm:$0xff] }
 0x661   :  { %v11748_v21 = vadd.f32 %v11651_v50, %v5073_v31  ;;  %v11750_v46 = vmax.f32 %v5214_v48, %v5560_v22  ;;  %13726 = vst [vmem:[#allocation95_spill] sm:$0xff] %v11756_v59  ;;  %v4720_v31 = vadd.f32 %v11399_v11, %v13727_v8  ;;  %6084 = vmatpush.msra.mxu2 %v6047_v39  ;;  %v11768_v22 = vpop.f32.mrf.mxu0 }
 0x662   :  { %v5154_v38 = vadd.f32 %v11537_v9, %v5084_v35  ;;  %5950 = vmatmul.f32.gmra.mxu1 %v11744_v57  ;;  %v4731_v35 = vadd.f32 %v11425_v42, %v4376_v49  ;;  %13728 = vst [vmem:[#allocation51_spill] sm:$0xff] %v11768_v22  ;;  %6193 = vmatpush.msrb.mxu3 %v6067_v1  ;;  %v13729_v42 = vld [vmem:[#allocation84_spill] sm:$0xff]  ;;  %v13730_v49 = vld [vmem:[#allocation113_spill] sm:$0xff] }
 0x663   :  { %v5207_v6 = vmax.f32 %v11748_v21, 0.0  ;;  %5030 = vmatmul.f32.gmra.mxu3 %v11622_v58  ;;  %5855 = vmatmul.f32.gmra.mxu0 %v11750_v46  ;;  %v3891_v22 = vadd.f32 %v13730_v49, %v13729_v42 }
 0x664   :  { %v5218_v48 = vmax.f32 %v5154_v38, 0.0  ;;  %4935 = vmatmul.f32.gmra.mxu2 %v11760_v26 }
 0x665   :  { %v5541_v54 = vrot.slane %v5207_v6, 2  ;;  %6085 = vmatpush.msra.mxu2 %v6046_v47  ;;  %v6043_v47 = vld [vmem:[#allocation11 + $0x108] sm:$0xff] }
 0x666   :  { %v4983_v58 = vpop.f32.mrf.mxu3  ;;  %v5563_v21 = vrot.slane %v5218_v48, 2 }
 0x667   :  { %v5075_v15 = vadd.f32 %v4983_v58, %v4720_v31  ;;  %v4888_v36 = vpop.f32.mrf.mxu2  ;;  %v5542_v5 = vsel %vm5524_vm3, %v5537_v16, %v5541_v54  ;;  %6086 = vmatpush.msra.mxu2 %v6045_v60  ;;  %v6044_v31 = vld [vmem:[#allocation11 + $0x110] sm:$0xff] }
 0x668   :  { %v5086_v38 = vadd.f32 %v4888_v36, %v4731_v35  ;;  %v11771_v59 = vmax.f32 %v5205_v28, %v5542_v5  ;;  %v5564_v11 = vsel %vm5524_vm3, %v5559_v56, %v5563_v21  ;;  %v11782_v28 = vld [vmem:[#allocation4 + $0xe8] sm:$0xff]  ;;  %v4378_v56 = vadd.f32 %v11261_v7, %v3891_v22  ;;  %v11789_v58 = vpop.f32.mrf.mxu1  ;;  %v6042_v5 = vld [vmem:[#allocation11 + $0x100] sm:$0xff] }
 0x669   :  { %v5145_v39 = vadd.f32 %v11651_v50, %v5075_v15  ;;  %v11775_v8 = vmax.f32 %v5216_v53, %v5564_v11  ;;  %v4722_v35 = vadd.f32 %v11419_v40, %v11259_v51  ;;  %6087 = vmatpush.msra.mxu2 %v6044_v31  ;;  %v11793_v22 = vpop.f32.mrf.mxu0 }
 0x66a   :  { %v5156_v1 = vadd.f32 %v11537_v9, %v5086_v38  ;;  %5953 = vmatmul.f32.gmra.mxu1 %v11771_v59  ;;  %v4733_v15 = vadd.f32 %v11439_v0, %v4378_v56  ;;  %v13731_v0 = vld [vmem:[#allocation101_spill] sm:$0xff] }
 0x66b   :  { %v5209_v16 = vmax.f32 %v5145_v39, 0.0  ;;  %5033 = vmatmul.f32.gmra.mxu3 %v11643_v43  ;;  %5858 = vmatmul.f32.gmra.mxu0 %v11775_v8 }
 0x66c   :  { %v5220_v53 = vmax.f32 %v5156_v1, 0.0  ;;  %4938 = vmatmul.f32.gmra.mxu2 %v11782_v28  ;;  %v13732_v1 = vld [vmem:[#allocation150_spill] sm:$0xff] }
 0x66d   :  { %v5545_v60 = vrot.slane %v5209_v16, 2  ;;  %6088 = vmatpush.msra.mxu2 %v6043_v47  ;;  %v3894_v31 = vadd.f32 %v13732_v1, %v13731_v0  ;;  %v11806_v47 = vld [vmem:[#allocation4 + $0xf0] sm:$0xff] }
 0x66e   :  { %v4986_v43 = vpop.f32.mrf.mxu3  ;;  %v5567_v36 = vrot.slane %v5220_v53, 2 }
 0x66f   :  { %v5077_v38 = vadd.f32 %v4986_v43, %v4722_v35  ;;  %v4891_v11 = vpop.f32.mrf.mxu2  ;;  %v5546_v7 = vsel %vm5524_vm3, %v5541_v54, %v5545_v60  ;;  %6089 = vmatpush.msra.mxu2 %v6042_v5  ;;  %v6066_v43 = vld [vmem:[#allocation11 + $0x1c0] sm:$0xff] }
 0x670   :  { %v5088_v39 = vadd.f32 %v4891_v11, %v4733_v15  ;;  %v11795_v42 = vmax.f32 %v5207_v6, %v5546_v7  ;;  %v5568_v51 = vsel %vm5524_vm3, %v5563_v21, %v5567_v36  ;;  %v4380_v6 = vadd.f32 %v11275_v44, %v3894_v31  ;;  %6194 = vmatpush.msrb.mxu3 %v6066_v43  ;;  %v13735_v31 = vld [vmem:[#allocation141_spill] sm:$0xff]  ;;  %v13738_v43 = vld [vmem:[#allocation76_spill] sm:$0xff] }
 0x671   :  { %v5147_v40 = vadd.f32 %v11651_v50, %v5077_v38  ;;  %v11799_v49 = vmax.f32 %v5218_v48, %v5568_v51  ;;  %v13733_v48 = vld [vmem:[#allocation47_spill] sm:$0xff] }
 0x672   :  { %v5158_v56 = vadd.f32 %v11537_v9, %v5088_v39  ;;  %5956 = vmatmul.f32.gmra.mxu1 %v11795_v42  ;;  %v4724_v35 = vadd.f32 %v11433_v30, %v13733_v48  ;;  %v4735_v5 = vadd.f32 %v11456_v62, %v4380_v6  ;;  %v13736_v62 = vld [vmem:[#allocation96_spill] sm:$0xff]  ;;  %v11825_v6 = vpop.f32.mrf.mxu0 }
 0x673   :  { %v5211_v54 = vmax.f32 %v5147_v40, 0.0  ;;  %5036 = vmatmul.f32.gmra.mxu3 %v11664_v18  ;;  %5861 = vmatmul.f32.gmra.mxu0 %v11799_v49  ;;  %v11814_v18 = vpop.f32.mrf.mxu1 }
 0x674   :  { %v5222_v21 = vmax.f32 %v5158_v56, 0.0  ;;  %4941 = vmatmul.f32.gmra.mxu2 %v11806_v47  ;;  %13734 = vst [vmem:[#allocation106_spill] sm:$0xff] %v11814_v18  ;;  %v3897_v56 = vadd.f32 %v13736_v62, %v13735_v31 }
 0x675   :  { %v5549_v15 = vrot.slane %v5211_v54, 2 }
 0x676   :  { %v4989_v38 = vpop.f32.mrf.mxu3  ;;  %v5571_v11 = vrot.slane %v5222_v21, 2 }
 0x677   :  { %v5079_v7 = vadd.f32 %v4989_v38, %v4724_v35  ;;  %v4894_v39 = vpop.f32.mrf.mxu2  ;;  %v5550_v51 = vsel %vm5524_vm3, %v5545_v60, %v5549_v15  ;;  %v13737_v60 = vld [vmem:[#allocation29_spill] sm:$0xff] }
 0x678   :  { %v5090_v44 = vadd.f32 %v4894_v39, %v4735_v5  ;;  %v11817_v40 = vmax.f32 %v5209_v16, %v5550_v51  ;;  %v5572_v0 = vsel %vm5524_vm3, %v5567_v36, %v5571_v11  ;;  %v11830_v16 = vld [vmem:[#allocation4 + $0xf8] sm:$0xff]  ;;  %v4382_v36 = vadd.f32 %v13737_v60, %v3897_v56 }
 0x679   :  { %v5149_v30 = vadd.f32 %v11651_v50, %v5079_v7  ;;  %v11821_v1 = vmax.f32 %v5220_v53, %v5572_v0  ;;  %v4726_v5 = vadd.f32 %v11451_v33, %v13738_v43  ;;  %v13740_v33 = vld [vmem:[#allocation85_spill] sm:$0xff]  ;;  %v13741_v43 = vld [vmem:[#allocation116_spill] sm:$0xff] }
 0x67a   :  { %v5160_v48 = vadd.f32 %v11537_v9, %v5090_v44  ;;  %5959 = vmatmul.f32.gmra.mxu1 %v11817_v40  ;;  %v4737_v7 = vadd.f32 %v11473_v34, %v4382_v36  ;;  %v3900_v34 = vadd.f32 %v13741_v43, %v13740_v33 }
 0x67b   :  { %v5213_v35 = vmax.f32 %v5149_v30, 0.0  ;;  %5039 = vmatmul.f32.gmra.mxu3 %v11684_v14  ;;  %5864 = vmatmul.f32.gmra.mxu0 %v11821_v1  ;;  %v11842_v56 = vpop.f32.mrf.mxu1 }
 0x67c   :  { %v5224_v53 = vmax.f32 %v5160_v48, 0.0  ;;  %4944 = vmatmul.f32.gmra.mxu2 %v11830_v16  ;;  %13739 = vst [vmem:[#allocation126_spill] sm:$0xff] %v11842_v56 }
 0x67d   :  { %v5553_v38 = vrot.slane %v5213_v35, 2 }
 0x67e   :  { %v4992_v39 = vpop.f32.mrf.mxu3  ;;  %v5575_v51 = vrot.slane %v5224_v53, 2 }
 0x67f   :  { %v5081_v44 = vadd.f32 %v4992_v39, %v4726_v5  ;;  %v4897_v0 = vpop.f32.mrf.mxu2  ;;  %v5554_v14 = vsel %vm5524_vm3, %v5549_v15, %v5553_v38  ;;  %v11856_v39 = vld [vmem:[#allocation4 + $0x108] sm:$0xff] }
 0x680   :  { %v5092_v30 = vadd.f32 %v4897_v0, %v4737_v7  ;;  %v11839_v31 = vmax.f32 %v5211_v54, %v5554_v14  ;;  %v5576_v62 = vsel %vm5524_vm3, %v5571_v11, %v5575_v51  ;;  %v13742_v54 = vld [vmem:[#allocation137_spill] sm:$0xff]  ;;  %v11854_v11 = vpop.f32.mrf.mxu0  ;;  %v6065_v14 = vld [vmem:[#allocation11 + $0x1b8] sm:$0xff] }
 0x681   :  { %v5151_v48 = vadd.f32 %v11651_v50, %v5081_v44  ;;  %v11845_v60 = vmax.f32 %v5222_v21, %v5576_v62  ;;  %v4384_v15 = vadd.f32 %v13742_v54, %v3900_v34  ;;  %13743 = vst [vmem:[#allocation42_spill] sm:$0xff] %v11854_v11  ;;  %v13744_v21 = vld [vmem:[#allocation118_spill] sm:$0xff]  ;;  %6195 = vmatpush.msrb.mxu3 %v6065_v14  ;;  %v13750_v14 = vld [vmem:[#allocation59_spill] sm:$0xff] }
 0x682   :  { %v5162_v36 = vadd.f32 %v11537_v9, %v5092_v30  ;;  %5962 = vmatmul.f32.gmra.mxu1 %v11839_v31  ;;  %v4728_v44 = vadd.f32 %v11465_v32, %v13744_v21  ;;  %v13745_v32 = vld [vmem:[#allocation104_spill] sm:$0xff] }
 0x683   :  { %v5215_v5 = vmax.f32 %v5151_v48, 0.0  ;;  %5042 = vmatmul.f32.gmra.mxu3 %v11708_v37  ;;  %5867 = vmatmul.f32.gmra.mxu0 %v11845_v60  ;;  %v4739_v30 = vadd.f32 %v11491_v12, %v4384_v15  ;;  %v13746_v21 = vld [vmem:[#allocation64_spill] sm:$0xff]  ;;  %v11873_v15 = vpop.f32.mrf.mxu1 }
 0x684   :  { %v5226_v7 = vmax.f32 %v5162_v36, 0.0  ;;  %4947 = vmatmul.f32.gmra.mxu2 %v11856_v39  ;;  %v3903_v18 = vadd.f32 %v13746_v21, %v13745_v32  ;;  %13747 = vst [vmem:[#allocation52_spill] sm:$0xff] %v11873_v15 }
 0x685   :  { %v5557_v0 = vrot.slane %v5215_v5, 2 }
 0x686   :  { %v4995_v62 = vpop.f32.mrf.mxu3  ;;  %v5579_v37 = vrot.slane %v5226_v7, 2 }
 0x687   :  { %v5083_v48 = vadd.f32 %v4995_v62, %v4728_v44  ;;  %v4900_v33 = vpop.f32.mrf.mxu2  ;;  %v5558_v43 = vsel %vm5524_vm3, %v5553_v38, %v5557_v0 }
 0x688   :  { %v5094_v34 = vadd.f32 %v4900_v33, %v4739_v30  ;;  %v11863_v36 = vmax.f32 %v5213_v35, %v5558_v43  ;;  %v5580_v54 = vsel %vm5524_vm3, %v5575_v51, %v5579_v37  ;;  %v13748_v35 = vld [vmem:[#allocation30_spill] sm:$0xff]  ;;  %v11882_v43 = vpop.f32.mrf.mxu0 }
 0x689   :  { %v5153_v56 = vadd.f32 %v11651_v50, %v5083_v48  ;;  %v11867_v11 = vmax.f32 %v5224_v53, %v5580_v54  ;;  %v4386_v38 = vadd.f32 %v13748_v35, %v3903_v18  ;;  %v13749_v53 = vld [vmem:[#allocation138_spill] sm:$0xff]  ;;  %v13751_v48 = vld [vmem:[#allocation89_spill] sm:$0xff]  ;;  %13752 = vst [vmem:[#allocation129_spill] sm:$0xff] %v11882_v43 }
 0x68a   :  { %v5164_v12 = vadd.f32 %v11537_v9, %v5094_v34  ;;  %5965 = vmatmul.f32.gmra.mxu1 %v11863_v36  ;;  %v4730_v30 = vadd.f32 %v13750_v14, %v13749_v53  ;;  %v6063_v35 = vld [vmem:[#allocation11 + $0x1a8] sm:$0xff] }
 0x68b   :  { %v5217_v44 = vmax.f32 %v5153_v56, 0.0  ;;  %5045 = vmatmul.f32.gmra.mxu3 %v11733_v27  ;;  %5870 = vmatmul.f32.gmra.mxu0 %v11867_v11  ;;  %v4741_v33 = vadd.f32 %v13751_v48, %v4386_v38  ;;  %v6064_v56 = vld [vmem:[#allocation11 + $0x1b0] sm:$0xff]  ;;  %v13753_v38 = vld [vmem:[#allocation144_spill] sm:$0xff] }
 0x68c   :  { %v5228_v51 = vmax.f32 %v5164_v12, 0.0  ;;  %6090 = vmatmul.f32.vlgmr.msra.gmra.mxu2 %v11576_v25  ;;  %6196 = vmatpush.msrb.mxu3 %v6064_v56  ;;  %v13754_v48 = vld [vmem:[#allocation119_spill] sm:$0xff] }
 0x68d   :  { %v5561_v62 = vrot.slane %v5217_v44, 2  ;;  %v3906_v15 = vadd.f32 %v13754_v48, %v13753_v38  ;;  %v13756_v56 = vld [vmem:[#allocation23_spill] sm:$0xff] }
 0x68e   :  { %v4998_v34 = vpop.f32.mrf.mxu3  ;;  %v5583_v54 = vrot.slane %v5228_v51, 2  ;;  %6197 = vmatpush.msrb.mxu3 %v6063_v35 }
 0x68f   :  { %v5085_v32 = vadd.f32 %v4998_v34, %v4730_v30  ;;  %v4903_v27 = vpop.f32.mrf.mxu2  ;;  %v5562_v21 = vsel %vm5524_vm3, %v5557_v0, %v5561_v62  ;;  %v6062_v0 = vld [vmem:[#allocation11 + $0x1a0] sm:$0xff] }
 0x690   :  { %v5096_v18 = vadd.f32 %v4903_v27, %v4741_v33  ;;  %v11885_v12 = vmax.f32 %v5215_v5, %v5562_v21  ;;  %v5584_v25 = vsel %vm5524_vm3, %v5579_v37, %v5583_v54  ;;  %v13755_v5 = vld [vmem:[#allocation50_spill] sm:$0xff]  ;;  %6198 = vmatpush.msrb.mxu3 %v6062_v0  ;;  %v11901_v21 = vpop.f32.mrf.mxu1 }
 0x691   :  { %v5155_v53 = vadd.f32 %v11651_v50, %v5085_v32  ;;  %v11889_v14 = vmax.f32 %v5226_v7, %v5584_v25  ;;  %v4388_v37 = vadd.f32 %v13755_v5, %v3906_v15  ;;  %v6061_v7 = vld [vmem:[#allocation11 + $0x198] sm:$0xff]  ;;  %v13757_v32 = vld [vmem:[#allocation147_spill] sm:$0xff]  ;;  %13758 = vst [vmem:[#allocation71_spill] sm:$0xff] %v11901_v21 }
 0x692   :  { %v5166_v30 = vadd.f32 %v11537_v9, %v5096_v18  ;;  %5968 = vmatmul.f32.gmra.mxu1 %v11885_v12  ;;  %v4732_v27 = vadd.f32 %v13757_v32, %v13756_v56  ;;  %v13759_v25 = vld [vmem:[#allocation91_spill] sm:$0xff]  ;;  %6199 = vmatpush.msrb.mxu3 %v6061_v7  ;;  %v6059_v56 = vld [vmem:[#allocation11 + $0x188] sm:$0xff]  ;;  %v13761_v7 = vld [vmem:[#allocation100_spill] sm:$0xff] }
 0x693   :  { %v5219_v34 = vmax.f32 %v5155_v53, 0.0  ;;  %5048 = vmatmul.f32.gmra.mxu3 %v11760_v26  ;;  %5873 = vmatmul.f32.gmra.mxu0 %v11889_v14  ;;  %v4743_v35 = vadd.f32 %v13759_v25, %v4388_v37  ;;  %v6060_v26 = vld [vmem:[#allocation11 + $0x190] sm:$0xff] }
 0x694   :  { %v5230_v33 = vmax.f32 %v5166_v30, 0.0  ;;  %6093 = vmatmul.f32.gmra.mxu2 %v11595_v41  ;;  %v11905_v30 = vpop.f32.mrf.mxu0  ;;  %6200 = vmatpush.msrb.mxu3 %v6060_v26  ;;  %v13760_v25 = vld [vmem:[#allocation87_spill] sm:$0xff] }
 0x695   :  { %v5565_v18 = vrot.slane %v5219_v34, 2  ;;  %v3909_v21 = vadd.f32 %v13761_v7, %v13760_v25 }
 0x696   :  { %v5001_v53 = vpop.f32.mrf.mxu3  ;;  %v5587_v38 = vrot.slane %v5230_v33, 2  ;;  %6201 = vmatpush.msrb.mxu3 %v6059_v56 }
 0x697   :  { %v5087_v48 = vadd.f32 %v5001_v53, %v4732_v27  ;;  %v4906_v43 = vpop.f32.mrf.mxu2  ;;  %v5566_v15 = vsel %vm5524_vm3, %v5561_v62, %v5565_v18  ;;  %v6058_v62 = vld [vmem:[#allocation11 + $0x180] sm:$0xff]  ;;  %v13764_v53 = vld [vmem:[#allocation36_spill] sm:$0xff] }
 0x698   :  { %v5098_v41 = vadd.f32 %v4906_v43, %v4743_v35  ;;  %v11907_v0 = vmax.f32 %v5217_v44, %v5566_v15  ;;  %v5588_v5 = vsel %vm5524_vm3, %v5583_v54, %v5587_v38  ;;  %v13762_v44 = vld [vmem:[#allocation32_spill] sm:$0xff]  ;;  %6202 = vmatpush.msrb.mxu3 %v6058_v62 }
 0x699   :  { %v5157_v32 = vadd.f32 %v11651_v50, %v5087_v48  ;;  %v11911_v37 = vmax.f32 %v5228_v51, %v5588_v5  ;;  %v4390_v54 = vadd.f32 %v13762_v44, %v3909_v21  ;;  %v13763_v51 = vld [vmem:[#allocation77_spill] sm:$0xff]  ;;  %v6462_v15 = vld [vmem:[#allocation12 + $0xf8] sm:$0xff] }
 0x69a   :  { %v5168_v27 = vadd.f32 %v11537_v9, %v5098_v41  ;;  %5971 = vmatmul.f32.gmra.mxu1 %v11907_v0  ;;  %v4734_v26 = vadd.f32 %v13764_v53, %v13763_v51  ;;  %v13765_v41 = vld [vmem:[#allocation92_spill] sm:$0xff]  ;;  %6463 = vmatpush.msrb.mxu0 %v6462_v15 }
 0x69b   :  { %v5221_v43 = vmax.f32 %v5157_v32, 0.0  ;;  %5051 = vmatmul.f32.gmra.mxu3 %v11782_v28  ;;  %5876 = vmatmul.f32.gmra.mxu0 %v11911_v37  ;;  %v4745_v5 = vadd.f32 %v13765_v41, %v4390_v54  ;;  %v11924_v32 = vpop.f32.mrf.mxu1  ;;  %v13769_v54 = vld [vmem:[#allocation107_spill] sm:$0xff] }
 0x69c   :  { %v5232_v35 = vmax.f32 %v5168_v27, 0.0  ;;  %6096 = vmatmul.f32.gmra.mxu2 %v11616_v13  ;;  %13766 = vst [vmem:[#allocation81_spill] sm:$0xff] %v11924_v32  ;;  %v13770_v41 = vld [vmem:[#allocation123_spill] sm:$0xff] }
 0x69d   :  { %v5569_v48 = vrot.slane %v5221_v43, 2  ;;  %v3912_v15 = vadd.f32 %v13770_v41, %v13769_v54 }
 0x69e   :  { %v5004_v56 = vpop.f32.mrf.mxu3  ;;  %v5591_v25 = vrot.slane %v5232_v35, 2 }
 0x69f   :  { %v5089_v28 = vadd.f32 %v5004_v56, %v4734_v26  ;;  %v4909_v7 = vpop.f32.mrf.mxu2  ;;  %v5570_v21 = vsel %vm5524_vm3, %v5565_v18, %v5569_v48 }
 0x6a0   :  { %v5100_v27 = vadd.f32 %v4909_v7, %v4745_v5  ;;  %v11927_v44 = vmax.f32 %v5219_v34, %v5570_v21  ;;  %v11929_v13 = vpop.f32.mrf.mxu0  ;;  %v5592_v62 = vsel %vm5524_vm3, %v5587_v38, %v5591_v25  ;;  %v13771_v34 = vld [vmem:[#allocation139_spill] sm:$0xff]  ;;  %v13772_v38 = vld [vmem:[#allocation121_spill] sm:$0xff]  ;;  %v13774_v7 = vld [vmem:[#allocation40_spill] sm:$0xff] }
 0x6a1   :  { %13767 = vst [vmem:[#allocation105_spill] sm:$0xff] %v11929_v13  ;;  %v5159_v51 = vadd.f32 %v11651_v50, %v5089_v28  ;;  %v11933_v53 = vmax.f32 %v5230_v33, %v5592_v62  ;;  %v4392_v18 = vadd.f32 %v13771_v34, %v3912_v15  ;;  %v13773_v33 = vld [vmem:[#allocation39_spill] sm:$0xff] }
 0x6a2   :  { %v5170_v32 = vadd.f32 %v11537_v9, %v5100_v27  ;;  %5974 = vmatmul.f32.gmra.mxu1 %v11927_v44  ;;  %v4736_v56 = vadd.f32 %v13773_v33, %v13772_v38  ;;  %v13777_v38 = vld [vmem:[#allocation69_spill] sm:$0xff] }
 0x6a3   :  { %13768 = vst [vmem:[#allocation73_spill] sm:$0xff] %v11933_v53  ;;  %v5223_v26 = vmax.f32 %v5159_v51, 0.0  ;;  %5054 = vmatmul.f32.gmra.mxu3 %v11806_v47  ;;  %5879 = vmatmul.f32.gmra.mxu0 %v11933_v53  ;;  %v4747_v21 = vadd.f32 %v13774_v7, %v4392_v18  ;;  %v13776_v18 = vld [vmem:[#allocation148_spill] sm:$0xff] }
 0x6a4   :  { %v5234_v5 = vmax.f32 %v5170_v32, 0.0  ;;  %6099 = vmatmul.f32.gmra.mxu2 %v11635_v55  ;;  %v11952_v55 = vpop.f32.mrf.mxu1  ;;  %v3915_v33 = vadd.f32 %v13777_v38, %v13776_v18 }
 0x6a5   :  { %v5573_v28 = vrot.slane %v5223_v26, 2 }
 0x6a6   :  { %v5007_v62 = vpop.f32.mrf.mxu3  ;;  %v5595_v27 = vrot.slane %v5234_v5, 2 }
 0x6a7   :  { %v5091_v54 = vadd.f32 %v5007_v62, %v4736_v56  ;;  %v4912_v41 = vpop.f32.mrf.mxu2  ;;  %v5574_v51 = vsel %vm5524_vm3, %v5569_v48, %v5573_v28 }
 0x6a8   :  { %v5102_v47 = vadd.f32 %v4912_v41, %v4747_v21  ;;  %v11947_v13 = vmax.f32 %v5221_v43, %v5574_v51  ;;  %v11949_v53 = vpop.f32.mrf.mxu0  ;;  %v5596_v32 = vsel %vm5524_vm3, %v5591_v25, %v5595_v27  ;;  %v13778_v43 = vld [vmem:[#allocation31_spill] sm:$0xff]  ;;  %v13779_v21 = vld [vmem:[#allocation140_spill] sm:$0xff] }
 0x6a9   :  { %13775 = vst [vmem:[#allocation72_spill] sm:$0xff] %v11949_v53  ;;  %v5161_v15 = vadd.f32 %v11651_v50, %v5091_v54  ;;  %v11955_v34 = vmax.f32 %v5232_v35, %v5596_v32  ;;  %v4394_v25 = vadd.f32 %v13778_v43, %v3915_v33  ;;  %v13780_v35 = vld [vmem:[#allocation65_spill] sm:$0xff]  ;;  %v6461_v41 = vld [vmem:[#allocation12 + $0xf0] sm:$0xff] }
 0x6aa   :  { %v5172_v56 = vadd.f32 %v11537_v9, %v5102_v47  ;;  %5977 = vmatmul.f32.gmra.mxu1 %v11947_v13  ;;  %v4738_v62 = vadd.f32 %v13780_v35, %v13779_v21  ;;  %6464 = vmatpush.msrb.mxu0 %v6461_v41  ;;  %v13782_v21 = vld [vmem:[#allocation90_spill] sm:$0xff] }
 0x6ab   :  { %v5225_v48 = vmax.f32 %v5161_v15, 0.0  ;;  %5057 = vmatmul.f32.gmra.mxu3 %v11830_v16  ;;  %5882 = vmatmul.f32.gmra.mxu0 %v11955_v34  ;;  %v4749_v51 = vadd.f32 %v11599_v24, %v4394_v25  ;;  %v13783_v24 = vld [vmem:[#allocation70_spill] sm:$0xff] }
 0x6ac   :  { %v5236_v7 = vmax.f32 %v5172_v56, 0.0  ;;  %6102 = vmatmul.f32.gmra.mxu2 %v11658_v23  ;;  %v3918_v25 = vadd.f32 %v13783_v24, %v13782_v21 }
 0x6ad   :  { %v5577_v54 = vrot.slane %v5225_v48, 2 }
 0x6ae   :  { %v5010_v47 = vpop.f32.mrf.mxu3  ;;  %v5599_v32 = vrot.slane %v5236_v7, 2 }
 0x6af   :  { %v5093_v15 = vadd.f32 %v5010_v47, %v4738_v62  ;;  %v4915_v18 = vpop.f32.mrf.mxu2  ;;  %v5578_v16 = vsel %vm5524_vm3, %v5573_v28, %v5577_v54  ;;  %v11981_v62 = vpop.f32.mrf.mxu1 }
 0x6b0   :  { %v5104_v38 = vadd.f32 %v4915_v18, %v4749_v51  ;;  %v11969_v53 = vmax.f32 %v5223_v26, %v5578_v16  ;;  %v11971_v33 = vpop.f32.mrf.mxu0  ;;  %v5600_v23 = vsel %vm5524_vm3, %v5595_v27, %v5599_v32  ;;  %v13784_v26 = vld [vmem:[#allocation53_spill] sm:$0xff] }
 0x6b1   :  { %13781 = vst [vmem:[#allocation43_spill] sm:$0xff] %v11971_v33  ;;  %v5163_v56 = vadd.f32 %v11651_v50, %v5093_v15  ;;  %v11975_v43 = vmax.f32 %v5234_v5, %v5600_v23  ;;  %v4396_v27 = vadd.f32 %v13784_v26, %v3918_v25  ;;  %v13785_v5 = vld [vmem:[#allocation24_spill] sm:$0xff]  ;;  %v13786_v51 = vld [vmem:[#allocation49_spill] sm:$0xff]  ;;  %v13787_v26 = vld [vmem:[#allocation110_spill] sm:$0xff] }
 0x6b2   :  { %v5174_v35 = vadd.f32 %v11537_v9, %v5104_v38  ;;  %5980 = vmatmul.f32.gmra.mxu1 %v11969_v53  ;;  %v4740_v47 = vadd.f32 %v13786_v51, %v13785_v5  ;;  %v13788_v5 = vld [vmem:[#allocation128_spill] sm:$0xff] }
 0x6b3   :  { %v5227_v28 = vmax.f32 %v5163_v56, 0.0  ;;  %5060 = vmatmul.f32.gmra.mxu3 %v11856_v39  ;;  %5885 = vmatmul.f32.gmra.mxu0 %v11975_v43  ;;  %v4751_v18 = vadd.f32 %v11626_v61, %v4396_v27  ;;  %v3921_v61 = vadd.f32 %v13788_v5, %v13787_v26 }
 0x6b4   :  { %v5238_v41 = vmax.f32 %v5174_v35, 0.0  ;;  %6105 = vmatmul.f32.gmra.mxu2 %v11678_v3 }
 0x6b5   :  { %v5581_v15 = vrot.slane %v5227_v28, 2 }
 0x6b6   :  { %v5013_v16 = vpop.f32.mrf.mxu3  ;;  %v5603_v38 = vrot.slane %v5238_v41, 2 }
 0x6b7   :  { %v5095_v23 = vadd.f32 %v5013_v16, %v4740_v47  ;;  %v4918_v21 = vpop.f32.mrf.mxu2  ;;  %v5582_v56 = vsel %vm5524_vm3, %v5577_v54, %v5581_v15 }
 0x6b8   :  { %v5106_v39 = vadd.f32 %v4918_v21, %v4751_v18  ;;  %v11991_v24 = vmax.f32 %v5225_v48, %v5582_v56  ;;  %v11993_v33 = vpop.f32.mrf.mxu0  ;;  %v5604_v25 = vsel %vm5524_vm3, %v5599_v32, %v5603_v38  ;;  %v13789_v48 = vld [vmem:[#allocation35_spill] sm:$0xff]  ;;  %v13790_v32 = vld [vmem:[#allocation86_spill] sm:$0xff]  ;;  %v12009_v18 = vpop.f32.mrf.mxu1 }
 0x6b9   :  { %v5165_v3 = vadd.f32 %v11651_v50, %v5095_v23  ;;  %v11997_v35 = vmax.f32 %v5236_v7, %v5604_v25  ;;  %v4398_v54 = vadd.f32 %v13789_v48, %v3921_v61  ;;  %v4742_v7 = vadd.f32 %v11614_v52, %v13790_v32  ;;  %v6460_v23 = vld [vmem:[#allocation12 + $0xe8] sm:$0xff]  ;;  %v13791_v48 = vld [vmem:[#allocation60_spill] sm:$0xff] }
 0x6ba   :  { %v5176_v27 = vadd.f32 %v11537_v9, %v5106_v39  ;;  %5983 = vmatmul.f32.gmra.mxu1 %v11991_v24  ;;  %6465 = vmatpush.msrb.mxu0 %v6460_v23 }
 0x6bb   :  { %v5229_v51 = vmax.f32 %v5165_v3, 0.0  ;;  %6203 = vmatmul.f32.vlgmr.msrb.gmra.mxu3 %v11695_v20  ;;  %5888 = vmatmul.f32.gmra.mxu0 %v11997_v35  ;;  %v4753_v21 = vadd.f32 %v11654_v19, %v4398_v54  ;;  %v13792_v19 = vld [vmem:[#allocation109_spill] sm:$0xff] }
 0x6bc   :  { %v5240_v47 = vmax.f32 %v5176_v27, 0.0  ;;  %6108 = vmatmul.f32.gmra.mxu2 %v11699_v45  ;;  %v3924_v54 = vadd.f32 %v13792_v19, %v13791_v48 }
 0x6bd   :  { %v5585_v16 = vrot.slane %v5229_v51, 2 }
 0x6be   :  { %v5016_v56 = vpop.f32.mrf.mxu3  ;;  %v5607_v39 = vrot.slane %v5240_v47, 2 }
 0x6bf   :  { %v5097_v20 = vadd.f32 %v5016_v56, %v4742_v7  ;;  %v4921_v25 = vpop.f32.mrf.mxu2  ;;  %v5586_v3 = vsel %vm5524_vm3, %v5581_v15, %v5585_v16 }
 0x6c0   :  { %v5108_v26 = vadd.f32 %v4921_v25, %v4753_v21  ;;  %v12013_v5 = vmax.f32 %v5227_v28, %v5586_v3  ;;  %v12015_v45 = vpop.f32.mrf.mxu0  ;;  %v5608_v52 = vsel %vm5524_vm3, %v5603_v38, %v5607_v39  ;;  %v13793_v28 = vld [vmem:[#allocation142_spill] sm:$0xff]  ;;  %v13794_v38 = vld [vmem:[#allocation124_spill] sm:$0xff]  ;;  %v12032_v3 = vpop.f32.mrf.mxu1 }
 0x6c1   :  { %v5167_v61 = vadd.f32 %v11651_v50, %v5097_v20  ;;  %v12019_v27 = vmax.f32 %v5238_v41, %v5608_v52  ;;  %v4400_v15 = vadd.f32 %v13793_v28, %v3924_v54  ;;  %v4744_v41 = vadd.f32 %v11640_v2, %v13794_v38 }
 0x6c2   :  { %v5178_v32 = vadd.f32 %v11537_v9, %v5108_v26  ;;  %5986 = vmatmul.f32.gmra.mxu1 %v12013_v5 }
 0x6c3   :  { %v5231_v7 = vmax.f32 %v5167_v61, 0.0  ;;  %6206 = vmatmul.f32.gmra.mxu3 %v11717_v63  ;;  %5891 = vmatmul.f32.gmra.mxu0 %v12019_v27  ;;  %v4755_v56 = vadd.f32 %v11674_v29, %v4400_v15  ;;  %v13796_v29 = vld [vmem:[#allocation61_spill] sm:$0xff] }
 0x6c4   :  { %v5242_v23 = vmax.f32 %v5178_v32, 0.0  ;;  %6111 = vmatmul.f32.gmra.mxu2 %v11725_v17  ;;  %v13797_v32 = vld [vmem:[#allocation132_spill] sm:$0xff] }
 0x6c5   :  { %v5589_v21 = vrot.slane %v5231_v7, 2  ;;  %v3927_v28 = vadd.f32 %v13797_v32, %v13796_v29 }
 0x6c6   :  { %v5019_v20 = vpop.f32.mrf.mxu3  ;;  %v5611_v25 = vrot.slane %v5242_v23, 2 }
 0x6c7   :  { %v5099_v26 = vadd.f32 %v5019_v20, %v4744_v41  ;;  %v4924_v52 = vpop.f32.mrf.mxu2  ;;  %v5590_v63 = vsel %vm5524_vm3, %v5585_v16, %v5589_v21  ;;  %v6459_v20 = vld [vmem:[#allocation12 + $0xe0] sm:$0xff] }
 0x6c8   :  { %v5110_v61 = vadd.f32 %v4924_v52, %v4755_v56  ;;  %v12035_v48 = vmax.f32 %v5229_v51, %v5590_v63  ;;  %v12037_v19 = vpop.f32.mrf.mxu0  ;;  %v5612_v17 = vsel %vm5524_vm3, %v5607_v39, %v5611_v25  ;;  %v13798_v51 = vld [vmem:[#allocation78_spill] sm:$0xff]  ;;  %v13799_v39 = vld [vmem:[#allocation143_spill] sm:$0xff]  ;;  %6466 = vmatpush.msrb.mxu0 %v6459_v20 }
 0x6c9   :  { %13795 = vst [vmem:[#allocation54_spill] sm:$0xff] %v12037_v19  ;;  %v5169_v2 = vadd.f32 %v11651_v50, %v5099_v26  ;;  %v12041_v54 = vmax.f32 %v5240_v47, %v5612_v17  ;;  %v4402_v16 = vadd.f32 %v13798_v51, %v3927_v28  ;;  %v4746_v47 = vadd.f32 %v11671_v4, %v13799_v39  ;;  %v13800_v26 = vld [vmem:[#allocation125_spill] sm:$0xff]  ;;  %v13803_v39 = vld [vmem:[#allocation112_spill] sm:$0xff] }
 0x6ca   :  { %v5180_v15 = vadd.f32 %v11537_v9, %v5110_v61  ;;  %5989 = vmatmul.f32.gmra.mxu1 %v12035_v48 }
 0x6cb   :  { %v5233_v38 = vmax.f32 %v5169_v2, 0.0  ;;  %6209 = vmatmul.f32.gmra.mxu3 %v11744_v57  ;;  %5894 = vmatmul.f32.gmra.mxu0 %v12041_v54  ;;  %v4757_v52 = vadd.f32 %v13800_v26, %v4402_v16  ;;  %v13802_v16 = vld [vmem:[#allocation114_spill] sm:$0xff] }
 0x6cc   :  { %v5244_v41 = vmax.f32 %v5180_v15, 0.0  ;;  %6114 = vmatmul.f32.gmra.mxu2 %v11750_v46  ;;  %v3930_v20 = vadd.f32 %v13803_v39, %v13802_v16 }
 0x6cd   :  { %v5593_v56 = vrot.slane %v5233_v38, 2 }
 0x6ce   :  { %v5022_v63 = vpop.f32.mrf.mxu3  ;;  %v5615_v61 = vrot.slane %v5244_v41, 2 }
 0x6cf   :  { %v5101_v17 = vadd.f32 %v5022_v63, %v4746_v47  ;;  %v4927_v2 = vpop.f32.mrf.mxu2  ;;  %v12054_v57 = vpop.f32.mrf.mxu1  ;;  %v5594_v29 = vsel %vm5524_vm3, %v5589_v21, %v5593_v56 }
 0x6d0   :  { %v5112_v32 = vadd.f32 %v4927_v2, %v4757_v52  ;;  %v12057_v28 = vmax.f32 %v5231_v7, %v5594_v29  ;;  %v12059_v46 = vpop.f32.mrf.mxu0  ;;  %v5616_v4 = vsel %vm5524_vm3, %v5611_v25, %v5615_v61  ;;  %v13804_v7 = vld [vmem:[#allocation56_spill] sm:$0xff]  ;;  %v13805_v25 = vld [vmem:[#allocation25_spill] sm:$0xff] }
 0x6d1   :  { %13801 = vst [vmem:[#allocation74_spill] sm:$0xff] %v12059_v46  ;;  %v5171_v15 = vadd.f32 %v11651_v50, %v5101_v17  ;;  %v12063_v51 = vmax.f32 %v5242_v23, %v5616_v4  ;;  %v4404_v21 = vadd.f32 %v13804_v7, %v3930_v20  ;;  %v13806_v23 = vld [vmem:[#allocation102_spill] sm:$0xff] }
 0x6d2   :  { %v5182_v47 = vadd.f32 %v11537_v9, %v5112_v32  ;;  %5992 = vmatmul.f32.gmra.mxu1 %v12057_v28  ;;  %v4748_v63 = vadd.f32 %v13806_v23, %v13805_v25 }
 0x6d3   :  { %v5235_v26 = vmax.f32 %v5171_v15, 0.0  ;;  %6212 = vmatmul.f32.gmra.mxu3 %v11771_v59  ;;  %5897 = vmatmul.f32.gmra.mxu0 %v12063_v51  ;;  %v4759_v2 = vadd.f32 %v11737_v10, %v4404_v21  ;;  %v13808_v10 = vld [vmem:[#allocation62_spill] sm:$0xff]  ;;  %v13809_v21 = vld [vmem:[#allocation75_spill] sm:$0xff] }
 0x6d4   :  { %v5246_v52 = vmax.f32 %v5182_v47, 0.0  ;;  %6117 = vmatmul.f32.gmra.mxu2 %v11775_v8  ;;  %v3933_v25 = vadd.f32 %v13809_v21, %v13808_v10 }
 0x6d5   :  { %v5597_v17 = vrot.slane %v5235_v26, 2 }
 0x6d6   :  { %v5025_v29 = vpop.f32.mrf.mxu3  ;;  %v5619_v32 = vrot.slane %v5246_v52, 2 }
 0x6d7   :  { %v5103_v4 = vadd.f32 %v5025_v29, %v4748_v63  ;;  %v4930_v16 = vpop.f32.mrf.mxu2  ;;  %v12076_v15 = vpop.f32.mrf.mxu1  ;;  %v5598_v59 = vsel %vm5524_vm3, %v5593_v56, %v5597_v17 }
 0x6d8   :  { %v5114_v39 = vadd.f32 %v4930_v16, %v4759_v2  ;;  %v12079_v46 = vmax.f32 %v5233_v38, %v5598_v59  ;;  %v12081_v20 = vpop.f32.mrf.mxu0  ;;  %v5620_v8 = vsel %vm5524_vm3, %v5615_v61, %v5619_v32  ;;  %v13810_v38 = vld [vmem:[#allocation38_spill] sm:$0xff]  ;;  %v13811_v61 = vld [vmem:[#allocation33_spill] sm:$0xff]  ;;  %v6458_v16 = vld [vmem:[#allocation12 + $0xd8] sm:$0xff] }
 0x6d9   :  { %13807 = vst [vmem:[#allocation131_spill] sm:$0xff] %v12081_v20  ;;  %v5173_v47 = vadd.f32 %v11651_v50, %v5103_v4  ;;  %v12085_v7 = vmax.f32 %v5244_v41, %v5620_v8  ;;  %v4406_v56 = vadd.f32 %v13810_v38, %v3933_v25  ;;  %v13812_v41 = vld [vmem:[#allocation103_spill] sm:$0xff]  ;;  %6467 = vmatpush.msrb.mxu0 %v6458_v16 }
 0x6da   :  { %v5184_v23 = vadd.f32 %v11537_v9, %v5114_v39  ;;  %5995 = vmatmul.f32.gmra.mxu1 %v12079_v46  ;;  %v4750_v29 = vadd.f32 %v13812_v41, %v13811_v61  ;;  %v13813_v59 = vld [vmem:[#allocation51_spill] sm:$0xff] }
 0x6db   :  { %v5237_v63 = vmax.f32 %v5173_v47, 0.0  ;;  %6215 = vmatmul.f32.gmra.mxu3 %v11795_v42  ;;  %5900 = vmatmul.f32.gmra.mxu0 %v12085_v7  ;;  %v4761_v8 = vadd.f32 %v13813_v59, %v4406_v56  ;;  %v13815_v56 = vld [vmem:[#allocation63_spill] sm:$0xff]  ;;  %v13816_v59 = vld [vmem:[#allocation134_spill] sm:$0xff] }
 0x6dc   :  { %v5248_v2 = vmax.f32 %v5184_v23, 0.0  ;;  %6120 = vmatmul.f32.gmra.mxu2 %v11799_v49  ;;  %v3936_v16 = vadd.f32 %v13816_v59, %v13815_v56 }
 0x6dd   :  { %v5601_v4 = vrot.slane %v5237_v63, 2 }
 0x6de   :  { %v5028_v39 = vpop.f32.mrf.mxu3  ;;  %v5623_v10 = vrot.slane %v5248_v2, 2 }
 0x6df   :  { %v5105_v47 = vadd.f32 %v5028_v39, %v4750_v29  ;;  %v4933_v21 = vpop.f32.mrf.mxu2  ;;  %v12098_v42 = vpop.f32.mrf.mxu1  ;;  %v5602_v20 = vsel %vm5524_vm3, %v5597_v17, %v5601_v4 }
 0x6e0   :  { %v5116_v25 = vadd.f32 %v4933_v21, %v4761_v8  ;;  %v12101_v23 = vmax.f32 %v5235_v26, %v5602_v20  ;;  %v12103_v49 = vpop.f32.mrf.mxu0  ;;  %v5624_v38 = vsel %vm5524_vm3, %v5619_v32, %v5623_v10  ;;  %v13817_v26 = vld [vmem:[#allocation145_spill] sm:$0xff]  ;;  %v13818_v32 = vld [vmem:[#allocation127_spill] sm:$0xff] }
 0x6e1   :  { %13814 = vst [vmem:[#allocation97_spill] sm:$0xff] %v12103_v49  ;;  %v5175_v61 = vadd.f32 %v11651_v50, %v5105_v47  ;;  %v12107_v41 = vmax.f32 %v5246_v52, %v5624_v38  ;;  %v4408_v17 = vadd.f32 %v13817_v26, %v3936_v16  ;;  %v13819_v52 = vld [vmem:[#allocation95_spill] sm:$0xff]  ;;  %v13820_v26 = vld [vmem:[#allocation117_spill] sm:$0xff] }
 0x6e2   :  { %v5186_v29 = vadd.f32 %v11537_v9, %v5116_v25  ;;  %5998 = vmatmul.f32.gmra.mxu1 %v12101_v23  ;;  %v4752_v8 = vadd.f32 %v13819_v52, %v13818_v32  ;;  %v13821_v32 = vld [vmem:[#allocation44_spill] sm:$0xff] }
 0x6e3   :  { %v5239_v39 = vmax.f32 %v5175_v61, 0.0  ;;  %6218 = vmatmul.f32.gmra.mxu3 %v11817_v40  ;;  %5903 = vmatmul.f32.gmra.mxu0 %v12107_v41  ;;  %v4763_v21 = vadd.f32 %v11793_v22, %v4408_v17  ;;  %v3939_v22 = vadd.f32 %v13821_v32, %v13820_v26 }
 0x6e4   :  { %v5250_v20 = vmax.f32 %v5186_v29, 0.0  ;;  %6123 = vmatmul.f32.gmra.mxu2 %v11821_v1 }
 0x6e5   :  { %v5605_v47 = vrot.slane %v5239_v39, 2 }
 0x6e6   :  { %v5031_v38 = vpop.f32.mrf.mxu3  ;;  %v5627_v25 = vrot.slane %v5250_v20, 2 }
 0x6e7   :  { %v5107_v56 = vadd.f32 %v5031_v38, %v4752_v8  ;;  %v4936_v59 = vpop.f32.mrf.mxu2  ;;  %v12120_v61 = vpop.f32.mrf.mxu1  ;;  %v5606_v40 = vsel %vm5524_vm3, %v5601_v4, %v5605_v47 }
 0x6e8   :  { %v5118_v49 = vadd.f32 %v4936_v59, %v4763_v21  ;;  %v12123_v19 = vmax.f32 %v5237_v63, %v5606_v40  ;;  %v5628_v16 = vsel %vm5524_vm3, %v5623_v10, %v5627_v25  ;;  %v12133_v52 = vpop.f32.mrf.mxu0  ;;  %v13823_v63 = vld [vmem:[#allocation26_spill] sm:$0xff] }
 0x6e9   :  { %v5177_v1 = vadd.f32 %v11651_v50, %v5107_v56  ;;  %v12127_v29 = vmax.f32 %v5248_v2, %v5628_v16  ;;  %13822 = vst [vmem:[#allocation55_spill] sm:$0xff] %v12133_v52  ;;  %v4410_v4 = vadd.f32 %v13823_v63, %v3939_v22  ;;  %v13824_v2 = vld [vmem:[#allocation146_spill] sm:$0xff]  ;;  %v6457_v56 = vld [vmem:[#allocation12 + $0xd0] sm:$0xff] }
 0x6ea   :  { %v5188_v17 = vadd.f32 %v11537_v9, %v5118_v49  ;;  %6001 = vmatmul.f32.gmra.mxu1 %v12123_v19  ;;  %v4754_v21 = vadd.f32 %v11789_v58, %v13824_v2  ;;  %6468 = vmatpush.msrb.mxu0 %v6457_v56  ;;  %v13825_v63 = vld [vmem:[#allocation99_spill] sm:$0xff] }
 0x6eb   :  { %v5241_v8 = vmax.f32 %v5177_v1, 0.0  ;;  %6221 = vmatmul.f32.gmra.mxu3 %v11839_v31  ;;  %5906 = vmatmul.f32.gmra.mxu0 %v12127_v29  ;;  %v4765_v49 = vadd.f32 %v11825_v6, %v4410_v4  ;;  %v13826_v6 = vld [vmem:[#allocation115_spill] sm:$0xff] }
 0x6ec   :  { %v5252_v10 = vmax.f32 %v5188_v17, 0.0  ;;  %6126 = vmatmul.f32.gmra.mxu2 %v11845_v60  ;;  %v3942_v4 = vadd.f32 %v13826_v6, %v13825_v63 }
 0x6ed   :  { %v5609_v38 = vrot.slane %v5241_v8, 2 }
 0x6ee   :  { %v5034_v59 = vpop.f32.mrf.mxu3  ;;  %v5631_v40 = vrot.slane %v5252_v10, 2 }
 0x6ef   :  { %v5109_v16 = vadd.f32 %v5034_v59, %v4754_v21  ;;  %v4939_v1 = vpop.f32.mrf.mxu2  ;;  %v12142_v31 = vpop.f32.mrf.mxu1  ;;  %v5610_v26 = vsel %vm5524_vm3, %v5605_v47, %v5609_v38 }
 0x6f0   :  { %v5120_v32 = vadd.f32 %v4939_v1, %v4765_v49  ;;  %v12145_v22 = vmax.f32 %v5239_v39, %v5610_v26  ;;  %v5632_v60 = vsel %vm5524_vm3, %v5627_v25, %v5631_v40  ;;  %v13827_v39 = vld [vmem:[#allocation130_spill] sm:$0xff]  ;;  %v12159_v25 = vpop.f32.mrf.mxu0 }
 0x6f1   :  { %v5179_v58 = vadd.f32 %v11651_v50, %v5109_v16  ;;  %v12149_v17 = vmax.f32 %v5250_v20, %v5632_v60  ;;  %v4412_v47 = vadd.f32 %v13827_v39, %v3942_v4  ;;  %13828 = vst [vmem:[#allocation98_spill] sm:$0xff] %v12159_v25  ;;  %v13829_v20 = vld [vmem:[#allocation41_spill] sm:$0xff]  ;;  %v13830_v49 = vld [vmem:[#allocation106_spill] sm:$0xff] }
 0x6f2   :  { %v5190_v2 = vadd.f32 %v11537_v9, %v5120_v32  ;;  %6004 = vmatmul.f32.gmra.mxu1 %v12145_v22  ;;  %v4756_v59 = vadd.f32 %v13830_v49, %v13829_v20  ;;  %v13831_v1 = vld [vmem:[#allocation42_spill] sm:$0xff]  ;;  %v13832_v20 = vld [vmem:[#allocation120_spill] sm:$0xff] }
 0x6f3   :  { %v5243_v21 = vmax.f32 %v5179_v58, 0.0  ;;  %6224 = vmatmul.f32.gmra.mxu3 %v11863_v36  ;;  %5909 = vmatmul.f32.gmra.mxu0 %v12149_v17  ;;  %v4767_v26 = vadd.f32 %v13831_v1, %v4412_v47  ;;  %v13833_v49 = vld [vmem:[#allocation136_spill] sm:$0xff] }
 0x6f4   :  { %v5254_v56 = vmax.f32 %v5190_v2, 0.0  ;;  %6129 = vmatmul.f32.gmra.mxu2 %v11867_v11  ;;  %v3945_v47 = vadd.f32 %v13833_v49, %v13832_v20 }
 0x6f5   :  { %v5613_v16 = vrot.slane %v5243_v21, 2 }
 0x6f6   :  { %v5037_v32 = vpop.f32.mrf.mxu3  ;;  %v5635_v60 = vrot.slane %v5254_v56, 2 }
 0x6f7   :  { %v5111_v58 = vadd.f32 %v5037_v32, %v4756_v59  ;;  %v4942_v63 = vpop.f32.mrf.mxu2  ;;  %v12164_v36 = vpop.f32.mrf.mxu1  ;;  %v5614_v6 = vsel %vm5524_vm3, %v5609_v38, %v5613_v16 }
 0x6f8   :  { %v5122_v4 = vadd.f32 %v4942_v63, %v4767_v26  ;;  %v12167_v2 = vmax.f32 %v5241_v8, %v5614_v6  ;;  %v5636_v11 = vsel %vm5524_vm3, %v5631_v40, %v5635_v60  ;;  %v13834_v8 = vld [vmem:[#allocation34_spill] sm:$0xff]  ;;  %v13835_v40 = vld [vmem:[#allocation149_spill] sm:$0xff]  ;;  %v12184_v20 = vpop.f32.mrf.mxu0 }
 0x6f9   :  { %v5181_v39 = vadd.f32 %v11651_v50, %v5111_v58  ;;  %v12171_v25 = vmax.f32 %v5252_v10, %v5636_v11  ;;  %v4414_v38 = vadd.f32 %v13834_v8, %v3945_v47  ;;  %v13836_v10 = vld [vmem:[#allocation126_spill] sm:$0xff]  ;;  %v13837_v6 = vld [vmem:[#allocation129_spill] sm:$0xff]  ;;  %13838 = vst [vmem:[#allocation108_spill] sm:$0xff] %v12184_v20 }
 0x6fa   :  { %v5192_v1 = vadd.f32 %v11537_v9, %v5122_v4  ;;  %6007 = vmatmul.f32.gmra.mxu1 %v12167_v2  ;;  %v4758_v32 = vadd.f32 %v13836_v10, %v13835_v40  ;;  %v6456_v63 = vld [vmem:[#allocation12 + $0xc8] sm:$0xff] }
 0x6fb   :  { %v5245_v59 = vmax.f32 %v5181_v39, 0.0  ;;  %6227 = vmatmul.f32.gmra.mxu3 %v11885_v12  ;;  %5912 = vmatmul.f32.gmra.mxu0 %v12171_v25  ;;  %v4769_v11 = vadd.f32 %v13837_v6, %v4414_v38  ;;  %v13840_v38 = vld [vmem:[#allocation67_spill] sm:$0xff]  ;;  %v13841_v6 = vld [vmem:[#allocation22_spill] sm:$0xff] }
 0x6fc   :  { %v5256_v26 = vmax.f32 %v5192_v1, 0.0  ;;  %6132 = vmatmul.f32.gmra.mxu2 %v11889_v14  ;;  %6469 = vmatpush.msrb.mxu0 %v6456_v63  ;;  %v3948_v20 = vadd.f32 %v13841_v6, %v13840_v38 }
 0x6fd   :  { %v5617_v58 = vrot.slane %v5245_v59, 2 }
 0x6fe   :  { %v5040_v4 = vpop.f32.mrf.mxu3  ;;  %v5639_v39 = vrot.slane %v5256_v26, 2 }
 0x6ff   :  { %v5113_v12 = vadd.f32 %v5040_v4, %v4758_v32  ;;  %v4945_v49 = vpop.f32.mrf.mxu2  ;;  %v12186_v52 = vpop.f32.mrf.mxu1  ;;  %v5618_v47 = vsel %vm5524_vm3, %v5613_v16, %v5617_v58 }
 0x700   :  { %13839 = vst [vmem:[#allocation133_spill] sm:$0xff] %v12186_v52  ;;  %v5124_v1 = vadd.f32 %v4945_v49, %v4769_v11  ;;  %v12189_v14 = vmax.f32 %v5243_v21, %v5618_v47  ;;  %v5640_v8 = vsel %vm5524_vm3, %v5635_v60, %v5639_v39  ;;  %v13842_v21 = vld [vmem:[#allocation79_spill] sm:$0xff]  ;;  %v13843_v60 = vld [vmem:[#allocation88_spill] sm:$0xff]  ;;  %v12207_v6 = vpop.f32.mrf.mxu0 }
 0x701   :  { %v5183_v40 = vadd.f32 %v11651_v50, %v5113_v12  ;;  %v12193_v10 = vmax.f32 %v5254_v56, %v5640_v8  ;;  %v4416_v16 = vadd.f32 %v13842_v21, %v3948_v20  ;;  %v13844_v56 = vld [vmem:[#allocation52_spill] sm:$0xff] }
 0x702   :  { %v5194_v63 = vadd.f32 %v11537_v9, %v5124_v1  ;;  %6010 = vmatmul.f32.gmra.mxu1 %v12189_v14  ;;  %v4760_v4 = vadd.f32 %v13844_v56, %v13843_v60  ;;  %v13846_v60 = vld [vmem:[#allocation37_spill] sm:$0xff] }
 0x703   :  { %v5247_v32 = vmax.f32 %v5183_v40, 0.0  ;;  %6230 = vmatmul.f32.gmra.mxu3 %v11907_v0  ;;  %5915 = vmatmul.f32.gmra.mxu0 %v12193_v10  ;;  %v4771_v49 = vadd.f32 %v11905_v30, %v4416_v16 }
 0x704   :  { %v5258_v11 = vmax.f32 %v5194_v63, 0.0  ;;  %6135 = vmatmul.f32.gmra.mxu2 %v11911_v37 }
 0x705   :  { %v5621_v12 = vrot.slane %v5247_v32, 2 }
 0x706   :  { %v5043_v47 = vpop.f32.mrf.mxu3  ;;  %v5643_v1 = vrot.slane %v5258_v11, 2 }
 0x707   :  { %v5115_v8 = vadd.f32 %v5043_v47, %v4760_v4  ;;  %v4948_v38 = vpop.f32.mrf.mxu2  ;;  %v5622_v40 = vsel %vm5524_vm3, %v5617_v58, %v5621_v12  ;;  %v12213_v63 = vpop.f32.mrf.mxu1 }
 0x708   :  { %v5126_v0 = vadd.f32 %v4948_v38, %v4771_v49  ;;  %v12209_v52 = vmax.f32 %v5245_v59, %v5622_v40  ;;  %v5644_v20 = vsel %vm5524_vm3, %v5639_v39, %v5643_v1  ;;  %v13845_v59 = vld [vmem:[#allocation73_spill] sm:$0xff]  ;;  %v13847_v39 = vld [vmem:[#allocation71_spill] sm:$0xff]  ;;  %v5456_v40 = vld [vmem:[#allocation5 + $0xf8] sm:$0x3] }
 0x709   :  { %v5185_v37 = vadd.f32 %v11651_v50, %v5115_v8  ;;  %v12215_v21 = vmax.f32 %v5256_v26, %v5644_v20  ;;  %v4762_v56 = vadd.f32 %v13847_v39, %v13846_v60  ;;  %v6455_v49 = vld [vmem:[#allocation12 + $0xc0] sm:$0xff] }
 0x70a   :  { %v5196_v30 = vadd.f32 %v11537_v9, %v5126_v0  ;;  %6013 = vmatmul.f32.gmra.mxu1 %v12209_v52  ;;  %6470 = vmatpush.msrb.mxu0 %v6455_v49  ;;  %v6412_v49 = vld [vmem:[#allocation12 + $0x70] sm:$0xff] }
 0x70b   :  { %v5249_v16 = vmax.f32 %v5185_v37, 0.0  ;;  %6233 = vmatmul.f32.gmra.mxu3 %v11927_v44  ;;  %5918 = vmatmul.f32.gmra.mxu0 %v12215_v21 }
 0x70c   :  { %v5260_v58 = vmax.f32 %v5196_v30, 0.0  ;;  %6138 = vmatmul.f32.gmra.mxu2 %v13845_v59  ;;  %v12233_v30 = vpop.f32.mrf.mxu0  ;;  %v5651_v59 = vrot.slane %v5456_v40, 2 }
 0x70d   :  { %v5625_v4 = vrot.slane %v5249_v16, 2 }
 0x70e   :  { %v5046_v47 = vpop.f32.mrf.mxu3  ;;  %v5647_v26 = vrot.slane %v5260_v58, 2 }
 0x70f   :  { %v5117_v8 = vadd.f32 %v5046_v47, %v4762_v56  ;;  %v12224_v9 = vpop.f32.mrf.mxu2  ;;  %v5626_v38 = vsel %vm5524_vm3, %v5621_v12, %v5625_v4  ;;  %v12237_v39 = vpop.f32.mrf.mxu1  ;;  %v13848_v12 = vld [vmem:[#allocation80_spill] sm:$0xff] }
 0x710   :  { %v12227_v44 = vmax.f32 %v5247_v32, %v5626_v38  ;;  %v5648_v0 = vsel %vm5524_vm3, %v5643_v1, %v5647_v26  ;;  %v6413_v32 = vld [vmem:[#allocation12 + $0x78] sm:$0xff]  ;;  %v13849_v1 = vld [vmem:[#allocation81_spill] sm:$0xff] }
 0x711   :  { %v5187_v20 = vadd.f32 %v11651_v50, %v5117_v8  ;;  %v12231_v37 = vmax.f32 %v5258_v11, %v5648_v0  ;;  %6576 = vmatpush.msrb.mxu1 %v6413_v32  ;;  %v4764_v11 = vadd.f32 %v13849_v1, %v13848_v12  ;;  %v5652_v8 = vsel %vm5524_vm3, %v5647_v26, %v5651_v59  ;;  %v6411_v0 = vld [vmem:[#allocation12 + $0x68] sm:$0xff]  ;;  %v6410_v12 = vld [vmem:[#allocation12 + $0x60] sm:$0xff]  ;;  %v6409_v26 = vld [vmem:[#allocation12 + $0x58] sm:$0xff] }
 0x712   :  { %6016 = vmatmul.f32.gmra.mxu1 %v12227_v44  ;;  %v12250_v32 = vmax.f32 %v5260_v58, %v5652_v8 }
 0x713   :  { %v5251_v60 = vmax.f32 %v5187_v20, 0.0  ;;  %6236 = vmatmul.f32.gmra.mxu3 %v11947_v13  ;;  %5921 = vmatmul.f32.gmra.mxu0 %v12231_v37 }
 0x714   :  { %6141 = vmatmul.f32.gmra.mxu2 %v11955_v34  ;;  %6577 = vmatpush.msrb.mxu1 %v6412_v49  ;;  %v12255_v59 = vpop.f32.mrf.mxu0  ;;  %v6454_v49 = vld [vmem:[#allocation12 + $0xb8] sm:$0xff] }
 0x715   :  { %v5629_v56 = vrot.slane %v5251_v60, 2  ;;  %6471 = vmatpush.msrb.mxu0 %v6454_v49 }
 0x716   :  { %v5049_v47 = vpop.f32.mrf.mxu3  ;;  %6578 = vmatpush.msrb.mxu1 %v6411_v0 }
 0x717   :  { %v5119_v38 = vadd.f32 %v5049_v47, %v4764_v11  ;;  %v12244_v40 = vpop.f32.mrf.mxu2  ;;  %v5630_v13 = vsel %vm5524_vm3, %v5625_v4, %v5629_v56  ;;  %v12260_v11 = vpop.f32.mrf.mxu1  ;;  %v6408_v47 = vld [vmem:[#allocation12 + $0x50] sm:$0xff] }
 0x718   :  { %v12247_v20 = vmax.f32 %v5249_v16, %v5630_v13  ;;  %6579 = vmatpush.msrb.mxu1 %v6410_v12  ;;  %v13850_v16 = vld [vmem:[#allocation66_spill] sm:$0xff] }
 0x719   :  { %v5189_v34 = vadd.f32 %v11651_v50, %v5119_v38  ;;  %v4766_v4 = vadd.f32 %v11952_v55, %v13850_v16  ;;  %v6406_v55 = vld [vmem:[#allocation12 + $0x40] sm:$0xff]  ;;  %v13851_v16 = vld [vmem:[#allocation68_spill] sm:$0xff] }
 0x71a   :  { %6019 = vmatmul.f32.gmra.mxu1 %v12247_v20 }
 0x71b   :  { %v5253_v1 = vmax.f32 %v5189_v34, 0.0  ;;  %6239 = vmatmul.f32.gmra.mxu3 %v11969_v53  ;;  %5924 = vmatmul.f32.gmra.mxu0 %v12250_v32 }
 0x71c   :  { %6144 = vmatmul.f32.gmra.mxu2 %v11975_v43  ;;  %6580 = vmatpush.msrb.mxu1 %v6409_v26  ;;  %v6407_v43 = vld [vmem:[#allocation12 + $0x48] sm:$0xff]  ;;  %v6405_v26 = vld [vmem:[#allocation12 + $0x38] sm:$0xff]  ;;  %v12273_v49 = vpop.f32.mrf.mxu0 }
 0x71d   :  { %v5633_v58 = vrot.slane %v5253_v1, 2  ;;  %13852 = vst [vmem:[#allocation45_spill] sm:$0xff] %v12273_v49  ;;  %v6402_v49 = vld [vmem:[#allocation12 + $0x20] sm:$0xff] }
 0x71e   :  { %v5052_v8 = vpop.f32.mrf.mxu3  ;;  %6581 = vmatpush.msrb.mxu1 %v6408_v47  ;;  %v6453_v47 = vld [vmem:[#allocation12 + $0xb0] sm:$0xff] }
 0x71f   :  { %v5121_v53 = vadd.f32 %v5052_v8, %v4766_v4  ;;  %v12262_v38 = vpop.f32.mrf.mxu2  ;;  %v5634_v13 = vsel %vm5524_vm3, %v5629_v56, %v5633_v58  ;;  %v4768_v4 = vadd.f32 %v11981_v62, %v13851_v16  ;;  %v6404_v8 = vld [vmem:[#allocation12 + $0x30] sm:$0xff]  ;;  %6472 = vmatpush.msrb.mxu0 %v6453_v47  ;;  %v6451_v16 = vld [vmem:[#allocation12 + $0xa0] sm:$0xff]  ;;  %v6401_v47 = vld [vmem:[#allocation12 + $0x18] sm:$0xff] }
 0x720   :  { %v12265_v0 = vmax.f32 %v5251_v60, %v5634_v13  ;;  %6582 = vmatpush.msrb.mxu1 %v6407_v43  ;;  %v12275_v13 = vpop.f32.mrf.mxu1  ;;  %v6452_v43 = vld [vmem:[#allocation12 + $0xa8] sm:$0xff] }
 0x721   :  { %v5191_v34 = vadd.f32 %v11651_v50, %v5121_v53  ;;  %6473 = vmatpush.msrb.mxu0 %v6452_v43 }
 0x722   :  { %6022 = vmatmul.f32.gmra.mxu1 %v12265_v0 }
 0x723   :  { %v5255_v12 = vmax.f32 %v5191_v34, 0.0  ;;  %6242 = vmatmul.f32.gmra.mxu3 %v11991_v24  ;;  %6583 = vmatpush.msrb.mxu1 %v6406_v55  ;;  %v6403_v55 = vld [vmem:[#allocation12 + $0x28] sm:$0xff] }
 0x724   :  { %6147 = vmatmul.f32.gmra.mxu2 %v11997_v35  ;;  %6474 = vmatpush.msrb.mxu0 %v6451_v16 }
 0x725   :  { %v5637_v56 = vrot.slane %v5255_v12, 2  ;;  %6584 = vmatpush.msrb.mxu1 %v6405_v26 }
 0x726   :  { %v5055_v60 = vpop.f32.mrf.mxu3 }
 0x727   :  { %v5123_v53 = vadd.f32 %v5055_v60, %v4768_v4  ;;  %v12277_v34 = vpop.f32.mrf.mxu2  ;;  %v5638_v24 = vsel %vm5524_vm3, %v5633_v58, %v5637_v56  ;;  %6585 = vmatpush.msrb.mxu1 %v6404_v8  ;;  %v6450_v60 = vld [vmem:[#allocation12 + $0x98] sm:$0xff] }
 0x728   :  { %v12280_v35 = vmax.f32 %v5253_v1, %v5638_v24  ;;  %v13853_v1 = vld [vmem:[#allocation122_spill] sm:$0xff]  ;;  %6475 = vmatpush.msrb.mxu0 %v6450_v60  ;;  %v6400_v60 = vld [vmem:[#allocation12 + $0x10] sm:$0xff] }
 0x729   :  { %v5193_v62 = vadd.f32 %v11651_v50, %v5123_v53  ;;  %6586 = vmatpush.msrb.mxu1 %v6403_v55  ;;  %v4770_v58 = vadd.f32 %v12009_v18, %v13853_v1  ;;  %v6449_v53 = vld [vmem:[#allocation12 + $0x90] sm:$0xff]  ;;  %v12296_v55 = vpop.f32.mrf.mxu1 }
 0x72a   :  { %6025 = vmatmul.f32.gmra.mxu1 %v12280_v35  ;;  %6476 = vmatpush.msrb.mxu0 %v6449_v53 }
 0x72b   :  { %v5257_v4 = vmax.f32 %v5193_v62, 0.0  ;;  %6245 = vmatmul.f32.gmra.mxu3 %v12013_v5  ;;  %6587 = vmatpush.msrb.mxu1 %v6402_v49  ;;  %v12291_v62 = vpop.f32.mrf.mxu0  ;;  %v6447_v49 = vld [vmem:[#allocation12 + $0x80] sm:$0xff] }
 0x72c   :  { %6150 = vmatmul.f32.gmra.mxu2 %v12019_v27  ;;  %v6448_v27 = vld [vmem:[#allocation12 + $0x88] sm:$0xff] }
 0x72d   :  { %v5641_v26 = vrot.slane %v5257_v4, 2  ;;  %6588 = vmatpush.msrb.mxu1 %v6401_v47  ;;  %6477 = vmatpush.msrb.mxu0 %v6448_v27 }
 0x72e   :  { %v5058_v8 = vpop.f32.mrf.mxu3 }
 0x72f   :  { %v5125_v24 = vadd.f32 %v5058_v8, %v4770_v58  ;;  %v12288_v43 = vpop.f32.mrf.mxu2  ;;  %v5642_v5 = vsel %vm5524_vm3, %v5637_v56, %v5641_v26  ;;  %6478 = vmatpush.msrb.mxu0 %v6447_v49  ;;  %v6399_v56 = vld [vmem:[#allocation12 + $0x8] sm:$0xff]  ;;  %6589 = vmatpush.msrb.mxu1 %v6400_v60  ;;  %v6398_v8 = vld [vmem:[#allocation12] sm:$0xff] }
 0x730   :  { %v12293_v16 = vmax.f32 %v5255_v12, %v5642_v5  ;;  %v13854_v12 = vld [vmem:[#allocation94_spill] sm:$0xff] }
 0x731   :  { %v5195_v18 = vadd.f32 %v11651_v50, %v5125_v24  ;;  %v4772_v58 = vadd.f32 %v12032_v3, %v13854_v12  ;;  %6590 = vmatpush.msrb.mxu1 %v6399_v56  ;;  %v12312_v3 = vpop.f32.mrf.mxu1  ;;  %v5457_v12 = vld [vmem:[#allocation5 + $0x70] sm:$0x3] }
 0x732   :  { %6028 = vmatmul.f32.gmra.mxu1 %v12293_v16 }
 0x733   :  { %v5259_v1 = vmax.f32 %v5195_v18, 0.0  ;;  %6248 = vmatmul.f32.gmra.mxu3 %v12035_v48  ;;  %6591 = vmatpush.msrb.mxu1 %v6398_v8  ;;  %v12309_v49 = vpop.f32.mrf.mxu0 }
 0x734   :  { %6153 = vmatmul.f32.gmra.mxu2 %v12041_v54 }
 0x735   :  { %v5645_v47 = vrot.slane %v5259_v1, 2 }
 0x736   :  { %v5061_v53 = vpop.f32.mrf.mxu3 }
 0x737   :  { %v5127_v24 = vadd.f32 %v5061_v53, %v4772_v58  ;;  %v12303_v5 = vpop.f32.mrf.mxu2  ;;  %v5646_v27 = vsel %vm5524_vm3, %v5641_v26, %v5645_v47  ;;  %v13855_v26 = vld [vmem:[#allocation105_spill] sm:$0xff] }
 0x738   :  { %v12306_v18 = vmax.f32 %v5257_v4, %v5646_v27  ;;  %v5946_v4 = vadd.f32 %v12054_v57, %v13855_v26  ;;  %v5653_v27 = vrot.slane %v5457_v12, 2 }
 0x739   :  { %v5197_v48 = vadd.f32 %v11651_v50, %v5127_v24  ;;  %v12329_v57 = vpop.f32.mrf.mxu1 }
 0x73a   :  { %6031 = vmatmul.f32.gmra.mxu1 %v12306_v18 }
 0x73b   :  { %v5261_v54 = vmax.f32 %v5197_v48, 0.0  ;;  %6251 = vmatmul.f32.gmra.mxu3 %v12057_v28  ;;  %v12326_v28 = vpop.f32.mrf.mxu0  ;;  %v13856_v48 = vld [vmem:[#allocation72_spill] sm:$0xff] }
 0x73c   :  { %6156 = vmatmul.f32.gmra.mxu2 %v12063_v51 }
 0x73d   :  { %v5649_v60 = vrot.slane %v5261_v54, 2 }
 0x73e   :  { %v6204_v56 = vpop.f32.mrf.mxu3 }
 0x73f   :  { %v6205_v58 = vadd.f32 %v6204_v56, %v12224_v9  ;;  %v12319_v50 = vpop.f32.mrf.mxu2  ;;  %v5650_v8 = vsel %vm5524_vm3, %v5645_v47, %v5649_v60  ;;  %v5654_v51 = vsel %vm5524_vm3, %v5649_v60, %v5653_v27  ;;  %v13857_v60 = vld [vmem:[#allocation43_spill] sm:$0xff] }
 0x740   :  { %v12322_v53 = vmax.f32 %v5259_v1, %v5650_v8  ;;  %v5949_v1 = vadd.f32 %v12076_v15, %v13856_v48  ;;  %v12337_v12 = vmax.f32 %v5261_v54, %v5654_v51  ;;  %v6737_v15 = vld [vmem:[#allocation12 + $0x178] sm:$0xff]  ;;  %v6736_v8 = vld [vmem:[#allocation12 + $0x170] sm:$0xff] }
 0x741   :  { %v6300_v24 = vmax.f32 %v5946_v4, %v6205_v58  ;;  %v12349_v4 = vpop.f32.mrf.mxu1  ;;  %6738 = vmatpush.msrb.mxu2 %v6737_v15  ;;  %v6733_v51 = vld [vmem:[#allocation12 + $0x158] sm:$0xff]  ;;  %v5958_v15 = vadd.f32 %v12142_v31, %v12015_v45  ;;  %v6728_v45 = vld [vmem:[#allocation12 + $0x130] sm:$0xff] }
 0x742   :  { %6034 = vmatmul.f32.gmra.mxu1 %v12322_v53 }
 0x743   :  { %6332 = vst [vmem:[#allocation6] sm:$0xff] %v6300_v24  ;;  %6254 = vmatmul.f32.gmra.mxu3 %v12079_v46  ;;  %v12345_v46 = vpop.f32.mrf.mxu0  ;;  %6739 = vmatpush.msrb.mxu2 %v6736_v8 }
 0x744   :  { %6159 = vmatmul.f32.gmra.mxu2 %v12085_v7 }
 0x746   :  { %v6207_v9 = vpop.f32.mrf.mxu3 }
 0x747   :  { %v6208_v47 = vadd.f32 %v6207_v9, %v12244_v40  ;;  %v12335_v56 = vpop.f32.mrf.mxu2  ;;  %v5952_v40 = vadd.f32 %v12098_v42, %v13857_v60  ;;  %v6734_v42 = vld [vmem:[#allocation12 + $0x160] sm:$0xff]  ;;  %v5955_v9 = vadd.f32 %v12120_v61, %v11993_v33  ;;  %v6731_v33 = vld [vmem:[#allocation12 + $0x148] sm:$0xff] }
 0x749   :  { %v12339_v26 = vmax.f32 %v5949_v1, %v6208_v47  ;;  %v12366_v47 = vpop.f32.mrf.mxu1 }
 0x74a   :  { %6037 = vmatmul.f32.gmra.mxu1 %v12337_v12 }
 0x74b   :  { %6333 = vst [vmem:[#allocation6 + $0x8] sm:$0xff] %v12339_v26  ;;  %6257 = vmatmul.f32.gmra.mxu3 %v12101_v23 }
 0x74c   :  { %6162 = vmatmul.f32.gmra.mxu2 %v12107_v41  ;;  %v6735_v41 = vld [vmem:[#allocation12 + $0x168] sm:$0xff] }
 0x74d   :  { %6740 = vmatpush.msrb.mxu2 %v6735_v41  ;;  %v13858_v41 = vld [vmem:[#allocation54_spill] sm:$0xff] }
 0x74e   :  { %v6210_v7 = vpop.f32.mrf.mxu3 }
 0x74f   :  { %v6211_v54 = vadd.f32 %v6210_v7, %v12262_v38  ;;  %v12352_v58 = vpop.f32.mrf.mxu2  ;;  %6741 = vmatpush.msrb.mxu2 %v6734_v42  ;;  %v6732_v7 = vld [vmem:[#allocation12 + $0x150] sm:$0xff]  ;;  %v5961_v42 = vadd.f32 %v12164_v36, %v13858_v41 }
 0x750   :  { %v13861_v41 = vld [vmem:[#allocation131_spill] sm:$0xff] }
 0x751   :  { %v12354_v27 = vmax.f32 %v5952_v40, %v6211_v54  ;;  %6742 = vmatpush.msrb.mxu2 %v6733_v51 }
 0x752   :  { %v6414_v23 = vld [vmem:[#allocation6 + $0x4] sm:$0xff]  ;;  %6592 = vmatmul.f32.vlgmr.msrb.gmra.mxu1 %v6300_v24  ;;  %v12364_v24 = vpop.f32.mrf.mxu0 }
 0x753   :  { %6334 = vst [vmem:[#allocation6 + $0x10] sm:$0xff] %v12354_v27  ;;  %6260 = vmatmul.f32.gmra.mxu3 %v12123_v19  ;;  %6479 = vmatmul.f32.vlgmr.msrb.gmra.mxu0 %v6414_v23  ;;  %v12389_v23 = vpop.f32.mrf.mxu1 }
 0x754   :  { %6165 = vmatmul.f32.gmra.mxu2 %v12127_v29 }
 0x755   :  { %6743 = vmatpush.msrb.mxu2 %v6732_v7 }
 0x756   :  { %v6213_v38 = vpop.f32.mrf.mxu3 }
 0x757   :  { %v6214_v48 = vadd.f32 %v6213_v38, %v12277_v34  ;;  %v12362_v1 = vpop.f32.mrf.mxu2  ;;  %v6730_v34 = vld [vmem:[#allocation12 + $0x140] sm:$0xff]  ;;  %6744 = vmatpush.msrb.mxu2 %v6731_v33  ;;  %v6724_v33 = vld [vmem:[#allocation12 + $0x110] sm:$0xff] }
 0x759   :  { %v12368_v19 = vmax.f32 %v5955_v9, %v6214_v48  ;;  %6745 = vmatpush.msrb.mxu2 %v6730_v34  ;;  %v13860_v34 = vld [vmem:[#allocation133_spill] sm:$0xff] }
 0x75a   :  { %v12370_v29 = vld [vmem:[#allocation6 + $0xc] sm:$0xff]  ;;  %6595 = vmatmul.f32.gmra.mxu1 %v12339_v26 }
 0x75b   :  { %6335 = vst [vmem:[#allocation6 + $0x18] sm:$0xff] %v12368_v19  ;;  %6263 = vmatmul.f32.gmra.mxu3 %v12145_v22  ;;  %6482 = vmatmul.f32.gmra.mxu0 %v12370_v29  ;;  %v12384_v22 = vpop.f32.mrf.mxu0  ;;  %v12411_v48 = vpop.f32.mrf.mxu1 }
 0x75c   :  { %6168 = vmatmul.f32.gmra.mxu2 %v12149_v17  ;;  %v6729_v17 = vld [vmem:[#allocation12 + $0x138] sm:$0xff] }
 0x75d   :  { %6746 = vmatpush.msrb.mxu2 %v6729_v17 }
 0x75e   :  { %v6216_v61 = vpop.f32.mrf.mxu3 }
 0x75f   :  { %v6217_v60 = vadd.f32 %v6216_v61, %v12288_v43  ;;  %v12380_v40 = vpop.f32.mrf.mxu2  ;;  %v6727_v43 = vld [vmem:[#allocation12 + $0x128] sm:$0xff]  ;;  %6747 = vmatpush.msrb.mxu2 %v6728_v45 }
 0x760   :  { %v13859_v61 = vld [vmem:[#allocation74_spill] sm:$0xff] }
 0x761   :  { %v12382_v54 = vmax.f32 %v5958_v15, %v6217_v60  ;;  %6748 = vmatpush.msrb.mxu2 %v6727_v43  ;;  %v5964_v15 = vadd.f32 %v13860_v34, %v13859_v61 }
 0x762   :  { %v12386_v8 = vld [vmem:[#allocation6 + $0x14] sm:$0xff]  ;;  %6598 = vmatmul.f32.gmra.mxu1 %v12354_v27 }
 0x763   :  { %6336 = vst [vmem:[#allocation6 + $0x20] sm:$0xff] %v12382_v54  ;;  %6266 = vmatmul.f32.gmra.mxu3 %v12167_v2  ;;  %6485 = vmatmul.f32.gmra.mxu0 %v12386_v8  ;;  %v12408_v36 = vpop.f32.mrf.mxu0 }
 0x764   :  { %6171 = vmatmul.f32.gmra.mxu2 %v12171_v25  ;;  %v6726_v25 = vld [vmem:[#allocation12 + $0x120] sm:$0xff] }
 0x765   :  { %6749 = vmatpush.msrb.mxu2 %v6726_v25 }
 0x766   :  { %v6219_v31 = vpop.f32.mrf.mxu3 }
 0x767   :  { %v6220_v38 = vadd.f32 %v6219_v31, %v12303_v5  ;;  %v12398_v51 = vpop.f32.mrf.mxu2  ;;  %v6725_v5 = vld [vmem:[#allocation12 + $0x118] sm:$0xff] }
 0x768   :  { %6750 = vmatpush.msrb.mxu2 %v6725_v5 }
 0x769   :  { %v12400_v9 = vmax.f32 %v5961_v42, %v6220_v38  ;;  %v5967_v42 = vadd.f32 %v12213_v63, %v13861_v41  ;;  %v12431_v38 = vpop.f32.mrf.mxu1  ;;  %v6931_v63 = vld [vmem:[#allocation12 + $0x1f8] sm:$0xff]  ;;  %v6926_v41 = vld [vmem:[#allocation12 + $0x1d0] sm:$0xff] }
 0x76a   :  { %v12402_v2 = vld [vmem:[#allocation6 + $0x1c] sm:$0xff]  ;;  %6601 = vmatmul.f32.gmra.mxu1 %v12368_v19  ;;  %6751 = vmatpush.msrb.mxu2 %v6724_v33  ;;  %v13862_v33 = vld [vmem:[#allocation97_spill] sm:$0xff] }
 0x76b   :  { %6337 = vst [vmem:[#allocation6 + $0x28] sm:$0xff] %v12400_v9  ;;  %6269 = vmatmul.f32.gmra.mxu3 %v12189_v14  ;;  %6488 = vmatmul.f32.gmra.mxu0 %v12402_v2  ;;  %v12427_v31 = vpop.f32.mrf.mxu0  ;;  %v5970_v61 = vadd.f32 %v12237_v39, %v13862_v33  ;;  %v6927_v39 = vld [vmem:[#allocation12 + $0x1d8] sm:$0xff] }
 0x76c   :  { %6174 = vmatmul.f32.gmra.mxu2 %v12193_v10  ;;  %v6723_v10 = vld [vmem:[#allocation12 + $0x108] sm:$0xff]  ;;  %6932 = vmatpush.msra.mxu3 %v6931_v63 }
 0x76d   :  { %6752 = vmatpush.msrb.mxu2 %v6723_v10 }
 0x76e   :  { %v6222_v7 = vpop.f32.mrf.mxu3 }
 0x76f   :  { %v6223_v60 = vadd.f32 %v6222_v7, %v12319_v50  ;;  %v12416_v17 = vpop.f32.mrf.mxu2  ;;  %v6722_v50 = vld [vmem:[#allocation12 + $0x100] sm:$0xff] }
 0x770   :  { %6753 = vmatpush.msrb.mxu2 %v6722_v50 }
 0x771   :  { %v12418_v14 = vmax.f32 %v5964_v15, %v6223_v60  ;;  %v6929_v60 = vld [vmem:[#allocation12 + $0x1e8] sm:$0xff]  ;;  %v12450_v10 = vpop.f32.mrf.mxu1 }
 0x772   :  { %v12420_v45 = vld [vmem:[#allocation6 + $0x24] sm:$0xff]  ;;  %6604 = vmatmul.f32.gmra.mxu1 %v12382_v54 }
 0x773   :  { %6338 = vst [vmem:[#allocation6 + $0x30] sm:$0xff] %v12418_v14  ;;  %6272 = vmatmul.f32.gmra.mxu3 %v12209_v52  ;;  %6491 = vmatmul.f32.gmra.mxu0 %v12420_v45 }
 0x774   :  { %6177 = vmatmul.f32.gmra.mxu2 %v12215_v21 }
 0x776   :  { %v6225_v43 = vpop.f32.mrf.mxu3 }
 0x777   :  { %v6226_v25 = vadd.f32 %v6225_v43, %v12335_v56  ;;  %v12434_v5 = vpop.f32.mrf.mxu2  ;;  %v6930_v56 = vld [vmem:[#allocation12 + $0x1f0] sm:$0xff]  ;;  %v6928_v43 = vld [vmem:[#allocation12 + $0x1e0] sm:$0xff] }
 0x778   :  { %6933 = vmatpush.msra.mxu3 %v6930_v56  ;;  %v6925_v56 = vld [vmem:[#allocation12 + $0x1c8] sm:$0xff] }
 0x779   :  { %v12436_v52 = vmax.f32 %v5967_v42, %v6226_v25  ;;  %v13863_v42 = vld [vmem:[#allocation55_spill] sm:$0xff] }
 0x77a   :  { %v12438_v7 = vld [vmem:[#allocation6 + $0x2c] sm:$0xff]  ;;  %6607 = vmatmul.f32.gmra.mxu1 %v12400_v9  ;;  %6934 = vmatpush.msra.mxu3 %v6929_v60  ;;  %v5973_v25 = vadd.f32 %v12260_v11, %v13863_v42  ;;  %v6922_v60 = vld [vmem:[#allocation12 + $0x1b0] sm:$0xff]  ;;  %v6921_v42 = vld [vmem:[#allocation12 + $0x1a8] sm:$0xff] }
 0x77b   :  { %6339 = vst [vmem:[#allocation6 + $0x38] sm:$0xff] %v12436_v52  ;;  %6275 = vmatmul.f32.gmra.mxu3 %v12227_v44  ;;  %6494 = vmatmul.f32.gmra.mxu0 %v12438_v7  ;;  %v12452_v44 = vpop.f32.mrf.mxu0  ;;  %v6923_v11 = vld [vmem:[#allocation12 + $0x1b8] sm:$0xff] }
 0x77c   :  { %6180 = vmatmul.f32.gmra.mxu2 %v12231_v37  ;;  %6935 = vmatpush.msra.mxu3 %v6928_v43  ;;  %v13864_v43 = vld [vmem:[#allocation98_spill] sm:$0xff] }
 0x77e   :  { %v6228_v21 = vpop.f32.mrf.mxu3  ;;  %6936 = vmatpush.msra.mxu3 %v6927_v39  ;;  %v5976_v39 = vadd.f32 %v12275_v13, %v13864_v43  ;;  %v6919_v13 = vld [vmem:[#allocation12 + $0x198] sm:$0xff] }
 0x77f   :  { %v6229_v34 = vadd.f32 %v6228_v21, %v12352_v58  ;;  %v12448_v15 = vpop.f32.mrf.mxu2 }
 0x780   :  { %6937 = vmatpush.msra.mxu3 %v6926_v41 }
 0x781   :  { %v12454_v50 = vmax.f32 %v5970_v61, %v6229_v34  ;;  %v12473_v61 = vpop.f32.mrf.mxu1 }
 0x782   :  { %v12456_v37 = vld [vmem:[#allocation6 + $0x34] sm:$0xff]  ;;  %6610 = vmatmul.f32.gmra.mxu1 %v12418_v14  ;;  %6938 = vmatpush.msra.mxu3 %v6925_v56 }
 0x783   :  { %6340 = vst [vmem:[#allocation6 + $0x40] sm:$0xff] %v12454_v50  ;;  %6278 = vmatmul.f32.gmra.mxu3 %v12247_v20  ;;  %6497 = vmatmul.f32.gmra.mxu0 %v12456_v37  ;;  %v12475_v34 = vpop.f32.mrf.mxu0 }
 0x784   :  { %6183 = vmatmul.f32.gmra.mxu2 %v12250_v32  ;;  %v6924_v32 = vld [vmem:[#allocation12 + $0x1c0] sm:$0xff] }
 0x785   :  { %6939 = vmatpush.msra.mxu3 %v6924_v32  ;;  %v6918_v32 = vld [vmem:[#allocation12 + $0x190] sm:$0xff] }
 0x786   :  { %v6231_v58 = vpop.f32.mrf.mxu3 }
 0x787   :  { %v6232_v63 = vadd.f32 %v6231_v58, %v12362_v1  ;;  %v12466_v21 = vpop.f32.mrf.mxu2  ;;  %6940 = vmatpush.msra.mxu3 %v6923_v11  ;;  %v13865_v11 = vld [vmem:[#allocation108_spill] sm:$0xff] }
 0x789   :  { %v12468_v33 = vmax.f32 %v5973_v25, %v6232_v63  ;;  %6941 = vmatpush.msra.mxu3 %v6922_v60 }
 0x78a   :  { %v12470_v20 = vld [vmem:[#allocation6 + $0x3c] sm:$0xff]  ;;  %6613 = vmatmul.f32.gmra.mxu1 %v12436_v52 }
 0x78b   :  { %6341 = vst [vmem:[#allocation6 + $0x48] sm:$0xff] %v12468_v33  ;;  %6281 = vmatmul.f32.gmra.mxu3 %v12265_v0  ;;  %6500 = vmatmul.f32.gmra.mxu0 %v12470_v20  ;;  %v12497_v63 = vpop.f32.mrf.mxu0 }
 0x78c   :  { %6754 = vmatmul.f32.vlgmr.msrb.gmra.mxu2 %v12339_v26  ;;  %6942 = vmatpush.msra.mxu3 %v6921_v42  ;;  %v6920_v26 = vld [vmem:[#allocation12 + $0x1a0] sm:$0xff]  ;;  %v5982_v42 = vadd.f32 %v12312_v3, %v12207_v6  ;;  %v5985_v3 = vadd.f32 %v12329_v57, %v12233_v30  ;;  %v7124_v30 = vld [vmem:[#allocation12 + $0x270] sm:$0xff]  ;;  %v5988_v57 = vadd.f32 %v12349_v4, %v12255_v59 }
 0x78d   :  { %v13866_v4 = vld [vmem:[#allocation45_spill] sm:$0xff] }
 0x78e   :  { %v6234_v1 = vpop.f32.mrf.mxu3  ;;  %6943 = vmatpush.msra.mxu3 %v6920_v26 }
 0x78f   :  { %v6235_v58 = vadd.f32 %v6234_v1, %v12380_v40  ;;  %v12484_v41 = vpop.f32.mrf.mxu2  ;;  %v12495_v40 = vpop.f32.mrf.mxu1  ;;  %v5979_v1 = vadd.f32 %v12296_v55, %v13865_v11  ;;  %v7125_v55 = vld [vmem:[#allocation12 + $0x278] sm:$0xff] }
 0x790   :  { %6944 = vmatpush.msra.mxu3 %v6919_v13  ;;  %7126 = vmatpush.msra.mxu0 %v7125_v55 }
 0x791   :  { %v12486_v25 = vmax.f32 %v5976_v39, %v6235_v58  ;;  %v6916_v58 = vld [vmem:[#allocation12 + $0x180] sm:$0xff] }
 0x792   :  { %v12488_v0 = vld [vmem:[#allocation6 + $0x44] sm:$0xff]  ;;  %6616 = vmatmul.f32.gmra.mxu1 %v12454_v50  ;;  %6945 = vmatpush.msra.mxu3 %v6918_v32 }
 0x793   :  { %6342 = vst [vmem:[#allocation6 + $0x50] sm:$0xff] %v12486_v25  ;;  %6284 = vmatmul.f32.gmra.mxu3 %v12280_v35  ;;  %6503 = vmatmul.f32.gmra.mxu0 %v12488_v0  ;;  %v6917_v35 = vld [vmem:[#allocation12 + $0x188] sm:$0xff]  ;;  %v12517_v13 = vpop.f32.mrf.mxu0 }
 0x794   :  { %6757 = vmatmul.f32.gmra.mxu2 %v12354_v27  ;;  %6946 = vmatpush.msra.mxu3 %v6917_v35 }
 0x795   :  { %7127 = vmatpush.msra.mxu0 %v7124_v30 }
 0x796   :  { %v6237_v56 = vpop.f32.mrf.mxu3  ;;  %6947 = vmatpush.msra.mxu3 %v6916_v58 }
 0x797   :  { %v6238_v60 = vadd.f32 %v6237_v56, %v12398_v51  ;;  %v12502_v43 = vpop.f32.mrf.mxu2  ;;  %v12515_v26 = vpop.f32.mrf.mxu1 }
 0x799   :  { %v12504_v39 = vmax.f32 %v5979_v1, %v6238_v60 }
 0x79a   :  { %v12506_v27 = vld [vmem:[#allocation6 + $0x4c] sm:$0xff]  ;;  %6619 = vmatmul.f32.gmra.mxu1 %v12468_v33 }
 0x79b   :  { %6343 = vst [vmem:[#allocation6 + $0x58] sm:$0xff] %v12504_v39  ;;  %6287 = vmatmul.f32.gmra.mxu3 %v12293_v16  ;;  %6506 = vmatmul.f32.gmra.mxu0 %v12506_v27  ;;  %v12536_v1 = vpop.f32.mrf.mxu0 }
 0x79c   :  { %6760 = vmatmul.f32.gmra.mxu2 %v12368_v19 }
 0x79e   :  { %v6240_v51 = vpop.f32.mrf.mxu3 }
 0x79f   :  { %v6241_v56 = vadd.f32 %v6240_v51, %v12416_v17  ;;  %v12520_v32 = vpop.f32.mrf.mxu2  ;;  %v12534_v17 = vpop.f32.mrf.mxu1 }
 0x7a1   :  { %v12522_v16 = vmax.f32 %v5982_v42, %v6241_v56 }
 0x7a2   :  { %v12524_v11 = vld [vmem:[#allocation6 + $0x54] sm:$0xff]  ;;  %6622 = vmatmul.f32.gmra.mxu1 %v12486_v25 }
 0x7a3   :  { %6344 = vst [vmem:[#allocation6 + $0x60] sm:$0xff] %v12522_v16  ;;  %6290 = vmatmul.f32.gmra.mxu3 %v12306_v18  ;;  %6509 = vmatmul.f32.gmra.mxu0 %v12524_v11 }
 0x7a4   :  { %6763 = vmatmul.f32.gmra.mxu2 %v12382_v54 }
 0x7a6   :  { %v6243_v6 = vpop.f32.mrf.mxu3 }
 0x7a7   :  { %v6244_v19 = vadd.f32 %v6243_v6, %v12434_v5  ;;  %v12542_v58 = vpop.f32.mrf.mxu2  ;;  %v12557_v51 = vpop.f32.mrf.mxu1 }
 0x7a9   :  { %v12538_v60 = vmax.f32 %v5985_v3, %v6244_v19  ;;  %v5994_v19 = vadd.f32 %v12389_v23, %v12291_v62  ;;  %v5997_v62 = vadd.f32 %v12411_v48, %v12309_v49  ;;  %v7122_v49 = vld [vmem:[#allocation12 + $0x260] sm:$0xff]  ;;  %v6000_v48 = vadd.f32 %v12431_v38, %v12326_v28 }
 0x7aa   :  { %v12540_v35 = vld [vmem:[#allocation6 + $0x5c] sm:$0xff]  ;;  %6625 = vmatmul.f32.gmra.mxu1 %v12504_v39 }
 0x7ab   :  { %6345 = vst [vmem:[#allocation6 + $0x68] sm:$0xff] %v12538_v60  ;;  %6293 = vmatmul.f32.gmra.mxu3 %v12322_v53  ;;  %6512 = vmatmul.f32.gmra.mxu0 %v12540_v35  ;;  %v12559_v53 = vpop.f32.mrf.mxu0 }
 0x7ac   :  { %6766 = vmatmul.f32.gmra.mxu2 %v12400_v9 }
 0x7ae   :  { %v6246_v18 = vpop.f32.mrf.mxu3 }
 0x7af   :  { %v6247_v54 = vadd.f32 %v6246_v18, %v12448_v15  ;;  %v12564_v9 = vpop.f32.mrf.mxu2  ;;  %v5991_v15 = vadd.f32 %v12366_v47, %v13866_v4 }
 0x7b1   :  { %v12552_v5 = vmax.f32 %v5988_v57, %v6247_v54 }
 0x7b2   :  { %v12554_v55 = vld [vmem:[#allocation6 + $0x64] sm:$0xff]  ;;  %6628 = vmatmul.f32.gmra.mxu1 %v12522_v16 }
 0x7b3   :  { %6346 = vst [vmem:[#allocation6 + $0x70] sm:$0xff] %v12552_v5  ;;  %6296 = vmatmul.f32.gmra.mxu3 %v12337_v12  ;;  %6515 = vmatmul.f32.gmra.mxu0 %v12554_v55  ;;  %v7123_v12 = vld [vmem:[#allocation12 + $0x268] sm:$0xff]  ;;  %v12581_v47 = vpop.f32.mrf.mxu0 }
 0x7b4   :  { %6769 = vmatmul.f32.gmra.mxu2 %v12418_v14  ;;  %7128 = vmatpush.msra.mxu0 %v7123_v12  ;;  %v12579_v14 = vpop.f32.mrf.mxu1 }
 0x7b6   :  { %v6249_v59 = vpop.f32.mrf.mxu3  ;;  %7129 = vmatpush.msra.mxu0 %v7122_v49 }
 0x7b7   :  { %v6250_v42 = vadd.f32 %v6249_v59, %v12466_v21  ;;  %v12583_v3 = vpop.f32.mrf.mxu2 }
 0x7b9   :  { %v12570_v56 = vmax.f32 %v5991_v15, %v6250_v42 }
 0x7ba   :  { %v12572_v6 = vld [vmem:[#allocation6 + $0x6c] sm:$0xff]  ;;  %6631 = vmatmul.f32.gmra.mxu1 %v12538_v60 }
 0x7bb   :  { %6347 = vst [vmem:[#allocation6 + $0x78] sm:$0xff] %v12570_v56  ;;  %6518 = vmatmul.f32.gmra.mxu0 %v12572_v6  ;;  %6948 = vmatmul.f32.vlgmr.msra.gmra.mxu3 %v12370_v29 }
 0x7bc   :  { %6772 = vmatmul.f32.gmra.mxu2 %v12436_v52  ;;  %v12599_v23 = vpop.f32.mrf.mxu1 }
 0x7be   :  { %v6252_v21 = vpop.f32.mrf.mxu3 }
 0x7bf   :  { %v6253_v30 = vadd.f32 %v6252_v21, %v12484_v41  ;;  %v12602_v41 = vpop.f32.mrf.mxu0  ;;  %v12604_v54 = vpop.f32.mrf.mxu2 }
 0x7c1   :  { %v12588_v18 = vmax.f32 %v5994_v19, %v6253_v30 }
 0x7c2   :  { %v12590_v57 = vld [vmem:[#allocation6 + $0x74] sm:$0xff]  ;;  %6634 = vmatmul.f32.gmra.mxu1 %v12552_v5 }
 0x7c3   :  { %6348 = vst [vmem:[#allocation6 + $0x80] sm:$0xff] %v12588_v18  ;;  %6521 = vmatmul.f32.gmra.mxu0 %v12590_v57  ;;  %6951 = vmatmul.f32.gmra.mxu3 %v12386_v8 }
 0x7c4   :  { %6775 = vmatmul.f32.gmra.mxu2 %v12454_v50  ;;  %v12620_v15 = vpop.f32.mrf.mxu1 }
 0x7c6   :  { %v6255_v29 = vpop.f32.mrf.mxu3 }
 0x7c7   :  { %v6256_v52 = vadd.f32 %v6255_v29, %v12502_v43  ;;  %v12624_v12 = vpop.f32.mrf.mxu2 }
 0x7c9   :  { %v12606_v59 = vmax.f32 %v5997_v62, %v6256_v52 }
 0x7ca   :  { %v12608_v4 = vld [vmem:[#allocation6 + $0x7c] sm:$0xff]  ;;  %6637 = vmatmul.f32.gmra.mxu1 %v12570_v56 }
 0x7cb   :  { %6349 = vst [vmem:[#allocation6 + $0x88] sm:$0xff] %v12606_v59  ;;  %6524 = vmatmul.f32.gmra.mxu0 %v12608_v4  ;;  %6954 = vmatmul.f32.gmra.mxu3 %v12402_v2  ;;  %v6003_v2 = vadd.f32 %v12450_v10, %v12345_v46 }
 0x7cc   :  { %6778 = vmatmul.f32.gmra.mxu2 %v12468_v33  ;;  %v12643_v30 = vpop.f32.mrf.mxu1 }
 0x7ce   :  { %v6258_v8 = vpop.f32.mrf.mxu3 }
 0x7cf   :  { %v6259_v50 = vadd.f32 %v6258_v8, %v12520_v32  ;;  %v6163_v46 = vpop.f32.mrf.mxu2 }
 0x7d0   :  { %v12618_v43 = vpop.f32.mrf.mxu0 }
 0x7d1   :  { %v12622_v42 = vmax.f32 %v6000_v48, %v6259_v50 }
 0x7d2   :  { %v12626_v21 = vld [vmem:[#allocation6 + $0x84] sm:$0xff]  ;;  %6640 = vmatmul.f32.gmra.mxu1 %v12588_v18 }
 0x7d3   :  { %6350 = vst [vmem:[#allocation6 + $0x90] sm:$0xff] %v12622_v42  ;;  %6527 = vmatmul.f32.gmra.mxu0 %v12626_v21  ;;  %6957 = vmatmul.f32.gmra.mxu3 %v12420_v45  ;;  %v7121_v45 = vld [vmem:[#allocation12 + $0x258] sm:$0xff] }
 0x7d4   :  { %6781 = vmatmul.f32.gmra.mxu2 %v12486_v25  ;;  %7130 = vmatpush.msra.mxu0 %v7121_v45  ;;  %v6006_v25 = vadd.f32 %v12473_v61, %v12364_v24 }
 0x7d6   :  { %v6261_v28 = vpop.f32.mrf.mxu3 }
 0x7d7   :  { %v6262_v38 = vadd.f32 %v6261_v28, %v12542_v58  ;;  %v6166_v24 = vpop.f32.mrf.mxu2 }
 0x7d8   :  { %v12636_v33 = vpop.f32.mrf.mxu0 }
 0x7d9   :  { %v12638_v32 = vmax.f32 %v6003_v2, %v6262_v38 }
 0x7da   :  { %v12640_v19 = vld [vmem:[#allocation6 + $0x8c] sm:$0xff]  ;;  %6643 = vmatmul.f32.gmra.mxu1 %v12606_v59 }
 0x7db   :  { %6351 = vst [vmem:[#allocation6 + $0x98] sm:$0xff] %v12638_v32  ;;  %6530 = vmatmul.f32.gmra.mxu0 %v12640_v19  ;;  %6960 = vmatmul.f32.gmra.mxu3 %v12438_v7  ;;  %v12663_v7 = vpop.f32.mrf.mxu1 }
 0x7dc   :  { %6784 = vmatmul.f32.gmra.mxu2 %v12504_v39  ;;  %v6009_v39 = vadd.f32 %v12495_v40, %v12384_v22  ;;  %v6012_v40 = vadd.f32 %v12515_v26, %v12408_v36 }
 0x7de   :  { %v6264_v10 = vpop.f32.mrf.mxu3 }
 0x7df   :  { %v6265_v58 = vadd.f32 %v6264_v10, %v12564_v9  ;;  %v6169_v50 = vpop.f32.mrf.mxu2 }
 0x7e0   :  { %v12652_v29 = vpop.f32.mrf.mxu0 }
 0x7e1   :  { %v12654_v62 = vmax.f32 %v6006_v25, %v6265_v58 }
 0x7e2   :  { %v12656_v52 = vld [vmem:[#allocation6 + $0x94] sm:$0xff]  ;;  %6646 = vmatmul.f32.gmra.mxu1 %v12622_v42 }
 0x7e3   :  { %6352 = vst [vmem:[#allocation6 + $0xa0] sm:$0xff] %v12654_v62  ;;  %6533 = vmatmul.f32.gmra.mxu0 %v12656_v52  ;;  %6963 = vmatmul.f32.gmra.mxu3 %v12456_v37  ;;  %v7120_v37 = vld [vmem:[#allocation12 + $0x250] sm:$0xff] }
 0x7e4   :  { %6787 = vmatmul.f32.gmra.mxu2 %v12522_v16  ;;  %7131 = vmatpush.msra.mxu0 %v7120_v37  ;;  %v12681_v16 = vpop.f32.mrf.mxu1 }
 0x7e6   :  { %v6267_v61 = vpop.f32.mrf.mxu3 }
 0x7e7   :  { %v6268_v9 = vadd.f32 %v6267_v61, %v12583_v3  ;;  %v6172_v10 = vpop.f32.mrf.mxu2 }
 0x7e8   :  { %v12668_v49 = vpop.f32.mrf.mxu0 }
 0x7e9   :  { %v12670_v8 = vmax.f32 %v6009_v39, %v6268_v9 }
 0x7ea   :  { %v12672_v48 = vld [vmem:[#allocation6 + $0x9c] sm:$0xff]  ;;  %6649 = vmatmul.f32.gmra.mxu1 %v12638_v32 }
 0x7eb   :  { %6353 = vst [vmem:[#allocation6 + $0xa8] sm:$0xff] %v12670_v8  ;;  %6536 = vmatmul.f32.gmra.mxu0 %v12672_v48  ;;  %6966 = vmatmul.f32.gmra.mxu3 %v12470_v20  ;;  %v6015_v20 = vadd.f32 %v12534_v17, %v12427_v31  ;;  %v7119_v31 = vld [vmem:[#allocation12 + $0x248] sm:$0xff]  ;;  %v6018_v17 = vadd.f32 %v12557_v51, %v12452_v44 }
 0x7ec   :  { %6790 = vmatmul.f32.gmra.mxu2 %v12538_v60  ;;  %7132 = vmatpush.msra.mxu0 %v7119_v31  ;;  %v6021_v51 = vadd.f32 %v12579_v14, %v12475_v34 }
 0x7ee   :  { %v6270_v22 = vpop.f32.mrf.mxu3 }
 0x7ef   :  { %v6271_v3 = vadd.f32 %v6270_v22, %v12604_v54  ;;  %v12700_v54 = vpop.f32.mrf.mxu1 }
 0x7f0   :  { %v12684_v28 = vpop.f32.mrf.mxu0 }
 0x7f1   :  { %v12686_v2 = vmax.f32 %v6012_v40, %v6271_v3 }
 0x7f2   :  { %v12688_v38 = vld [vmem:[#allocation6 + $0xa4] sm:$0xff]  ;;  %6652 = vmatmul.f32.gmra.mxu1 %v12654_v62 }
 0x7f3   :  { %6354 = vst [vmem:[#allocation6 + $0xb0] sm:$0xff] %v12686_v2  ;;  %6539 = vmatmul.f32.gmra.mxu0 %v12688_v38  ;;  %6969 = vmatmul.f32.gmra.mxu3 %v12488_v0 }
 0x7f4   :  { %6793 = vmatmul.f32.gmra.mxu2 %v12552_v5 }
 0x7f6   :  { %v6273_v36 = vpop.f32.mrf.mxu3 }
 0x7f7   :  { %v6274_v26 = vadd.f32 %v6273_v36, %v12624_v12  ;;  %v12720_v39 = vpop.f32.mrf.mxu1 }
 0x7f8   :  { %v12698_v60 = vpop.f32.mrf.mxu0 }
 0x7f9   :  { %v12702_v45 = vmax.f32 %v6015_v20, %v6274_v26 }
 0x7fa   :  { %v12704_v25 = vld [vmem:[#allocation6 + $0xac] sm:$0xff]  ;;  %6655 = vmatmul.f32.gmra.mxu1 %v12670_v8 }
 0x7fb   :  { %6355 = vst [vmem:[#allocation6 + $0xb8] sm:$0xff] %v12702_v45  ;;  %6542 = vmatmul.f32.gmra.mxu0 %v12704_v25  ;;  %6972 = vmatmul.f32.gmra.mxu3 %v12506_v27  ;;  %v6175_v27 = vpop.f32.mrf.mxu2 }
 0x7fc   :  { %6796 = vmatmul.f32.gmra.mxu2 %v12570_v56 }
 0x7fe   :  { %v6276_v0 = vpop.f32.mrf.mxu3 }
 0x7ff   :  { %v6277_v5 = vadd.f32 %v6276_v0, %v6163_v46  ;;  %v12739_v34 = vpop.f32.mrf.mxu1 }
 0x800   :  { %v12713_v12 = vpop.f32.mrf.mxu0 }
 0x801   :  { %v12715_v58 = vmax.f32 %v6018_v17, %v6277_v5  ;;  %v7354_v17 = vld [vmem:[#allocation14 + $0x78] sm:$0xff] }
 0x802   :  { %v12717_v61 = vld [vmem:[#allocation6 + $0xb4] sm:$0xff]  ;;  %6658 = vmatmul.f32.gmra.mxu1 %v12686_v2 }
 0x803   :  { %6356 = vst [vmem:[#allocation6 + $0xc0] sm:$0xff] %v12715_v58  ;;  %6545 = vmatmul.f32.gmra.mxu0 %v12717_v61  ;;  %6975 = vmatmul.f32.gmra.mxu3 %v12524_v11  ;;  %v7118_v11 = vld [vmem:[#allocation12 + $0x240] sm:$0xff]  ;;  %v6178_v14 = vpop.f32.mrf.mxu2 }
 0x804   :  { %6799 = vmatmul.f32.gmra.mxu2 %v12588_v18  ;;  %7133 = vmatpush.msra.mxu0 %v7118_v11  ;;  %v7115_v11 = vld [vmem:[#allocation12 + $0x228] sm:$0xff] }
 0x805   :  { %7359 = vmatpush.msra.mxu1 %v7354_v17 }
 0x806   :  { %v6279_v44 = vpop.f32.mrf.mxu3 }
 0x807   :  { %v6280_v56 = vadd.f32 %v6279_v44, %v6166_v24  ;;  %v6024_v24 = vadd.f32 %v12599_v23, %v12497_v63  ;;  %v6027_v63 = vadd.f32 %v12620_v15, %v12517_v13  ;;  %v12756_v23 = vpop.f32.mrf.mxu1  ;;  %v6030_v15 = vadd.f32 %v12643_v30, %v12536_v1 }
 0x808   :  { %v12728_v46 = vpop.f32.mrf.mxu0 }
 0x809   :  { %v12730_v9 = vmax.f32 %v6021_v51, %v6280_v56 }
 0x80a   :  { %v12732_v37 = vld [vmem:[#allocation6 + $0xbc] sm:$0xff]  ;;  %6661 = vmatmul.f32.gmra.mxu1 %v12702_v45 }
 0x80b   :  { %6357 = vst [vmem:[#allocation6 + $0xc8] sm:$0xff] %v12730_v9  ;;  %6548 = vmatmul.f32.gmra.mxu0 %v12732_v37  ;;  %6978 = vmatmul.f32.gmra.mxu3 %v12540_v35  ;;  %v6181_v20 = vpop.f32.mrf.mxu2 }
 0x80c   :  { %6802 = vmatmul.f32.gmra.mxu2 %v12606_v59 }
 0x80e   :  { %v6282_v18 = vpop.f32.mrf.mxu3 }
 0x80f   :  { %v6283_v22 = vadd.f32 %v6282_v18, %v6169_v50  ;;  %v12773_v5 = vpop.f32.mrf.mxu1 }
 0x810   :  { %v12743_v40 = vpop.f32.mrf.mxu0 }
 0x811   :  { %v12745_v3 = vmax.f32 %v6024_v24, %v6283_v22  ;;  %v7114_v24 = vld [vmem:[#allocation12 + $0x220] sm:$0xff] }
 0x812   :  { %v12747_v36 = vld [vmem:[#allocation6 + $0xc4] sm:$0xff]  ;;  %6664 = vmatmul.f32.gmra.mxu1 %v12715_v58 }
 0x813   :  { %6358 = vst [vmem:[#allocation6 + $0xd0] sm:$0xff] %v12745_v3  ;;  %6551 = vmatmul.f32.gmra.mxu0 %v12747_v36  ;;  %6981 = vmatmul.f32.gmra.mxu3 %v12554_v55  ;;  %v7117_v55 = vld [vmem:[#allocation12 + $0x238] sm:$0xff]  ;;  %v6184_v51 = vpop.f32.mrf.mxu2 }
 0x814   :  { %6805 = vmatmul.f32.gmra.mxu2 %v12622_v42  ;;  %7134 = vmatpush.msra.mxu0 %v7117_v55 }
 0x816   :  { %v6285_v35 = vpop.f32.mrf.mxu3 }
 0x817   :  { %v6286_v50 = vadd.f32 %v6285_v35, %v6172_v10  ;;  %v7112_v35 = vld [vmem:[#allocation12 + $0x210] sm:$0xff] }
 0x818   :  { %v12758_v26 = vpop.f32.mrf.mxu0 }
 0x819   :  { %v12760_v31 = vmax.f32 %v6027_v63, %v6286_v50  ;;  %v6036_v63 = vadd.f32 %v12681_v16, %v12581_v47 }
 0x81a   :  { %v12762_v0 = vld [vmem:[#allocation6 + $0xcc] sm:$0xff]  ;;  %6667 = vmatmul.f32.gmra.mxu1 %v12730_v9 }
 0x81b   :  { %6359 = vst [vmem:[#allocation6 + $0xd8] sm:$0xff] %v12760_v31  ;;  %6554 = vmatmul.f32.gmra.mxu0 %v12762_v0  ;;  %6984 = vmatmul.f32.gmra.mxu3 %v12572_v6  ;;  %v7116_v6 = vld [vmem:[#allocation12 + $0x230] sm:$0xff] }
 0x81c   :  { %6808 = vmatmul.f32.gmra.mxu2 %v12638_v32  ;;  %v6033_v32 = vadd.f32 %v12663_v7, %v12559_v53  ;;  %7135 = vmatpush.msra.mxu0 %v7116_v6  ;;  %v7113_v53 = vld [vmem:[#allocation12 + $0x218] sm:$0xff]  ;;  %v6755_v7 = vpop.f32.mrf.mxu2 }
 0x81e   :  { %v6288_v13 = vpop.f32.mrf.mxu3  ;;  %7136 = vmatpush.msra.mxu0 %v7115_v11 }
 0x81f   :  { %v6289_v42 = vadd.f32 %v6288_v13, %v6175_v27  ;;  %v7111_v13 = vld [vmem:[#allocation12 + $0x208] sm:$0xff] }
 0x820   :  { %v12771_v10 = vpop.f32.mrf.mxu0  ;;  %7137 = vmatpush.msra.mxu0 %v7114_v24 }
 0x821   :  { %v12775_v44 = vmax.f32 %v6030_v15, %v6289_v42  ;;  %v7353_v15 = vld [vmem:[#allocation14 + $0x70] sm:$0xff] }
 0x822   :  { %v12777_v56 = vld [vmem:[#allocation6 + $0xd4] sm:$0xff]  ;;  %6670 = vmatmul.f32.gmra.mxu1 %v12745_v3  ;;  %7138 = vmatpush.msra.mxu0 %v7113_v53 }
 0x823   :  { %6360 = vst [vmem:[#allocation6 + $0xe0] sm:$0xff] %v12775_v44  ;;  %6557 = vmatmul.f32.gmra.mxu0 %v12777_v56  ;;  %6987 = vmatmul.f32.gmra.mxu3 %v12590_v57  ;;  %v12793_v57 = vpop.f32.mrf.mxu1 }
 0x824   :  { %6811 = vmatmul.f32.gmra.mxu2 %v12654_v62  ;;  %7139 = vmatpush.msra.mxu0 %v7112_v35  ;;  %v6758_v16 = vpop.f32.mrf.mxu2  ;;  %v7352_v35 = vld [vmem:[#allocation14 + $0x68] sm:$0xff] }
 0x825   :  { %7360 = vmatpush.msra.mxu1 %v7353_v15 }
 0x826   :  { %v6291_v1 = vpop.f32.mrf.mxu3  ;;  %7140 = vmatpush.msra.mxu0 %v7111_v13 }
 0x827   :  { %v6292_v30 = vadd.f32 %v6291_v1, %v6178_v14  ;;  %v6039_v1 = vadd.f32 %v12700_v54, %v12602_v41  ;;  %7361 = vmatpush.msra.mxu1 %v7352_v35  ;;  %v6606_v35 = vadd.f32 %v12793_v57, %v12684_v28 }
 0x828   :  { %v12786_v27 = vpop.f32.mrf.mxu0 }
 0x829   :  { %v12788_v18 = vmax.f32 %v6033_v32, %v6292_v30 }
 0x82a   :  { %v12790_v22 = vld [vmem:[#allocation6 + $0xdc] sm:$0xff]  ;;  %6673 = vmatmul.f32.gmra.mxu1 %v12760_v31 }
 0x82b   :  { %6361 = vst [vmem:[#allocation6 + $0xe8] sm:$0xff] %v12788_v18  ;;  %6560 = vmatmul.f32.gmra.mxu0 %v12790_v22  ;;  %6990 = vmatmul.f32.gmra.mxu3 %v12608_v4  ;;  %v7110_v4 = vld [vmem:[#allocation12 + $0x200] sm:$0xff]  ;;  %v12812_v47 = vpop.f32.mrf.mxu1 }
 0x82c   :  { %6814 = vmatmul.f32.gmra.mxu2 %v12670_v8  ;;  %7141 = vmatpush.msra.mxu0 %v7110_v4  ;;  %v6761_v53 = vpop.f32.mrf.mxu2 }
 0x82e   :  { %v6294_v14 = vpop.f32.mrf.mxu3 }
 0x82f   :  { %v6295_v50 = vadd.f32 %v6294_v14, %v6181_v20 }
 0x830   :  { %v12801_v55 = vpop.f32.mrf.mxu0 }
 0x831   :  { %v12803_v42 = vmax.f32 %v6036_v63, %v6295_v50 }
 0x832   :  { %v12805_v17 = vld [vmem:[#allocation6 + $0xe4] sm:$0xff]  ;;  %6676 = vmatmul.f32.gmra.mxu1 %v12775_v44 }
 0x833   :  { %6362 = vst [vmem:[#allocation6 + $0xf0] sm:$0xff] %v12803_v42  ;;  %6563 = vmatmul.f32.gmra.mxu0 %v12805_v17  ;;  %6993 = vmatmul.f32.gmra.mxu3 %v12626_v21  ;;  %v6594_v21 = vadd.f32 %v12720_v39, %v12618_v43 }
 0x834   :  { %6817 = vmatmul.f32.gmra.mxu2 %v12686_v2  ;;  %v6764_v15 = vpop.f32.mrf.mxu2 }
 0x835   :  { %v6851_v41 = vadd.f32 %v6755_v7, %v6594_v21  ;;  %v6603_v21 = vadd.f32 %v12773_v5, %v12668_v49 }
 0x836   :  { %v6297_v20 = vpop.f32.mrf.mxu3 }
 0x837   :  { %v6298_v6 = vadd.f32 %v6297_v20, %v6184_v51  ;;  %v12829_v51 = vpop.f32.mrf.mxu1 }
 0x838   :  { %v12816_v32 = vpop.f32.mrf.mxu0 }
 0x839   :  { %v12818_v30 = vmax.f32 %v6039_v1, %v6298_v6  ;;  %v7351_v1 = vld [vmem:[#allocation14 + $0x60] sm:$0xff] }
 0x83a   :  { %v12820_v11 = vld [vmem:[#allocation6 + $0xec] sm:$0xff]  ;;  %6679 = vmatmul.f32.gmra.mxu1 %v12788_v18 }
 0x83b   :  { %6363 = vst [vmem:[#allocation6 + $0xf8] sm:$0xff] %v12818_v30  ;;  %6566 = vmatmul.f32.gmra.mxu0 %v12820_v11  ;;  %6996 = vmatmul.f32.gmra.mxu3 %v12640_v19  ;;  %v6597_v19 = vadd.f32 %v12739_v34, %v12636_v33  ;;  %v6600_v33 = vadd.f32 %v12756_v23, %v12652_v29  ;;  %v7077_v6 = vld [vmem:[#allocation6 + $0x10] sm:$0xff] }
 0x83c   :  { %6820 = vmatmul.f32.gmra.mxu2 %v12702_v45  ;;  %7362 = vmatpush.msra.mxu1 %v7351_v1  ;;  %v6767_v29 = vpop.f32.mrf.mxu2 }
 0x83d   :  { %v6852_v39 = vadd.f32 %v6758_v16, %v6597_v19  ;;  %v6855_v49 = vadd.f32 %v6767_v29, %v6606_v35  ;;  %v7081_v35 = vld [vmem:[#allocation6 + $0x30] sm:$0xff] }
 0x83e   :  { %v6949_v54 = vpop.f32.mrf.mxu3 }
 0x83f   :  { %v12831_v24 = vadd.f32 %v6949_v54, %v6851_v41  ;;  %v6614_v13 = vpop.f32.mrf.mxu1 }
 0x840   :  { %v12833_v14 = vpop.f32.mrf.mxu0 }
 0x842   :  { %v12835_v43 = vld [vmem:[#allocation6 + $0xf4] sm:$0xff]  ;;  %6682 = vmatmul.f32.gmra.mxu1 %v12803_v42  ;;  %v12847_v4 = vld [vmem:[#allocation6 + $0xfc] sm:$0xff] }
 0x843   :  { %6569 = vmatmul.f32.gmra.mxu0 %v12835_v43  ;;  %6999 = vmatmul.f32.gmra.mxu3 %v12656_v52  ;;  %v6853_v52 = vadd.f32 %v6761_v53, %v6600_v33  ;;  %v7078_v53 = vld [vmem:[#allocation6 + $0x18] sm:$0xff]  ;;  %v6609_v33 = vadd.f32 %v12812_v47, %v12698_v60 }
 0x844   :  { %6823 = vmatmul.f32.gmra.mxu2 %v12715_v58 }
 0x846   :  { %v6952_v7 = vpop.f32.mrf.mxu3 }
 0x847   :  { %v12843_v63 = vadd.f32 %v6952_v7, %v6852_v39  ;;  %v7350_v7 = vld [vmem:[#allocation14 + $0x58] sm:$0xff]  ;;  %v12879_v28 = vpop.f32.mrf.mxu1 }
 0x848   :  { %v12845_v50 = vpop.f32.mrf.mxu0  ;;  %7363 = vmatpush.msra.mxu1 %v7350_v7  ;;  %v7082_v7 = vld [vmem:[#allocation6 + $0x38] sm:$0xff] }
 0x84a   :  { %6685 = vmatmul.f32.gmra.mxu1 %v12818_v30 }
 0x84b   :  { %6572 = vmatmul.f32.gmra.mxu0 %v12847_v4  ;;  %7002 = vmatmul.f32.gmra.mxu3 %v12672_v48  ;;  %v6854_v48 = vadd.f32 %v6764_v15, %v6603_v21  ;;  %v7079_v15 = vld [vmem:[#allocation6 + $0x20] sm:$0xff]  ;;  %v6612_v21 = vadd.f32 %v12829_v51, %v12713_v12 }
 0x84c   :  { %6826 = vmatmul.f32.gmra.mxu2 %v12730_v9 }
 0x84e   :  { %v6955_v34 = vpop.f32.mrf.mxu3 }
 0x84f   :  { %v12855_v16 = vadd.f32 %v6955_v34, %v6853_v52  ;;  %v12889_v47 = vpop.f32.mrf.mxu1 }
 0x850   :  { %v12857_v20 = vpop.f32.mrf.mxu0 }
 0x853   :  { %7005 = vmatmul.f32.gmra.mxu3 %v12688_v38  ;;  %7142 = vmatmul.f32.vlgmr.msra.gmra.mxu0 %v7077_v6  ;;  %v6770_v38 = vpop.f32.mrf.mxu2  ;;  %v7080_v6 = vld [vmem:[#allocation6 + $0x28] sm:$0xff] }
 0x854   :  { %6829 = vmatmul.f32.gmra.mxu2 %v12745_v3 }
 0x856   :  { %v6958_v23 = vpop.f32.mrf.mxu3 }
 0x857   :  { %v12863_v41 = vadd.f32 %v6958_v23, %v6854_v48  ;;  %v7349_v23 = vld [vmem:[#allocation14 + $0x50] sm:$0xff] }
 0x858   :  { %v12865_v54 = vpop.f32.mrf.mxu0  ;;  %7364 = vmatpush.msra.mxu1 %v7349_v23  ;;  %v7346_v23 = vld [vmem:[#allocation14 + $0x38] sm:$0xff] }
 0x85b   :  { %7008 = vmatmul.f32.gmra.mxu3 %v12704_v25  ;;  %7145 = vmatmul.f32.gmra.mxu0 %v7078_v53  ;;  %v6856_v25 = vadd.f32 %v6770_v38, %v6609_v33  ;;  %v6773_v34 = vpop.f32.mrf.mxu2  ;;  %v12911_v33 = vld [vmem:[#allocation4 + $0x108] sm:$0xff] }
 0x85c   :  { %6832 = vmatmul.f32.gmra.mxu2 %v12760_v31  ;;  %v6857_v60 = vadd.f32 %v6773_v34, %v6612_v21  ;;  %v7085_v21 = vld [vmem:[#allocation6 + $0x50] sm:$0xff] }
 0x85e   :  { %v6961_v5 = vpop.f32.mrf.mxu3 }
 0x85f   :  { %v12871_v19 = vadd.f32 %v6961_v5, %v6855_v49  ;;  %v6615_v49 = vadd.f32 %v6614_v13, %v12728_v46  ;;  %v12902_v5 = vpop.f32.mrf.mxu1  ;;  %v7083_v13 = vld [vmem:[#allocation6 + $0x40] sm:$0xff] }
 0x860   :  { %v12873_v39 = vpop.f32.mrf.mxu0 }
 0x863   :  { %7011 = vmatmul.f32.gmra.mxu3 %v12717_v61  ;;  %7148 = vmatmul.f32.gmra.mxu0 %v7079_v15  ;;  %v6776_v53 = vpop.f32.mrf.mxu2 }
 0x864   :  { %6835 = vmatmul.f32.gmra.mxu2 %v12775_v44  ;;  %v6858_v12 = vadd.f32 %v6776_v53, %v6615_v49  ;;  %v7519_v53 = vld [vmem:[#allocation15 + $0x78] sm:$0xff]  ;;  %v7087_v49 = vld [vmem:[#allocation6 + $0x60] sm:$0xff] }
 0x865   :  { %7524 = vmatpush.msra.mxu2 %v7519_v53  ;;  %v7518_v53 = vld [vmem:[#allocation15 + $0x70] sm:$0xff] }
 0x866   :  { %v6964_v57 = vpop.f32.mrf.mxu3 }
 0x867   :  { %v12881_v52 = vadd.f32 %v6964_v57, %v6856_v25  ;;  %v12908_v15 = vpop.f32.mrf.mxu1  ;;  %7525 = vmatpush.msra.mxu2 %v7518_v53 }
 0x868   :  { %v12883_v1 = vpop.f32.mrf.mxu0 }
 0x86b   :  { %7014 = vmatmul.f32.gmra.mxu3 %v12732_v37  ;;  %7151 = vmatmul.f32.gmra.mxu0 %v7080_v6  ;;  %v7347_v6 = vld [vmem:[#allocation14 + $0x40] sm:$0xff] }
 0x86c   :  { %6838 = vmatmul.f32.gmra.mxu2 %v12788_v18 }
 0x86e   :  { %v6967_v61 = vpop.f32.mrf.mxu3 }
 0x86f   :  { %v12891_v29 = vadd.f32 %v6967_v61, %v6857_v60  ;;  %v12917_v57 = vpop.f32.mrf.mxu1  ;;  %v7086_v61 = vld [vmem:[#allocation6 + $0x58] sm:$0xff] }
 0x870   :  { %v12893_v48 = vpop.f32.mrf.mxu0 }
 0x873   :  { %7017 = vmatmul.f32.gmra.mxu3 %v12747_v36  ;;  %7154 = vmatmul.f32.gmra.mxu0 %v7081_v35  ;;  %v7348_v36 = vld [vmem:[#allocation14 + $0x48] sm:$0xff] }
 0x874   :  { %6841 = vmatmul.f32.gmra.mxu2 %v12803_v42  ;;  %7365 = vmatpush.msra.mxu1 %v7348_v36  ;;  %v7343_v36 = vld [vmem:[#allocation14 + $0x20] sm:$0xff] }
 0x876   :  { %v6970_v37 = vpop.f32.mrf.mxu3  ;;  %7366 = vmatpush.msra.mxu1 %v7347_v6  ;;  %v7342_v6 = vld [vmem:[#allocation14 + $0x18] sm:$0xff] }
 0x877   :  { %v12898_v51 = vadd.f32 %v6970_v37, %v6858_v12  ;;  %v7345_v12 = vld [vmem:[#allocation14 + $0x30] sm:$0xff]  ;;  %v7088_v37 = vld [vmem:[#allocation6 + $0x68] sm:$0xff] }
 0x878   :  { %v12900_v38 = vpop.f32.mrf.mxu0  ;;  %7367 = vmatpush.msra.mxu1 %v7346_v23 }
 0x87a   :  { %7368 = vmatpush.msra.mxu1 %v7345_v12  ;;  %v7090_v12 = vld [vmem:[#allocation6 + $0x78] sm:$0xff] }
 0x87b   :  { %7020 = vmatmul.f32.gmra.mxu3 %v12762_v0  ;;  %7157 = vmatmul.f32.gmra.mxu0 %v7082_v7  ;;  %v7084_v0 = vld [vmem:[#allocation6 + $0x48] sm:$0xff] }
 0x87c   :  { %6844 = vmatmul.f32.gmra.mxu2 %v12818_v30 }
 0x880   :  { %v12906_v46 = vpop.f32.mrf.mxu0 }
 0x883   :  { %7023 = vmatmul.f32.gmra.mxu3 %v12777_v56  ;;  %7160 = vmatmul.f32.gmra.mxu0 %v7083_v13  ;;  %v12922_v56 = vpop.f32.mrf.mxu1 }
 0x884   :  { %6847 = vmatmul.f32.gmra.mxu2 %v12911_v33 }
 0x888   :  { %v12914_v25 = vpop.f32.mrf.mxu0 }
 0x88b   :  { %7026 = vmatmul.f32.gmra.mxu3 %v12790_v22  ;;  %7163 = vmatmul.f32.gmra.mxu0 %v7084_v0  ;;  %v12929_v35 = vpop.f32.mrf.mxu1  ;;  %v6914_v0 = vld [vmem:[#allocation6 + $0x104] sm:$0xff] }
 0x890   :  { %v12919_v34 = vpop.f32.mrf.mxu0 }
 0x891   :  { %13867 = vst [vmem:[#allocation57_spill] sm:$0xff] %v12919_v34  ;;  %v7514_v34 = vld [vmem:[#allocation15 + $0x50] sm:$0xff] }
 0x893   :  { %7029 = vmatmul.f32.gmra.mxu3 %v12805_v17  ;;  %7166 = vmatmul.f32.gmra.mxu0 %v7085_v21  ;;  %v12934_v7 = vpop.f32.mrf.mxu1  ;;  %v7341_v21 = vld [vmem:[#allocation14 + $0x10] sm:$0xff] }
 0x898   :  { %v12924_v60 = vpop.f32.mrf.mxu0 }
 0x899   :  { %13868 = vst [vmem:[#allocation21_spill] sm:$0xff] %v12924_v60 }
 0x89b   :  { %7032 = vmatmul.f32.gmra.mxu3 %v12820_v11  ;;  %7169 = vmatmul.f32.gmra.mxu0 %v7086_v61  ;;  %v7344_v11 = vld [vmem:[#allocation14 + $0x28] sm:$0xff]  ;;  %v12939_v23 = vpop.f32.mrf.mxu1 }
 0x89c   :  { %7369 = vmatpush.msra.mxu1 %v7344_v11  ;;  %v7340_v61 = vld [vmem:[#allocation14 + $0x8] sm:$0xff] }
 0x89e   :  { %7370 = vmatpush.msra.mxu1 %v7343_v36  ;;  %v7091_v36 = vld [vmem:[#allocation6 + $0x80] sm:$0xff] }
 0x8a0   :  { %v12927_v22 = vpop.f32.mrf.mxu0  ;;  %7371 = vmatpush.msra.mxu1 %v7342_v6 }
 0x8a1   :  { %13869 = vst [vmem:[#allocation82_spill] sm:$0xff] %v12927_v22 }
 0x8a2   :  { %7372 = vmatpush.msra.mxu1 %v7341_v21  ;;  %v12955_v21 = vld [vmem:[%s13224_s8] ss:$0 sm:$0xff] }
 0x8a3   :  { %7035 = vmatmul.f32.gmra.mxu3 %v12835_v43  ;;  %7172 = vmatmul.f32.gmra.mxu0 %v7087_v49  ;;  %v7089_v43 = vld [vmem:[#allocation6 + $0x70] sm:$0xff] }
 0x8a4   :  { %7373 = vmatpush.msra.mxu1 %v7340_v61 }
 0x8a8   :  { %v12932_v17 = vpop.f32.mrf.mxu0 }
 0x8a9   :  { %13870 = vst [vmem:[#allocation58_spill] sm:$0xff] %v12932_v17  ;;  %v6779_v17 = vpop.f32.mrf.mxu2 }
 0x8ab   :  { %7038 = vmatmul.f32.gmra.mxu3 %v12847_v4  ;;  %7175 = vmatmul.f32.gmra.mxu0 %v7088_v37  ;;  %v7339_v4 = vld [vmem:[#allocation14] sm:$0xff]  ;;  %v12943_v37 = vpop.f32.mrf.mxu1 }
 0x8ac   :  { %7374 = vmatpush.msra.mxu1 %v7339_v4  ;;  %v7093_v4 = vld [vmem:[#allocation6 + $0x90] sm:$0xff] }
 0x8b0   :  { %v12937_v13 = vpop.f32.mrf.mxu0 }
 0x8b1   :  { %13871 = vst [vmem:[#allocation27_spill] sm:$0xff] %v12937_v13 }
 0x8b3   :  { %7041 = vmatmul.f32.gmra.mxu3 %v6914_v0  ;;  %7178 = vmatmul.f32.gmra.mxu0 %v7089_v43  ;;  %v7517_v0 = vld [vmem:[#allocation15 + $0x68] sm:$0xff]  ;;  %v12949_v43 = vpop.f32.mrf.mxu1 }
 0x8b4   :  { %7526 = vmatpush.msra.mxu2 %v7517_v0  ;;  %v7516_v0 = vld [vmem:[#allocation15 + $0x60] sm:$0xff] }
 0x8b6   :  { %7527 = vmatpush.msra.mxu2 %v7516_v0 }
 0x8b8   :  { %v12941_v49 = vpop.f32.mrf.mxu0 }
 0x8b9   :  { %13872 = vst [vmem:[#allocation83_spill] sm:$0xff] %v12941_v49  ;;  %v7094_v49 = vld [vmem:[#allocation6 + $0x98] sm:$0xff] }
 0x8bb   :  { %7181 = vmatmul.f32.gmra.mxu0 %v7090_v12  ;;  %v12958_v12 = vpop.f32.mrf.mxu1 }
 0x8c0   :  { %v12945_v11 = vpop.f32.mrf.mxu0 }
 0x8c1   :  { %13873 = vst [vmem:[#allocation46_spill] sm:$0xff] %v12945_v11 }
 0x8c3   :  { %7184 = vmatmul.f32.gmra.mxu0 %v7091_v36  ;;  %v12963_v22 = vpop.f32.mrf.mxu1 }
 0x8c8   :  { %v12947_v6 = vpop.f32.mrf.mxu0 }
 0x8c9   :  { %13874 = vst [vmem:[#allocation111_spill] sm:$0xff] %v12947_v6 }
 0x8cb   :  { %7187 = vmatmul.f32.gmra.mxu0 %v12606_v59 }
 0x8d0   :  { %v7143_v61 = vpop.f32.mrf.mxu0 }
 0x8d1   :  { %v7239_v53 = vadd.f32 %v7143_v61, %v12831_v24  ;;  %v6973_v61 = vpop.f32.mrf.mxu3 }
 0x8d3   :  { %v7275_v36 = vadd.f32 %v12955_v21, %v7239_v53  ;;  %7190 = vmatmul.f32.gmra.mxu0 %v7093_v4 }
 0x8d5   :  { %v7307_v6 = vmax.f32 %v7275_v36, 0.0  ;;  %v12968_v36 = vpop.f32.mrf.mxu1 }
 0x8d7   :  { %7375 = vmatmul.f32.vlgmr.msra.gmra.mxu1 %v7307_v6  ;;  %v7515_v6 = vld [vmem:[#allocation15 + $0x58] sm:$0xff] }
 0x8d8   :  { %v7146_v11 = vpop.f32.mrf.mxu0  ;;  %7528 = vmatpush.msra.mxu2 %v7515_v6 }
 0x8d9   :  { %v7240_v59 = vadd.f32 %v7146_v11, %v12843_v63  ;;  %v6782_v11 = vpop.f32.mrf.mxu2 }
 0x8da   :  { %7529 = vmatpush.msra.mxu2 %v7514_v34 }
 0x8db   :  { %v7276_v13 = vadd.f32 %v12955_v21, %v7240_v59  ;;  %7193 = vmatmul.f32.gmra.mxu0 %v7094_v49  ;;  %v6976_v49 = vpop.f32.mrf.mxu3 }
 0x8dd   :  { %v7308_v24 = vmax.f32 %v7276_v13, 0.0 }
 0x8df   :  { %7378 = vmatmul.f32.gmra.mxu1 %v7308_v24 }
 0x8e0   :  { %v7149_v60 = vpop.f32.mrf.mxu0 }
 0x8e1   :  { %v7241_v53 = vadd.f32 %v7149_v60, %v12855_v16  ;;  %v6785_v60 = vpop.f32.mrf.mxu2 }
 0x8e3   :  { %v7277_v4 = vadd.f32 %v12955_v21, %v7241_v53  ;;  %7196 = vmatmul.f32.gmra.mxu0 %v12654_v62  ;;  %v12973_v62 = vpop.f32.mrf.mxu1 }
 0x8e5   :  { %v7309_v63 = vmax.f32 %v7277_v4, 0.0  ;;  %v6979_v4 = vpop.f32.mrf.mxu3 }
 0x8e7   :  { %7381 = vmatmul.f32.gmra.mxu1 %v7309_v63 }
 0x8e8   :  { %v7152_v0 = vpop.f32.mrf.mxu0 }
 0x8e9   :  { %v7242_v13 = vadd.f32 %v7152_v0, %v12863_v41  ;;  %v6788_v0 = vpop.f32.mrf.mxu2 }
 0x8eb   :  { %v7278_v59 = vadd.f32 %v12955_v21, %v7242_v13  ;;  %7199 = vmatmul.f32.gmra.mxu0 %v12670_v8  ;;  %v12979_v13 = vpop.f32.mrf.mxu1 }
 0x8ed   :  { %v7310_v16 = vmax.f32 %v7278_v59, 0.0 }
 0x8ef   :  { %7384 = vmatmul.f32.gmra.mxu1 %v7310_v16 }
 0x8f0   :  { %v7155_v24 = vpop.f32.mrf.mxu0 }
 0x8f1   :  { %v7243_v53 = vadd.f32 %v7155_v24, %v12871_v19  ;;  %v6982_v19 = vpop.f32.mrf.mxu3  ;;  %v12986_v34 = vpop.f32.mrf.mxu2 }
 0x8f3   :  { %v7279_v6 = vadd.f32 %v12955_v21, %v7243_v53  ;;  %7202 = vmatmul.f32.gmra.mxu0 %v12686_v2 }
 0x8f5   :  { %v7311_v63 = vmax.f32 %v7279_v6, 0.0 }
 0x8f7   :  { %7387 = vmatmul.f32.gmra.mxu1 %v7311_v63  ;;  %v7513_v63 = vld [vmem:[#allocation15 + $0x48] sm:$0xff] }
 0x8f8   :  { %v7158_v41 = vpop.f32.mrf.mxu0  ;;  %7530 = vmatpush.msra.mxu2 %v7513_v63 }
 0x8f9   :  { %v7244_v8 = vadd.f32 %v7158_v41, %v12881_v52  ;;  %v12988_v52 = vpop.f32.mrf.mxu1  ;;  %v12990_v41 = vpop.f32.mrf.mxu3 }
 0x8fa   :  { %13875 = vst [vmem:[#allocation135_spill] sm:$0xff] %v12988_v52 }
 0x8fb   :  { %v7280_v59 = vadd.f32 %v12955_v21, %v7244_v8  ;;  %7205 = vmatmul.f32.gmra.mxu0 %v12702_v45 }
 0x8fd   :  { %v7312_v16 = vmax.f32 %v7280_v59, 0.0 }
 0x8ff   :  { %7390 = vmatmul.f32.gmra.mxu1 %v7312_v16 }
 0x900   :  { %v7161_v24 = vpop.f32.mrf.mxu0 }
 0x901   :  { %v7245_v2 = vadd.f32 %v7161_v24, %v12891_v29  ;;  %v6618_v29 = vadd.f32 %v12879_v28, %v12743_v40  ;;  %v12997_v24 = vpop.f32.mrf.mxu2  ;;  %v13001_v63 = vpop.f32.mrf.mxu3 }
 0x903   :  { %v7281_v53 = vadd.f32 %v12955_v21, %v7245_v2  ;;  %7208 = vmatmul.f32.gmra.mxu0 %v12715_v58  ;;  %v6859_v58 = vadd.f32 %v6779_v17, %v6618_v29  ;;  %v7512_v17 = vld [vmem:[#allocation15 + $0x40] sm:$0xff] }
 0x904   :  { %7531 = vmatpush.msra.mxu2 %v7512_v17  ;;  %v6630_v17 = vadd.f32 %v12917_v57, %v12801_v55  ;;  %v7508_v55 = vld [vmem:[#allocation15 + $0x20] sm:$0xff] }
 0x905   :  { %v7313_v6 = vmax.f32 %v7281_v53, 0.0  ;;  %v7053_v2 = vadd.f32 %v6973_v61, %v6859_v58  ;;  %v12999_v53 = vpop.f32.mrf.mxu1 }
 0x907   :  { %7393 = vmatmul.f32.gmra.mxu1 %v7313_v6 }
 0x908   :  { %v7164_v45 = vpop.f32.mrf.mxu0 }
 0x909   :  { %v7246_v8 = vadd.f32 %v7164_v45, %v12898_v51  ;;  %v6621_v51 = vadd.f32 %v12889_v47, %v12758_v26  ;;  %v13007_v61 = vpop.f32.mrf.mxu2  ;;  %v13011_v58 = vpop.f32.mrf.mxu3  ;;  %v6624_v26 = vadd.f32 %v12902_v5, %v12771_v10 }
 0x90b   :  { %v7282_v59 = vadd.f32 %v12955_v21, %v7246_v8  ;;  %7211 = vmatmul.f32.gmra.mxu0 %v12730_v9  ;;  %v6860_v9 = vadd.f32 %v6782_v11, %v6621_v51 }
 0x90d   :  { %v7314_v16 = vmax.f32 %v7282_v59, 0.0  ;;  %v7054_v45 = vadd.f32 %v6976_v49, %v6860_v9  ;;  %v13009_v29 = vpop.f32.mrf.mxu1 }
 0x90f   :  { %7396 = vmatmul.f32.gmra.mxu1 %v7314_v16 }
 0x910   :  { %v7167_v6 = vpop.f32.mrf.mxu0 }
 0x911   :  { %v7247_v52 = vadd.f32 %v7167_v6, %v7053_v2  ;;  %v13017_v2 = vpop.f32.mrf.mxu2  ;;  %v6627_v6 = vadd.f32 %v12908_v15, %v12786_v27  ;;  %v13025_v10 = vpop.f32.mrf.mxu3 }
 0x913   :  { %v7283_v40 = vadd.f32 %v12955_v21, %v7247_v52  ;;  %7214 = vmatmul.f32.gmra.mxu0 %v12745_v3  ;;  %v6861_v3 = vadd.f32 %v6785_v60, %v6624_v26  ;;  %v7511_v60 = vld [vmem:[#allocation15 + $0x38] sm:$0xff] }
 0x914   :  { %7532 = vmatpush.msra.mxu2 %v7511_v60 }
 0x915   :  { %v7315_v28 = vmax.f32 %v7283_v40, 0.0  ;;  %v7055_v52 = vadd.f32 %v6979_v4, %v6861_v3  ;;  %v13021_v51 = vpop.f32.mrf.mxu1  ;;  %v7507_v3 = vld [vmem:[#allocation15 + $0x18] sm:$0xff] }
 0x917   :  { %7399 = vmatmul.f32.gmra.mxu1 %v7315_v28 }
 0x918   :  { %v7170_v8 = vpop.f32.mrf.mxu0 }
 0x919   :  { %v7248_v59 = vadd.f32 %v7170_v8, %v7054_v45  ;;  %v6803_v15 = vpop.f32.mrf.mxu2  ;;  %v7510_v45 = vld [vmem:[#allocation15 + $0x30] sm:$0xff] }
 0x91a   :  { %7533 = vmatpush.msra.mxu2 %v7510_v45 }
 0x91b   :  { %v7284_v47 = vadd.f32 %v12955_v21, %v7248_v59  ;;  %7217 = vmatmul.f32.gmra.mxu0 %v12760_v31  ;;  %v6862_v31 = vadd.f32 %v6788_v0, %v6627_v6  ;;  %v7509_v59 = vld [vmem:[#allocation15 + $0x28] sm:$0xff] }
 0x91c   :  { %7534 = vmatpush.msra.mxu2 %v7509_v59 }
 0x91d   :  { %v7316_v11 = vmax.f32 %v7284_v47, 0.0  ;;  %v7056_v4 = vadd.f32 %v6982_v19, %v6862_v31  ;;  %v13032_v8 = vpop.f32.mrf.mxu1  ;;  %v6997_v19 = vpop.f32.mrf.mxu3 }
 0x91e   :  { %7535 = vmatpush.msra.mxu2 %v7508_v55 }
 0x91f   :  { %7402 = vmatmul.f32.gmra.mxu1 %v7316_v11  ;;  %v7506_v11 = vld [vmem:[#allocation15 + $0x10] sm:$0xff] }
 0x920   :  { %v7173_v49 = vpop.f32.mrf.mxu0  ;;  %7536 = vmatpush.msra.mxu2 %v7507_v3 }
 0x921   :  { %v7249_v16 = vadd.f32 %v7173_v49, %v7055_v52 }
 0x922   :  { %7537 = vmatpush.msra.mxu2 %v7506_v11 }
 0x923   :  { %v7285_v40 = vadd.f32 %v12955_v21, %v7249_v16  ;;  %7220 = vmatmul.f32.gmra.mxu0 %v12775_v44  ;;  %v6863_v44 = vadd.f32 %v12986_v34, %v6630_v17  ;;  %v7505_v16 = vld [vmem:[#allocation15 + $0x8] sm:$0xff] }
 0x924   :  { %7538 = vmatpush.msra.mxu2 %v7505_v16 }
 0x925   :  { %v7317_v5 = vmax.f32 %v7285_v40, 0.0  ;;  %v7057_v26 = vadd.f32 %v12990_v41, %v6863_v44  ;;  %v6806_v41 = vpop.f32.mrf.mxu2  ;;  %v13041_v40 = vpop.f32.mrf.mxu1  ;;  %v6639_v44 = vadd.f32 %v12934_v7, %v12845_v50 }
 0x926   :  { %v7000_v31 = vpop.f32.mrf.mxu3 }
 0x927   :  { %7405 = vmatmul.f32.gmra.mxu1 %v7317_v5 }
 0x928   :  { %v7176_v9 = vpop.f32.mrf.mxu0 }
 0x929   :  { %v7250_v28 = vadd.f32 %v7176_v9, %v7056_v4 }
 0x92b   :  { %v7286_v27 = vadd.f32 %v12955_v21, %v7250_v28  ;;  %7223 = vmatmul.f32.gmra.mxu0 %v12788_v18  ;;  %v6633_v18 = vadd.f32 %v12922_v56, %v12816_v32  ;;  %v7504_v56 = vld [vmem:[#allocation15] sm:$0xff] }
 0x92c   :  { %7539 = vmatpush.msra.mxu2 %v7504_v56  ;;  %v6648_v56 = vadd.f32 %v12949_v43, %v12873_v39 }
 0x92d   :  { %v7318_v0 = vmax.f32 %v7286_v27, 0.0  ;;  %v6864_v52 = vadd.f32 %v12997_v24, %v6633_v18  ;;  %v6809_v9 = vpop.f32.mrf.mxu2  ;;  %v13049_v27 = vpop.f32.mrf.mxu1  ;;  %v13066_v18 = vld [vmem:[%s13226_s10] ss:$0 sm:$0xff] }
 0x92e   :  { %v7003_v45 = vpop.f32.mrf.mxu3 }
 0x92f   :  { %7408 = vmatmul.f32.gmra.mxu1 %v7318_v0  ;;  %v7058_v6 = vadd.f32 %v13001_v63, %v6864_v52 }
 0x930   :  { %v7179_v47 = vpop.f32.mrf.mxu0 }
 0x931   :  { %v7251_v57 = vadd.f32 %v7179_v47, %v7057_v26  ;;  %v6642_v26 = vadd.f32 %v12939_v23, %v12857_v20  ;;  %v6645_v20 = vadd.f32 %v12943_v37, %v12865_v54 }
 0x933   :  { %v7287_v34 = vadd.f32 %v12955_v21, %v7251_v57  ;;  %7226 = vmatmul.f32.gmra.mxu0 %v12803_v42  ;;  %v6636_v42 = vadd.f32 %v12929_v35, %v12833_v14  ;;  %v6867_v55 = vadd.f32 %v6803_v15, %v6642_v26  ;;  %v6868_v11 = vadd.f32 %v6806_v41, %v6645_v20 }
 0x934   :  { %v6654_v26 = vadd.f32 %v12963_v22, %v12893_v48  ;;  %v6657_v20 = vadd.f32 %v12968_v36, %v12900_v38 }
 0x935   :  { %v7319_v49 = vmax.f32 %v7287_v34, 0.0  ;;  %v6865_v60 = vadd.f32 %v13007_v61, %v6636_v42  ;;  %v6812_v59 = vpop.f32.mrf.mxu2  ;;  %v13061_v50 = vpop.f32.mrf.mxu1 }
 0x936   :  { %v7006_v7 = vpop.f32.mrf.mxu3 }
 0x937   :  { %7411 = vmatmul.f32.gmra.mxu1 %v7319_v49  ;;  %v7059_v63 = vadd.f32 %v13011_v58, %v6865_v60  ;;  %v7062_v49 = vadd.f32 %v7000_v31, %v6868_v11 }
 0x938   :  { %v7182_v32 = vpop.f32.mrf.mxu0 }
 0x939   :  { %v7252_v5 = vadd.f32 %v7182_v32, %v7058_v6 }
 0x93b   :  { %v7288_v24 = vadd.f32 %v12955_v21, %v7252_v5  ;;  %7229 = vmatmul.f32.gmra.mxu0 %v12818_v30  ;;  %v6866_v30 = vadd.f32 %v13017_v2, %v6639_v44  ;;  %v7061_v2 = vadd.f32 %v6997_v19, %v6867_v55  ;;  %v6869_v5 = vadd.f32 %v6809_v9, %v6648_v56 }
 0x93d   :  { %v7320_v4 = vmax.f32 %v7288_v24, 0.0  ;;  %v7060_v61 = vadd.f32 %v13025_v10, %v6866_v30  ;;  %v7063_v60 = vadd.f32 %v7003_v45, %v6869_v5 }
 0x93e   :  { %v7009_v19 = vpop.f32.mrf.mxu3 }
 0x93f   :  { %7414 = vmatmul.f32.gmra.mxu1 %v7320_v4 }
 0x940   :  { %v7185_v28 = vpop.f32.mrf.mxu0 }
 0x941   :  { %v7253_v17 = vadd.f32 %v7185_v28, %v7059_v63 }
 0x943   :  { %v7289_v14 = vadd.f32 %v12955_v21, %v7253_v17  ;;  %7232 = vmatmul.f32.gmra.mxu0 %v12911_v33  ;;  %v6651_v17 = vadd.f32 %v12958_v12, %v12883_v1 }
 0x945   :  { %v7321_v35 = vmax.f32 %v7289_v14, 0.0  ;;  %v6870_v44 = vadd.f32 %v6812_v59, %v6651_v17 }
 0x946   :  { %v7012_v31 = vpop.f32.mrf.mxu3 }
 0x947   :  { %7417 = vmatmul.f32.gmra.mxu1 %v7321_v35  ;;  %v7064_v30 = vadd.f32 %v7006_v7, %v6870_v44 }
 0x948   :  { %v7188_v58 = vpop.f32.mrf.mxu0 }
 0x949   :  { %v7254_v0 = vadd.f32 %v7188_v58, %v7060_v61 }
 0x94b   :  { %v7290_v47 = vadd.f32 %v12955_v21, %v7254_v0  ;;  %7235 = vmatmul.f32.gmra.mxu0 %v12911_v33  ;;  %v6815_v33 = vpop.f32.mrf.mxu2 }
 0x94d   :  { %v7322_v57 = vmax.f32 %v7290_v47, 0.0  ;;  %v6871_v47 = vadd.f32 %v6815_v33, %v6654_v26 }
 0x94e   :  { %v7015_v0 = vpop.f32.mrf.mxu3 }
 0x94f   :  { %7420 = vmatmul.f32.gmra.mxu1 %v7322_v57  ;;  %v7065_v57 = vadd.f32 %v7009_v19, %v6871_v47 }
 0x950   :  { %v7191_v3 = vpop.f32.mrf.mxu0 }
 0x951   :  { %v7255_v10 = vadd.f32 %v7191_v3, %v7061_v2 }
 0x953   :  { %v7291_v23 = vadd.f32 %v12955_v21, %v7255_v10  ;;  %v6818_v24 = vpop.f32.mrf.mxu2 }
 0x954   :  { %v7376_v34 = vpop.f32.mrf.mxu1 }
 0x955   :  { %v7323_v52 = vmax.f32 %v7291_v23, 0.0  ;;  %v7377_v15 = vadd.f32 %v13066_v18, %v7376_v34  ;;  %v6872_v34 = vadd.f32 %v6818_v24, %v6657_v20 }
 0x956   :  { %v7018_v48 = vpop.f32.mrf.mxu3 }
 0x957   :  { %v7472_v16 = vmax.f32 %v7377_v15, 0.0  ;;  %7423 = vmatmul.f32.gmra.mxu1 %v7323_v52  ;;  %v7066_v52 = vadd.f32 %v7012_v31, %v6872_v34 }
 0x958   :  { %v7194_v6 = vpop.f32.mrf.mxu0 }
 0x959   :  { %v7256_v32 = vadd.f32 %v7194_v6, %v7062_v49  ;;  %7540 = vmatmul.f32.vlgmr.msra.gmra.mxu2 %v7472_v16  ;;  %v6660_v16 = vadd.f32 %v12973_v62, %v12906_v46 }
 0x95b   :  { %v7292_v54 = vadd.f32 %v12955_v21, %v7256_v32  ;;  %v6821_v45 = vpop.f32.mrf.mxu2 }
 0x95c   :  { %v7379_v37 = vpop.f32.mrf.mxu1  ;;  %v6873_v32 = vadd.f32 %v6821_v45, %v6660_v16 }
 0x95d   :  { %v7324_v42 = vmax.f32 %v7292_v54, 0.0  ;;  %v7380_v41 = vadd.f32 %v13066_v18, %v7379_v37 }
 0x95e   :  { %v7021_v37 = vpop.f32.mrf.mxu3  ;;  %v7067_v5 = vadd.f32 %v7015_v0, %v6873_v32 }
 0x95f   :  { %v7473_v4 = vmax.f32 %v7380_v41, 0.0  ;;  %7426 = vmatmul.f32.gmra.mxu1 %v7324_v42 }
 0x960   :  { %v7197_v63 = vpop.f32.mrf.mxu0 }
 0x961   :  { %v7257_v28 = vadd.f32 %v7197_v63, %v7063_v60  ;;  %7543 = vmatmul.f32.gmra.mxu2 %v7473_v4  ;;  %v6663_v60 = vadd.f32 %v12979_v13, %v12914_v25 }
 0x963   :  { %v7293_v39 = vadd.f32 %v12955_v21, %v7257_v28  ;;  %v6824_v10 = vpop.f32.mrf.mxu2 }
 0x964   :  { %v7382_v43 = vpop.f32.mrf.mxu1  ;;  %v6874_v4 = vadd.f32 %v6824_v10, %v6663_v60 }
 0x965   :  { %v7325_v14 = vmax.f32 %v7293_v39, 0.0  ;;  %v7383_v9 = vadd.f32 %v13066_v18, %v7382_v43 }
 0x966   :  { %v7068_v17 = vadd.f32 %v7018_v48, %v6874_v4  ;;  %v7024_v43 = vpop.f32.mrf.mxu3 }
 0x967   :  { %v7474_v35 = vmax.f32 %v7383_v9, 0.0  ;;  %7429 = vmatmul.f32.gmra.mxu1 %v7325_v14  ;;  %v13876_v9 = vld [vmem:[#allocation57_spill] sm:$0xff] }
 0x968   :  { %v7200_v61 = vpop.f32.mrf.mxu0 }
 0x969   :  { %v7258_v58 = vadd.f32 %v7200_v61, %v7064_v30  ;;  %7546 = vmatmul.f32.gmra.mxu2 %v7474_v35  ;;  %v13877_v30 = vld [vmem:[#allocation135_spill] sm:$0xff] }
 0x96a   :  { %v6666_v35 = vadd.f32 %v13877_v30, %v13876_v9 }
 0x96b   :  { %v7294_v1 = vadd.f32 %v12955_v21, %v7258_v58  ;;  %v6827_v38 = vpop.f32.mrf.mxu2 }
 0x96c   :  { %v7385_v12 = vpop.f32.mrf.mxu1  ;;  %v6875_v45 = vadd.f32 %v6827_v38, %v6666_v35 }
 0x96d   :  { %v7326_v55 = vmax.f32 %v7294_v1, 0.0  ;;  %v7386_v59 = vadd.f32 %v13066_v18, %v7385_v12 }
 0x96e   :  { %v7069_v0 = vadd.f32 %v7021_v37, %v6875_v45 }
 0x96f   :  { %v7475_v2 = vmax.f32 %v7386_v59, 0.0  ;;  %7432 = vmatmul.f32.gmra.mxu1 %v7326_v55  ;;  %v7027_v55 = vpop.f32.mrf.mxu3  ;;  %v13878_v59 = vld [vmem:[#allocation21_spill] sm:$0xff] }
 0x970   :  { %v7203_v7 = vpop.f32.mrf.mxu0 }
 0x971   :  { %v7259_v3 = vadd.f32 %v7203_v7, %v7065_v57  ;;  %7549 = vmatmul.f32.gmra.mxu2 %v7475_v2  ;;  %v6669_v57 = vadd.f32 %v12999_v53, %v13878_v59 }
 0x973   :  { %v7295_v23 = vadd.f32 %v12955_v21, %v7259_v3  ;;  %v6830_v28 = vpop.f32.mrf.mxu2 }
 0x974   :  { %v7388_v22 = vpop.f32.mrf.mxu1  ;;  %v6876_v3 = vadd.f32 %v6830_v28, %v6669_v57  ;;  %v13881_v28 = vld [vmem:[#allocation27_spill] sm:$0xff] }
 0x975   :  { %v7327_v11 = vmax.f32 %v7295_v23, 0.0  ;;  %v7389_v33 = vadd.f32 %v13066_v18, %v7388_v22 }
 0x976   :  { %v7070_v23 = vadd.f32 %v7024_v43, %v6876_v3  ;;  %v13883_v3 = vld [vmem:[#allocation46_spill] sm:$0xff] }
 0x977   :  { %v7476_v15 = vmax.f32 %v7389_v33, 0.0  ;;  %7435 = vmatmul.f32.gmra.mxu1 %v7327_v11  ;;  %v13879_v33 = vld [vmem:[#allocation82_spill] sm:$0xff]  ;;  %v7030_v53 = vpop.f32.mrf.mxu3 }
 0x978   :  { %v7206_v19 = vpop.f32.mrf.mxu0 }
 0x979   :  { %v7260_v49 = vadd.f32 %v7206_v19, %v7066_v52  ;;  %7552 = vmatmul.f32.gmra.mxu2 %v7476_v15  ;;  %v6672_v52 = vadd.f32 %v13009_v29, %v13879_v33 }
 0x97b   :  { %v7296_v6 = vadd.f32 %v12955_v21, %v7260_v49  ;;  %v6833_v1 = vpop.f32.mrf.mxu2 }
 0x97c   :  { %v7391_v36 = vpop.f32.mrf.mxu1  ;;  %v6877_v49 = vadd.f32 %v6833_v1, %v6672_v52 }
 0x97d   :  { %v7328_v56 = vmax.f32 %v7296_v6, 0.0  ;;  %v7392_v54 = vadd.f32 %v13066_v18, %v7391_v36 }
 0x97e   :  { %v7071_v38 = vadd.f32 %v7027_v55, %v6877_v49 }
 0x97f   :  { %v7477_v42 = vmax.f32 %v7392_v54, 0.0  ;;  %7438 = vmatmul.f32.gmra.mxu1 %v7328_v56  ;;  %v13880_v54 = vld [vmem:[#allocation58_spill] sm:$0xff] }
 0x980   :  { %v7209_v41 = vpop.f32.mrf.mxu0  ;;  %v6675_v37 = vadd.f32 %v13021_v51, %v13880_v54 }
 0x981   :  { %v7261_v24 = vadd.f32 %v7209_v41, %v7067_v5  ;;  %7555 = vmatmul.f32.gmra.mxu2 %v7477_v42 }
 0x983   :  { %v7297_v46 = vadd.f32 %v12955_v21, %v7261_v24  ;;  %v6836_v11 = vpop.f32.mrf.mxu2 }
 0x984   :  { %v7394_v62 = vpop.f32.mrf.mxu1  ;;  %v6878_v41 = vadd.f32 %v6836_v11, %v6675_v37 }
 0x985   :  { %v7329_v31 = vmax.f32 %v7297_v46, 0.0  ;;  %v7395_v63 = vadd.f32 %v13066_v18, %v7394_v62  ;;  %v7033_v46 = vpop.f32.mrf.mxu3 }
 0x986   :  { %v7072_v62 = vadd.f32 %v7030_v53, %v6878_v41  ;;  %v13884_v53 = vld [vmem:[#allocation111_spill] sm:$0xff] }
 0x987   :  { %v7478_v39 = vmax.f32 %v7395_v63, 0.0  ;;  %7441 = vmatmul.f32.gmra.mxu1 %v7329_v31 }
 0x988   :  { %v7212_v44 = vpop.f32.mrf.mxu0 }
 0x989   :  { %v7262_v14 = vadd.f32 %v7212_v44, %v7068_v17  ;;  %7558 = vmatmul.f32.gmra.mxu2 %v7478_v39  ;;  %v6678_v17 = vadd.f32 %v13032_v8, %v13881_v28 }
 0x98b   :  { %v7298_v25 = vadd.f32 %v12955_v21, %v7262_v14  ;;  %v6839_v29 = vpop.f32.mrf.mxu2 }
 0x98c   :  { %v7397_v13 = vpop.f32.mrf.mxu1  ;;  %v6879_v43 = vadd.f32 %v6839_v29, %v6678_v17 }
 0x98d   :  { %v7330_v61 = vmax.f32 %v7298_v25, 0.0  ;;  %v7398_v58 = vadd.f32 %v13066_v18, %v7397_v13  ;;  %v7036_v25 = vpop.f32.mrf.mxu3 }
 0x98e   :  { %v7073_v30 = vadd.f32 %v7033_v46, %v6879_v43 }
 0x98f   :  { %v7479_v26 = vmax.f32 %v7398_v58, 0.0  ;;  %7444 = vmatmul.f32.gmra.mxu1 %v7330_v61  ;;  %v13882_v61 = vld [vmem:[#allocation83_spill] sm:$0xff] }
 0x990   :  { %v7215_v12 = vpop.f32.mrf.mxu0  ;;  %v6681_v58 = vadd.f32 %v13041_v40, %v13882_v61 }
 0x991   :  { %v7263_v47 = vadd.f32 %v7215_v12, %v7069_v0  ;;  %7561 = vmatmul.f32.gmra.mxu2 %v7479_v26 }
 0x993   :  { %v7299_v2 = vadd.f32 %v12955_v21, %v7263_v47  ;;  %v6842_v9 = vpop.f32.mrf.mxu2 }
 0x994   :  { %v7400_v7 = vpop.f32.mrf.mxu1  ;;  %v6880_v26 = vadd.f32 %v6842_v9, %v6681_v58 }
 0x995   :  { %v7331_v10 = vmax.f32 %v7299_v2, 0.0  ;;  %v7401_v20 = vadd.f32 %v13066_v18, %v7400_v7  ;;  %v7039_v7 = vpop.f32.mrf.mxu3 }
 0x996   :  { %v7074_v47 = vadd.f32 %v7036_v25, %v6880_v26 }
 0x997   :  { %v7480_v48 = vmax.f32 %v7401_v20, 0.0  ;;  %7447 = vmatmul.f32.gmra.mxu1 %v7331_v10  ;;  %v6684_v10 = vadd.f32 %v13049_v27, %v13883_v3 }
 0x998   :  { %v7218_v22 = vpop.f32.mrf.mxu0 }
 0x999   :  { %v7264_v34 = vadd.f32 %v7218_v22, %v7070_v23  ;;  %7564 = vmatmul.f32.gmra.mxu2 %v7480_v48 }
 0x99b   :  { %v7300_v15 = vadd.f32 %v12955_v21, %v7264_v34  ;;  %v6845_v59 = vpop.f32.mrf.mxu2 }
 0x99c   :  { %v7403_v19 = vpop.f32.mrf.mxu1  ;;  %v6881_v23 = vadd.f32 %v6845_v59, %v6684_v10 }
 0x99d   :  { %v7332_v16 = vmax.f32 %v7300_v15, 0.0  ;;  %v7404_v6 = vadd.f32 %v13066_v18, %v7403_v19  ;;  %v6687_v19 = vadd.f32 %v13061_v50, %v13884_v53  ;;  %v7042_v27 = vpop.f32.mrf.mxu3 }
 0x99e   :  { %v7075_v34 = vadd.f32 %v7039_v7, %v6881_v23 }
 0x99f   :  { %v7481_v36 = vmax.f32 %v7404_v6, 0.0  ;;  %7450 = vmatmul.f32.gmra.mxu1 %v7332_v16 }
 0x9a0   :  { %v7221_v32 = vpop.f32.mrf.mxu0 }
 0x9a1   :  { %v7265_v56 = vadd.f32 %v7221_v32, %v7071_v38  ;;  %7567 = vmatmul.f32.gmra.mxu2 %v7481_v36 }
 0x9a3   :  { %v7301_v5 = vadd.f32 %v12955_v21, %v7265_v56  ;;  %v6848_v15 = vpop.f32.mrf.mxu2 }
 0x9a4   :  { %v7406_v42 = vpop.f32.mrf.mxu1  ;;  %v6882_v6 = vadd.f32 %v6848_v15, %v6687_v19 }
 0x9a5   :  { %v7333_v24 = vmax.f32 %v7301_v5, 0.0  ;;  %v7407_v60 = vadd.f32 %v13066_v18, %v7406_v42 }
 0x9a6   :  { %v7076_v32 = vadd.f32 %v7042_v27, %v6882_v6 }
 0x9a7   :  { %v7482_v4 = vmax.f32 %v7407_v60, 0.0  ;;  %7453 = vmatmul.f32.gmra.mxu1 %v7333_v24 }
 0x9a8   :  { %v7224_v31 = vpop.f32.mrf.mxu0 }
 0x9a9   :  { %v7266_v63 = vadd.f32 %v7224_v31, %v7072_v62  ;;  %7570 = vmatmul.f32.gmra.mxu2 %v7482_v4 }
 0x9ab   :  { %v7302_v51 = vadd.f32 %v12955_v21, %v7266_v63 }
 0x9ac   :  { %v7409_v39 = vpop.f32.mrf.mxu1 }
 0x9ad   :  { %v7334_v44 = vmax.f32 %v7302_v51, 0.0  ;;  %v7410_v14 = vadd.f32 %v13066_v18, %v7409_v39 }
 0x9af   :  { %v7483_v35 = vmax.f32 %v7410_v14, 0.0  ;;  %7456 = vmatmul.f32.gmra.mxu1 %v7334_v44 }
 0x9b0   :  { %v7227_v13 = vpop.f32.mrf.mxu0 }
 0x9b1   :  { %v7267_v45 = vadd.f32 %v7227_v13, %v7073_v30  ;;  %7573 = vmatmul.f32.gmra.mxu2 %v7483_v35 }
 0x9b3   :  { %v7303_v8 = vadd.f32 %v12955_v21, %v7267_v45 }
 0x9b4   :  { %v7412_v0 = vpop.f32.mrf.mxu1 }
 0x9b5   :  { %v7335_v1 = vmax.f32 %v7303_v8, 0.0  ;;  %v7413_v12 = vadd.f32 %v13066_v18, %v7412_v0 }
 0x9b7   :  { %v7484_v55 = vmax.f32 %v7413_v12, 0.0  ;;  %7459 = vmatmul.f32.gmra.mxu1 %v7335_v1 }
 0x9b8   :  { %v7230_v57 = vpop.f32.mrf.mxu0 }
 0x9b9   :  { %v7268_v2 = vadd.f32 %v7230_v57, %v7074_v47  ;;  %7576 = vmatmul.f32.gmra.mxu2 %v7484_v55 }
 0x9bb   :  { %v7304_v40 = vadd.f32 %v12955_v21, %v7268_v2 }
 0x9bc   :  { %v7415_v20 = vpop.f32.mrf.mxu1 }
 0x9bd   :  { %v7336_v48 = vmax.f32 %v7304_v40, 0.0  ;;  %v7416_v22 = vadd.f32 %v13066_v18, %v7415_v20 }
 0x9bf   :  { %v7485_v11 = vmax.f32 %v7416_v22, 0.0  ;;  %7462 = vmatmul.f32.gmra.mxu1 %v7336_v48 }
 0x9c0   :  { %v7233_v33 = vpop.f32.mrf.mxu0 }
 0x9c1   :  { %v7269_v52 = vadd.f32 %v7233_v33, %v7075_v34  ;;  %7579 = vmatmul.f32.gmra.mxu2 %v7485_v11 }
 0x9c3   :  { %v7305_v49 = vadd.f32 %v12955_v21, %v7269_v52 }
 0x9c4   :  { %v7418_v16 = vpop.f32.mrf.mxu1 }
 0x9c5   :  { %v7337_v38 = vmax.f32 %v7305_v49, 0.0  ;;  %v7419_v36 = vadd.f32 %v13066_v18, %v7418_v16 }
 0x9c7   :  { %v7486_v56 = vmax.f32 %v7419_v36, 0.0  ;;  %7465 = vmatmul.f32.gmra.mxu1 %v7337_v38 }
 0x9c8   :  { %v7236_v54 = vpop.f32.mrf.mxu0 }
 0x9c9   :  { %v7270_v37 = vadd.f32 %v7236_v54, %v7076_v32  ;;  %7582 = vmatmul.f32.gmra.mxu2 %v7486_v56 }
 0x9cb   :  { %v7306_v5 = vadd.f32 %v12955_v21, %v7270_v37 }
 0x9cc   :  { %v7421_v29 = vpop.f32.mrf.mxu1 }
 0x9cd   :  { %v7338_v42 = vmax.f32 %v7306_v5, 0.0  ;;  %v7422_v50 = vadd.f32 %v13066_v18, %v7421_v29 }
 0x9cf   :  { %v7487_v41 = vmax.f32 %v7422_v50, 0.0  ;;  %7468 = vmatmul.f32.gmra.mxu1 %v7338_v42 }
 0x9d1   :  { %7585 = vmatmul.f32.gmra.mxu2 %v7487_v41 }
 0x9d4   :  { %v7424_v24 = vpop.f32.mrf.mxu1 }
 0x9d5   :  { %v7425_v60 = vadd.f32 %v13066_v18, %v7424_v24  ;;  %v13163_v24 = vld [vmem:[%s13228_s12] ss:$0 sm:$0xff] }
 0x9d7   :  { %v7488_v46 = vmax.f32 %v7425_v60, 0.0 }
 0x9d9   :  { %7588 = vmatmul.f32.gmra.mxu2 %v7488_v46 }
 0x9dc   :  { %v7427_v62 = vpop.f32.mrf.mxu1  ;;  %v13131_v4 = vpop.f32.mrf.mxu2 }
 0x9dd   :  { %v7428_v31 = vadd.f32 %v13066_v18, %v7427_v62 }
 0x9df   :  { %v7489_v63 = vmax.f32 %v7428_v31, 0.0 }
 0x9e1   :  { %7591 = vmatmul.f32.gmra.mxu2 %v7489_v63 }
 0x9e4   :  { %v7430_v21 = vpop.f32.mrf.mxu1  ;;  %v13134_v28 = vpop.f32.mrf.mxu2 }
 0x9e5   :  { %v7431_v17 = vadd.f32 %v13066_v18, %v7430_v21 }
 0x9e7   :  { %v7490_v51 = vmax.f32 %v7431_v17, 0.0 }
 0x9e9   :  { %7594 = vmatmul.f32.gmra.mxu2 %v7490_v51 }
 0x9ec   :  { %v7433_v39 = vpop.f32.mrf.mxu1  ;;  %v13137_v43 = vpop.f32.mrf.mxu2 }
 0x9ed   :  { %v7434_v44 = vadd.f32 %v13066_v18, %v7433_v39 }
 0x9ef   :  { %v7491_v14 = vmax.f32 %v7434_v44, 0.0 }
 0x9f1   :  { %7597 = vmatmul.f32.gmra.mxu2 %v7491_v14 }
 0x9f4   :  { %v7436_v9 = vpop.f32.mrf.mxu1  ;;  %v13140_v30 = vpop.f32.mrf.mxu2 }
 0x9f5   :  { %v7437_v35 = vadd.f32 %v13066_v18, %v7436_v9 }
 0x9f7   :  { %v7492_v25 = vmax.f32 %v7437_v35, 0.0 }
 0x9f9   :  { %7600 = vmatmul.f32.gmra.mxu2 %v7492_v25 }
 0x9fc   :  { %v7439_v13 = vpop.f32.mrf.mxu1  ;;  %v13143_v45 = vpop.f32.mrf.mxu2 }
 0x9fd   :  { %v7440_v61 = vadd.f32 %v13066_v18, %v7439_v13  ;;  %v7554_v25 = vadd.f32 %v13163_v24, %v13143_v45 }
 0x9ff   :  { %v7493_v58 = vmax.f32 %v7440_v61, 0.0  ;;  %v7551_v61 = vadd.f32 %v13163_v24, %v13140_v30 }
 0xa01   :  { %7603 = vmatmul.f32.gmra.mxu2 %v7493_v58  ;;  %v7548_v58 = vadd.f32 %v13163_v24, %v13137_v43 }
 0xa04   :  { %v7442_v8 = vpop.f32.mrf.mxu1  ;;  %v13146_v0 = vpop.f32.mrf.mxu2 }
 0xa05   :  { %v7443_v26 = vadd.f32 %v13066_v18, %v7442_v8  ;;  %v7557_v35 = vadd.f32 %v13163_v24, %v13146_v0  ;;  %v7545_v8 = vadd.f32 %v13163_v24, %v13134_v28  ;;  %v7542_v0 = vadd.f32 %v13163_v24, %v13131_v4  ;;  %v7637_v28 = vld [vmem:[%s13229_s13] sm:$0xff] }
 0xa07   :  { %v7494_v1 = vmax.f32 %v7443_v26, 0.0 }
 0xa09   :  { %7606 = vmatmul.f32.gmra.mxu2 %v7494_v1 }
 0xa0c   :  { %v7445_v12 = vpop.f32.mrf.mxu1  ;;  %v13149_v47 = vpop.f32.mrf.mxu2 }
 0xa0d   :  { %v7446_v55 = vadd.f32 %v13066_v18, %v7445_v12  ;;  %v7560_v9 = vadd.f32 %v13163_v24, %v13149_v47 }
 0xa0f   :  { %v7495_v59 = vmax.f32 %v7446_v55, 0.0 }
 0xa11   :  { %7609 = vmatmul.f32.gmra.mxu2 %v7495_v59 }
 0xa14   :  { %v7448_v57 = vpop.f32.mrf.mxu1  ;;  %v7562_v2 = vpop.f32.mrf.mxu2 }
 0xa15   :  { %v7449_v7 = vadd.f32 %v13066_v18, %v7448_v57  ;;  %v7563_v14 = vadd.f32 %v13163_v24, %v7562_v2 }
 0xa17   :  { %v7496_v3 = vmax.f32 %v7449_v7, 0.0 }
 0xa19   :  { %7612 = vmatmul.f32.gmra.mxu2 %v7496_v3 }
 0xa1c   :  { %v7451_v10 = vpop.f32.mrf.mxu1  ;;  %v7565_v40 = vpop.f32.mrf.mxu2 }
 0xa1d   :  { %v7452_v20 = vadd.f32 %v13066_v18, %v7451_v10  ;;  %v7566_v39 = vadd.f32 %v13163_v24, %v7565_v40 }
 0xa1f   :  { %v7497_v23 = vmax.f32 %v7452_v20, 0.0 }
 0xa21   :  { %7615 = vmatmul.f32.gmra.mxu2 %v7497_v23 }
 0xa24   :  { %v7454_v48 = vpop.f32.mrf.mxu1  ;;  %v7568_v22 = vpop.f32.mrf.mxu2 }
 0xa25   :  { %v7455_v34 = vadd.f32 %v13066_v18, %v7454_v48  ;;  %v7569_v51 = vadd.f32 %v13163_v24, %v7568_v22 }
 0xa27   :  { %v7498_v11 = vmax.f32 %v7455_v34, 0.0 }
 0xa29   :  { %7618 = vmatmul.f32.gmra.mxu2 %v7498_v11 }
 0xa2c   :  { %v7457_v33 = vpop.f32.mrf.mxu1  ;;  %v7571_v52 = vpop.f32.mrf.mxu2 }
 0xa2d   :  { %v7458_v15 = vadd.f32 %v13066_v18, %v7457_v33  ;;  %v7572_v17 = vadd.f32 %v13163_v24, %v7571_v52 }
 0xa2f   :  { %v7499_v53 = vmax.f32 %v7458_v15, 0.0 }
 0xa31   :  { %7621 = vmatmul.f32.gmra.mxu2 %v7499_v53 }
 0xa34   :  { %v7460_v19 = vpop.f32.mrf.mxu1  ;;  %v7574_v49 = vpop.f32.mrf.mxu2 }
 0xa35   :  { %v7461_v27 = vadd.f32 %v13066_v18, %v7460_v19  ;;  %v7575_v21 = vadd.f32 %v13163_v24, %v7574_v49 }
 0xa37   :  { %v7500_v16 = vmax.f32 %v7461_v27, 0.0 }
 0xa39   :  { %7624 = vmatmul.f32.gmra.mxu2 %v7500_v16  ;;  %v7638_v16 = vld [vmem:[%s13229_s13 + $0x8] sm:$0xff] }
 0xa3c   :  { %v7463_v6 = vpop.f32.mrf.mxu1  ;;  %v7577_v38 = vpop.f32.mrf.mxu2 }
 0xa3d   :  { %v7464_v36 = vadd.f32 %v13066_v18, %v7463_v6  ;;  %v7578_v63 = vadd.f32 %v13163_v24, %v7577_v38 }
 0xa3f   :  { %v7501_v32 = vmax.f32 %v7464_v36, 0.0 }
 0xa41   :  { %7627 = vmatmul.f32.gmra.mxu2 %v7501_v32 }
 0xa44   :  { %v7466_v56 = vpop.f32.mrf.mxu1  ;;  %v7580_v54 = vpop.f32.mrf.mxu2 }
 0xa45   :  { %v7467_v37 = vadd.f32 %v13066_v18, %v7466_v56  ;;  %v7581_v31 = vadd.f32 %v13163_v24, %v7580_v54 }
 0xa47   :  { %v7502_v5 = vmax.f32 %v7467_v37, 0.0 }
 0xa49   :  { %7630 = vmatmul.f32.gmra.mxu2 %v7502_v5 }
 0xa4c   :  { %v7469_v29 = vpop.f32.mrf.mxu1  ;;  %v7583_v42 = vpop.f32.mrf.mxu2 }
 0xa4d   :  { %v7470_v50 = vadd.f32 %v13066_v18, %v7469_v29  ;;  %v7584_v62 = vadd.f32 %v13163_v24, %v7583_v42 }
 0xa4f   :  { %v7503_v41 = vmax.f32 %v7470_v50, 0.0 }
 0xa51   :  { %7633 = vmatmul.f32.gmra.mxu2 %v7503_v41 }
 0xa54   :  { %v7586_v60 = vpop.f32.mrf.mxu2 }
 0xa55   :  { %v7587_v46 = vadd.f32 %v13163_v24, %v7586_v60 }
 0xa57   :  { %7639 = vmatpush.msrb.mxu3 %v7587_v46 }
 0xa59   :  { %7640 = vmatpush.msrb.mxu3 %v7584_v62 }
 0xa5b   :  { %7641 = vmatpush.msrb.mxu3 %v7581_v31 }
 0xa5c   :  { %v13169_v18 = vpop.f32.mrf.mxu2 }
 0xa5d   :  { %7642 = vmatpush.msrb.mxu3 %v7578_v63  ;;  %v7590_v27 = vadd.f32 %v13163_v24, %v13169_v18 }
 0xa5f   :  { %7643 = vmatpush.msrb.mxu3 %v7575_v21 }
 0xa61   :  { %7644 = vmatpush.msrb.mxu3 %v7572_v17 }
 0xa63   :  { %7645 = vmatpush.msrb.mxu3 %v7569_v51 }
 0xa64   :  { %v7592_v44 = vpop.f32.mrf.mxu2 }
 0xa65   :  { %7646 = vmatpush.msrb.mxu3 %v7566_v39  ;;  %v7593_v49 = vadd.f32 %v13163_v24, %v7592_v44 }
 0xa67   :  { %7647 = vmatpush.msrb.mxu3 %v7563_v14 }
 0xa69   :  { %7648 = vmatpush.msrb.mxu3 %v7560_v9 }
 0xa6b   :  { %7649 = vmatpush.msrb.mxu3 %v7557_v35 }
 0xa6c   :  { %v7595_v13 = vpop.f32.mrf.mxu2 }
 0xa6d   :  { %7650 = vmatpush.msrb.mxu3 %v7554_v25  ;;  %v7596_v19 = vadd.f32 %v13163_v24, %v7595_v13 }
 0xa6f   :  { %7651 = vmatpush.msrb.mxu3 %v7551_v61 }
 0xa71   :  { %7652 = vmatpush.msrb.mxu3 %v7548_v58 }
 0xa73   :  { %7653 = vmatpush.msrb.mxu3 %v7545_v8 }
 0xa74   :  { %v7598_v26 = vpop.f32.mrf.mxu2 }
 0xa75   :  { %7654 = vmatpush.msrb.mxu3 %v7542_v0  ;;  %v7599_v53 = vadd.f32 %v13163_v24, %v7598_v26 }
 0xa76   :  { %7655 = vmatmul.f32.vlgmr.msrb.gmra.mxu3 %v7637_v28 }
 0xa7c   :  { %v7601_v45 = vpop.f32.mrf.mxu2 }
 0xa7d   :  { %v7602_v15 = vadd.f32 %v13163_v24, %v7601_v45 }
 0xa84   :  { %v7604_v1 = vpop.f32.mrf.mxu2 }
 0xa85   :  { %v7605_v52 = vadd.f32 %v13163_v24, %v7604_v1 }
 0xa8c   :  { %v7607_v12 = vpop.f32.mrf.mxu2 }
 0xa8d   :  { %v7608_v33 = vadd.f32 %v13163_v24, %v7607_v12 }
 0xa94   :  { %v7610_v47 = vpop.f32.mrf.mxu2 }
 0xa95   :  { %v7611_v11 = vadd.f32 %v13163_v24, %v7610_v47 }
 0xa9c   :  { %v7613_v30 = vpop.f32.mrf.mxu2 }
 0xa9d   :  { %v7614_v34 = vadd.f32 %v13163_v24, %v7613_v30 }
 0xaa4   :  { %v7616_v55 = vpop.f32.mrf.mxu2 }
 0xaa5   :  { %v7617_v22 = vadd.f32 %v13163_v24, %v7616_v55 }
 0xaac   :  { %v7619_v59 = vpop.f32.mrf.mxu2 }
 0xaad   :  { %v7620_v48 = vadd.f32 %v13163_v24, %v7619_v59 }
 0xab4   :  { %v7622_v57 = vpop.f32.mrf.mxu2 }
 0xab5   :  { %v7623_v23 = vadd.f32 %v13163_v24, %v7622_v57 }
 0xabc   :  { %v7625_v43 = vpop.f32.mrf.mxu2 }
 0xabd   :  { %v7626_v20 = vadd.f32 %v13163_v24, %v7625_v43 }
 0xac4   :  { %v7628_v2 = vpop.f32.mrf.mxu2 }
 0xac5   :  { %v7629_v40 = vadd.f32 %v13163_v24, %v7628_v2 }
 0xacc   :  { %v7631_v7 = vpop.f32.mrf.mxu2 }
 0xacd   :  { %v7632_v10 = vadd.f32 %v13163_v24, %v7631_v7 }
 0xad4   :  { %v7634_v4 = vpop.f32.mrf.mxu2 }
 0xad5   :  { %v7635_v3 = vadd.f32 %v13163_v24, %v7634_v4 }
 0xad7   :  { %7659 = vmatpush.msra.mxu3 %v7635_v3 }
 0xad9   :  { %7660 = vmatpush.msra.mxu3 %v7632_v10 }
 0xadb   :  { %7661 = vmatpush.msra.mxu3 %v7629_v40 }
 0xadd   :  { %7662 = vmatpush.msra.mxu3 %v7626_v20 }
 0xadf   :  { %7663 = vmatpush.msra.mxu3 %v7623_v23 }
 0xae1   :  { %7664 = vmatpush.msra.mxu3 %v7620_v48 }
 0xae3   :  { %7665 = vmatpush.msra.mxu3 %v7617_v22 }
 0xae5   :  { %7666 = vmatpush.msra.mxu3 %v7614_v34 }
 0xae7   :  { %7667 = vmatpush.msra.mxu3 %v7611_v11 }
 0xae9   :  { %7668 = vmatpush.msra.mxu3 %v7608_v33 }
 0xaeb   :  { %7669 = vmatpush.msra.mxu3 %v7605_v52 }
 0xaed   :  { %7670 = vmatpush.msra.mxu3 %v7602_v15 }
 0xaef   :  { %7671 = vmatpush.msra.mxu3 %v7599_v53 }
 0xaf1   :  { %7672 = vmatpush.msra.mxu3 %v7596_v19 }
 0xaf3   :  { %7673 = vmatpush.msra.mxu3 %v7593_v49 }
 0xaf5   :  { %7674 = vmatpush.msra.mxu3 %v7590_v27 }
 0xaf6   :  { %7675 = vmatmul.f32.vlgmr.msra.gmra.mxu3 %v7638_v16 }
 0xaf9   :  { %v7656_v6 = vpop.f32.mrf.mxu3 }
 0xb79   :  { %v7676_v38 = vpop.f32.mrf.mxu3 }
 0xb7a   :  { %v7677_v36 = vadd.f32 %v7676_v38, %v7656_v6 }
 0xb7c   :  { %7679 = vst [vmem:[%s13230_s14] sm:$0xff] %v7677_v36 }
 0xb7d   :  { %7684 = vsyncpa [#allocation8], 1 }
 0xb7e   :  { %7685 = vsyncpa [#allocation10], 1 }
 0xb7f   :  { %7686 = vsyncpa [#allocation13], 1 }
 0xb80   :  { %7687 = vsyncpa [#allocation16], 1 }

</bundles_post_ra>
